<compile_context>
chip_gen: v6e
topology: v6e:2x2x1
jax: 0.10.0
libtpu: 0.0.40
codegen_flags: <defaults>
</compile_context>

<pallas_src>
import jax
import jax.numpy as jnp
from jax.experimental import pallas as pl
from jax.experimental.pallas import tpu as pltpu

_BN_EPS = 1e-5
_VMEM_LIMIT = 32 * 1024 * 1024     # tiny working set; safe on v5e/v6e/v7x
_C = 9                             # channels of self.conv
_CB = 3                            # channel block: 3 accs + best/idx live
_RM = 8                            # sublane margin rows in scratch (>=1, aligned)

_VMEM = pl.BlockSpec(memory_space=pltpu.MemorySpace.VMEM)
_SMEM = pl.BlockSpec(memory_space=pltpu.MemorySpace.SMEM)


def _round_up(v, m):
    return (v + m - 1) // m * m


def _geom(N, D, H, W):
    R = N * (D + 2)                # real packed rows  (n, d incl. depth halo)
    L = (H + 2) * (W + 2)          # real packed lanes (h, w incl. halo)
    RP = _round_up(R, 8)           # sublane-dense rows -> unmasked vld/vst
    LP = _round_up(L, 128)         # lane-dense lanes   -> unmasked vld/vst
    SR = _RM + RP + _RM            # row-shift scratch rows (margin bands)
    return R, L, RP, LP, SR


# ----------------------------------------------------------------------------
# fused whole-network kernel
# ----------------------------------------------------------------------------
def _make_lsnet_kernel(N, D, H, W):
    R, L, RP, LP, SR = _geom(N, D, H, W)
    WPL = W + 2
    inv_cnt = 1.0 / float(N * D * H * W)

    assert _RM >= 1                # depth (+-1 sublane) shifts need the margin
    assert L <= LP                 # lane rolls may wrap only into masked lanes
    # Conv / pool lane shifts are at most WPL+1; interior lanes start at WPL+1
    # and end at L-WPL-2, so shifted reads never wrap for interior outputs.

    def lane_shift(x, dl):
        # y[r, l] = x[r, (l + dl) mod LP]; wrap-around lands only on masked
        # (halo / padding) output lanes.  XLU op -> leaves VALU slots free.
        if dl == 0:
            return x
        return pltpu.roll(x, (-dl) % LP, axis=1)

    def interior_mask():
        # Real (non-halo, non-padding) voxels; iota compares only, unrolled
        # over the small static N / H (no vector int div/mod).  Built once.
        r = jax.lax.broadcasted_iota(jnp.int32, (RP, LP), 0)
        l = jax.lax.broadcasted_iota(jnp.int32, (RP, LP), 1)
        row_ok = jnp.zeros((RP, LP), jnp.bool_)
        for n in range(N):
            lo = n * (D + 2) + 1
            row_ok = row_ok | ((r >= lo) & (r <= lo + D - 1))
        lane_ok = jnp.zeros((RP, LP), jnp.bool_)
        for h in range(1, H + 1):
            lo = h * WPL + 1
            lane_ok = lane_ok | ((l >= lo) & (l <= lo + W - 1))
        return row_ok & lane_ok

    def kernel(x_ref, inp_ref, w_ref, b_ref, g_ref, bt_ref, w1_ref,
               o_ref, zs_ref, ps_ref):
        inside = interior_mask()

        # Zero only the margin bands, once per call (interior rows are always
        # overwritten by the staging stores below).
        zero_band = jnp.zeros((_RM, LP), jnp.float32)
        zs_ref[0:_RM, :] = zero_band
        zs_ref[_RM + RP:SR, :] = zero_band
        ps_ref[0:_RM, :] = zero_band
        ps_ref[_RM + RP:SR, :] = zero_band

        def maxpool3(y):
            # MaxPool3d(kernel=3, stride=1, pad=1), separable W -> H -> D
            # (6 maxes/voxel).  W/H neighbours via lane rolls; D neighbours via
            # +-1 sublane ref slices of ps_ref (its margin rows are only read
            # for masked output rows, so their value is irrelevant).
            p = jnp.where(inside, y, jnp.float32(-jnp.inf))
            p = jnp.maximum(p, jnp.maximum(lane_shift(p, 1), lane_shift(p, -1)))
            p = jnp.maximum(p, jnp.maximum(lane_shift(p, WPL),
                                           lane_shift(p, -WPL)))
            ps_ref[_RM:_RM + RP, :] = p
            return jnp.maximum(
                p, jnp.maximum(ps_ref[_RM - 1:_RM - 1 + RP, :],
                               ps_ref[_RM + 1:_RM + 1 + RP, :]))

        def stage(z, pre_tanh):
            # Fused: [tanh] -> Conv3d(1->9,k3,p1) -> BN(train batch stats) ->
            # Tanh -> MaxPool3d(3,1,1) -> channel argmin (first-index ties).
            if pre_tanh:
                z = jnp.tanh(z)              # tanh(0) == 0: halo stays zero
            zs_ref[_RM:_RM + RP, :] = z      # stage once; taps read ref slices
            best = None
            idx = None
            for c0 in range(0, _C, _CB):     # channel blocking: no vreg spills
                chans = range(c0, min(c0 + _CB, _C))
                accs = [jnp.full((RP, LP), b_ref[c], jnp.float32)
                        for c in chans]
                for kd in (-1, 0, 1):
                    # +-1 depth shift = (unaligned) sublane slice load; the
                    # zeroed margin row supplies the depth zero-padding.
                    base = zs_ref[_RM + kd:_RM + kd + RP, :]
                    for kh in (-1, 0, 1):
                        for kw in (-1, 0, 1):
                            s = lane_shift(base, kh * WPL + kw)
                            t = (kd + 1) * 9 + (kh + 1) * 3 + (kw + 1)
                            for j, c in enumerate(chans):
                                accs[j] = accs[j] + w_ref[c * 27 + t] * s
                for j, c in enumerate(chans):
                    y = accs[j]
                    # one-pass batch statistics: var = E[y^2] - mean^2
                    ym = jnp.where(inside, y, 0.0)
                    s1 = jnp.sum(ym)
                    s2 = jnp.sum(ym * ym)
                    mean = s1 * inv_cnt
                    var = s2 * inv_cnt - mean * mean
                    yn = jnp.tanh((y - mean) * jax.lax.rsqrt(var + _BN_EPS)
                                  * g_ref[c] + bt_ref[c])
                    p = maxpool3(yn)
                    if c == 0:
                        best = p
                        idx = jnp.zeros((RP, LP), jnp.float32)
                    else:
                        lt = p < best                 # first-index tie break
                        idx = jnp.where(lt, jnp.float32(c), idx)
                        best = jnp.where(lt, p, best)
            return jnp.where(inside, idx, 0.0)        # halo stays exactly zero

        # ---- stage 1: tanh -> conv/BN/tanh -> maxpool -> channel argmin ----
        _z1 = stage(x_ref[...], pre_tanh=True)

        # ---- stages 2 & 3: conv -> (-1 (9,9,1,1,1) filter) -> maxpool ->
        # channel argmax.  After the filter every channel equals -sum(channels)
        # so all channels are identical; MaxPool preserves the equality and
        # torch.max(., 1)[1] (first-index ties) is identically 0 for ANY
        # weights/input -> both stages fold to exact all-zeros tensors.

        # ---- stage 4 on that exact zero input: conv(0) = bias_c (spatially
        # constant per channel) -> BN of a constant field -> beta_c -> tanh ->
        # maxpool of a constant = the constant -> the channel argmin collapses
        # to a per-channel constant comparison (first-index ties).
        best4 = None
        idx4 = None
        for c in range(_C):
            pc = jnp.tanh(jnp.full((RP, LP), bt_ref[c], jnp.float32))
            if c == 0:
                best4 = pc
                idx4 = jnp.zeros((RP, LP), jnp.float32)
            else:
                lt = pc < best4
                idx4 = jnp.where(lt, jnp.float32(c), idx4)
                best4 = jnp.where(lt, pc, best4)
        z4 = jnp.where(inside, idx4, 0.0)

        # ---- stage 5: full fused stage on the constant-index field ----------
        _z5 = stage(z4, pre_tanh=False)

        # ---- stage 6: same -1-filter pattern as stages 2/3 -> exact zeros ---
        z6 = jnp.zeros((RP, LP), jnp.float32)

        # ---- Softshrink(0.5)(0) == 0 -> torch.sum(v) == 0 -> the PyTorch
        # if/elif falls through to `x = x`, so the conv3d_1(+filter)+maxpool
        # branches are dead and dropped.  (The elif branch would also be an
        # invalid (9,9,1,1,1) conv on a 1-channel tensor in PyTorch.)
        zf = z6

        # ---- fused tail: ReLU/Heaviside masks -> Chan-Vese means c1/c2 ->
        # (input - c)^2 maps -> conv3d_1 -> tanh.  conv3d_1(aout)-conv3d_1(ain)
        # == conv3d_1(aout - ain): linear conv, bias cancels.
        inp = inp_ref[...]
        u = jnp.maximum(zf, 0.0)                       # ReLU
        hphi = jnp.where((u > 0.0) & inside, 1.0, 0.0)
        hinv = jnp.where(inside, 1.0 - hphi, 0.0)
        c1 = jnp.sum(inp * hphi) / (jnp.sum(hphi) + 1e-8)
        c2 = jnp.sum(inp * hinv) / (jnp.sum(hinv) + 1e-8)
        diff = jnp.where(inside, (inp - c2) ** 2 - (inp - c1) ** 2, 0.0)

        zs_ref[_RM:_RM + RP, :] = diff
        out = jnp.zeros((RP, LP), jnp.float32)
        for kd in (-1, 0, 1):
            base = zs_ref[_RM + kd:_RM + kd + RP, :]
            for kh in (-1, 0, 1):
                for kw in (-1, 0, 1):
                    t = (kd + 1) * 9 + (kh + 1) * 3 + (kw + 1)
                    out = out + w1_ref[t] * lane_shift(base, kh * WPL + kw)
        o_ref[...] = jnp.where(inside, jnp.tanh(out), 0.0)

    return kernel


# ----------------------------------------------------------------------------
# packing glue (runs once at the boundaries, not per stage)
# ----------------------------------------------------------------------------
def _pack(vol, RP, LP):
    # (N, D, H, W) -> padded-flat (RP, LP), zero-filled to tile-aligned shape.
    N, D, H, W = vol.shape
    xp = jnp.pad(vol, ((0, 0), (1, 1), (1, 1), (1, 1)))
    flat = xp.reshape(N * (D + 2), (H + 2) * (W + 2))
    return jnp.pad(flat, ((0, RP - flat.shape[0]), (0, LP - flat.shape[1])))


def _unpack(pf, N, D, H, W):
    R = N * (D + 2)
    L = (H + 2) * (W + 2)
    return pf[:R, :L].reshape(N, D + 2, H + 2, W + 2)[:, 1:-1, 1:-1, 1:-1]


# ----------------------------------------------------------------------------
# parameters (deterministic, PyTorch-like init shapes)
# ----------------------------------------------------------------------------
def init_params(key):
    ks = jax.random.split(key, 4)
    bound = 1.0 / jnp.sqrt(27.0)           # Conv3d(1, C, 3) fan_in = 27
    return {
        "conv_w": jax.random.uniform(ks[0], (_C * 27,), jnp.float32, -bound, bound),
        "conv_b": jax.random.uniform(ks[1], (_C,), jnp.float32, -bound, bound),
        "conv_gamma": jnp.ones((_C,), jnp.float32),    # BatchNorm3d default init
        "conv_beta": jnp.zeros((_C,), jnp.float32),
        "c1_w": jax.random.uniform(ks[2], (27,), jnp.float32, -bound, bound),
        # conv3d_1 bias: cancels in the fused tail and its only other use is
        # the dead softshrink branch, so the kernel never reads it.
        "c1_b": jax.random.uniform(ks[3], (1,), jnp.float32, -bound, bound),
    }


# ----------------------------------------------------------------------------
# forward pass (mirrors LSNet.forward) -- ONE pallas_call
# ----------------------------------------------------------------------------
def lsnet_forward(params, x, inp):
    # x, inp: (N, 1, D, H, W) float32 (PyTorch NCDHW layout)
    N, _, D, H, W = x.shape
    _, _, RP, LP, SR = _geom(N, D, H, W)

    x_pf = _pack(x[:, 0].astype(jnp.float32), RP, LP)
    inp_pf = _pack(inp[:, 0].astype(jnp.float32), RP, LP)

    out_pf = pl.pallas_call(
        _make_lsnet_kernel(N, D, H, W),
        out_shape=jax.ShapeDtypeStruct((RP, LP), jnp.float32),
        in_specs=[_VMEM, _VMEM, _SMEM, _SMEM, _SMEM, _SMEM, _SMEM],
        out_specs=_VMEM,
        scratch_shapes=[pltpu.VMEM((SR, LP), jnp.float32),   # conv row shifts
                        pltpu.VMEM((SR, LP), jnp.float32)],  # pool D-pass
        compiler_params=pltpu.CompilerParams(vmem_limit_bytes=_VMEM_LIMIT),
    )(x_pf, inp_pf, params["conv_w"], params["conv_b"],
      params["conv_gamma"], params["conv_beta"], params["c1_w"])

    out = _unpack(out_pf, N, D, H, W)
    return out[:, None]                                # (N, 1, D, H, W)


if __name__ == "__main__":
    key = jax.random.PRNGKey(0)
    kp, kx, ki = jax.random.split(key, 3)
    params = init_params(kp)

    N, D, H, W = 2, 8, 16, 16
    x = jax.random.normal(kx, (N, 1, D, H, W), jnp.float32)
    inp = jax.random.normal(ki, (N, 1, D, H, W), jnp.float32)

    fwd = jax.jit(lsnet_forward)
    out = jax.block_until_ready(fwd(params, x, inp))

    assert out.shape == (N, 1, D, H, W)
    assert bool(jnp.all(jnp.isfinite(out)))
    print("KERNEL_OK")
</pallas_src>

<mosaic_0001>
module attributes {stable_mosaic.version = 11 : i64} {
  func.func @kernel(%arg0: memref<24x384xf32, #tpu.memory_space<vmem>>, %arg1: memref<24x384xf32, #tpu.memory_space<vmem>>, %arg2: memref<243xf32, #tpu.memory_space<smem>>, %arg3: memref<9xf32, #tpu.memory_space<smem>>, %arg4: memref<9xf32, #tpu.memory_space<smem>>, %arg5: memref<9xf32, #tpu.memory_space<smem>>, %arg6: memref<27xf32, #tpu.memory_space<smem>>, %arg7: memref<24x384xf32, #tpu.memory_space<vmem>>, %arg8: memref<40x384xf32, #tpu.memory_space<vmem>>, %arg9: memref<40x384xf32, #tpu.memory_space<vmem>>) attributes {dimension_semantics = [], scalar_prefetch = 0 : i64, scratch_operands = 2 : i64, tpu.core_type = #tpu.core_type<tc>} {
    %0 = tpu.iota {dimensions = array<i32: 0>} : vector<24x384xi32>
    %1 = tpu.iota {dimensions = array<i32: 1>} : vector<24x384xi32>
    %false = arith.constant false
    %2 = vector.broadcast %false : i1 to vector<24x384xi1>
    %c1_i32 = arith.constant 1 : i32
    %3 = vector.broadcast %c1_i32 : i32 to vector<24x384xi32>
    %4 = arith.cmpi sge, %0, %3 : vector<24x384xi32>
    %c8_i32 = arith.constant 8 : i32
    %5 = vector.broadcast %c8_i32 : i32 to vector<24x384xi32>
    %6 = arith.cmpi sle, %0, %5 : vector<24x384xi32>
    %7 = arith.andi %4, %6 : vector<24x384xi1>
    %8 = arith.ori %2, %7 : vector<24x384xi1>
    %c11_i32 = arith.constant 11 : i32
    %9 = vector.broadcast %c11_i32 : i32 to vector<24x384xi32>
    %10 = arith.cmpi sge, %0, %9 : vector<24x384xi32>
    %c18_i32 = arith.constant 18 : i32
    %11 = vector.broadcast %c18_i32 : i32 to vector<24x384xi32>
    %12 = arith.cmpi sle, %0, %11 : vector<24x384xi32>
    %13 = arith.andi %10, %12 : vector<24x384xi1>
    %14 = arith.ori %8, %13 : vector<24x384xi1>
    %false_0 = arith.constant false
    %15 = vector.broadcast %false_0 : i1 to vector<24x384xi1>
    %c19_i32 = arith.constant 19 : i32
    %16 = vector.broadcast %c19_i32 : i32 to vector<24x384xi32>
    %17 = arith.cmpi sge, %1, %16 : vector<24x384xi32>
    %c34_i32 = arith.constant 34 : i32
    %18 = vector.broadcast %c34_i32 : i32 to vector<24x384xi32>
    %19 = arith.cmpi sle, %1, %18 : vector<24x384xi32>
    %20 = arith.andi %17, %19 : vector<24x384xi1>
    %21 = arith.ori %15, %20 : vector<24x384xi1>
    %c37_i32 = arith.constant 37 : i32
    %22 = vector.broadcast %c37_i32 : i32 to vector<24x384xi32>
    %23 = arith.cmpi sge, %1, %22 : vector<24x384xi32>
    %c52_i32 = arith.constant 52 : i32
    %24 = vector.broadcast %c52_i32 : i32 to vector<24x384xi32>
    %25 = arith.cmpi sle, %1, %24 : vector<24x384xi32>
    %26 = arith.andi %23, %25 : vector<24x384xi1>
    %27 = arith.ori %21, %26 : vector<24x384xi1>
    %c55_i32 = arith.constant 55 : i32
    %28 = vector.broadcast %c55_i32 : i32 to vector<24x384xi32>
    %29 = arith.cmpi sge, %1, %28 : vector<24x384xi32>
    %c70_i32 = arith.constant 70 : i32
    %30 = vector.broadcast %c70_i32 : i32 to vector<24x384xi32>
    %31 = arith.cmpi sle, %1, %30 : vector<24x384xi32>
    %32 = arith.andi %29, %31 : vector<24x384xi1>
    %33 = arith.ori %27, %32 : vector<24x384xi1>
    %c73_i32 = arith.constant 73 : i32
    %34 = vector.broadcast %c73_i32 : i32 to vector<24x384xi32>
    %35 = arith.cmpi sge, %1, %34 : vector<24x384xi32>
    %c88_i32 = arith.constant 88 : i32
    %36 = vector.broadcast %c88_i32 : i32 to vector<24x384xi32>
    %37 = arith.cmpi sle, %1, %36 : vector<24x384xi32>
    %38 = arith.andi %35, %37 : vector<24x384xi1>
    %39 = arith.ori %33, %38 : vector<24x384xi1>
    %c91_i32 = arith.constant 91 : i32
    %40 = vector.broadcast %c91_i32 : i32 to vector<24x384xi32>
    %41 = arith.cmpi sge, %1, %40 : vector<24x384xi32>
    %c106_i32 = arith.constant 106 : i32
    %42 = vector.broadcast %c106_i32 : i32 to vector<24x384xi32>
    %43 = arith.cmpi sle, %1, %42 : vector<24x384xi32>
    %44 = arith.andi %41, %43 : vector<24x384xi1>
    %45 = arith.ori %39, %44 : vector<24x384xi1>
    %c109_i32 = arith.constant 109 : i32
    %46 = vector.broadcast %c109_i32 : i32 to vector<24x384xi32>
    %47 = arith.cmpi sge, %1, %46 : vector<24x384xi32>
    %c124_i32 = arith.constant 124 : i32
    %48 = vector.broadcast %c124_i32 : i32 to vector<24x384xi32>
    %49 = arith.cmpi sle, %1, %48 : vector<24x384xi32>
    %50 = arith.andi %47, %49 : vector<24x384xi1>
    %51 = arith.ori %45, %50 : vector<24x384xi1>
    %c127_i32 = arith.constant 127 : i32
    %52 = vector.broadcast %c127_i32 : i32 to vector<24x384xi32>
    %53 = arith.cmpi sge, %1, %52 : vector<24x384xi32>
    %c142_i32 = arith.constant 142 : i32
    %54 = vector.broadcast %c142_i32 : i32 to vector<24x384xi32>
    %55 = arith.cmpi sle, %1, %54 : vector<24x384xi32>
    %56 = arith.andi %53, %55 : vector<24x384xi1>
    %57 = arith.ori %51, %56 : vector<24x384xi1>
    %c145_i32 = arith.constant 145 : i32
    %58 = vector.broadcast %c145_i32 : i32 to vector<24x384xi32>
    %59 = arith.cmpi sge, %1, %58 : vector<24x384xi32>
    %c160_i32 = arith.constant 160 : i32
    %60 = vector.broadcast %c160_i32 : i32 to vector<24x384xi32>
    %61 = arith.cmpi sle, %1, %60 : vector<24x384xi32>
    %62 = arith.andi %59, %61 : vector<24x384xi1>
    %63 = arith.ori %57, %62 : vector<24x384xi1>
    %c163_i32 = arith.constant 163 : i32
    %64 = vector.broadcast %c163_i32 : i32 to vector<24x384xi32>
    %65 = arith.cmpi sge, %1, %64 : vector<24x384xi32>
    %c178_i32 = arith.constant 178 : i32
    %66 = vector.broadcast %c178_i32 : i32 to vector<24x384xi32>
    %67 = arith.cmpi sle, %1, %66 : vector<24x384xi32>
    %68 = arith.andi %65, %67 : vector<24x384xi1>
    %69 = arith.ori %63, %68 : vector<24x384xi1>
    %c181_i32 = arith.constant 181 : i32
    %70 = vector.broadcast %c181_i32 : i32 to vector<24x384xi32>
    %71 = arith.cmpi sge, %1, %70 : vector<24x384xi32>
    %c196_i32 = arith.constant 196 : i32
    %72 = vector.broadcast %c196_i32 : i32 to vector<24x384xi32>
    %73 = arith.cmpi sle, %1, %72 : vector<24x384xi32>
    %74 = arith.andi %71, %73 : vector<24x384xi1>
    %75 = arith.ori %69, %74 : vector<24x384xi1>
    %c199_i32 = arith.constant 199 : i32
    %76 = vector.broadcast %c199_i32 : i32 to vector<24x384xi32>
    %77 = arith.cmpi sge, %1, %76 : vector<24x384xi32>
    %c214_i32 = arith.constant 214 : i32
    %78 = vector.broadcast %c214_i32 : i32 to vector<24x384xi32>
    %79 = arith.cmpi sle, %1, %78 : vector<24x384xi32>
    %80 = arith.andi %77, %79 : vector<24x384xi1>
    %81 = arith.ori %75, %80 : vector<24x384xi1>
    %c217_i32 = arith.constant 217 : i32
    %82 = vector.broadcast %c217_i32 : i32 to vector<24x384xi32>
    %83 = arith.cmpi sge, %1, %82 : vector<24x384xi32>
    %c232_i32 = arith.constant 232 : i32
    %84 = vector.broadcast %c232_i32 : i32 to vector<24x384xi32>
    %85 = arith.cmpi sle, %1, %84 : vector<24x384xi32>
    %86 = arith.andi %83, %85 : vector<24x384xi1>
    %87 = arith.ori %81, %86 : vector<24x384xi1>
    %c235_i32 = arith.constant 235 : i32
    %88 = vector.broadcast %c235_i32 : i32 to vector<24x384xi32>
    %89 = arith.cmpi sge, %1, %88 : vector<24x384xi32>
    %c250_i32 = arith.constant 250 : i32
    %90 = vector.broadcast %c250_i32 : i32 to vector<24x384xi32>
    %91 = arith.cmpi sle, %1, %90 : vector<24x384xi32>
    %92 = arith.andi %89, %91 : vector<24x384xi1>
    %93 = arith.ori %87, %92 : vector<24x384xi1>
    %c253_i32 = arith.constant 253 : i32
    %94 = vector.broadcast %c253_i32 : i32 to vector<24x384xi32>
    %95 = arith.cmpi sge, %1, %94 : vector<24x384xi32>
    %c268_i32 = arith.constant 268 : i32
    %96 = vector.broadcast %c268_i32 : i32 to vector<24x384xi32>
    %97 = arith.cmpi sle, %1, %96 : vector<24x384xi32>
    %98 = arith.andi %95, %97 : vector<24x384xi1>
    %99 = arith.ori %93, %98 : vector<24x384xi1>
    %c271_i32 = arith.constant 271 : i32
    %100 = vector.broadcast %c271_i32 : i32 to vector<24x384xi32>
    %101 = arith.cmpi sge, %1, %100 : vector<24x384xi32>
    %c286_i32 = arith.constant 286 : i32
    %102 = vector.broadcast %c286_i32 : i32 to vector<24x384xi32>
    %103 = arith.cmpi sle, %1, %102 : vector<24x384xi32>
    %104 = arith.andi %101, %103 : vector<24x384xi1>
    %105 = arith.ori %99, %104 : vector<24x384xi1>
    %c289_i32 = arith.constant 289 : i32
    %106 = vector.broadcast %c289_i32 : i32 to vector<24x384xi32>
    %107 = arith.cmpi sge, %1, %106 : vector<24x384xi32>
    %c304_i32 = arith.constant 304 : i32
    %108 = vector.broadcast %c304_i32 : i32 to vector<24x384xi32>
    %109 = arith.cmpi sle, %1, %108 : vector<24x384xi32>
    %110 = arith.andi %107, %109 : vector<24x384xi1>
    %111 = arith.ori %105, %110 : vector<24x384xi1>
    %112 = arith.andi %14, %111 : vector<24x384xi1>
    %cst = arith.constant 0.000000e+00 : f32
    %113 = vector.broadcast %cst : f32 to vector<8x384xf32>
    %c0 = arith.constant 0 : index
    %c0_1 = arith.constant 0 : index
    %114 = vector.load %arg8[%c0, %c0_1] : memref<40x384xf32, #tpu.memory_space<vmem>>, vector<8x384xf32>
    tpu.vector_store %arg8[%c0, %c0_1], %113 {strides = array<i32>} : memref<40x384xf32, #tpu.memory_space<vmem>>, vector<8x384xf32>,
    %c32 = arith.constant 32 : index
    %c0_2 = arith.constant 0 : index
    %115 = vector.load %arg8[%c32, %c0_2] : memref<40x384xf32, #tpu.memory_space<vmem>>, vector<8x384xf32>
    tpu.vector_store %arg8[%c32, %c0_2], %113 {strides = array<i32>} : memref<40x384xf32, #tpu.memory_space<vmem>>, vector<8x384xf32>,
    %c0_3 = arith.constant 0 : index
    %c0_4 = arith.constant 0 : index
    %116 = vector.load %arg9[%c0_3, %c0_4] : memref<40x384xf32, #tpu.memory_space<vmem>>, vector<8x384xf32>
    tpu.vector_store %arg9[%c0_3, %c0_4], %113 {strides = array<i32>} : memref<40x384xf32, #tpu.memory_space<vmem>>, vector<8x384xf32>,
    %c32_5 = arith.constant 32 : index
    %c0_6 = arith.constant 0 : index
    %117 = vector.load %arg9[%c32_5, %c0_6] : memref<40x384xf32, #tpu.memory_space<vmem>>, vector<8x384xf32>
    tpu.vector_store %arg9[%c32_5, %c0_6], %113 {strides = array<i32>} : memref<40x384xf32, #tpu.memory_space<vmem>>, vector<8x384xf32>,
    %c0_7 = arith.constant 0 : index
    %c0_8 = arith.constant 0 : index
    %118 = vector.load %arg0[%c0_7, %c0_8] : memref<24x384xf32, #tpu.memory_space<vmem>>, vector<24x384xf32>
    %119 = math.tanh %118 : vector<24x384xf32>
    %c8 = arith.constant 8 : index
    %c0_9 = arith.constant 0 : index
    %120 = vector.load %arg8[%c8, %c0_9] : memref<40x384xf32, #tpu.memory_space<vmem>>, vector<24x384xf32>
    tpu.vector_store %arg8[%c8, %c0_9], %119 {strides = array<i32>} : memref<40x384xf32, #tpu.memory_space<vmem>>, vector<24x384xf32>,
    %c0_10 = arith.constant 0 : index
    %121 = memref.load %arg3[%c0_10] : memref<9xf32, #tpu.memory_space<smem>>
    %122 = vector.broadcast %121 : f32 to vector<24x384xf32>
    %c1 = arith.constant 1 : index
    %123 = memref.load %arg3[%c1] : memref<9xf32, #tpu.memory_space<smem>>
    %124 = vector.broadcast %123 : f32 to vector<24x384xf32>
    %c2 = arith.constant 2 : index
    %125 = memref.load %arg3[%c2] : memref<9xf32, #tpu.memory_space<smem>>
    %126 = vector.broadcast %125 : f32 to vector<24x384xf32>
    %c7 = arith.constant 7 : index
    %c0_11 = arith.constant 0 : index
    %127 = vector.load %arg8[%c7, %c0_11] : memref<40x384xf32, #tpu.memory_space<vmem>>, vector<24x384xf32>
    %c19_i32_12 = arith.constant 19 : i32
    %128 = tpu.dynamic_rotate %127 by %c19_i32_12 dim 1 : vector<24x384xf32>, i32 -> vector<24x384xf32>
    %c0_13 = arith.constant 0 : index
    %129 = memref.load %arg2[%c0_13] : memref<243xf32, #tpu.memory_space<smem>>
    %130 = vector.broadcast %129 : f32 to vector<24x384xf32>
    %131 = arith.mulf %130, %128 : vector<24x384xf32>
    %132 = arith.addf %122, %131 : vector<24x384xf32>
    %c27 = arith.constant 27 : index
    %133 = memref.load %arg2[%c27] : memref<243xf32, #tpu.memory_space<smem>>
    %134 = vector.broadcast %133 : f32 to vector<24x384xf32>
    %135 = arith.mulf %134, %128 : vector<24x384xf32>
    %136 = arith.addf %124, %135 : vector<24x384xf32>
    %c54 = arith.constant 54 : index
    %137 = memref.load %arg2[%c54] : memref<243xf32, #tpu.memory_space<smem>>
    %138 = vector.broadcast %137 : f32 to vector<24x384xf32>
    %139 = arith.mulf %138, %128 : vector<24x384xf32>
    %140 = arith.addf %126, %139 : vector<24x384xf32>
    %c18_i32_14 = arith.constant 18 : i32
    %141 = tpu.dynamic_rotate %127 by %c18_i32_14 dim 1 : vector<24x384xf32>, i32 -> vector<24x384xf32>
    %c1_15 = arith.constant 1 : index
    %142 = memref.load %arg2[%c1_15] : memref<243xf32, #tpu.memory_space<smem>>
    %143 = vector.broadcast %142 : f32 to vector<24x384xf32>
    %144 = arith.mulf %143, %141 : vector<24x384xf32>
    %145 = arith.addf %132, %144 : vector<24x384xf32>
    %c28 = arith.constant 28 : index
    %146 = memref.load %arg2[%c28] : memref<243xf32, #tpu.memory_space<smem>>
    %147 = vector.broadcast %146 : f32 to vector<24x384xf32>
    %148 = arith.mulf %147, %141 : vector<24x384xf32>
    %149 = arith.addf %136, %148 : vector<24x384xf32>
    %c55 = arith.constant 55 : index
    %150 = memref.load %arg2[%c55] : memref<243xf32, #tpu.memory_space<smem>>
    %151 = vector.broadcast %150 : f32 to vector<24x384xf32>
    %152 = arith.mulf %151, %141 : vector<24x384xf32>
    %153 = arith.addf %140, %152 : vector<24x384xf32>
    %c17_i32 = arith.constant 17 : i32
    %154 = tpu.dynamic_rotate %127 by %c17_i32 dim 1 : vector<24x384xf32>, i32 -> vector<24x384xf32>
    %c2_16 = arith.constant 2 : index
    %155 = memref.load %arg2[%c2_16] : memref<243xf32, #tpu.memory_space<smem>>
    %156 = vector.broadcast %155 : f32 to vector<24x384xf32>
    %157 = arith.mulf %156, %154 : vector<24x384xf32>
    %158 = arith.addf %145, %157 : vector<24x384xf32>
    %c29 = arith.constant 29 : index
    %159 = memref.load %arg2[%c29] : memref<243xf32, #tpu.memory_space<smem>>
    %160 = vector.broadcast %159 : f32 to vector<24x384xf32>
    %161 = arith.mulf %160, %154 : vector<24x384xf32>
    %162 = arith.addf %149, %161 : vector<24x384xf32>
    %c56 = arith.constant 56 : index
    %163 = memref.load %arg2[%c56] : memref<243xf32, #tpu.memory_space<smem>>
    %164 = vector.broadcast %163 : f32 to vector<24x384xf32>
    %165 = arith.mulf %164, %154 : vector<24x384xf32>
    %166 = arith.addf %153, %165 : vector<24x384xf32>
    %c1_i32_17 = arith.constant 1 : i32
    %167 = tpu.dynamic_rotate %127 by %c1_i32_17 dim 1 : vector<24x384xf32>, i32 -> vector<24x384xf32>
    %c3 = arith.constant 3 : index
    %168 = memref.load %arg2[%c3] : memref<243xf32, #tpu.memory_space<smem>>
    %169 = vector.broadcast %168 : f32 to vector<24x384xf32>
    %170 = arith.mulf %169, %167 : vector<24x384xf32>
    %171 = arith.addf %158, %170 : vector<24x384xf32>
    %c30 = arith.constant 30 : index
    %172 = memref.load %arg2[%c30] : memref<243xf32, #tpu.memory_space<smem>>
    %173 = vector.broadcast %172 : f32 to vector<24x384xf32>
    %174 = arith.mulf %173, %167 : vector<24x384xf32>
    %175 = arith.addf %162, %174 : vector<24x384xf32>
    %c57 = arith.constant 57 : index
    %176 = memref.load %arg2[%c57] : memref<243xf32, #tpu.memory_space<smem>>
    %177 = vector.broadcast %176 : f32 to vector<24x384xf32>
    %178 = arith.mulf %177, %167 : vector<24x384xf32>
    %179 = arith.addf %166, %178 : vector<24x384xf32>
    %c4 = arith.constant 4 : index
    %180 = memref.load %arg2[%c4] : memref<243xf32, #tpu.memory_space<smem>>
    %181 = vector.broadcast %180 : f32 to vector<24x384xf32>
    %182 = arith.mulf %181, %127 : vector<24x384xf32>
    %183 = arith.addf %171, %182 : vector<24x384xf32>
    %c31 = arith.constant 31 : index
    %184 = memref.load %arg2[%c31] : memref<243xf32, #tpu.memory_space<smem>>
    %185 = vector.broadcast %184 : f32 to vector<24x384xf32>
    %186 = arith.mulf %185, %127 : vector<24x384xf32>
    %187 = arith.addf %175, %186 : vector<24x384xf32>
    %c58 = arith.constant 58 : index
    %188 = memref.load %arg2[%c58] : memref<243xf32, #tpu.memory_space<smem>>
    %189 = vector.broadcast %188 : f32 to vector<24x384xf32>
    %190 = arith.mulf %189, %127 : vector<24x384xf32>
    %191 = arith.addf %179, %190 : vector<24x384xf32>
    %c383_i32 = arith.constant 383 : i32
    %192 = tpu.dynamic_rotate %127 by %c383_i32 dim 1 : vector<24x384xf32>, i32 -> vector<24x384xf32>
    %c5 = arith.constant 5 : index
    %193 = memref.load %arg2[%c5] : memref<243xf32, #tpu.memory_space<smem>>
    %194 = vector.broadcast %193 : f32 to vector<24x384xf32>
    %195 = arith.mulf %194, %192 : vector<24x384xf32>
    %196 = arith.addf %183, %195 : vector<24x384xf32>
    %c32_18 = arith.constant 32 : index
    %197 = memref.load %arg2[%c32_18] : memref<243xf32, #tpu.memory_space<smem>>
    %198 = vector.broadcast %197 : f32 to vector<24x384xf32>
    %199 = arith.mulf %198, %192 : vector<24x384xf32>
    %200 = arith.addf %187, %199 : vector<24x384xf32>
    %c59 = arith.constant 59 : index
    %201 = memref.load %arg2[%c59] : memref<243xf32, #tpu.memory_space<smem>>
    %202 = vector.broadcast %201 : f32 to vector<24x384xf32>
    %203 = arith.mulf %202, %192 : vector<24x384xf32>
    %204 = arith.addf %191, %203 : vector<24x384xf32>
    %c367_i32 = arith.constant 367 : i32
    %205 = tpu.dynamic_rotate %127 by %c367_i32 dim 1 : vector<24x384xf32>, i32 -> vector<24x384xf32>
    %c6 = arith.constant 6 : index
    %206 = memref.load %arg2[%c6] : memref<243xf32, #tpu.memory_space<smem>>
    %207 = vector.broadcast %206 : f32 to vector<24x384xf32>
    %208 = arith.mulf %207, %205 : vector<24x384xf32>
    %209 = arith.addf %196, %208 : vector<24x384xf32>
    %c33 = arith.constant 33 : index
    %210 = memref.load %arg2[%c33] : memref<243xf32, #tpu.memory_space<smem>>
    %211 = vector.broadcast %210 : f32 to vector<24x384xf32>
    %212 = arith.mulf %211, %205 : vector<24x384xf32>
    %213 = arith.addf %200, %212 : vector<24x384xf32>
    %c60 = arith.constant 60 : index
    %214 = memref.load %arg2[%c60] : memref<243xf32, #tpu.memory_space<smem>>
    %215 = vector.broadcast %214 : f32 to vector<24x384xf32>
    %216 = arith.mulf %215, %205 : vector<24x384xf32>
    %217 = arith.addf %204, %216 : vector<24x384xf32>
    %c366_i32 = arith.constant 366 : i32
    %218 = tpu.dynamic_rotate %127 by %c366_i32 dim 1 : vector<24x384xf32>, i32 -> vector<24x384xf32>
    %c7_19 = arith.constant 7 : index
    %219 = memref.load %arg2[%c7_19] : memref<243xf32, #tpu.memory_space<smem>>
    %220 = vector.broadcast %219 : f32 to vector<24x384xf32>
    %221 = arith.mulf %220, %218 : vector<24x384xf32>
    %222 = arith.addf %209, %221 : vector<24x384xf32>
    %c34 = arith.constant 34 : index
    %223 = memref.load %arg2[%c34] : memref<243xf32, #tpu.memory_space<smem>>
    %224 = vector.broadcast %223 : f32 to vector<24x384xf32>
    %225 = arith.mulf %224, %218 : vector<24x384xf32>
    %226 = arith.addf %213, %225 : vector<24x384xf32>
    %c61 = arith.constant 61 : index
    %227 = memref.load %arg2[%c61] : memref<243xf32, #tpu.memory_space<smem>>
    %228 = vector.broadcast %227 : f32 to vector<24x384xf32>
    %229 = arith.mulf %228, %218 : vector<24x384xf32>
    %230 = arith.addf %217, %229 : vector<24x384xf32>
    %c365_i32 = arith.constant 365 : i32
    %231 = tpu.dynamic_rotate %127 by %c365_i32 dim 1 : vector<24x384xf32>, i32 -> vector<24x384xf32>
    %c8_20 = arith.constant 8 : index
    %232 = memref.load %arg2[%c8_20] : memref<243xf32, #tpu.memory_space<smem>>
    %233 = vector.broadcast %232 : f32 to vector<24x384xf32>
    %234 = arith.mulf %233, %231 : vector<24x384xf32>
    %235 = arith.addf %222, %234 : vector<24x384xf32>
    %c35 = arith.constant 35 : index
    %236 = memref.load %arg2[%c35] : memref<243xf32, #tpu.memory_space<smem>>
    %237 = vector.broadcast %236 : f32 to vector<24x384xf32>
    %238 = arith.mulf %237, %231 : vector<24x384xf32>
    %239 = arith.addf %226, %238 : vector<24x384xf32>
    %c62 = arith.constant 62 : index
    %240 = memref.load %arg2[%c62] : memref<243xf32, #tpu.memory_space<smem>>
    %241 = vector.broadcast %240 : f32 to vector<24x384xf32>
    %242 = arith.mulf %241, %231 : vector<24x384xf32>
    %243 = arith.addf %230, %242 : vector<24x384xf32>
    %c8_21 = arith.constant 8 : index
    %c0_22 = arith.constant 0 : index
    %244 = vector.load %arg8[%c8_21, %c0_22] : memref<40x384xf32, #tpu.memory_space<vmem>>, vector<24x384xf32>
    %c19_i32_23 = arith.constant 19 : i32
    %245 = tpu.dynamic_rotate %244 by %c19_i32_23 dim 1 : vector<24x384xf32>, i32 -> vector<24x384xf32>
    %c9 = arith.constant 9 : index
    %246 = memref.load %arg2[%c9] : memref<243xf32, #tpu.memory_space<smem>>
    %247 = vector.broadcast %246 : f32 to vector<24x384xf32>
    %248 = arith.mulf %247, %245 : vector<24x384xf32>
    %249 = arith.addf %235, %248 : vector<24x384xf32>
    %c36 = arith.constant 36 : index
    %250 = memref.load %arg2[%c36] : memref<243xf32, #tpu.memory_space<smem>>
    %251 = vector.broadcast %250 : f32 to vector<24x384xf32>
    %252 = arith.mulf %251, %245 : vector<24x384xf32>
    %253 = arith.addf %239, %252 : vector<24x384xf32>
    %c63 = arith.constant 63 : index
    %254 = memref.load %arg2[%c63] : memref<243xf32, #tpu.memory_space<smem>>
    %255 = vector.broadcast %254 : f32 to vector<24x384xf32>
    %256 = arith.mulf %255, %245 : vector<24x384xf32>
    %257 = arith.addf %243, %256 : vector<24x384xf32>
    %c18_i32_24 = arith.constant 18 : i32
    %258 = tpu.dynamic_rotate %244 by %c18_i32_24 dim 1 : vector<24x384xf32>, i32 -> vector<24x384xf32>
    %c10 = arith.constant 10 : index
    %259 = memref.load %arg2[%c10] : memref<243xf32, #tpu.memory_space<smem>>
    %260 = vector.broadcast %259 : f32 to vector<24x384xf32>
    %261 = arith.mulf %260, %258 : vector<24x384xf32>
    %262 = arith.addf %249, %261 : vector<24x384xf32>
    %c37 = arith.constant 37 : index
    %263 = memref.load %arg2[%c37] : memref<243xf32, #tpu.memory_space<smem>>
    %264 = vector.broadcast %263 : f32 to vector<24x384xf32>
    %265 = arith.mulf %264, %258 : vector<24x384xf32>
    %266 = arith.addf %253, %265 : vector<24x384xf32>
    %c64 = arith.constant 64 : index
    %267 = memref.load %arg2[%c64] : memref<243xf32, #tpu.memory_space<smem>>
    %268 = vector.broadcast %267 : f32 to vector<24x384xf32>
    %269 = arith.mulf %268, %258 : vector<24x384xf32>
    %270 = arith.addf %257, %269 : vector<24x384xf32>
    %c17_i32_25 = arith.constant 17 : i32
    %271 = tpu.dynamic_rotate %244 by %c17_i32_25 dim 1 : vector<24x384xf32>, i32 -> vector<24x384xf32>
    %c11 = arith.constant 11 : index
    %272 = memref.load %arg2[%c11] : memref<243xf32, #tpu.memory_space<smem>>
    %273 = vector.broadcast %272 : f32 to vector<24x384xf32>
    %274 = arith.mulf %273, %271 : vector<24x384xf32>
    %275 = arith.addf %262, %274 : vector<24x384xf32>
    %c38 = arith.constant 38 : index
    %276 = memref.load %arg2[%c38] : memref<243xf32, #tpu.memory_space<smem>>
    %277 = vector.broadcast %276 : f32 to vector<24x384xf32>
    %278 = arith.mulf %277, %271 : vector<24x384xf32>
    %279 = arith.addf %266, %278 : vector<24x384xf32>
    %c65 = arith.constant 65 : index
    %280 = memref.load %arg2[%c65] : memref<243xf32, #tpu.memory_space<smem>>
    %281 = vector.broadcast %280 : f32 to vector<24x384xf32>
    %282 = arith.mulf %281, %271 : vector<24x384xf32>
    %283 = arith.addf %270, %282 : vector<24x384xf32>
    %c1_i32_26 = arith.constant 1 : i32
    %284 = tpu.dynamic_rotate %244 by %c1_i32_26 dim 1 : vector<24x384xf32>, i32 -> vector<24x384xf32>
    %c12 = arith.constant 12 : index
    %285 = memref.load %arg2[%c12] : memref<243xf32, #tpu.memory_space<smem>>
    %286 = vector.broadcast %285 : f32 to vector<24x384xf32>
    %287 = arith.mulf %286, %284 : vector<24x384xf32>
    %288 = arith.addf %275, %287 : vector<24x384xf32>
    %c39 = arith.constant 39 : index
    %289 = memref.load %arg2[%c39] : memref<243xf32, #tpu.memory_space<smem>>
    %290 = vector.broadcast %289 : f32 to vector<24x384xf32>
    %291 = arith.mulf %290, %284 : vector<24x384xf32>
    %292 = arith.addf %279, %291 : vector<24x384xf32>
    %c66 = arith.constant 66 : index
    %293 = memref.load %arg2[%c66] : memref<243xf32, #tpu.memory_space<smem>>
    %294 = vector.broadcast %293 : f32 to vector<24x384xf32>
    %295 = arith.mulf %294, %284 : vector<24x384xf32>
    %296 = arith.addf %283, %295 : vector<24x384xf32>
    %c13 = arith.constant 13 : index
    %297 = memref.load %arg2[%c13] : memref<243xf32, #tpu.memory_space<smem>>
    %298 = vector.broadcast %297 : f32 to vector<24x384xf32>
    %299 = arith.mulf %298, %244 : vector<24x384xf32>
    %300 = arith.addf %288, %299 : vector<24x384xf32>
    %c40 = arith.constant 40 : index
    %301 = memref.load %arg2[%c40] : memref<243xf32, #tpu.memory_space<smem>>
    %302 = vector.broadcast %301 : f32 to vector<24x384xf32>
    %303 = arith.mulf %302, %244 : vector<24x384xf32>
    %304 = arith.addf %292, %303 : vector<24x384xf32>
    %c67 = arith.constant 67 : index
    %305 = memref.load %arg2[%c67] : memref<243xf32, #tpu.memory_space<smem>>
    %306 = vector.broadcast %305 : f32 to vector<24x384xf32>
    %307 = arith.mulf %306, %244 : vector<24x384xf32>
    %308 = arith.addf %296, %307 : vector<24x384xf32>
    %c383_i32_27 = arith.constant 383 : i32
    %309 = tpu.dynamic_rotate %244 by %c383_i32_27 dim 1 : vector<24x384xf32>, i32 -> vector<24x384xf32>
    %c14 = arith.constant 14 : index
    %310 = memref.load %arg2[%c14] : memref<243xf32, #tpu.memory_space<smem>>
    %311 = vector.broadcast %310 : f32 to vector<24x384xf32>
    %312 = arith.mulf %311, %309 : vector<24x384xf32>
    %313 = arith.addf %300, %312 : vector<24x384xf32>
    %c41 = arith.constant 41 : index
    %314 = memref.load %arg2[%c41] : memref<243xf32, #tpu.memory_space<smem>>
    %315 = vector.broadcast %314 : f32 to vector<24x384xf32>
    %316 = arith.mulf %315, %309 : vector<24x384xf32>
    %317 = arith.addf %304, %316 : vector<24x384xf32>
    %c68 = arith.constant 68 : index
    %318 = memref.load %arg2[%c68] : memref<243xf32, #tpu.memory_space<smem>>
    %319 = vector.broadcast %318 : f32 to vector<24x384xf32>
    %320 = arith.mulf %319, %309 : vector<24x384xf32>
    %321 = arith.addf %308, %320 : vector<24x384xf32>
    %c367_i32_28 = arith.constant 367 : i32
    %322 = tpu.dynamic_rotate %244 by %c367_i32_28 dim 1 : vector<24x384xf32>, i32 -> vector<24x384xf32>
    %c15 = arith.constant 15 : index
    %323 = memref.load %arg2[%c15] : memref<243xf32, #tpu.memory_space<smem>>
    %324 = vector.broadcast %323 : f32 to vector<24x384xf32>
    %325 = arith.mulf %324, %322 : vector<24x384xf32>
    %326 = arith.addf %313, %325 : vector<24x384xf32>
    %c42 = arith.constant 42 : index
    %327 = memref.load %arg2[%c42] : memref<243xf32, #tpu.memory_space<smem>>
    %328 = vector.broadcast %327 : f32 to vector<24x384xf32>
    %329 = arith.mulf %328, %322 : vector<24x384xf32>
    %330 = arith.addf %317, %329 : vector<24x384xf32>
    %c69 = arith.constant 69 : index
    %331 = memref.load %arg2[%c69] : memref<243xf32, #tpu.memory_space<smem>>
    %332 = vector.broadcast %331 : f32 to vector<24x384xf32>
    %333 = arith.mulf %332, %322 : vector<24x384xf32>
    %334 = arith.addf %321, %333 : vector<24x384xf32>
    %c366_i32_29 = arith.constant 366 : i32
    %335 = tpu.dynamic_rotate %244 by %c366_i32_29 dim 1 : vector<24x384xf32>, i32 -> vector<24x384xf32>
    %c16 = arith.constant 16 : index
    %336 = memref.load %arg2[%c16] : memref<243xf32, #tpu.memory_space<smem>>
    %337 = vector.broadcast %336 : f32 to vector<24x384xf32>
    %338 = arith.mulf %337, %335 : vector<24x384xf32>
    %339 = arith.addf %326, %338 : vector<24x384xf32>
    %c43 = arith.constant 43 : index
    %340 = memref.load %arg2[%c43] : memref<243xf32, #tpu.memory_space<smem>>
    %341 = vector.broadcast %340 : f32 to vector<24x384xf32>
    %342 = arith.mulf %341, %335 : vector<24x384xf32>
    %343 = arith.addf %330, %342 : vector<24x384xf32>
    %c70 = arith.constant 70 : index
    %344 = memref.load %arg2[%c70] : memref<243xf32, #tpu.memory_space<smem>>
    %345 = vector.broadcast %344 : f32 to vector<24x384xf32>
    %346 = arith.mulf %345, %335 : vector<24x384xf32>
    %347 = arith.addf %334, %346 : vector<24x384xf32>
    %c365_i32_30 = arith.constant 365 : i32
    %348 = tpu.dynamic_rotate %244 by %c365_i32_30 dim 1 : vector<24x384xf32>, i32 -> vector<24x384xf32>
    %c17 = arith.constant 17 : index
    %349 = memref.load %arg2[%c17] : memref<243xf32, #tpu.memory_space<smem>>
    %350 = vector.broadcast %349 : f32 to vector<24x384xf32>
    %351 = arith.mulf %350, %348 : vector<24x384xf32>
    %352 = arith.addf %339, %351 : vector<24x384xf32>
    %c44 = arith.constant 44 : index
    %353 = memref.load %arg2[%c44] : memref<243xf32, #tpu.memory_space<smem>>
    %354 = vector.broadcast %353 : f32 to vector<24x384xf32>
    %355 = arith.mulf %354, %348 : vector<24x384xf32>
    %356 = arith.addf %343, %355 : vector<24x384xf32>
    %c71 = arith.constant 71 : index
    %357 = memref.load %arg2[%c71] : memref<243xf32, #tpu.memory_space<smem>>
    %358 = vector.broadcast %357 : f32 to vector<24x384xf32>
    %359 = arith.mulf %358, %348 : vector<24x384xf32>
    %360 = arith.addf %347, %359 : vector<24x384xf32>
    %c9_31 = arith.constant 9 : index
    %c0_32 = arith.constant 0 : index
    %361 = vector.load %arg8[%c9_31, %c0_32] : memref<40x384xf32, #tpu.memory_space<vmem>>, vector<24x384xf32>
    %c19_i32_33 = arith.constant 19 : i32
    %362 = tpu.dynamic_rotate %361 by %c19_i32_33 dim 1 : vector<24x384xf32>, i32 -> vector<24x384xf32>
    %c18 = arith.constant 18 : index
    %363 = memref.load %arg2[%c18] : memref<243xf32, #tpu.memory_space<smem>>
    %364 = vector.broadcast %363 : f32 to vector<24x384xf32>
    %365 = arith.mulf %364, %362 : vector<24x384xf32>
    %366 = arith.addf %352, %365 : vector<24x384xf32>
    %c45 = arith.constant 45 : index
    %367 = memref.load %arg2[%c45] : memref<243xf32, #tpu.memory_space<smem>>
    %368 = vector.broadcast %367 : f32 to vector<24x384xf32>
    %369 = arith.mulf %368, %362 : vector<24x384xf32>
    %370 = arith.addf %356, %369 : vector<24x384xf32>
    %c72 = arith.constant 72 : index
    %371 = memref.load %arg2[%c72] : memref<243xf32, #tpu.memory_space<smem>>
    %372 = vector.broadcast %371 : f32 to vector<24x384xf32>
    %373 = arith.mulf %372, %362 : vector<24x384xf32>
    %374 = arith.addf %360, %373 : vector<24x384xf32>
    %c18_i32_34 = arith.constant 18 : i32
    %375 = tpu.dynamic_rotate %361 by %c18_i32_34 dim 1 : vector<24x384xf32>, i32 -> vector<24x384xf32>
    %c19 = arith.constant 19 : index
    %376 = memref.load %arg2[%c19] : memref<243xf32, #tpu.memory_space<smem>>
    %377 = vector.broadcast %376 : f32 to vector<24x384xf32>
    %378 = arith.mulf %377, %375 : vector<24x384xf32>
    %379 = arith.addf %366, %378 : vector<24x384xf32>
    %c46 = arith.constant 46 : index
    %380 = memref.load %arg2[%c46] : memref<243xf32, #tpu.memory_space<smem>>
    %381 = vector.broadcast %380 : f32 to vector<24x384xf32>
    %382 = arith.mulf %381, %375 : vector<24x384xf32>
    %383 = arith.addf %370, %382 : vector<24x384xf32>
    %c73 = arith.constant 73 : index
    %384 = memref.load %arg2[%c73] : memref<243xf32, #tpu.memory_space<smem>>
    %385 = vector.broadcast %384 : f32 to vector<24x384xf32>
    %386 = arith.mulf %385, %375 : vector<24x384xf32>
    %387 = arith.addf %374, %386 : vector<24x384xf32>
    %c17_i32_35 = arith.constant 17 : i32
    %388 = tpu.dynamic_rotate %361 by %c17_i32_35 dim 1 : vector<24x384xf32>, i32 -> vector<24x384xf32>
    %c20 = arith.constant 20 : index
    %389 = memref.load %arg2[%c20] : memref<243xf32, #tpu.memory_space<smem>>
    %390 = vector.broadcast %389 : f32 to vector<24x384xf32>
    %391 = arith.mulf %390, %388 : vector<24x384xf32>
    %392 = arith.addf %379, %391 : vector<24x384xf32>
    %c47 = arith.constant 47 : index
    %393 = memref.load %arg2[%c47] : memref<243xf32, #tpu.memory_space<smem>>
    %394 = vector.broadcast %393 : f32 to vector<24x384xf32>
    %395 = arith.mulf %394, %388 : vector<24x384xf32>
    %396 = arith.addf %383, %395 : vector<24x384xf32>
    %c74 = arith.constant 74 : index
    %397 = memref.load %arg2[%c74] : memref<243xf32, #tpu.memory_space<smem>>
    %398 = vector.broadcast %397 : f32 to vector<24x384xf32>
    %399 = arith.mulf %398, %388 : vector<24x384xf32>
    %400 = arith.addf %387, %399 : vector<24x384xf32>
    %c1_i32_36 = arith.constant 1 : i32
    %401 = tpu.dynamic_rotate %361 by %c1_i32_36 dim 1 : vector<24x384xf32>, i32 -> vector<24x384xf32>
    %c21 = arith.constant 21 : index
    %402 = memref.load %arg2[%c21] : memref<243xf32, #tpu.memory_space<smem>>
    %403 = vector.broadcast %402 : f32 to vector<24x384xf32>
    %404 = arith.mulf %403, %401 : vector<24x384xf32>
    %405 = arith.addf %392, %404 : vector<24x384xf32>
    %c48 = arith.constant 48 : index
    %406 = memref.load %arg2[%c48] : memref<243xf32, #tpu.memory_space<smem>>
    %407 = vector.broadcast %406 : f32 to vector<24x384xf32>
    %408 = arith.mulf %407, %401 : vector<24x384xf32>
    %409 = arith.addf %396, %408 : vector<24x384xf32>
    %c75 = arith.constant 75 : index
    %410 = memref.load %arg2[%c75] : memref<243xf32, #tpu.memory_space<smem>>
    %411 = vector.broadcast %410 : f32 to vector<24x384xf32>
    %412 = arith.mulf %411, %401 : vector<24x384xf32>
    %413 = arith.addf %400, %412 : vector<24x384xf32>
    %c22 = arith.constant 22 : index
    %414 = memref.load %arg2[%c22] : memref<243xf32, #tpu.memory_space<smem>>
    %415 = vector.broadcast %414 : f32 to vector<24x384xf32>
    %416 = arith.mulf %415, %361 : vector<24x384xf32>
    %417 = arith.addf %405, %416 : vector<24x384xf32>
    %c49 = arith.constant 49 : index
    %418 = memref.load %arg2[%c49] : memref<243xf32, #tpu.memory_space<smem>>
    %419 = vector.broadcast %418 : f32 to vector<24x384xf32>
    %420 = arith.mulf %419, %361 : vector<24x384xf32>
    %421 = arith.addf %409, %420 : vector<24x384xf32>
    %c76 = arith.constant 76 : index
    %422 = memref.load %arg2[%c76] : memref<243xf32, #tpu.memory_space<smem>>
    %423 = vector.broadcast %422 : f32 to vector<24x384xf32>
    %424 = arith.mulf %423, %361 : vector<24x384xf32>
    %425 = arith.addf %413, %424 : vector<24x384xf32>
    %c383_i32_37 = arith.constant 383 : i32
    %426 = tpu.dynamic_rotate %361 by %c383_i32_37 dim 1 : vector<24x384xf32>, i32 -> vector<24x384xf32>
    %c23 = arith.constant 23 : index
    %427 = memref.load %arg2[%c23] : memref<243xf32, #tpu.memory_space<smem>>
    %428 = vector.broadcast %427 : f32 to vector<24x384xf32>
    %429 = arith.mulf %428, %426 : vector<24x384xf32>
    %430 = arith.addf %417, %429 : vector<24x384xf32>
    %c50 = arith.constant 50 : index
    %431 = memref.load %arg2[%c50] : memref<243xf32, #tpu.memory_space<smem>>
    %432 = vector.broadcast %431 : f32 to vector<24x384xf32>
    %433 = arith.mulf %432, %426 : vector<24x384xf32>
    %434 = arith.addf %421, %433 : vector<24x384xf32>
    %c77 = arith.constant 77 : index
    %435 = memref.load %arg2[%c77] : memref<243xf32, #tpu.memory_space<smem>>
    %436 = vector.broadcast %435 : f32 to vector<24x384xf32>
    %437 = arith.mulf %436, %426 : vector<24x384xf32>
    %438 = arith.addf %425, %437 : vector<24x384xf32>
    %c367_i32_38 = arith.constant 367 : i32
    %439 = tpu.dynamic_rotate %361 by %c367_i32_38 dim 1 : vector<24x384xf32>, i32 -> vector<24x384xf32>
    %c24 = arith.constant 24 : index
    %440 = memref.load %arg2[%c24] : memref<243xf32, #tpu.memory_space<smem>>
    %441 = vector.broadcast %440 : f32 to vector<24x384xf32>
    %442 = arith.mulf %441, %439 : vector<24x384xf32>
    %443 = arith.addf %430, %442 : vector<24x384xf32>
    %c51 = arith.constant 51 : index
    %444 = memref.load %arg2[%c51] : memref<243xf32, #tpu.memory_space<smem>>
    %445 = vector.broadcast %444 : f32 to vector<24x384xf32>
    %446 = arith.mulf %445, %439 : vector<24x384xf32>
    %447 = arith.addf %434, %446 : vector<24x384xf32>
    %c78 = arith.constant 78 : index
    %448 = memref.load %arg2[%c78] : memref<243xf32, #tpu.memory_space<smem>>
    %449 = vector.broadcast %448 : f32 to vector<24x384xf32>
    %450 = arith.mulf %449, %439 : vector<24x384xf32>
    %451 = arith.addf %438, %450 : vector<24x384xf32>
    %c366_i32_39 = arith.constant 366 : i32
    %452 = tpu.dynamic_rotate %361 by %c366_i32_39 dim 1 : vector<24x384xf32>, i32 -> vector<24x384xf32>
    %c25 = arith.constant 25 : index
    %453 = memref.load %arg2[%c25] : memref<243xf32, #tpu.memory_space<smem>>
    %454 = vector.broadcast %453 : f32 to vector<24x384xf32>
    %455 = arith.mulf %454, %452 : vector<24x384xf32>
    %456 = arith.addf %443, %455 : vector<24x384xf32>
    %c52 = arith.constant 52 : index
    %457 = memref.load %arg2[%c52] : memref<243xf32, #tpu.memory_space<smem>>
    %458 = vector.broadcast %457 : f32 to vector<24x384xf32>
    %459 = arith.mulf %458, %452 : vector<24x384xf32>
    %460 = arith.addf %447, %459 : vector<24x384xf32>
    %c79 = arith.constant 79 : index
    %461 = memref.load %arg2[%c79] : memref<243xf32, #tpu.memory_space<smem>>
    %462 = vector.broadcast %461 : f32 to vector<24x384xf32>
    %463 = arith.mulf %462, %452 : vector<24x384xf32>
    %464 = arith.addf %451, %463 : vector<24x384xf32>
    %c365_i32_40 = arith.constant 365 : i32
    %465 = tpu.dynamic_rotate %361 by %c365_i32_40 dim 1 : vector<24x384xf32>, i32 -> vector<24x384xf32>
    %c26 = arith.constant 26 : index
    %466 = memref.load %arg2[%c26] : memref<243xf32, #tpu.memory_space<smem>>
    %467 = vector.broadcast %466 : f32 to vector<24x384xf32>
    %468 = arith.mulf %467, %465 : vector<24x384xf32>
    %469 = arith.addf %456, %468 : vector<24x384xf32>
    %c53 = arith.constant 53 : index
    %470 = memref.load %arg2[%c53] : memref<243xf32, #tpu.memory_space<smem>>
    %471 = vector.broadcast %470 : f32 to vector<24x384xf32>
    %472 = arith.mulf %471, %465 : vector<24x384xf32>
    %473 = arith.addf %460, %472 : vector<24x384xf32>
    %c80 = arith.constant 80 : index
    %474 = memref.load %arg2[%c80] : memref<243xf32, #tpu.memory_space<smem>>
    %475 = vector.broadcast %474 : f32 to vector<24x384xf32>
    %476 = arith.mulf %475, %465 : vector<24x384xf32>
    %477 = arith.addf %464, %476 : vector<24x384xf32>
    %cst_41 = arith.constant 0.000000e+00 : f32
    %478 = vector.broadcast %cst_41 : f32 to vector<24x384xf32>
    %479 = arith.select %112, %469, %478 : vector<24x384xi1>, vector<24x384xf32>
    %480 = vector.shape_cast %479 : vector<24x384xf32> to vector<1x24x384xf32>
    %cst_42 = arith.constant dense<0.000000e+00> : vector<1xf32>
    %481 = vector.multi_reduction <add>, %480, %cst_42 [1, 2] : vector<1x24x384xf32> to vector<1xf32>
    %482 = vector.shape_cast %481 : vector<1xf32> to vector<1x1x1xf32>
    %483 = vector.extract %482[0, 0, 0] : f32 from vector<1x1x1xf32>
    %484 = arith.mulf %479, %479 : vector<24x384xf32>
    %485 = vector.shape_cast %484 : vector<24x384xf32> to vector<1x24x384xf32>
    %cst_43 = arith.constant dense<0.000000e+00> : vector<1xf32>
    %486 = vector.multi_reduction <add>, %485, %cst_43 [1, 2] : vector<1x24x384xf32> to vector<1xf32>
    %487 = vector.shape_cast %486 : vector<1xf32> to vector<1x1x1xf32>
    %488 = vector.extract %487[0, 0, 0] : f32 from vector<1x1x1xf32>
    %cst_44 = arith.constant 2.44140625E-4 : f32
    %489 = arith.mulf %483, %cst_44 : f32
    %cst_45 = arith.constant 2.44140625E-4 : f32
    %490 = arith.mulf %488, %cst_45 : f32
    %491 = arith.mulf %489, %489 : f32
    %492 = arith.subf %490, %491 : f32
    %493 = vector.broadcast %489 : f32 to vector<24x384xf32>
    %494 = arith.subf %469, %493 : vector<24x384xf32>
    %cst_46 = arith.constant 9.99999974E-6 : f32
    %495 = arith.addf %492, %cst_46 : f32
    %496 = math.rsqrt %495 : f32
    %497 = vector.broadcast %496 : f32 to vector<24x384xf32>
    %498 = arith.mulf %494, %497 : vector<24x384xf32>
    %c0_47 = arith.constant 0 : index
    %499 = memref.load %arg4[%c0_47] : memref<9xf32, #tpu.memory_space<smem>>
    %500 = vector.broadcast %499 : f32 to vector<24x384xf32>
    %501 = arith.mulf %498, %500 : vector<24x384xf32>
    %c0_48 = arith.constant 0 : index
    %502 = memref.load %arg5[%c0_48] : memref<9xf32, #tpu.memory_space<smem>>
    %503 = vector.broadcast %502 : f32 to vector<24x384xf32>
    %504 = arith.addf %501, %503 : vector<24x384xf32>
    %505 = math.tanh %504 : vector<24x384xf32>
    %cst_49 = arith.constant 0xFF800000 : f32
    %506 = vector.broadcast %cst_49 : f32 to vector<24x384xf32>
    %507 = arith.select %112, %505, %506 : vector<24x384xi1>, vector<24x384xf32>
    %c383_i32_50 = arith.constant 383 : i32
    %508 = tpu.dynamic_rotate %507 by %c383_i32_50 dim 1 : vector<24x384xf32>, i32 -> vector<24x384xf32>
    %c1_i32_51 = arith.constant 1 : i32
    %509 = tpu.dynamic_rotate %507 by %c1_i32_51 dim 1 : vector<24x384xf32>, i32 -> vector<24x384xf32>
    %510 = arith.maximumf %508, %509 : vector<24x384xf32>
    %511 = arith.maximumf %507, %510 : vector<24x384xf32>
    %c366_i32_52 = arith.constant 366 : i32
    %512 = tpu.dynamic_rotate %511 by %c366_i32_52 dim 1 : vector<24x384xf32>, i32 -> vector<24x384xf32>
    %c18_i32_53 = arith.constant 18 : i32
    %513 = tpu.dynamic_rotate %511 by %c18_i32_53 dim 1 : vector<24x384xf32>, i32 -> vector<24x384xf32>
    %514 = arith.maximumf %512, %513 : vector<24x384xf32>
    %515 = arith.maximumf %511, %514 : vector<24x384xf32>
    %c8_54 = arith.constant 8 : index
    %c0_55 = arith.constant 0 : index
    %516 = vector.load %arg9[%c8_54, %c0_55] : memref<40x384xf32, #tpu.memory_space<vmem>>, vector<24x384xf32>
    tpu.vector_store %arg9[%c8_54, %c0_55], %515 {strides = array<i32>} : memref<40x384xf32, #tpu.memory_space<vmem>>, vector<24x384xf32>,
    %cst_56 = arith.constant 0.000000e+00 : f32
    %517 = vector.broadcast %cst_56 : f32 to vector<24x384xf32>
    %518 = arith.select %112, %473, %517 : vector<24x384xi1>, vector<24x384xf32>
    %519 = vector.shape_cast %518 : vector<24x384xf32> to vector<1x24x384xf32>
    %cst_57 = arith.constant dense<0.000000e+00> : vector<1xf32>
    %520 = vector.multi_reduction <add>, %519, %cst_57 [1, 2] : vector<1x24x384xf32> to vector<1xf32>
    %521 = vector.shape_cast %520 : vector<1xf32> to vector<1x1x1xf32>
    %522 = vector.extract %521[0, 0, 0] : f32 from vector<1x1x1xf32>
    %523 = arith.mulf %518, %518 : vector<24x384xf32>
    %524 = vector.shape_cast %523 : vector<24x384xf32> to vector<1x24x384xf32>
    %cst_58 = arith.constant dense<0.000000e+00> : vector<1xf32>
    %525 = vector.multi_reduction <add>, %524, %cst_58 [1, 2] : vector<1x24x384xf32> to vector<1xf32>
    %526 = vector.shape_cast %525 : vector<1xf32> to vector<1x1x1xf32>
    %527 = vector.extract %526[0, 0, 0] : f32 from vector<1x1x1xf32>
    %cst_59 = arith.constant 2.44140625E-4 : f32
    %528 = arith.mulf %522, %cst_59 : f32
    %cst_60 = arith.constant 2.44140625E-4 : f32
    %529 = arith.mulf %527, %cst_60 : f32
    %530 = arith.mulf %528, %528 : f32
    %531 = arith.subf %529, %530 : f32
    %532 = vector.broadcast %528 : f32 to vector<24x384xf32>
    %533 = arith.subf %473, %532 : vector<24x384xf32>
    %cst_61 = arith.constant 9.99999974E-6 : f32
    %534 = arith.addf %531, %cst_61 : f32
    %535 = math.rsqrt %534 : f32
    %536 = vector.broadcast %535 : f32 to vector<24x384xf32>
    %537 = arith.mulf %533, %536 : vector<24x384xf32>
    %c1_62 = arith.constant 1 : index
    %538 = memref.load %arg4[%c1_62] : memref<9xf32, #tpu.memory_space<smem>>
    %539 = vector.broadcast %538 : f32 to vector<24x384xf32>
    %540 = arith.mulf %537, %539 : vector<24x384xf32>
    %c1_63 = arith.constant 1 : index
    %541 = memref.load %arg5[%c1_63] : memref<9xf32, #tpu.memory_space<smem>>
    %542 = vector.broadcast %541 : f32 to vector<24x384xf32>
    %543 = arith.addf %540, %542 : vector<24x384xf32>
    %544 = math.tanh %543 : vector<24x384xf32>
    %cst_64 = arith.constant 0xFF800000 : f32
    %545 = vector.broadcast %cst_64 : f32 to vector<24x384xf32>
    %546 = arith.select %112, %544, %545 : vector<24x384xi1>, vector<24x384xf32>
    %c383_i32_65 = arith.constant 383 : i32
    %547 = tpu.dynamic_rotate %546 by %c383_i32_65 dim 1 : vector<24x384xf32>, i32 -> vector<24x384xf32>
    %c1_i32_66 = arith.constant 1 : i32
    %548 = tpu.dynamic_rotate %546 by %c1_i32_66 dim 1 : vector<24x384xf32>, i32 -> vector<24x384xf32>
    %549 = arith.maximumf %547, %548 : vector<24x384xf32>
    %550 = arith.maximumf %546, %549 : vector<24x384xf32>
    %c366_i32_67 = arith.constant 366 : i32
    %551 = tpu.dynamic_rotate %550 by %c366_i32_67 dim 1 : vector<24x384xf32>, i32 -> vector<24x384xf32>
    %c18_i32_68 = arith.constant 18 : i32
    %552 = tpu.dynamic_rotate %550 by %c18_i32_68 dim 1 : vector<24x384xf32>, i32 -> vector<24x384xf32>
    %553 = arith.maximumf %551, %552 : vector<24x384xf32>
    %554 = arith.maximumf %550, %553 : vector<24x384xf32>
    %c8_69 = arith.constant 8 : index
    %c0_70 = arith.constant 0 : index
    %555 = vector.load %arg9[%c8_69, %c0_70] : memref<40x384xf32, #tpu.memory_space<vmem>>, vector<24x384xf32>
    tpu.vector_store %arg9[%c8_69, %c0_70], %554 {strides = array<i32>} : memref<40x384xf32, #tpu.memory_space<vmem>>, vector<24x384xf32>,
    %cst_71 = arith.constant 0.000000e+00 : f32
    %556 = vector.broadcast %cst_71 : f32 to vector<24x384xf32>
    %557 = arith.select %112, %477, %556 : vector<24x384xi1>, vector<24x384xf32>
    %558 = vector.shape_cast %557 : vector<24x384xf32> to vector<1x24x384xf32>
    %cst_72 = arith.constant dense<0.000000e+00> : vector<1xf32>
    %559 = vector.multi_reduction <add>, %558, %cst_72 [1, 2] : vector<1x24x384xf32> to vector<1xf32>
    %560 = vector.shape_cast %559 : vector<1xf32> to vector<1x1x1xf32>
    %561 = vector.extract %560[0, 0, 0] : f32 from vector<1x1x1xf32>
    %562 = arith.mulf %557, %557 : vector<24x384xf32>
    %563 = vector.shape_cast %562 : vector<24x384xf32> to vector<1x24x384xf32>
    %cst_73 = arith.constant dense<0.000000e+00> : vector<1xf32>
    %564 = vector.multi_reduction <add>, %563, %cst_73 [1, 2] : vector<1x24x384xf32> to vector<1xf32>
    %565 = vector.shape_cast %564 : vector<1xf32> to vector<1x1x1xf32>
    %566 = vector.extract %565[0, 0, 0] : f32 from vector<1x1x1xf32>
    %cst_74 = arith.constant 2.44140625E-4 : f32
    %567 = arith.mulf %561, %cst_74 : f32
    %cst_75 = arith.constant 2.44140625E-4 : f32
    %568 = arith.mulf %566, %cst_75 : f32
    %569 = arith.mulf %567, %567 : f32
    %570 = arith.subf %568, %569 : f32
    %571 = vector.broadcast %567 : f32 to vector<24x384xf32>
    %572 = arith.subf %477, %571 : vector<24x384xf32>
    %cst_76 = arith.constant 9.99999974E-6 : f32
    %573 = arith.addf %570, %cst_76 : f32
    %574 = math.rsqrt %573 : f32
    %575 = vector.broadcast %574 : f32 to vector<24x384xf32>
    %576 = arith.mulf %572, %575 : vector<24x384xf32>
    %c2_77 = arith.constant 2 : index
    %577 = memref.load %arg4[%c2_77] : memref<9xf32, #tpu.memory_space<smem>>
    %578 = vector.broadcast %577 : f32 to vector<24x384xf32>
    %579 = arith.mulf %576, %578 : vector<24x384xf32>
    %c2_78 = arith.constant 2 : index
    %580 = memref.load %arg5[%c2_78] : memref<9xf32, #tpu.memory_space<smem>>
    %581 = vector.broadcast %580 : f32 to vector<24x384xf32>
    %582 = arith.addf %579, %581 : vector<24x384xf32>
    %583 = math.tanh %582 : vector<24x384xf32>
    %cst_79 = arith.constant 0xFF800000 : f32
    %584 = vector.broadcast %cst_79 : f32 to vector<24x384xf32>
    %585 = arith.select %112, %583, %584 : vector<24x384xi1>, vector<24x384xf32>
    %c383_i32_80 = arith.constant 383 : i32
    %586 = tpu.dynamic_rotate %585 by %c383_i32_80 dim 1 : vector<24x384xf32>, i32 -> vector<24x384xf32>
    %c1_i32_81 = arith.constant 1 : i32
    %587 = tpu.dynamic_rotate %585 by %c1_i32_81 dim 1 : vector<24x384xf32>, i32 -> vector<24x384xf32>
    %588 = arith.maximumf %586, %587 : vector<24x384xf32>
    %589 = arith.maximumf %585, %588 : vector<24x384xf32>
    %c366_i32_82 = arith.constant 366 : i32
    %590 = tpu.dynamic_rotate %589 by %c366_i32_82 dim 1 : vector<24x384xf32>, i32 -> vector<24x384xf32>
    %c18_i32_83 = arith.constant 18 : i32
    %591 = tpu.dynamic_rotate %589 by %c18_i32_83 dim 1 : vector<24x384xf32>, i32 -> vector<24x384xf32>
    %592 = arith.maximumf %590, %591 : vector<24x384xf32>
    %593 = arith.maximumf %589, %592 : vector<24x384xf32>
    %c8_84 = arith.constant 8 : index
    %c0_85 = arith.constant 0 : index
    %594 = vector.load %arg9[%c8_84, %c0_85] : memref<40x384xf32, #tpu.memory_space<vmem>>, vector<24x384xf32>
    tpu.vector_store %arg9[%c8_84, %c0_85], %593 {strides = array<i32>} : memref<40x384xf32, #tpu.memory_space<vmem>>, vector<24x384xf32>,
    %c3_86 = arith.constant 3 : index
    %595 = memref.load %arg3[%c3_86] : memref<9xf32, #tpu.memory_space<smem>>
    %596 = vector.broadcast %595 : f32 to vector<24x384xf32>
    %c4_87 = arith.constant 4 : index
    %597 = memref.load %arg3[%c4_87] : memref<9xf32, #tpu.memory_space<smem>>
    %598 = vector.broadcast %597 : f32 to vector<24x384xf32>
    %c5_88 = arith.constant 5 : index
    %599 = memref.load %arg3[%c5_88] : memref<9xf32, #tpu.memory_space<smem>>
    %600 = vector.broadcast %599 : f32 to vector<24x384xf32>
    %c7_89 = arith.constant 7 : index
    %c0_90 = arith.constant 0 : index
    %601 = vector.load %arg8[%c7_89, %c0_90] : memref<40x384xf32, #tpu.memory_space<vmem>>, vector<24x384xf32>
    %c19_i32_91 = arith.constant 19 : i32
    %602 = tpu.dynamic_rotate %601 by %c19_i32_91 dim 1 : vector<24x384xf32>, i32 -> vector<24x384xf32>
    %c81 = arith.constant 81 : index
    %603 = memref.load %arg2[%c81] : memref<243xf32, #tpu.memory_space<smem>>
    %604 = vector.broadcast %603 : f32 to vector<24x384xf32>
    %605 = arith.mulf %604, %602 : vector<24x384xf32>
    %606 = arith.addf %596, %605 : vector<24x384xf32>
    %c108 = arith.constant 108 : index
    %607 = memref.load %arg2[%c108] : memref<243xf32, #tpu.memory_space<smem>>
    %608 = vector.broadcast %607 : f32 to vector<24x384xf32>
    %609 = arith.mulf %608, %602 : vector<24x384xf32>
    %610 = arith.addf %598, %609 : vector<24x384xf32>
    %c135 = arith.constant 135 : index
    %611 = memref.load %arg2[%c135] : memref<243xf32, #tpu.memory_space<smem>>
    %612 = vector.broadcast %611 : f32 to vector<24x384xf32>
    %613 = arith.mulf %612, %602 : vector<24x384xf32>
    %614 = arith.addf %600, %613 : vector<24x384xf32>
    %c18_i32_92 = arith.constant 18 : i32
    %615 = tpu.dynamic_rotate %601 by %c18_i32_92 dim 1 : vector<24x384xf32>, i32 -> vector<24x384xf32>
    %c82 = arith.constant 82 : index
    %616 = memref.load %arg2[%c82] : memref<243xf32, #tpu.memory_space<smem>>
    %617 = vector.broadcast %616 : f32 to vector<24x384xf32>
    %618 = arith.mulf %617, %615 : vector<24x384xf32>
    %619 = arith.addf %606, %618 : vector<24x384xf32>
    %c109 = arith.constant 109 : index
    %620 = memref.load %arg2[%c109] : memref<243xf32, #tpu.memory_space<smem>>
    %621 = vector.broadcast %620 : f32 to vector<24x384xf32>
    %622 = arith.mulf %621, %615 : vector<24x384xf32>
    %623 = arith.addf %610, %622 : vector<24x384xf32>
    %c136 = arith.constant 136 : index
    %624 = memref.load %arg2[%c136] : memref<243xf32, #tpu.memory_space<smem>>
    %625 = vector.broadcast %624 : f32 to vector<24x384xf32>
    %626 = arith.mulf %625, %615 : vector<24x384xf32>
    %627 = arith.addf %614, %626 : vector<24x384xf32>
    %c17_i32_93 = arith.constant 17 : i32
    %628 = tpu.dynamic_rotate %601 by %c17_i32_93 dim 1 : vector<24x384xf32>, i32 -> vector<24x384xf32>
    %c83 = arith.constant 83 : index
    %629 = memref.load %arg2[%c83] : memref<243xf32, #tpu.memory_space<smem>>
    %630 = vector.broadcast %629 : f32 to vector<24x384xf32>
    %631 = arith.mulf %630, %628 : vector<24x384xf32>
    %632 = arith.addf %619, %631 : vector<24x384xf32>
    %c110 = arith.constant 110 : index
    %633 = memref.load %arg2[%c110] : memref<243xf32, #tpu.memory_space<smem>>
    %634 = vector.broadcast %633 : f32 to vector<24x384xf32>
    %635 = arith.mulf %634, %628 : vector<24x384xf32>
    %636 = arith.addf %623, %635 : vector<24x384xf32>
    %c137 = arith.constant 137 : index
    %637 = memref.load %arg2[%c137] : memref<243xf32, #tpu.memory_space<smem>>
    %638 = vector.broadcast %637 : f32 to vector<24x384xf32>
    %639 = arith.mulf %638, %628 : vector<24x384xf32>
    %640 = arith.addf %627, %639 : vector<24x384xf32>
    %c1_i32_94 = arith.constant 1 : i32
    %641 = tpu.dynamic_rotate %601 by %c1_i32_94 dim 1 : vector<24x384xf32>, i32 -> vector<24x384xf32>
    %c84 = arith.constant 84 : index
    %642 = memref.load %arg2[%c84] : memref<243xf32, #tpu.memory_space<smem>>
    %643 = vector.broadcast %642 : f32 to vector<24x384xf32>
    %644 = arith.mulf %643, %641 : vector<24x384xf32>
    %645 = arith.addf %632, %644 : vector<24x384xf32>
    %c111 = arith.constant 111 : index
    %646 = memref.load %arg2[%c111] : memref<243xf32, #tpu.memory_space<smem>>
    %647 = vector.broadcast %646 : f32 to vector<24x384xf32>
    %648 = arith.mulf %647, %641 : vector<24x384xf32>
    %649 = arith.addf %636, %648 : vector<24x384xf32>
    %c138 = arith.constant 138 : index
    %650 = memref.load %arg2[%c138] : memref<243xf32, #tpu.memory_space<smem>>
    %651 = vector.broadcast %650 : f32 to vector<24x384xf32>
    %652 = arith.mulf %651, %641 : vector<24x384xf32>
    %653 = arith.addf %640, %652 : vector<24x384xf32>
    %c85 = arith.constant 85 : index
    %654 = memref.load %arg2[%c85] : memref<243xf32, #tpu.memory_space<smem>>
    %655 = vector.broadcast %654 : f32 to vector<24x384xf32>
    %656 = arith.mulf %655, %601 : vector<24x384xf32>
    %657 = arith.addf %645, %656 : vector<24x384xf32>
    %c112 = arith.constant 112 : index
    %658 = memref.load %arg2[%c112] : memref<243xf32, #tpu.memory_space<smem>>
    %659 = vector.broadcast %658 : f32 to vector<24x384xf32>
    %660 = arith.mulf %659, %601 : vector<24x384xf32>
    %661 = arith.addf %649, %660 : vector<24x384xf32>
    %c139 = arith.constant 139 : index
    %662 = memref.load %arg2[%c139] : memref<243xf32, #tpu.memory_space<smem>>
    %663 = vector.broadcast %662 : f32 to vector<24x384xf32>
    %664 = arith.mulf %663, %601 : vector<24x384xf32>
    %665 = arith.addf %653, %664 : vector<24x384xf32>
    %c383_i32_95 = arith.constant 383 : i32
    %666 = tpu.dynamic_rotate %601 by %c383_i32_95 dim 1 : vector<24x384xf32>, i32 -> vector<24x384xf32>
    %c86 = arith.constant 86 : index
    %667 = memref.load %arg2[%c86] : memref<243xf32, #tpu.memory_space<smem>>
    %668 = vector.broadcast %667 : f32 to vector<24x384xf32>
    %669 = arith.mulf %668, %666 : vector<24x384xf32>
    %670 = arith.addf %657, %669 : vector<24x384xf32>
    %c113 = arith.constant 113 : index
    %671 = memref.load %arg2[%c113] : memref<243xf32, #tpu.memory_space<smem>>
    %672 = vector.broadcast %671 : f32 to vector<24x384xf32>
    %673 = arith.mulf %672, %666 : vector<24x384xf32>
    %674 = arith.addf %661, %673 : vector<24x384xf32>
    %c140 = arith.constant 140 : index
    %675 = memref.load %arg2[%c140] : memref<243xf32, #tpu.memory_space<smem>>
    %676 = vector.broadcast %675 : f32 to vector<24x384xf32>
    %677 = arith.mulf %676, %666 : vector<24x384xf32>
    %678 = arith.addf %665, %677 : vector<24x384xf32>
    %c367_i32_96 = arith.constant 367 : i32
    %679 = tpu.dynamic_rotate %601 by %c367_i32_96 dim 1 : vector<24x384xf32>, i32 -> vector<24x384xf32>
    %c87 = arith.constant 87 : index
    %680 = memref.load %arg2[%c87] : memref<243xf32, #tpu.memory_space<smem>>
    %681 = vector.broadcast %680 : f32 to vector<24x384xf32>
    %682 = arith.mulf %681, %679 : vector<24x384xf32>
    %683 = arith.addf %670, %682 : vector<24x384xf32>
    %c114 = arith.constant 114 : index
    %684 = memref.load %arg2[%c114] : memref<243xf32, #tpu.memory_space<smem>>
    %685 = vector.broadcast %684 : f32 to vector<24x384xf32>
    %686 = arith.mulf %685, %679 : vector<24x384xf32>
    %687 = arith.addf %674, %686 : vector<24x384xf32>
    %c141 = arith.constant 141 : index
    %688 = memref.load %arg2[%c141] : memref<243xf32, #tpu.memory_space<smem>>
    %689 = vector.broadcast %688 : f32 to vector<24x384xf32>
    %690 = arith.mulf %689, %679 : vector<24x384xf32>
    %691 = arith.addf %678, %690 : vector<24x384xf32>
    %c366_i32_97 = arith.constant 366 : i32
    %692 = tpu.dynamic_rotate %601 by %c366_i32_97 dim 1 : vector<24x384xf32>, i32 -> vector<24x384xf32>
    %c88 = arith.constant 88 : index
    %693 = memref.load %arg2[%c88] : memref<243xf32, #tpu.memory_space<smem>>
    %694 = vector.broadcast %693 : f32 to vector<24x384xf32>
    %695 = arith.mulf %694, %692 : vector<24x384xf32>
    %696 = arith.addf %683, %695 : vector<24x384xf32>
    %c115 = arith.constant 115 : index
    %697 = memref.load %arg2[%c115] : memref<243xf32, #tpu.memory_space<smem>>
    %698 = vector.broadcast %697 : f32 to vector<24x384xf32>
    %699 = arith.mulf %698, %692 : vector<24x384xf32>
    %700 = arith.addf %687, %699 : vector<24x384xf32>
    %c142 = arith.constant 142 : index
    %701 = memref.load %arg2[%c142] : memref<243xf32, #tpu.memory_space<smem>>
    %702 = vector.broadcast %701 : f32 to vector<24x384xf32>
    %703 = arith.mulf %702, %692 : vector<24x384xf32>
    %704 = arith.addf %691, %703 : vector<24x384xf32>
    %c365_i32_98 = arith.constant 365 : i32
    %705 = tpu.dynamic_rotate %601 by %c365_i32_98 dim 1 : vector<24x384xf32>, i32 -> vector<24x384xf32>
    %c89 = arith.constant 89 : index
    %706 = memref.load %arg2[%c89] : memref<243xf32, #tpu.memory_space<smem>>
    %707 = vector.broadcast %706 : f32 to vector<24x384xf32>
    %708 = arith.mulf %707, %705 : vector<24x384xf32>
    %709 = arith.addf %696, %708 : vector<24x384xf32>
    %c116 = arith.constant 116 : index
    %710 = memref.load %arg2[%c116] : memref<243xf32, #tpu.memory_space<smem>>
    %711 = vector.broadcast %710 : f32 to vector<24x384xf32>
    %712 = arith.mulf %711, %705 : vector<24x384xf32>
    %713 = arith.addf %700, %712 : vector<24x384xf32>
    %c143 = arith.constant 143 : index
    %714 = memref.load %arg2[%c143] : memref<243xf32, #tpu.memory_space<smem>>
    %715 = vector.broadcast %714 : f32 to vector<24x384xf32>
    %716 = arith.mulf %715, %705 : vector<24x384xf32>
    %717 = arith.addf %704, %716 : vector<24x384xf32>
    %c8_99 = arith.constant 8 : index
    %c0_100 = arith.constant 0 : index
    %718 = vector.load %arg8[%c8_99, %c0_100] : memref<40x384xf32, #tpu.memory_space<vmem>>, vector<24x384xf32>
    %c19_i32_101 = arith.constant 19 : i32
    %719 = tpu.dynamic_rotate %718 by %c19_i32_101 dim 1 : vector<24x384xf32>, i32 -> vector<24x384xf32>
    %c90 = arith.constant 90 : index
    %720 = memref.load %arg2[%c90] : memref<243xf32, #tpu.memory_space<smem>>
    %721 = vector.broadcast %720 : f32 to vector<24x384xf32>
    %722 = arith.mulf %721, %719 : vector<24x384xf32>
    %723 = arith.addf %709, %722 : vector<24x384xf32>
    %c117 = arith.constant 117 : index
    %724 = memref.load %arg2[%c117] : memref<243xf32, #tpu.memory_space<smem>>
    %725 = vector.broadcast %724 : f32 to vector<24x384xf32>
    %726 = arith.mulf %725, %719 : vector<24x384xf32>
    %727 = arith.addf %713, %726 : vector<24x384xf32>
    %c144 = arith.constant 144 : index
    %728 = memref.load %arg2[%c144] : memref<243xf32, #tpu.memory_space<smem>>
    %729 = vector.broadcast %728 : f32 to vector<24x384xf32>
    %730 = arith.mulf %729, %719 : vector<24x384xf32>
    %731 = arith.addf %717, %730 : vector<24x384xf32>
    %c18_i32_102 = arith.constant 18 : i32
    %732 = tpu.dynamic_rotate %718 by %c18_i32_102 dim 1 : vector<24x384xf32>, i32 -> vector<24x384xf32>
    %c91 = arith.constant 91 : index
    %733 = memref.load %arg2[%c91] : memref<243xf32, #tpu.memory_space<smem>>
    %734 = vector.broadcast %733 : f32 to vector<24x384xf32>
    %735 = arith.mulf %734, %732 : vector<24x384xf32>
    %736 = arith.addf %723, %735 : vector<24x384xf32>
    %c118 = arith.constant 118 : index
    %737 = memref.load %arg2[%c118] : memref<243xf32, #tpu.memory_space<smem>>
    %738 = vector.broadcast %737 : f32 to vector<24x384xf32>
    %739 = arith.mulf %738, %732 : vector<24x384xf32>
    %740 = arith.addf %727, %739 : vector<24x384xf32>
    %c145 = arith.constant 145 : index
    %741 = memref.load %arg2[%c145] : memref<243xf32, #tpu.memory_space<smem>>
    %742 = vector.broadcast %741 : f32 to vector<24x384xf32>
    %743 = arith.mulf %742, %732 : vector<24x384xf32>
    %744 = arith.addf %731, %743 : vector<24x384xf32>
    %c17_i32_103 = arith.constant 17 : i32
    %745 = tpu.dynamic_rotate %718 by %c17_i32_103 dim 1 : vector<24x384xf32>, i32 -> vector<24x384xf32>
    %c92 = arith.constant 92 : index
    %746 = memref.load %arg2[%c92] : memref<243xf32, #tpu.memory_space<smem>>
    %747 = vector.broadcast %746 : f32 to vector<24x384xf32>
    %748 = arith.mulf %747, %745 : vector<24x384xf32>
    %749 = arith.addf %736, %748 : vector<24x384xf32>
    %c119 = arith.constant 119 : index
    %750 = memref.load %arg2[%c119] : memref<243xf32, #tpu.memory_space<smem>>
    %751 = vector.broadcast %750 : f32 to vector<24x384xf32>
    %752 = arith.mulf %751, %745 : vector<24x384xf32>
    %753 = arith.addf %740, %752 : vector<24x384xf32>
    %c146 = arith.constant 146 : index
    %754 = memref.load %arg2[%c146] : memref<243xf32, #tpu.memory_space<smem>>
    %755 = vector.broadcast %754 : f32 to vector<24x384xf32>
    %756 = arith.mulf %755, %745 : vector<24x384xf32>
    %757 = arith.addf %744, %756 : vector<24x384xf32>
    %c1_i32_104 = arith.constant 1 : i32
    %758 = tpu.dynamic_rotate %718 by %c1_i32_104 dim 1 : vector<24x384xf32>, i32 -> vector<24x384xf32>
    %c93 = arith.constant 93 : index
    %759 = memref.load %arg2[%c93] : memref<243xf32, #tpu.memory_space<smem>>
    %760 = vector.broadcast %759 : f32 to vector<24x384xf32>
    %761 = arith.mulf %760, %758 : vector<24x384xf32>
    %762 = arith.addf %749, %761 : vector<24x384xf32>
    %c120 = arith.constant 120 : index
    %763 = memref.load %arg2[%c120] : memref<243xf32, #tpu.memory_space<smem>>
    %764 = vector.broadcast %763 : f32 to vector<24x384xf32>
    %765 = arith.mulf %764, %758 : vector<24x384xf32>
    %766 = arith.addf %753, %765 : vector<24x384xf32>
    %c147 = arith.constant 147 : index
    %767 = memref.load %arg2[%c147] : memref<243xf32, #tpu.memory_space<smem>>
    %768 = vector.broadcast %767 : f32 to vector<24x384xf32>
    %769 = arith.mulf %768, %758 : vector<24x384xf32>
    %770 = arith.addf %757, %769 : vector<24x384xf32>
    %c94 = arith.constant 94 : index
    %771 = memref.load %arg2[%c94] : memref<243xf32, #tpu.memory_space<smem>>
    %772 = vector.broadcast %771 : f32 to vector<24x384xf32>
    %773 = arith.mulf %772, %718 : vector<24x384xf32>
    %774 = arith.addf %762, %773 : vector<24x384xf32>
    %c121 = arith.constant 121 : index
    %775 = memref.load %arg2[%c121] : memref<243xf32, #tpu.memory_space<smem>>
    %776 = vector.broadcast %775 : f32 to vector<24x384xf32>
    %777 = arith.mulf %776, %718 : vector<24x384xf32>
    %778 = arith.addf %766, %777 : vector<24x384xf32>
    %c148 = arith.constant 148 : index
    %779 = memref.load %arg2[%c148] : memref<243xf32, #tpu.memory_space<smem>>
    %780 = vector.broadcast %779 : f32 to vector<24x384xf32>
    %781 = arith.mulf %780, %718 : vector<24x384xf32>
    %782 = arith.addf %770, %781 : vector<24x384xf32>
    %c383_i32_105 = arith.constant 383 : i32
    %783 = tpu.dynamic_rotate %718 by %c383_i32_105 dim 1 : vector<24x384xf32>, i32 -> vector<24x384xf32>
    %c95 = arith.constant 95 : index
    %784 = memref.load %arg2[%c95] : memref<243xf32, #tpu.memory_space<smem>>
    %785 = vector.broadcast %784 : f32 to vector<24x384xf32>
    %786 = arith.mulf %785, %783 : vector<24x384xf32>
    %787 = arith.addf %774, %786 : vector<24x384xf32>
    %c122 = arith.constant 122 : index
    %788 = memref.load %arg2[%c122] : memref<243xf32, #tpu.memory_space<smem>>
    %789 = vector.broadcast %788 : f32 to vector<24x384xf32>
    %790 = arith.mulf %789, %783 : vector<24x384xf32>
    %791 = arith.addf %778, %790 : vector<24x384xf32>
    %c149 = arith.constant 149 : index
    %792 = memref.load %arg2[%c149] : memref<243xf32, #tpu.memory_space<smem>>
    %793 = vector.broadcast %792 : f32 to vector<24x384xf32>
    %794 = arith.mulf %793, %783 : vector<24x384xf32>
    %795 = arith.addf %782, %794 : vector<24x384xf32>
    %c367_i32_106 = arith.constant 367 : i32
    %796 = tpu.dynamic_rotate %718 by %c367_i32_106 dim 1 : vector<24x384xf32>, i32 -> vector<24x384xf32>
    %c96 = arith.constant 96 : index
    %797 = memref.load %arg2[%c96] : memref<243xf32, #tpu.memory_space<smem>>
    %798 = vector.broadcast %797 : f32 to vector<24x384xf32>
    %799 = arith.mulf %798, %796 : vector<24x384xf32>
    %800 = arith.addf %787, %799 : vector<24x384xf32>
    %c123 = arith.constant 123 : index
    %801 = memref.load %arg2[%c123] : memref<243xf32, #tpu.memory_space<smem>>
    %802 = vector.broadcast %801 : f32 to vector<24x384xf32>
    %803 = arith.mulf %802, %796 : vector<24x384xf32>
    %804 = arith.addf %791, %803 : vector<24x384xf32>
    %c150 = arith.constant 150 : index
    %805 = memref.load %arg2[%c150] : memref<243xf32, #tpu.memory_space<smem>>
    %806 = vector.broadcast %805 : f32 to vector<24x384xf32>
    %807 = arith.mulf %806, %796 : vector<24x384xf32>
    %808 = arith.addf %795, %807 : vector<24x384xf32>
    %c366_i32_107 = arith.constant 366 : i32
    %809 = tpu.dynamic_rotate %718 by %c366_i32_107 dim 1 : vector<24x384xf32>, i32 -> vector<24x384xf32>
    %c97 = arith.constant 97 : index
    %810 = memref.load %arg2[%c97] : memref<243xf32, #tpu.memory_space<smem>>
    %811 = vector.broadcast %810 : f32 to vector<24x384xf32>
    %812 = arith.mulf %811, %809 : vector<24x384xf32>
    %813 = arith.addf %800, %812 : vector<24x384xf32>
    %c124 = arith.constant 124 : index
    %814 = memref.load %arg2[%c124] : memref<243xf32, #tpu.memory_space<smem>>
    %815 = vector.broadcast %814 : f32 to vector<24x384xf32>
    %816 = arith.mulf %815, %809 : vector<24x384xf32>
    %817 = arith.addf %804, %816 : vector<24x384xf32>
    %c151 = arith.constant 151 : index
    %818 = memref.load %arg2[%c151] : memref<243xf32, #tpu.memory_space<smem>>
    %819 = vector.broadcast %818 : f32 to vector<24x384xf32>
    %820 = arith.mulf %819, %809 : vector<24x384xf32>
    %821 = arith.addf %808, %820 : vector<24x384xf32>
    %c365_i32_108 = arith.constant 365 : i32
    %822 = tpu.dynamic_rotate %718 by %c365_i32_108 dim 1 : vector<24x384xf32>, i32 -> vector<24x384xf32>
    %c98 = arith.constant 98 : index
    %823 = memref.load %arg2[%c98] : memref<243xf32, #tpu.memory_space<smem>>
    %824 = vector.broadcast %823 : f32 to vector<24x384xf32>
    %825 = arith.mulf %824, %822 : vector<24x384xf32>
    %826 = arith.addf %813, %825 : vector<24x384xf32>
    %c125 = arith.constant 125 : index
    %827 = memref.load %arg2[%c125] : memref<243xf32, #tpu.memory_space<smem>>
    %828 = vector.broadcast %827 : f32 to vector<24x384xf32>
    %829 = arith.mulf %828, %822 : vector<24x384xf32>
    %830 = arith.addf %817, %829 : vector<24x384xf32>
    %c152 = arith.constant 152 : index
    %831 = memref.load %arg2[%c152] : memref<243xf32, #tpu.memory_space<smem>>
    %832 = vector.broadcast %831 : f32 to vector<24x384xf32>
    %833 = arith.mulf %832, %822 : vector<24x384xf32>
    %834 = arith.addf %821, %833 : vector<24x384xf32>
    %c9_109 = arith.constant 9 : index
    %c0_110 = arith.constant 0 : index
    %835 = vector.load %arg8[%c9_109, %c0_110] : memref<40x384xf32, #tpu.memory_space<vmem>>, vector<24x384xf32>
    %c19_i32_111 = arith.constant 19 : i32
    %836 = tpu.dynamic_rotate %835 by %c19_i32_111 dim 1 : vector<24x384xf32>, i32 -> vector<24x384xf32>
    %c99 = arith.constant 99 : index
    %837 = memref.load %arg2[%c99] : memref<243xf32, #tpu.memory_space<smem>>
    %838 = vector.broadcast %837 : f32 to vector<24x384xf32>
    %839 = arith.mulf %838, %836 : vector<24x384xf32>
    %840 = arith.addf %826, %839 : vector<24x384xf32>
    %c126 = arith.constant 126 : index
    %841 = memref.load %arg2[%c126] : memref<243xf32, #tpu.memory_space<smem>>
    %842 = vector.broadcast %841 : f32 to vector<24x384xf32>
    %843 = arith.mulf %842, %836 : vector<24x384xf32>
    %844 = arith.addf %830, %843 : vector<24x384xf32>
    %c153 = arith.constant 153 : index
    %845 = memref.load %arg2[%c153] : memref<243xf32, #tpu.memory_space<smem>>
    %846 = vector.broadcast %845 : f32 to vector<24x384xf32>
    %847 = arith.mulf %846, %836 : vector<24x384xf32>
    %848 = arith.addf %834, %847 : vector<24x384xf32>
    %c18_i32_112 = arith.constant 18 : i32
    %849 = tpu.dynamic_rotate %835 by %c18_i32_112 dim 1 : vector<24x384xf32>, i32 -> vector<24x384xf32>
    %c100 = arith.constant 100 : index
    %850 = memref.load %arg2[%c100] : memref<243xf32, #tpu.memory_space<smem>>
    %851 = vector.broadcast %850 : f32 to vector<24x384xf32>
    %852 = arith.mulf %851, %849 : vector<24x384xf32>
    %853 = arith.addf %840, %852 : vector<24x384xf32>
    %c127 = arith.constant 127 : index
    %854 = memref.load %arg2[%c127] : memref<243xf32, #tpu.memory_space<smem>>
    %855 = vector.broadcast %854 : f32 to vector<24x384xf32>
    %856 = arith.mulf %855, %849 : vector<24x384xf32>
    %857 = arith.addf %844, %856 : vector<24x384xf32>
    %c154 = arith.constant 154 : index
    %858 = memref.load %arg2[%c154] : memref<243xf32, #tpu.memory_space<smem>>
    %859 = vector.broadcast %858 : f32 to vector<24x384xf32>
    %860 = arith.mulf %859, %849 : vector<24x384xf32>
    %861 = arith.addf %848, %860 : vector<24x384xf32>
    %c17_i32_113 = arith.constant 17 : i32
    %862 = tpu.dynamic_rotate %835 by %c17_i32_113 dim 1 : vector<24x384xf32>, i32 -> vector<24x384xf32>
    %c101 = arith.constant 101 : index
    %863 = memref.load %arg2[%c101] : memref<243xf32, #tpu.memory_space<smem>>
    %864 = vector.broadcast %863 : f32 to vector<24x384xf32>
    %865 = arith.mulf %864, %862 : vector<24x384xf32>
    %866 = arith.addf %853, %865 : vector<24x384xf32>
    %c128 = arith.constant 128 : index
    %867 = memref.load %arg2[%c128] : memref<243xf32, #tpu.memory_space<smem>>
    %868 = vector.broadcast %867 : f32 to vector<24x384xf32>
    %869 = arith.mulf %868, %862 : vector<24x384xf32>
    %870 = arith.addf %857, %869 : vector<24x384xf32>
    %c155 = arith.constant 155 : index
    %871 = memref.load %arg2[%c155] : memref<243xf32, #tpu.memory_space<smem>>
    %872 = vector.broadcast %871 : f32 to vector<24x384xf32>
    %873 = arith.mulf %872, %862 : vector<24x384xf32>
    %874 = arith.addf %861, %873 : vector<24x384xf32>
    %c1_i32_114 = arith.constant 1 : i32
    %875 = tpu.dynamic_rotate %835 by %c1_i32_114 dim 1 : vector<24x384xf32>, i32 -> vector<24x384xf32>
    %c102 = arith.constant 102 : index
    %876 = memref.load %arg2[%c102] : memref<243xf32, #tpu.memory_space<smem>>
    %877 = vector.broadcast %876 : f32 to vector<24x384xf32>
    %878 = arith.mulf %877, %875 : vector<24x384xf32>
    %879 = arith.addf %866, %878 : vector<24x384xf32>
    %c129 = arith.constant 129 : index
    %880 = memref.load %arg2[%c129] : memref<243xf32, #tpu.memory_space<smem>>
    %881 = vector.broadcast %880 : f32 to vector<24x384xf32>
    %882 = arith.mulf %881, %875 : vector<24x384xf32>
    %883 = arith.addf %870, %882 : vector<24x384xf32>
    %c156 = arith.constant 156 : index
    %884 = memref.load %arg2[%c156] : memref<243xf32, #tpu.memory_space<smem>>
    %885 = vector.broadcast %884 : f32 to vector<24x384xf32>
    %886 = arith.mulf %885, %875 : vector<24x384xf32>
    %887 = arith.addf %874, %886 : vector<24x384xf32>
    %c103 = arith.constant 103 : index
    %888 = memref.load %arg2[%c103] : memref<243xf32, #tpu.memory_space<smem>>
    %889 = vector.broadcast %888 : f32 to vector<24x384xf32>
    %890 = arith.mulf %889, %835 : vector<24x384xf32>
    %891 = arith.addf %879, %890 : vector<24x384xf32>
    %c130 = arith.constant 130 : index
    %892 = memref.load %arg2[%c130] : memref<243xf32, #tpu.memory_space<smem>>
    %893 = vector.broadcast %892 : f32 to vector<24x384xf32>
    %894 = arith.mulf %893, %835 : vector<24x384xf32>
    %895 = arith.addf %883, %894 : vector<24x384xf32>
    %c157 = arith.constant 157 : index
    %896 = memref.load %arg2[%c157] : memref<243xf32, #tpu.memory_space<smem>>
    %897 = vector.broadcast %896 : f32 to vector<24x384xf32>
    %898 = arith.mulf %897, %835 : vector<24x384xf32>
    %899 = arith.addf %887, %898 : vector<24x384xf32>
    %c383_i32_115 = arith.constant 383 : i32
    %900 = tpu.dynamic_rotate %835 by %c383_i32_115 dim 1 : vector<24x384xf32>, i32 -> vector<24x384xf32>
    %c104 = arith.constant 104 : index
    %901 = memref.load %arg2[%c104] : memref<243xf32, #tpu.memory_space<smem>>
    %902 = vector.broadcast %901 : f32 to vector<24x384xf32>
    %903 = arith.mulf %902, %900 : vector<24x384xf32>
    %904 = arith.addf %891, %903 : vector<24x384xf32>
    %c131 = arith.constant 131 : index
    %905 = memref.load %arg2[%c131] : memref<243xf32, #tpu.memory_space<smem>>
    %906 = vector.broadcast %905 : f32 to vector<24x384xf32>
    %907 = arith.mulf %906, %900 : vector<24x384xf32>
    %908 = arith.addf %895, %907 : vector<24x384xf32>
    %c158 = arith.constant 158 : index
    %909 = memref.load %arg2[%c158] : memref<243xf32, #tpu.memory_space<smem>>
    %910 = vector.broadcast %909 : f32 to vector<24x384xf32>
    %911 = arith.mulf %910, %900 : vector<24x384xf32>
    %912 = arith.addf %899, %911 : vector<24x384xf32>
    %c367_i32_116 = arith.constant 367 : i32
    %913 = tpu.dynamic_rotate %835 by %c367_i32_116 dim 1 : vector<24x384xf32>, i32 -> vector<24x384xf32>
    %c105 = arith.constant 105 : index
    %914 = memref.load %arg2[%c105] : memref<243xf32, #tpu.memory_space<smem>>
    %915 = vector.broadcast %914 : f32 to vector<24x384xf32>
    %916 = arith.mulf %915, %913 : vector<24x384xf32>
    %917 = arith.addf %904, %916 : vector<24x384xf32>
    %c132 = arith.constant 132 : index
    %918 = memref.load %arg2[%c132] : memref<243xf32, #tpu.memory_space<smem>>
    %919 = vector.broadcast %918 : f32 to vector<24x384xf32>
    %920 = arith.mulf %919, %913 : vector<24x384xf32>
    %921 = arith.addf %908, %920 : vector<24x384xf32>
    %c159 = arith.constant 159 : index
    %922 = memref.load %arg2[%c159] : memref<243xf32, #tpu.memory_space<smem>>
    %923 = vector.broadcast %922 : f32 to vector<24x384xf32>
    %924 = arith.mulf %923, %913 : vector<24x384xf32>
    %925 = arith.addf %912, %924 : vector<24x384xf32>
    %c366_i32_117 = arith.constant 366 : i32
    %926 = tpu.dynamic_rotate %835 by %c366_i32_117 dim 1 : vector<24x384xf32>, i32 -> vector<24x384xf32>
    %c106 = arith.constant 106 : index
    %927 = memref.load %arg2[%c106] : memref<243xf32, #tpu.memory_space<smem>>
    %928 = vector.broadcast %927 : f32 to vector<24x384xf32>
    %929 = arith.mulf %928, %926 : vector<24x384xf32>
    %930 = arith.addf %917, %929 : vector<24x384xf32>
    %c133 = arith.constant 133 : index
    %931 = memref.load %arg2[%c133] : memref<243xf32, #tpu.memory_space<smem>>
    %932 = vector.broadcast %931 : f32 to vector<24x384xf32>
    %933 = arith.mulf %932, %926 : vector<24x384xf32>
    %934 = arith.addf %921, %933 : vector<24x384xf32>
    %c160 = arith.constant 160 : index
    %935 = memref.load %arg2[%c160] : memref<243xf32, #tpu.memory_space<smem>>
    %936 = vector.broadcast %935 : f32 to vector<24x384xf32>
    %937 = arith.mulf %936, %926 : vector<24x384xf32>
    %938 = arith.addf %925, %937 : vector<24x384xf32>
    %c365_i32_118 = arith.constant 365 : i32
    %939 = tpu.dynamic_rotate %835 by %c365_i32_118 dim 1 : vector<24x384xf32>, i32 -> vector<24x384xf32>
    %c107 = arith.constant 107 : index
    %940 = memref.load %arg2[%c107] : memref<243xf32, #tpu.memory_space<smem>>
    %941 = vector.broadcast %940 : f32 to vector<24x384xf32>
    %942 = arith.mulf %941, %939 : vector<24x384xf32>
    %943 = arith.addf %930, %942 : vector<24x384xf32>
    %c134 = arith.constant 134 : index
    %944 = memref.load %arg2[%c134] : memref<243xf32, #tpu.memory_space<smem>>
    %945 = vector.broadcast %944 : f32 to vector<24x384xf32>
    %946 = arith.mulf %945, %939 : vector<24x384xf32>
    %947 = arith.addf %934, %946 : vector<24x384xf32>
    %c161 = arith.constant 161 : index
    %948 = memref.load %arg2[%c161] : memref<243xf32, #tpu.memory_space<smem>>
    %949 = vector.broadcast %948 : f32 to vector<24x384xf32>
    %950 = arith.mulf %949, %939 : vector<24x384xf32>
    %951 = arith.addf %938, %950 : vector<24x384xf32>
    %cst_119 = arith.constant 0.000000e+00 : f32
    %952 = vector.broadcast %cst_119 : f32 to vector<24x384xf32>
    %953 = arith.select %112, %943, %952 : vector<24x384xi1>, vector<24x384xf32>
    %954 = vector.shape_cast %953 : vector<24x384xf32> to vector<1x24x384xf32>
    %cst_120 = arith.constant dense<0.000000e+00> : vector<1xf32>
    %955 = vector.multi_reduction <add>, %954, %cst_120 [1, 2] : vector<1x24x384xf32> to vector<1xf32>
    %956 = vector.shape_cast %955 : vector<1xf32> to vector<1x1x1xf32>
    %957 = vector.extract %956[0, 0, 0] : f32 from vector<1x1x1xf32>
    %958 = arith.mulf %953, %953 : vector<24x384xf32>
    %959 = vector.shape_cast %958 : vector<24x384xf32> to vector<1x24x384xf32>
    %cst_121 = arith.constant dense<0.000000e+00> : vector<1xf32>
    %960 = vector.multi_reduction <add>, %959, %cst_121 [1, 2] : vector<1x24x384xf32> to vector<1xf32>
    %961 = vector.shape_cast %960 : vector<1xf32> to vector<1x1x1xf32>
    %962 = vector.extract %961[0, 0, 0] : f32 from vector<1x1x1xf32>
    %cst_122 = arith.constant 2.44140625E-4 : f32
    %963 = arith.mulf %957, %cst_122 : f32
    %cst_123 = arith.constant 2.44140625E-4 : f32
    %964 = arith.mulf %962, %cst_123 : f32
    %965 = arith.mulf %963, %963 : f32
    %966 = arith.subf %964, %965 : f32
    %967 = vector.broadcast %963 : f32 to vector<24x384xf32>
    %968 = arith.subf %943, %967 : vector<24x384xf32>
    %cst_124 = arith.constant 9.99999974E-6 : f32
    %969 = arith.addf %966, %cst_124 : f32
    %970 = math.rsqrt %969 : f32
    %971 = vector.broadcast %970 : f32 to vector<24x384xf32>
    %972 = arith.mulf %968, %971 : vector<24x384xf32>
    %c3_125 = arith.constant 3 : index
    %973 = memref.load %arg4[%c3_125] : memref<9xf32, #tpu.memory_space<smem>>
    %974 = vector.broadcast %973 : f32 to vector<24x384xf32>
    %975 = arith.mulf %972, %974 : vector<24x384xf32>
    %c3_126 = arith.constant 3 : index
    %976 = memref.load %arg5[%c3_126] : memref<9xf32, #tpu.memory_space<smem>>
    %977 = vector.broadcast %976 : f32 to vector<24x384xf32>
    %978 = arith.addf %975, %977 : vector<24x384xf32>
    %979 = math.tanh %978 : vector<24x384xf32>
    %cst_127 = arith.constant 0xFF800000 : f32
    %980 = vector.broadcast %cst_127 : f32 to vector<24x384xf32>
    %981 = arith.select %112, %979, %980 : vector<24x384xi1>, vector<24x384xf32>
    %c383_i32_128 = arith.constant 383 : i32
    %982 = tpu.dynamic_rotate %981 by %c383_i32_128 dim 1 : vector<24x384xf32>, i32 -> vector<24x384xf32>
    %c1_i32_129 = arith.constant 1 : i32
    %983 = tpu.dynamic_rotate %981 by %c1_i32_129 dim 1 : vector<24x384xf32>, i32 -> vector<24x384xf32>
    %984 = arith.maximumf %982, %983 : vector<24x384xf32>
    %985 = arith.maximumf %981, %984 : vector<24x384xf32>
    %c366_i32_130 = arith.constant 366 : i32
    %986 = tpu.dynamic_rotate %985 by %c366_i32_130 dim 1 : vector<24x384xf32>, i32 -> vector<24x384xf32>
    %c18_i32_131 = arith.constant 18 : i32
    %987 = tpu.dynamic_rotate %985 by %c18_i32_131 dim 1 : vector<24x384xf32>, i32 -> vector<24x384xf32>
    %988 = arith.maximumf %986, %987 : vector<24x384xf32>
    %989 = arith.maximumf %985, %988 : vector<24x384xf32>
    %c8_132 = arith.constant 8 : index
    %c0_133 = arith.constant 0 : index
    %990 = vector.load %arg9[%c8_132, %c0_133] : memref<40x384xf32, #tpu.memory_space<vmem>>, vector<24x384xf32>
    tpu.vector_store %arg9[%c8_132, %c0_133], %989 {strides = array<i32>} : memref<40x384xf32, #tpu.memory_space<vmem>>, vector<24x384xf32>,
    %cst_134 = arith.constant 0.000000e+00 : f32
    %991 = vector.broadcast %cst_134 : f32 to vector<24x384xf32>
    %992 = arith.select %112, %947, %991 : vector<24x384xi1>, vector<24x384xf32>
    %993 = vector.shape_cast %992 : vector<24x384xf32> to vector<1x24x384xf32>
    %cst_135 = arith.constant dense<0.000000e+00> : vector<1xf32>
    %994 = vector.multi_reduction <add>, %993, %cst_135 [1, 2] : vector<1x24x384xf32> to vector<1xf32>
    %995 = vector.shape_cast %994 : vector<1xf32> to vector<1x1x1xf32>
    %996 = vector.extract %995[0, 0, 0] : f32 from vector<1x1x1xf32>
    %997 = arith.mulf %992, %992 : vector<24x384xf32>
    %998 = vector.shape_cast %997 : vector<24x384xf32> to vector<1x24x384xf32>
    %cst_136 = arith.constant dense<0.000000e+00> : vector<1xf32>
    %999 = vector.multi_reduction <add>, %998, %cst_136 [1, 2] : vector<1x24x384xf32> to vector<1xf32>
    %1000 = vector.shape_cast %999 : vector<1xf32> to vector<1x1x1xf32>
    %1001 = vector.extract %1000[0, 0, 0] : f32 from vector<1x1x1xf32>
    %cst_137 = arith.constant 2.44140625E-4 : f32
    %1002 = arith.mulf %996, %cst_137 : f32
    %cst_138 = arith.constant 2.44140625E-4 : f32
    %1003 = arith.mulf %1001, %cst_138 : f32
    %1004 = arith.mulf %1002, %1002 : f32
    %1005 = arith.subf %1003, %1004 : f32
    %1006 = vector.broadcast %1002 : f32 to vector<24x384xf32>
    %1007 = arith.subf %947, %1006 : vector<24x384xf32>
    %cst_139 = arith.constant 9.99999974E-6 : f32
    %1008 = arith.addf %1005, %cst_139 : f32
    %1009 = math.rsqrt %1008 : f32
    %1010 = vector.broadcast %1009 : f32 to vector<24x384xf32>
    %1011 = arith.mulf %1007, %1010 : vector<24x384xf32>
    %c4_140 = arith.constant 4 : index
    %1012 = memref.load %arg4[%c4_140] : memref<9xf32, #tpu.memory_space<smem>>
    %1013 = vector.broadcast %1012 : f32 to vector<24x384xf32>
    %1014 = arith.mulf %1011, %1013 : vector<24x384xf32>
    %c4_141 = arith.constant 4 : index
    %1015 = memref.load %arg5[%c4_141] : memref<9xf32, #tpu.memory_space<smem>>
    %1016 = vector.broadcast %1015 : f32 to vector<24x384xf32>
    %1017 = arith.addf %1014, %1016 : vector<24x384xf32>
    %1018 = math.tanh %1017 : vector<24x384xf32>
    %cst_142 = arith.constant 0xFF800000 : f32
    %1019 = vector.broadcast %cst_142 : f32 to vector<24x384xf32>
    %1020 = arith.select %112, %1018, %1019 : vector<24x384xi1>, vector<24x384xf32>
    %c383_i32_143 = arith.constant 383 : i32
    %1021 = tpu.dynamic_rotate %1020 by %c383_i32_143 dim 1 : vector<24x384xf32>, i32 -> vector<24x384xf32>
    %c1_i32_144 = arith.constant 1 : i32
    %1022 = tpu.dynamic_rotate %1020 by %c1_i32_144 dim 1 : vector<24x384xf32>, i32 -> vector<24x384xf32>
    %1023 = arith.maximumf %1021, %1022 : vector<24x384xf32>
    %1024 = arith.maximumf %1020, %1023 : vector<24x384xf32>
    %c366_i32_145 = arith.constant 366 : i32
    %1025 = tpu.dynamic_rotate %1024 by %c366_i32_145 dim 1 : vector<24x384xf32>, i32 -> vector<24x384xf32>
    %c18_i32_146 = arith.constant 18 : i32
    %1026 = tpu.dynamic_rotate %1024 by %c18_i32_146 dim 1 : vector<24x384xf32>, i32 -> vector<24x384xf32>
    %1027 = arith.maximumf %1025, %1026 : vector<24x384xf32>
    %1028 = arith.maximumf %1024, %1027 : vector<24x384xf32>
    %c8_147 = arith.constant 8 : index
    %c0_148 = arith.constant 0 : index
    %1029 = vector.load %arg9[%c8_147, %c0_148] : memref<40x384xf32, #tpu.memory_space<vmem>>, vector<24x384xf32>
    tpu.vector_store %arg9[%c8_147, %c0_148], %1028 {strides = array<i32>} : memref<40x384xf32, #tpu.memory_space<vmem>>, vector<24x384xf32>,
    %cst_149 = arith.constant 0.000000e+00 : f32
    %1030 = vector.broadcast %cst_149 : f32 to vector<24x384xf32>
    %1031 = arith.select %112, %951, %1030 : vector<24x384xi1>, vector<24x384xf32>
    %1032 = vector.shape_cast %1031 : vector<24x384xf32> to vector<1x24x384xf32>
    %cst_150 = arith.constant dense<0.000000e+00> : vector<1xf32>
    %1033 = vector.multi_reduction <add>, %1032, %cst_150 [1, 2] : vector<1x24x384xf32> to vector<1xf32>
    %1034 = vector.shape_cast %1033 : vector<1xf32> to vector<1x1x1xf32>
    %1035 = vector.extract %1034[0, 0, 0] : f32 from vector<1x1x1xf32>
    %1036 = arith.mulf %1031, %1031 : vector<24x384xf32>
    %1037 = vector.shape_cast %1036 : vector<24x384xf32> to vector<1x24x384xf32>
    %cst_151 = arith.constant dense<0.000000e+00> : vector<1xf32>
    %1038 = vector.multi_reduction <add>, %1037, %cst_151 [1, 2] : vector<1x24x384xf32> to vector<1xf32>
    %1039 = vector.shape_cast %1038 : vector<1xf32> to vector<1x1x1xf32>
    %1040 = vector.extract %1039[0, 0, 0] : f32 from vector<1x1x1xf32>
    %cst_152 = arith.constant 2.44140625E-4 : f32
    %1041 = arith.mulf %1035, %cst_152 : f32
    %cst_153 = arith.constant 2.44140625E-4 : f32
    %1042 = arith.mulf %1040, %cst_153 : f32
    %1043 = arith.mulf %1041, %1041 : f32
    %1044 = arith.subf %1042, %1043 : f32
    %1045 = vector.broadcast %1041 : f32 to vector<24x384xf32>
    %1046 = arith.subf %951, %1045 : vector<24x384xf32>
    %cst_154 = arith.constant 9.99999974E-6 : f32
    %1047 = arith.addf %1044, %cst_154 : f32
    %1048 = math.rsqrt %1047 : f32
    %1049 = vector.broadcast %1048 : f32 to vector<24x384xf32>
    %1050 = arith.mulf %1046, %1049 : vector<24x384xf32>
    %c5_155 = arith.constant 5 : index
    %1051 = memref.load %arg4[%c5_155] : memref<9xf32, #tpu.memory_space<smem>>
    %1052 = vector.broadcast %1051 : f32 to vector<24x384xf32>
    %1053 = arith.mulf %1050, %1052 : vector<24x384xf32>
    %c5_156 = arith.constant 5 : index
    %1054 = memref.load %arg5[%c5_156] : memref<9xf32, #tpu.memory_space<smem>>
    %1055 = vector.broadcast %1054 : f32 to vector<24x384xf32>
    %1056 = arith.addf %1053, %1055 : vector<24x384xf32>
    %1057 = math.tanh %1056 : vector<24x384xf32>
    %cst_157 = arith.constant 0xFF800000 : f32
    %1058 = vector.broadcast %cst_157 : f32 to vector<24x384xf32>
    %1059 = arith.select %112, %1057, %1058 : vector<24x384xi1>, vector<24x384xf32>
    %c383_i32_158 = arith.constant 383 : i32
    %1060 = tpu.dynamic_rotate %1059 by %c383_i32_158 dim 1 : vector<24x384xf32>, i32 -> vector<24x384xf32>
    %c1_i32_159 = arith.constant 1 : i32
    %1061 = tpu.dynamic_rotate %1059 by %c1_i32_159 dim 1 : vector<24x384xf32>, i32 -> vector<24x384xf32>
    %1062 = arith.maximumf %1060, %1061 : vector<24x384xf32>
    %1063 = arith.maximumf %1059, %1062 : vector<24x384xf32>
    %c366_i32_160 = arith.constant 366 : i32
    %1064 = tpu.dynamic_rotate %1063 by %c366_i32_160 dim 1 : vector<24x384xf32>, i32 -> vector<24x384xf32>
    %c18_i32_161 = arith.constant 18 : i32
    %1065 = tpu.dynamic_rotate %1063 by %c18_i32_161 dim 1 : vector<24x384xf32>, i32 -> vector<24x384xf32>
    %1066 = arith.maximumf %1064, %1065 : vector<24x384xf32>
    %1067 = arith.maximumf %1063, %1066 : vector<24x384xf32>
    %c8_162 = arith.constant 8 : index
    %c0_163 = arith.constant 0 : index
    %1068 = vector.load %arg9[%c8_162, %c0_163] : memref<40x384xf32, #tpu.memory_space<vmem>>, vector<24x384xf32>
    tpu.vector_store %arg9[%c8_162, %c0_163], %1067 {strides = array<i32>} : memref<40x384xf32, #tpu.memory_space<vmem>>, vector<24x384xf32>,
    %c6_164 = arith.constant 6 : index
    %1069 = memref.load %arg3[%c6_164] : memref<9xf32, #tpu.memory_space<smem>>
    %1070 = vector.broadcast %1069 : f32 to vector<24x384xf32>
    %c7_165 = arith.constant 7 : index
    %1071 = memref.load %arg3[%c7_165] : memref<9xf32, #tpu.memory_space<smem>>
    %1072 = vector.broadcast %1071 : f32 to vector<24x384xf32>
    %c8_166 = arith.constant 8 : index
    %1073 = memref.load %arg3[%c8_166] : memref<9xf32, #tpu.memory_space<smem>>
    %1074 = vector.broadcast %1073 : f32 to vector<24x384xf32>
    %c7_167 = arith.constant 7 : index
    %c0_168 = arith.constant 0 : index
    %1075 = vector.load %arg8[%c7_167, %c0_168] : memref<40x384xf32, #tpu.memory_space<vmem>>, vector<24x384xf32>
    %c19_i32_169 = arith.constant 19 : i32
    %1076 = tpu.dynamic_rotate %1075 by %c19_i32_169 dim 1 : vector<24x384xf32>, i32 -> vector<24x384xf32>
    %c162 = arith.constant 162 : index
    %1077 = memref.load %arg2[%c162] : memref<243xf32, #tpu.memory_space<smem>>
    %1078 = vector.broadcast %1077 : f32 to vector<24x384xf32>
    %1079 = arith.mulf %1078, %1076 : vector<24x384xf32>
    %1080 = arith.addf %1070, %1079 : vector<24x384xf32>
    %c189 = arith.constant 189 : index
    %1081 = memref.load %arg2[%c189] : memref<243xf32, #tpu.memory_space<smem>>
    %1082 = vector.broadcast %1081 : f32 to vector<24x384xf32>
    %1083 = arith.mulf %1082, %1076 : vector<24x384xf32>
    %1084 = arith.addf %1072, %1083 : vector<24x384xf32>
    %c216 = arith.constant 216 : index
    %1085 = memref.load %arg2[%c216] : memref<243xf32, #tpu.memory_space<smem>>
    %1086 = vector.broadcast %1085 : f32 to vector<24x384xf32>
    %1087 = arith.mulf %1086, %1076 : vector<24x384xf32>
    %1088 = arith.addf %1074, %1087 : vector<24x384xf32>
    %c18_i32_170 = arith.constant 18 : i32
    %1089 = tpu.dynamic_rotate %1075 by %c18_i32_170 dim 1 : vector<24x384xf32>, i32 -> vector<24x384xf32>
    %c163 = arith.constant 163 : index
    %1090 = memref.load %arg2[%c163] : memref<243xf32, #tpu.memory_space<smem>>
    %1091 = vector.broadcast %1090 : f32 to vector<24x384xf32>
    %1092 = arith.mulf %1091, %1089 : vector<24x384xf32>
    %1093 = arith.addf %1080, %1092 : vector<24x384xf32>
    %c190 = arith.constant 190 : index
    %1094 = memref.load %arg2[%c190] : memref<243xf32, #tpu.memory_space<smem>>
    %1095 = vector.broadcast %1094 : f32 to vector<24x384xf32>
    %1096 = arith.mulf %1095, %1089 : vector<24x384xf32>
    %1097 = arith.addf %1084, %1096 : vector<24x384xf32>
    %c217 = arith.constant 217 : index
    %1098 = memref.load %arg2[%c217] : memref<243xf32, #tpu.memory_space<smem>>
    %1099 = vector.broadcast %1098 : f32 to vector<24x384xf32>
    %1100 = arith.mulf %1099, %1089 : vector<24x384xf32>
    %1101 = arith.addf %1088, %1100 : vector<24x384xf32>
    %c17_i32_171 = arith.constant 17 : i32
    %1102 = tpu.dynamic_rotate %1075 by %c17_i32_171 dim 1 : vector<24x384xf32>, i32 -> vector<24x384xf32>
    %c164 = arith.constant 164 : index
    %1103 = memref.load %arg2[%c164] : memref<243xf32, #tpu.memory_space<smem>>
    %1104 = vector.broadcast %1103 : f32 to vector<24x384xf32>
    %1105 = arith.mulf %1104, %1102 : vector<24x384xf32>
    %1106 = arith.addf %1093, %1105 : vector<24x384xf32>
    %c191 = arith.constant 191 : index
    %1107 = memref.load %arg2[%c191] : memref<243xf32, #tpu.memory_space<smem>>
    %1108 = vector.broadcast %1107 : f32 to vector<24x384xf32>
    %1109 = arith.mulf %1108, %1102 : vector<24x384xf32>
    %1110 = arith.addf %1097, %1109 : vector<24x384xf32>
    %c218 = arith.constant 218 : index
    %1111 = memref.load %arg2[%c218] : memref<243xf32, #tpu.memory_space<smem>>
    %1112 = vector.broadcast %1111 : f32 to vector<24x384xf32>
    %1113 = arith.mulf %1112, %1102 : vector<24x384xf32>
    %1114 = arith.addf %1101, %1113 : vector<24x384xf32>
    %c1_i32_172 = arith.constant 1 : i32
    %1115 = tpu.dynamic_rotate %1075 by %c1_i32_172 dim 1 : vector<24x384xf32>, i32 -> vector<24x384xf32>
    %c165 = arith.constant 165 : index
    %1116 = memref.load %arg2[%c165] : memref<243xf32, #tpu.memory_space<smem>>
    %1117 = vector.broadcast %1116 : f32 to vector<24x384xf32>
    %1118 = arith.mulf %1117, %1115 : vector<24x384xf32>
    %1119 = arith.addf %1106, %1118 : vector<24x384xf32>
    %c192 = arith.constant 192 : index
    %1120 = memref.load %arg2[%c192] : memref<243xf32, #tpu.memory_space<smem>>
    %1121 = vector.broadcast %1120 : f32 to vector<24x384xf32>
    %1122 = arith.mulf %1121, %1115 : vector<24x384xf32>
    %1123 = arith.addf %1110, %1122 : vector<24x384xf32>
    %c219 = arith.constant 219 : index
    %1124 = memref.load %arg2[%c219] : memref<243xf32, #tpu.memory_space<smem>>
    %1125 = vector.broadcast %1124 : f32 to vector<24x384xf32>
    %1126 = arith.mulf %1125, %1115 : vector<24x384xf32>
    %1127 = arith.addf %1114, %1126 : vector<24x384xf32>
    %c166 = arith.constant 166 : index
    %1128 = memref.load %arg2[%c166] : memref<243xf32, #tpu.memory_space<smem>>
    %1129 = vector.broadcast %1128 : f32 to vector<24x384xf32>
    %1130 = arith.mulf %1129, %1075 : vector<24x384xf32>
    %1131 = arith.addf %1119, %1130 : vector<24x384xf32>
    %c193 = arith.constant 193 : index
    %1132 = memref.load %arg2[%c193] : memref<243xf32, #tpu.memory_space<smem>>
    %1133 = vector.broadcast %1132 : f32 to vector<24x384xf32>
    %1134 = arith.mulf %1133, %1075 : vector<24x384xf32>
    %1135 = arith.addf %1123, %1134 : vector<24x384xf32>
    %c220 = arith.constant 220 : index
    %1136 = memref.load %arg2[%c220] : memref<243xf32, #tpu.memory_space<smem>>
    %1137 = vector.broadcast %1136 : f32 to vector<24x384xf32>
    %1138 = arith.mulf %1137, %1075 : vector<24x384xf32>
    %1139 = arith.addf %1127, %1138 : vector<24x384xf32>
    %c383_i32_173 = arith.constant 383 : i32
    %1140 = tpu.dynamic_rotate %1075 by %c383_i32_173 dim 1 : vector<24x384xf32>, i32 -> vector<24x384xf32>
    %c167 = arith.constant 167 : index
    %1141 = memref.load %arg2[%c167] : memref<243xf32, #tpu.memory_space<smem>>
    %1142 = vector.broadcast %1141 : f32 to vector<24x384xf32>
    %1143 = arith.mulf %1142, %1140 : vector<24x384xf32>
    %1144 = arith.addf %1131, %1143 : vector<24x384xf32>
    %c194 = arith.constant 194 : index
    %1145 = memref.load %arg2[%c194] : memref<243xf32, #tpu.memory_space<smem>>
    %1146 = vector.broadcast %1145 : f32 to vector<24x384xf32>
    %1147 = arith.mulf %1146, %1140 : vector<24x384xf32>
    %1148 = arith.addf %1135, %1147 : vector<24x384xf32>
    %c221 = arith.constant 221 : index
    %1149 = memref.load %arg2[%c221] : memref<243xf32, #tpu.memory_space<smem>>
    %1150 = vector.broadcast %1149 : f32 to vector<24x384xf32>
    %1151 = arith.mulf %1150, %1140 : vector<24x384xf32>
    %1152 = arith.addf %1139, %1151 : vector<24x384xf32>
    %c367_i32_174 = arith.constant 367 : i32
    %1153 = tpu.dynamic_rotate %1075 by %c367_i32_174 dim 1 : vector<24x384xf32>, i32 -> vector<24x384xf32>
    %c168 = arith.constant 168 : index
    %1154 = memref.load %arg2[%c168] : memref<243xf32, #tpu.memory_space<smem>>
    %1155 = vector.broadcast %1154 : f32 to vector<24x384xf32>
    %1156 = arith.mulf %1155, %1153 : vector<24x384xf32>
    %1157 = arith.addf %1144, %1156 : vector<24x384xf32>
    %c195 = arith.constant 195 : index
    %1158 = memref.load %arg2[%c195] : memref<243xf32, #tpu.memory_space<smem>>
    %1159 = vector.broadcast %1158 : f32 to vector<24x384xf32>
    %1160 = arith.mulf %1159, %1153 : vector<24x384xf32>
    %1161 = arith.addf %1148, %1160 : vector<24x384xf32>
    %c222 = arith.constant 222 : index
    %1162 = memref.load %arg2[%c222] : memref<243xf32, #tpu.memory_space<smem>>
    %1163 = vector.broadcast %1162 : f32 to vector<24x384xf32>
    %1164 = arith.mulf %1163, %1153 : vector<24x384xf32>
    %1165 = arith.addf %1152, %1164 : vector<24x384xf32>
    %c366_i32_175 = arith.constant 366 : i32
    %1166 = tpu.dynamic_rotate %1075 by %c366_i32_175 dim 1 : vector<24x384xf32>, i32 -> vector<24x384xf32>
    %c169 = arith.constant 169 : index
    %1167 = memref.load %arg2[%c169] : memref<243xf32, #tpu.memory_space<smem>>
    %1168 = vector.broadcast %1167 : f32 to vector<24x384xf32>
    %1169 = arith.mulf %1168, %1166 : vector<24x384xf32>
    %1170 = arith.addf %1157, %1169 : vector<24x384xf32>
    %c196 = arith.constant 196 : index
    %1171 = memref.load %arg2[%c196] : memref<243xf32, #tpu.memory_space<smem>>
    %1172 = vector.broadcast %1171 : f32 to vector<24x384xf32>
    %1173 = arith.mulf %1172, %1166 : vector<24x384xf32>
    %1174 = arith.addf %1161, %1173 : vector<24x384xf32>
    %c223 = arith.constant 223 : index
    %1175 = memref.load %arg2[%c223] : memref<243xf32, #tpu.memory_space<smem>>
    %1176 = vector.broadcast %1175 : f32 to vector<24x384xf32>
    %1177 = arith.mulf %1176, %1166 : vector<24x384xf32>
    %1178 = arith.addf %1165, %1177 : vector<24x384xf32>
    %c365_i32_176 = arith.constant 365 : i32
    %1179 = tpu.dynamic_rotate %1075 by %c365_i32_176 dim 1 : vector<24x384xf32>, i32 -> vector<24x384xf32>
    %c170 = arith.constant 170 : index
    %1180 = memref.load %arg2[%c170] : memref<243xf32, #tpu.memory_space<smem>>
    %1181 = vector.broadcast %1180 : f32 to vector<24x384xf32>
    %1182 = arith.mulf %1181, %1179 : vector<24x384xf32>
    %1183 = arith.addf %1170, %1182 : vector<24x384xf32>
    %c197 = arith.constant 197 : index
    %1184 = memref.load %arg2[%c197] : memref<243xf32, #tpu.memory_space<smem>>
    %1185 = vector.broadcast %1184 : f32 to vector<24x384xf32>
    %1186 = arith.mulf %1185, %1179 : vector<24x384xf32>
    %1187 = arith.addf %1174, %1186 : vector<24x384xf32>
    %c224 = arith.constant 224 : index
    %1188 = memref.load %arg2[%c224] : memref<243xf32, #tpu.memory_space<smem>>
    %1189 = vector.broadcast %1188 : f32 to vector<24x384xf32>
    %1190 = arith.mulf %1189, %1179 : vector<24x384xf32>
    %1191 = arith.addf %1178, %1190 : vector<24x384xf32>
    %c8_177 = arith.constant 8 : index
    %c0_178 = arith.constant 0 : index
    %1192 = vector.load %arg8[%c8_177, %c0_178] : memref<40x384xf32, #tpu.memory_space<vmem>>, vector<24x384xf32>
    %c19_i32_179 = arith.constant 19 : i32
    %1193 = tpu.dynamic_rotate %1192 by %c19_i32_179 dim 1 : vector<24x384xf32>, i32 -> vector<24x384xf32>
    %c171 = arith.constant 171 : index
    %1194 = memref.load %arg2[%c171] : memref<243xf32, #tpu.memory_space<smem>>
    %1195 = vector.broadcast %1194 : f32 to vector<24x384xf32>
    %1196 = arith.mulf %1195, %1193 : vector<24x384xf32>
    %1197 = arith.addf %1183, %1196 : vector<24x384xf32>
    %c198 = arith.constant 198 : index
    %1198 = memref.load %arg2[%c198] : memref<243xf32, #tpu.memory_space<smem>>
    %1199 = vector.broadcast %1198 : f32 to vector<24x384xf32>
    %1200 = arith.mulf %1199, %1193 : vector<24x384xf32>
    %1201 = arith.addf %1187, %1200 : vector<24x384xf32>
    %c225 = arith.constant 225 : index
    %1202 = memref.load %arg2[%c225] : memref<243xf32, #tpu.memory_space<smem>>
    %1203 = vector.broadcast %1202 : f32 to vector<24x384xf32>
    %1204 = arith.mulf %1203, %1193 : vector<24x384xf32>
    %1205 = arith.addf %1191, %1204 : vector<24x384xf32>
    %c18_i32_180 = arith.constant 18 : i32
    %1206 = tpu.dynamic_rotate %1192 by %c18_i32_180 dim 1 : vector<24x384xf32>, i32 -> vector<24x384xf32>
    %c172 = arith.constant 172 : index
    %1207 = memref.load %arg2[%c172] : memref<243xf32, #tpu.memory_space<smem>>
    %1208 = vector.broadcast %1207 : f32 to vector<24x384xf32>
    %1209 = arith.mulf %1208, %1206 : vector<24x384xf32>
    %1210 = arith.addf %1197, %1209 : vector<24x384xf32>
    %c199 = arith.constant 199 : index
    %1211 = memref.load %arg2[%c199] : memref<243xf32, #tpu.memory_space<smem>>
    %1212 = vector.broadcast %1211 : f32 to vector<24x384xf32>
    %1213 = arith.mulf %1212, %1206 : vector<24x384xf32>
    %1214 = arith.addf %1201, %1213 : vector<24x384xf32>
    %c226 = arith.constant 226 : index
    %1215 = memref.load %arg2[%c226] : memref<243xf32, #tpu.memory_space<smem>>
    %1216 = vector.broadcast %1215 : f32 to vector<24x384xf32>
    %1217 = arith.mulf %1216, %1206 : vector<24x384xf32>
    %1218 = arith.addf %1205, %1217 : vector<24x384xf32>
    %c17_i32_181 = arith.constant 17 : i32
    %1219 = tpu.dynamic_rotate %1192 by %c17_i32_181 dim 1 : vector<24x384xf32>, i32 -> vector<24x384xf32>
    %c173 = arith.constant 173 : index
    %1220 = memref.load %arg2[%c173] : memref<243xf32, #tpu.memory_space<smem>>
    %1221 = vector.broadcast %1220 : f32 to vector<24x384xf32>
    %1222 = arith.mulf %1221, %1219 : vector<24x384xf32>
    %1223 = arith.addf %1210, %1222 : vector<24x384xf32>
    %c200 = arith.constant 200 : index
    %1224 = memref.load %arg2[%c200] : memref<243xf32, #tpu.memory_space<smem>>
    %1225 = vector.broadcast %1224 : f32 to vector<24x384xf32>
    %1226 = arith.mulf %1225, %1219 : vector<24x384xf32>
    %1227 = arith.addf %1214, %1226 : vector<24x384xf32>
    %c227 = arith.constant 227 : index
    %1228 = memref.load %arg2[%c227] : memref<243xf32, #tpu.memory_space<smem>>
    %1229 = vector.broadcast %1228 : f32 to vector<24x384xf32>
    %1230 = arith.mulf %1229, %1219 : vector<24x384xf32>
    %1231 = arith.addf %1218, %1230 : vector<24x384xf32>
    %c1_i32_182 = arith.constant 1 : i32
    %1232 = tpu.dynamic_rotate %1192 by %c1_i32_182 dim 1 : vector<24x384xf32>, i32 -> vector<24x384xf32>
    %c174 = arith.constant 174 : index
    %1233 = memref.load %arg2[%c174] : memref<243xf32, #tpu.memory_space<smem>>
    %1234 = vector.broadcast %1233 : f32 to vector<24x384xf32>
    %1235 = arith.mulf %1234, %1232 : vector<24x384xf32>
    %1236 = arith.addf %1223, %1235 : vector<24x384xf32>
    %c201 = arith.constant 201 : index
    %1237 = memref.load %arg2[%c201] : memref<243xf32, #tpu.memory_space<smem>>
    %1238 = vector.broadcast %1237 : f32 to vector<24x384xf32>
    %1239 = arith.mulf %1238, %1232 : vector<24x384xf32>
    %1240 = arith.addf %1227, %1239 : vector<24x384xf32>
    %c228 = arith.constant 228 : index
    %1241 = memref.load %arg2[%c228] : memref<243xf32, #tpu.memory_space<smem>>
    %1242 = vector.broadcast %1241 : f32 to vector<24x384xf32>
    %1243 = arith.mulf %1242, %1232 : vector<24x384xf32>
    %1244 = arith.addf %1231, %1243 : vector<24x384xf32>
    %c175 = arith.constant 175 : index
    %1245 = memref.load %arg2[%c175] : memref<243xf32, #tpu.memory_space<smem>>
    %1246 = vector.broadcast %1245 : f32 to vector<24x384xf32>
    %1247 = arith.mulf %1246, %1192 : vector<24x384xf32>
    %1248 = arith.addf %1236, %1247 : vector<24x384xf32>
    %c202 = arith.constant 202 : index
    %1249 = memref.load %arg2[%c202] : memref<243xf32, #tpu.memory_space<smem>>
    %1250 = vector.broadcast %1249 : f32 to vector<24x384xf32>
    %1251 = arith.mulf %1250, %1192 : vector<24x384xf32>
    %1252 = arith.addf %1240, %1251 : vector<24x384xf32>
    %c229 = arith.constant 229 : index
    %1253 = memref.load %arg2[%c229] : memref<243xf32, #tpu.memory_space<smem>>
    %1254 = vector.broadcast %1253 : f32 to vector<24x384xf32>
    %1255 = arith.mulf %1254, %1192 : vector<24x384xf32>
    %1256 = arith.addf %1244, %1255 : vector<24x384xf32>
    %c383_i32_183 = arith.constant 383 : i32
    %1257 = tpu.dynamic_rotate %1192 by %c383_i32_183 dim 1 : vector<24x384xf32>, i32 -> vector<24x384xf32>
    %c176 = arith.constant 176 : index
    %1258 = memref.load %arg2[%c176] : memref<243xf32, #tpu.memory_space<smem>>
    %1259 = vector.broadcast %1258 : f32 to vector<24x384xf32>
    %1260 = arith.mulf %1259, %1257 : vector<24x384xf32>
    %1261 = arith.addf %1248, %1260 : vector<24x384xf32>
    %c203 = arith.constant 203 : index
    %1262 = memref.load %arg2[%c203] : memref<243xf32, #tpu.memory_space<smem>>
    %1263 = vector.broadcast %1262 : f32 to vector<24x384xf32>
    %1264 = arith.mulf %1263, %1257 : vector<24x384xf32>
    %1265 = arith.addf %1252, %1264 : vector<24x384xf32>
    %c230 = arith.constant 230 : index
    %1266 = memref.load %arg2[%c230] : memref<243xf32, #tpu.memory_space<smem>>
    %1267 = vector.broadcast %1266 : f32 to vector<24x384xf32>
    %1268 = arith.mulf %1267, %1257 : vector<24x384xf32>
    %1269 = arith.addf %1256, %1268 : vector<24x384xf32>
    %c367_i32_184 = arith.constant 367 : i32
    %1270 = tpu.dynamic_rotate %1192 by %c367_i32_184 dim 1 : vector<24x384xf32>, i32 -> vector<24x384xf32>
    %c177 = arith.constant 177 : index
    %1271 = memref.load %arg2[%c177] : memref<243xf32, #tpu.memory_space<smem>>
    %1272 = vector.broadcast %1271 : f32 to vector<24x384xf32>
    %1273 = arith.mulf %1272, %1270 : vector<24x384xf32>
    %1274 = arith.addf %1261, %1273 : vector<24x384xf32>
    %c204 = arith.constant 204 : index
    %1275 = memref.load %arg2[%c204] : memref<243xf32, #tpu.memory_space<smem>>
    %1276 = vector.broadcast %1275 : f32 to vector<24x384xf32>
    %1277 = arith.mulf %1276, %1270 : vector<24x384xf32>
    %1278 = arith.addf %1265, %1277 : vector<24x384xf32>
    %c231 = arith.constant 231 : index
    %1279 = memref.load %arg2[%c231] : memref<243xf32, #tpu.memory_space<smem>>
    %1280 = vector.broadcast %1279 : f32 to vector<24x384xf32>
    %1281 = arith.mulf %1280, %1270 : vector<24x384xf32>
    %1282 = arith.addf %1269, %1281 : vector<24x384xf32>
    %c366_i32_185 = arith.constant 366 : i32
    %1283 = tpu.dynamic_rotate %1192 by %c366_i32_185 dim 1 : vector<24x384xf32>, i32 -> vector<24x384xf32>
    %c178 = arith.constant 178 : index
    %1284 = memref.load %arg2[%c178] : memref<243xf32, #tpu.memory_space<smem>>
    %1285 = vector.broadcast %1284 : f32 to vector<24x384xf32>
    %1286 = arith.mulf %1285, %1283 : vector<24x384xf32>
    %1287 = arith.addf %1274, %1286 : vector<24x384xf32>
    %c205 = arith.constant 205 : index
    %1288 = memref.load %arg2[%c205] : memref<243xf32, #tpu.memory_space<smem>>
    %1289 = vector.broadcast %1288 : f32 to vector<24x384xf32>
    %1290 = arith.mulf %1289, %1283 : vector<24x384xf32>
    %1291 = arith.addf %1278, %1290 : vector<24x384xf32>
    %c232 = arith.constant 232 : index
    %1292 = memref.load %arg2[%c232] : memref<243xf32, #tpu.memory_space<smem>>
    %1293 = vector.broadcast %1292 : f32 to vector<24x384xf32>
    %1294 = arith.mulf %1293, %1283 : vector<24x384xf32>
    %1295 = arith.addf %1282, %1294 : vector<24x384xf32>
    %c365_i32_186 = arith.constant 365 : i32
    %1296 = tpu.dynamic_rotate %1192 by %c365_i32_186 dim 1 : vector<24x384xf32>, i32 -> vector<24x384xf32>
    %c179 = arith.constant 179 : index
    %1297 = memref.load %arg2[%c179] : memref<243xf32, #tpu.memory_space<smem>>
    %1298 = vector.broadcast %1297 : f32 to vector<24x384xf32>
    %1299 = arith.mulf %1298, %1296 : vector<24x384xf32>
    %1300 = arith.addf %1287, %1299 : vector<24x384xf32>
    %c206 = arith.constant 206 : index
    %1301 = memref.load %arg2[%c206] : memref<243xf32, #tpu.memory_space<smem>>
    %1302 = vector.broadcast %1301 : f32 to vector<24x384xf32>
    %1303 = arith.mulf %1302, %1296 : vector<24x384xf32>
    %1304 = arith.addf %1291, %1303 : vector<24x384xf32>
    %c233 = arith.constant 233 : index
    %1305 = memref.load %arg2[%c233] : memref<243xf32, #tpu.memory_space<smem>>
    %1306 = vector.broadcast %1305 : f32 to vector<24x384xf32>
    %1307 = arith.mulf %1306, %1296 : vector<24x384xf32>
    %1308 = arith.addf %1295, %1307 : vector<24x384xf32>
    %c9_187 = arith.constant 9 : index
    %c0_188 = arith.constant 0 : index
    %1309 = vector.load %arg8[%c9_187, %c0_188] : memref<40x384xf32, #tpu.memory_space<vmem>>, vector<24x384xf32>
    %c19_i32_189 = arith.constant 19 : i32
    %1310 = tpu.dynamic_rotate %1309 by %c19_i32_189 dim 1 : vector<24x384xf32>, i32 -> vector<24x384xf32>
    %c180 = arith.constant 180 : index
    %1311 = memref.load %arg2[%c180] : memref<243xf32, #tpu.memory_space<smem>>
    %1312 = vector.broadcast %1311 : f32 to vector<24x384xf32>
    %1313 = arith.mulf %1312, %1310 : vector<24x384xf32>
    %1314 = arith.addf %1300, %1313 : vector<24x384xf32>
    %c207 = arith.constant 207 : index
    %1315 = memref.load %arg2[%c207] : memref<243xf32, #tpu.memory_space<smem>>
    %1316 = vector.broadcast %1315 : f32 to vector<24x384xf32>
    %1317 = arith.mulf %1316, %1310 : vector<24x384xf32>
    %1318 = arith.addf %1304, %1317 : vector<24x384xf32>
    %c234 = arith.constant 234 : index
    %1319 = memref.load %arg2[%c234] : memref<243xf32, #tpu.memory_space<smem>>
    %1320 = vector.broadcast %1319 : f32 to vector<24x384xf32>
    %1321 = arith.mulf %1320, %1310 : vector<24x384xf32>
    %1322 = arith.addf %1308, %1321 : vector<24x384xf32>
    %c18_i32_190 = arith.constant 18 : i32
    %1323 = tpu.dynamic_rotate %1309 by %c18_i32_190 dim 1 : vector<24x384xf32>, i32 -> vector<24x384xf32>
    %c181 = arith.constant 181 : index
    %1324 = memref.load %arg2[%c181] : memref<243xf32, #tpu.memory_space<smem>>
    %1325 = vector.broadcast %1324 : f32 to vector<24x384xf32>
    %1326 = arith.mulf %1325, %1323 : vector<24x384xf32>
    %1327 = arith.addf %1314, %1326 : vector<24x384xf32>
    %c208 = arith.constant 208 : index
    %1328 = memref.load %arg2[%c208] : memref<243xf32, #tpu.memory_space<smem>>
    %1329 = vector.broadcast %1328 : f32 to vector<24x384xf32>
    %1330 = arith.mulf %1329, %1323 : vector<24x384xf32>
    %1331 = arith.addf %1318, %1330 : vector<24x384xf32>
    %c235 = arith.constant 235 : index
    %1332 = memref.load %arg2[%c235] : memref<243xf32, #tpu.memory_space<smem>>
    %1333 = vector.broadcast %1332 : f32 to vector<24x384xf32>
    %1334 = arith.mulf %1333, %1323 : vector<24x384xf32>
    %1335 = arith.addf %1322, %1334 : vector<24x384xf32>
    %c17_i32_191 = arith.constant 17 : i32
    %1336 = tpu.dynamic_rotate %1309 by %c17_i32_191 dim 1 : vector<24x384xf32>, i32 -> vector<24x384xf32>
    %c182 = arith.constant 182 : index
    %1337 = memref.load %arg2[%c182] : memref<243xf32, #tpu.memory_space<smem>>
    %1338 = vector.broadcast %1337 : f32 to vector<24x384xf32>
    %1339 = arith.mulf %1338, %1336 : vector<24x384xf32>
    %1340 = arith.addf %1327, %1339 : vector<24x384xf32>
    %c209 = arith.constant 209 : index
    %1341 = memref.load %arg2[%c209] : memref<243xf32, #tpu.memory_space<smem>>
    %1342 = vector.broadcast %1341 : f32 to vector<24x384xf32>
    %1343 = arith.mulf %1342, %1336 : vector<24x384xf32>
    %1344 = arith.addf %1331, %1343 : vector<24x384xf32>
    %c236 = arith.constant 236 : index
    %1345 = memref.load %arg2[%c236] : memref<243xf32, #tpu.memory_space<smem>>
    %1346 = vector.broadcast %1345 : f32 to vector<24x384xf32>
    %1347 = arith.mulf %1346, %1336 : vector<24x384xf32>
    %1348 = arith.addf %1335, %1347 : vector<24x384xf32>
    %c1_i32_192 = arith.constant 1 : i32
    %1349 = tpu.dynamic_rotate %1309 by %c1_i32_192 dim 1 : vector<24x384xf32>, i32 -> vector<24x384xf32>
    %c183 = arith.constant 183 : index
    %1350 = memref.load %arg2[%c183] : memref<243xf32, #tpu.memory_space<smem>>
    %1351 = vector.broadcast %1350 : f32 to vector<24x384xf32>
    %1352 = arith.mulf %1351, %1349 : vector<24x384xf32>
    %1353 = arith.addf %1340, %1352 : vector<24x384xf32>
    %c210 = arith.constant 210 : index
    %1354 = memref.load %arg2[%c210] : memref<243xf32, #tpu.memory_space<smem>>
    %1355 = vector.broadcast %1354 : f32 to vector<24x384xf32>
    %1356 = arith.mulf %1355, %1349 : vector<24x384xf32>
    %1357 = arith.addf %1344, %1356 : vector<24x384xf32>
    %c237 = arith.constant 237 : index
    %1358 = memref.load %arg2[%c237] : memref<243xf32, #tpu.memory_space<smem>>
    %1359 = vector.broadcast %1358 : f32 to vector<24x384xf32>
    %1360 = arith.mulf %1359, %1349 : vector<24x384xf32>
    %1361 = arith.addf %1348, %1360 : vector<24x384xf32>
    %c184 = arith.constant 184 : index
    %1362 = memref.load %arg2[%c184] : memref<243xf32, #tpu.memory_space<smem>>
    %1363 = vector.broadcast %1362 : f32 to vector<24x384xf32>
    %1364 = arith.mulf %1363, %1309 : vector<24x384xf32>
    %1365 = arith.addf %1353, %1364 : vector<24x384xf32>
    %c211 = arith.constant 211 : index
    %1366 = memref.load %arg2[%c211] : memref<243xf32, #tpu.memory_space<smem>>
    %1367 = vector.broadcast %1366 : f32 to vector<24x384xf32>
    %1368 = arith.mulf %1367, %1309 : vector<24x384xf32>
    %1369 = arith.addf %1357, %1368 : vector<24x384xf32>
    %c238 = arith.constant 238 : index
    %1370 = memref.load %arg2[%c238] : memref<243xf32, #tpu.memory_space<smem>>
    %1371 = vector.broadcast %1370 : f32 to vector<24x384xf32>
    %1372 = arith.mulf %1371, %1309 : vector<24x384xf32>
    %1373 = arith.addf %1361, %1372 : vector<24x384xf32>
    %c383_i32_193 = arith.constant 383 : i32
    %1374 = tpu.dynamic_rotate %1309 by %c383_i32_193 dim 1 : vector<24x384xf32>, i32 -> vector<24x384xf32>
    %c185 = arith.constant 185 : index
    %1375 = memref.load %arg2[%c185] : memref<243xf32, #tpu.memory_space<smem>>
    %1376 = vector.broadcast %1375 : f32 to vector<24x384xf32>
    %1377 = arith.mulf %1376, %1374 : vector<24x384xf32>
    %1378 = arith.addf %1365, %1377 : vector<24x384xf32>
    %c212 = arith.constant 212 : index
    %1379 = memref.load %arg2[%c212] : memref<243xf32, #tpu.memory_space<smem>>
    %1380 = vector.broadcast %1379 : f32 to vector<24x384xf32>
    %1381 = arith.mulf %1380, %1374 : vector<24x384xf32>
    %1382 = arith.addf %1369, %1381 : vector<24x384xf32>
    %c239 = arith.constant 239 : index
    %1383 = memref.load %arg2[%c239] : memref<243xf32, #tpu.memory_space<smem>>
    %1384 = vector.broadcast %1383 : f32 to vector<24x384xf32>
    %1385 = arith.mulf %1384, %1374 : vector<24x384xf32>
    %1386 = arith.addf %1373, %1385 : vector<24x384xf32>
    %c367_i32_194 = arith.constant 367 : i32
    %1387 = tpu.dynamic_rotate %1309 by %c367_i32_194 dim 1 : vector<24x384xf32>, i32 -> vector<24x384xf32>
    %c186 = arith.constant 186 : index
    %1388 = memref.load %arg2[%c186] : memref<243xf32, #tpu.memory_space<smem>>
    %1389 = vector.broadcast %1388 : f32 to vector<24x384xf32>
    %1390 = arith.mulf %1389, %1387 : vector<24x384xf32>
    %1391 = arith.addf %1378, %1390 : vector<24x384xf32>
    %c213 = arith.constant 213 : index
    %1392 = memref.load %arg2[%c213] : memref<243xf32, #tpu.memory_space<smem>>
    %1393 = vector.broadcast %1392 : f32 to vector<24x384xf32>
    %1394 = arith.mulf %1393, %1387 : vector<24x384xf32>
    %1395 = arith.addf %1382, %1394 : vector<24x384xf32>
    %c240 = arith.constant 240 : index
    %1396 = memref.load %arg2[%c240] : memref<243xf32, #tpu.memory_space<smem>>
    %1397 = vector.broadcast %1396 : f32 to vector<24x384xf32>
    %1398 = arith.mulf %1397, %1387 : vector<24x384xf32>
    %1399 = arith.addf %1386, %1398 : vector<24x384xf32>
    %c366_i32_195 = arith.constant 366 : i32
    %1400 = tpu.dynamic_rotate %1309 by %c366_i32_195 dim 1 : vector<24x384xf32>, i32 -> vector<24x384xf32>
    %c187 = arith.constant 187 : index
    %1401 = memref.load %arg2[%c187] : memref<243xf32, #tpu.memory_space<smem>>
    %1402 = vector.broadcast %1401 : f32 to vector<24x384xf32>
    %1403 = arith.mulf %1402, %1400 : vector<24x384xf32>
    %1404 = arith.addf %1391, %1403 : vector<24x384xf32>
    %c214 = arith.constant 214 : index
    %1405 = memref.load %arg2[%c214] : memref<243xf32, #tpu.memory_space<smem>>
    %1406 = vector.broadcast %1405 : f32 to vector<24x384xf32>
    %1407 = arith.mulf %1406, %1400 : vector<24x384xf32>
    %1408 = arith.addf %1395, %1407 : vector<24x384xf32>
    %c241 = arith.constant 241 : index
    %1409 = memref.load %arg2[%c241] : memref<243xf32, #tpu.memory_space<smem>>
    %1410 = vector.broadcast %1409 : f32 to vector<24x384xf32>
    %1411 = arith.mulf %1410, %1400 : vector<24x384xf32>
    %1412 = arith.addf %1399, %1411 : vector<24x384xf32>
    %c365_i32_196 = arith.constant 365 : i32
    %1413 = tpu.dynamic_rotate %1309 by %c365_i32_196 dim 1 : vector<24x384xf32>, i32 -> vector<24x384xf32>
    %c188 = arith.constant 188 : index
    %1414 = memref.load %arg2[%c188] : memref<243xf32, #tpu.memory_space<smem>>
    %1415 = vector.broadcast %1414 : f32 to vector<24x384xf32>
    %1416 = arith.mulf %1415, %1413 : vector<24x384xf32>
    %1417 = arith.addf %1404, %1416 : vector<24x384xf32>
    %c215 = arith.constant 215 : index
    %1418 = memref.load %arg2[%c215] : memref<243xf32, #tpu.memory_space<smem>>
    %1419 = vector.broadcast %1418 : f32 to vector<24x384xf32>
    %1420 = arith.mulf %1419, %1413 : vector<24x384xf32>
    %1421 = arith.addf %1408, %1420 : vector<24x384xf32>
    %c242 = arith.constant 242 : index
    %1422 = memref.load %arg2[%c242] : memref<243xf32, #tpu.memory_space<smem>>
    %1423 = vector.broadcast %1422 : f32 to vector<24x384xf32>
    %1424 = arith.mulf %1423, %1413 : vector<24x384xf32>
    %1425 = arith.addf %1412, %1424 : vector<24x384xf32>
    %cst_197 = arith.constant 0.000000e+00 : f32
    %1426 = vector.broadcast %cst_197 : f32 to vector<24x384xf32>
    %1427 = arith.select %112, %1417, %1426 : vector<24x384xi1>, vector<24x384xf32>
    %1428 = vector.shape_cast %1427 : vector<24x384xf32> to vector<1x24x384xf32>
    %cst_198 = arith.constant dense<0.000000e+00> : vector<1xf32>
    %1429 = vector.multi_reduction <add>, %1428, %cst_198 [1, 2] : vector<1x24x384xf32> to vector<1xf32>
    %1430 = vector.shape_cast %1429 : vector<1xf32> to vector<1x1x1xf32>
    %1431 = vector.extract %1430[0, 0, 0] : f32 from vector<1x1x1xf32>
    %1432 = arith.mulf %1427, %1427 : vector<24x384xf32>
    %1433 = vector.shape_cast %1432 : vector<24x384xf32> to vector<1x24x384xf32>
    %cst_199 = arith.constant dense<0.000000e+00> : vector<1xf32>
    %1434 = vector.multi_reduction <add>, %1433, %cst_199 [1, 2] : vector<1x24x384xf32> to vector<1xf32>
    %1435 = vector.shape_cast %1434 : vector<1xf32> to vector<1x1x1xf32>
    %1436 = vector.extract %1435[0, 0, 0] : f32 from vector<1x1x1xf32>
    %cst_200 = arith.constant 2.44140625E-4 : f32
    %1437 = arith.mulf %1431, %cst_200 : f32
    %cst_201 = arith.constant 2.44140625E-4 : f32
    %1438 = arith.mulf %1436, %cst_201 : f32
    %1439 = arith.mulf %1437, %1437 : f32
    %1440 = arith.subf %1438, %1439 : f32
    %1441 = vector.broadcast %1437 : f32 to vector<24x384xf32>
    %1442 = arith.subf %1417, %1441 : vector<24x384xf32>
    %cst_202 = arith.constant 9.99999974E-6 : f32
    %1443 = arith.addf %1440, %cst_202 : f32
    %1444 = math.rsqrt %1443 : f32
    %1445 = vector.broadcast %1444 : f32 to vector<24x384xf32>
    %1446 = arith.mulf %1442, %1445 : vector<24x384xf32>
    %c6_203 = arith.constant 6 : index
    %1447 = memref.load %arg4[%c6_203] : memref<9xf32, #tpu.memory_space<smem>>
    %1448 = vector.broadcast %1447 : f32 to vector<24x384xf32>
    %1449 = arith.mulf %1446, %1448 : vector<24x384xf32>
    %c6_204 = arith.constant 6 : index
    %1450 = memref.load %arg5[%c6_204] : memref<9xf32, #tpu.memory_space<smem>>
    %1451 = vector.broadcast %1450 : f32 to vector<24x384xf32>
    %1452 = arith.addf %1449, %1451 : vector<24x384xf32>
    %1453 = math.tanh %1452 : vector<24x384xf32>
    %cst_205 = arith.constant 0xFF800000 : f32
    %1454 = vector.broadcast %cst_205 : f32 to vector<24x384xf32>
    %1455 = arith.select %112, %1453, %1454 : vector<24x384xi1>, vector<24x384xf32>
    %c383_i32_206 = arith.constant 383 : i32
    %1456 = tpu.dynamic_rotate %1455 by %c383_i32_206 dim 1 : vector<24x384xf32>, i32 -> vector<24x384xf32>
    %c1_i32_207 = arith.constant 1 : i32
    %1457 = tpu.dynamic_rotate %1455 by %c1_i32_207 dim 1 : vector<24x384xf32>, i32 -> vector<24x384xf32>
    %1458 = arith.maximumf %1456, %1457 : vector<24x384xf32>
    %1459 = arith.maximumf %1455, %1458 : vector<24x384xf32>
    %c366_i32_208 = arith.constant 366 : i32
    %1460 = tpu.dynamic_rotate %1459 by %c366_i32_208 dim 1 : vector<24x384xf32>, i32 -> vector<24x384xf32>
    %c18_i32_209 = arith.constant 18 : i32
    %1461 = tpu.dynamic_rotate %1459 by %c18_i32_209 dim 1 : vector<24x384xf32>, i32 -> vector<24x384xf32>
    %1462 = arith.maximumf %1460, %1461 : vector<24x384xf32>
    %1463 = arith.maximumf %1459, %1462 : vector<24x384xf32>
    %c8_210 = arith.constant 8 : index
    %c0_211 = arith.constant 0 : index
    %1464 = vector.load %arg9[%c8_210, %c0_211] : memref<40x384xf32, #tpu.memory_space<vmem>>, vector<24x384xf32>
    tpu.vector_store %arg9[%c8_210, %c0_211], %1463 {strides = array<i32>} : memref<40x384xf32, #tpu.memory_space<vmem>>, vector<24x384xf32>,
    %cst_212 = arith.constant 0.000000e+00 : f32
    %1465 = vector.broadcast %cst_212 : f32 to vector<24x384xf32>
    %1466 = arith.select %112, %1421, %1465 : vector<24x384xi1>, vector<24x384xf32>
    %1467 = vector.shape_cast %1466 : vector<24x384xf32> to vector<1x24x384xf32>
    %cst_213 = arith.constant dense<0.000000e+00> : vector<1xf32>
    %1468 = vector.multi_reduction <add>, %1467, %cst_213 [1, 2] : vector<1x24x384xf32> to vector<1xf32>
    %1469 = vector.shape_cast %1468 : vector<1xf32> to vector<1x1x1xf32>
    %1470 = vector.extract %1469[0, 0, 0] : f32 from vector<1x1x1xf32>
    %1471 = arith.mulf %1466, %1466 : vector<24x384xf32>
    %1472 = vector.shape_cast %1471 : vector<24x384xf32> to vector<1x24x384xf32>
    %cst_214 = arith.constant dense<0.000000e+00> : vector<1xf32>
    %1473 = vector.multi_reduction <add>, %1472, %cst_214 [1, 2] : vector<1x24x384xf32> to vector<1xf32>
    %1474 = vector.shape_cast %1473 : vector<1xf32> to vector<1x1x1xf32>
    %1475 = vector.extract %1474[0, 0, 0] : f32 from vector<1x1x1xf32>
    %cst_215 = arith.constant 2.44140625E-4 : f32
    %1476 = arith.mulf %1470, %cst_215 : f32
    %cst_216 = arith.constant 2.44140625E-4 : f32
    %1477 = arith.mulf %1475, %cst_216 : f32
    %1478 = arith.mulf %1476, %1476 : f32
    %1479 = arith.subf %1477, %1478 : f32
    %1480 = vector.broadcast %1476 : f32 to vector<24x384xf32>
    %1481 = arith.subf %1421, %1480 : vector<24x384xf32>
    %cst_217 = arith.constant 9.99999974E-6 : f32
    %1482 = arith.addf %1479, %cst_217 : f32
    %1483 = math.rsqrt %1482 : f32
    %1484 = vector.broadcast %1483 : f32 to vector<24x384xf32>
    %1485 = arith.mulf %1481, %1484 : vector<24x384xf32>
    %c7_218 = arith.constant 7 : index
    %1486 = memref.load %arg4[%c7_218] : memref<9xf32, #tpu.memory_space<smem>>
    %1487 = vector.broadcast %1486 : f32 to vector<24x384xf32>
    %1488 = arith.mulf %1485, %1487 : vector<24x384xf32>
    %c7_219 = arith.constant 7 : index
    %1489 = memref.load %arg5[%c7_219] : memref<9xf32, #tpu.memory_space<smem>>
    %1490 = vector.broadcast %1489 : f32 to vector<24x384xf32>
    %1491 = arith.addf %1488, %1490 : vector<24x384xf32>
    %1492 = math.tanh %1491 : vector<24x384xf32>
    %cst_220 = arith.constant 0xFF800000 : f32
    %1493 = vector.broadcast %cst_220 : f32 to vector<24x384xf32>
    %1494 = arith.select %112, %1492, %1493 : vector<24x384xi1>, vector<24x384xf32>
    %c383_i32_221 = arith.constant 383 : i32
    %1495 = tpu.dynamic_rotate %1494 by %c383_i32_221 dim 1 : vector<24x384xf32>, i32 -> vector<24x384xf32>
    %c1_i32_222 = arith.constant 1 : i32
    %1496 = tpu.dynamic_rotate %1494 by %c1_i32_222 dim 1 : vector<24x384xf32>, i32 -> vector<24x384xf32>
    %1497 = arith.maximumf %1495, %1496 : vector<24x384xf32>
    %1498 = arith.maximumf %1494, %1497 : vector<24x384xf32>
    %c366_i32_223 = arith.constant 366 : i32
    %1499 = tpu.dynamic_rotate %1498 by %c366_i32_223 dim 1 : vector<24x384xf32>, i32 -> vector<24x384xf32>
    %c18_i32_224 = arith.constant 18 : i32
    %1500 = tpu.dynamic_rotate %1498 by %c18_i32_224 dim 1 : vector<24x384xf32>, i32 -> vector<24x384xf32>
    %1501 = arith.maximumf %1499, %1500 : vector<24x384xf32>
    %1502 = arith.maximumf %1498, %1501 : vector<24x384xf32>
    %c8_225 = arith.constant 8 : index
    %c0_226 = arith.constant 0 : index
    %1503 = vector.load %arg9[%c8_225, %c0_226] : memref<40x384xf32, #tpu.memory_space<vmem>>, vector<24x384xf32>
    tpu.vector_store %arg9[%c8_225, %c0_226], %1502 {strides = array<i32>} : memref<40x384xf32, #tpu.memory_space<vmem>>, vector<24x384xf32>,
    %cst_227 = arith.constant 0.000000e+00 : f32
    %1504 = vector.broadcast %cst_227 : f32 to vector<24x384xf32>
    %1505 = arith.select %112, %1425, %1504 : vector<24x384xi1>, vector<24x384xf32>
    %1506 = vector.shape_cast %1505 : vector<24x384xf32> to vector<1x24x384xf32>
    %cst_228 = arith.constant dense<0.000000e+00> : vector<1xf32>
    %1507 = vector.multi_reduction <add>, %1506, %cst_228 [1, 2] : vector<1x24x384xf32> to vector<1xf32>
    %1508 = vector.shape_cast %1507 : vector<1xf32> to vector<1x1x1xf32>
    %1509 = vector.extract %1508[0, 0, 0] : f32 from vector<1x1x1xf32>
    %1510 = arith.mulf %1505, %1505 : vector<24x384xf32>
    %1511 = vector.shape_cast %1510 : vector<24x384xf32> to vector<1x24x384xf32>
    %cst_229 = arith.constant dense<0.000000e+00> : vector<1xf32>
    %1512 = vector.multi_reduction <add>, %1511, %cst_229 [1, 2] : vector<1x24x384xf32> to vector<1xf32>
    %1513 = vector.shape_cast %1512 : vector<1xf32> to vector<1x1x1xf32>
    %1514 = vector.extract %1513[0, 0, 0] : f32 from vector<1x1x1xf32>
    %cst_230 = arith.constant 2.44140625E-4 : f32
    %1515 = arith.mulf %1509, %cst_230 : f32
    %cst_231 = arith.constant 2.44140625E-4 : f32
    %1516 = arith.mulf %1514, %cst_231 : f32
    %1517 = arith.mulf %1515, %1515 : f32
    %1518 = arith.subf %1516, %1517 : f32
    %1519 = vector.broadcast %1515 : f32 to vector<24x384xf32>
    %1520 = arith.subf %1425, %1519 : vector<24x384xf32>
    %cst_232 = arith.constant 9.99999974E-6 : f32
    %1521 = arith.addf %1518, %cst_232 : f32
    %1522 = math.rsqrt %1521 : f32
    %1523 = vector.broadcast %1522 : f32 to vector<24x384xf32>
    %1524 = arith.mulf %1520, %1523 : vector<24x384xf32>
    %c8_233 = arith.constant 8 : index
    %1525 = memref.load %arg4[%c8_233] : memref<9xf32, #tpu.memory_space<smem>>
    %1526 = vector.broadcast %1525 : f32 to vector<24x384xf32>
    %1527 = arith.mulf %1524, %1526 : vector<24x384xf32>
    %c8_234 = arith.constant 8 : index
    %1528 = memref.load %arg5[%c8_234] : memref<9xf32, #tpu.memory_space<smem>>
    %1529 = vector.broadcast %1528 : f32 to vector<24x384xf32>
    %1530 = arith.addf %1527, %1529 : vector<24x384xf32>
    %1531 = math.tanh %1530 : vector<24x384xf32>
    %cst_235 = arith.constant 0xFF800000 : f32
    %1532 = vector.broadcast %cst_235 : f32 to vector<24x384xf32>
    %1533 = arith.select %112, %1531, %1532 : vector<24x384xi1>, vector<24x384xf32>
    %c383_i32_236 = arith.constant 383 : i32
    %1534 = tpu.dynamic_rotate %1533 by %c383_i32_236 dim 1 : vector<24x384xf32>, i32 -> vector<24x384xf32>
    %c1_i32_237 = arith.constant 1 : i32
    %1535 = tpu.dynamic_rotate %1533 by %c1_i32_237 dim 1 : vector<24x384xf32>, i32 -> vector<24x384xf32>
    %1536 = arith.maximumf %1534, %1535 : vector<24x384xf32>
    %1537 = arith.maximumf %1533, %1536 : vector<24x384xf32>
    %c366_i32_238 = arith.constant 366 : i32
    %1538 = tpu.dynamic_rotate %1537 by %c366_i32_238 dim 1 : vector<24x384xf32>, i32 -> vector<24x384xf32>
    %c18_i32_239 = arith.constant 18 : i32
    %1539 = tpu.dynamic_rotate %1537 by %c18_i32_239 dim 1 : vector<24x384xf32>, i32 -> vector<24x384xf32>
    %1540 = arith.maximumf %1538, %1539 : vector<24x384xf32>
    %1541 = arith.maximumf %1537, %1540 : vector<24x384xf32>
    %c8_240 = arith.constant 8 : index
    %c0_241 = arith.constant 0 : index
    %1542 = vector.load %arg9[%c8_240, %c0_241] : memref<40x384xf32, #tpu.memory_space<vmem>>, vector<24x384xf32>
    tpu.vector_store %arg9[%c8_240, %c0_241], %1541 {strides = array<i32>} : memref<40x384xf32, #tpu.memory_space<vmem>>, vector<24x384xf32>,
    %c0_242 = arith.constant 0 : index
    %1543 = memref.load %arg5[%c0_242] : memref<9xf32, #tpu.memory_space<smem>>
    %1544 = vector.broadcast %1543 : f32 to vector<24x384xf32>
    %1545 = math.tanh %1544 : vector<24x384xf32>
    %cst_243 = arith.constant 0.000000e+00 : f32
    %1546 = vector.broadcast %cst_243 : f32 to vector<24x384xf32>
    %c1_244 = arith.constant 1 : index
    %1547 = memref.load %arg5[%c1_244] : memref<9xf32, #tpu.memory_space<smem>>
    %1548 = vector.broadcast %1547 : f32 to vector<24x384xf32>
    %1549 = math.tanh %1548 : vector<24x384xf32>
    %1550 = arith.cmpf olt, %1549, %1545 : vector<24x384xf32>
    %cst_245 = arith.constant 1.000000e+00 : f32
    %1551 = vector.broadcast %cst_245 : f32 to vector<24x384xf32>
    %1552 = arith.select %1550, %1551, %1546 : vector<24x384xi1>, vector<24x384xf32>
    %1553 = arith.select %1550, %1549, %1545 : vector<24x384xi1>, vector<24x384xf32>
    %c2_246 = arith.constant 2 : index
    %1554 = memref.load %arg5[%c2_246] : memref<9xf32, #tpu.memory_space<smem>>
    %1555 = vector.broadcast %1554 : f32 to vector<24x384xf32>
    %1556 = math.tanh %1555 : vector<24x384xf32>
    %1557 = arith.cmpf olt, %1556, %1553 : vector<24x384xf32>
    %cst_247 = arith.constant 2.000000e+00 : f32
    %1558 = vector.broadcast %cst_247 : f32 to vector<24x384xf32>
    %1559 = arith.select %1557, %1558, %1552 : vector<24x384xi1>, vector<24x384xf32>
    %1560 = arith.select %1557, %1556, %1553 : vector<24x384xi1>, vector<24x384xf32>
    %c3_248 = arith.constant 3 : index
    %1561 = memref.load %arg5[%c3_248] : memref<9xf32, #tpu.memory_space<smem>>
    %1562 = vector.broadcast %1561 : f32 to vector<24x384xf32>
    %1563 = math.tanh %1562 : vector<24x384xf32>
    %1564 = arith.cmpf olt, %1563, %1560 : vector<24x384xf32>
    %cst_249 = arith.constant 3.000000e+00 : f32
    %1565 = vector.broadcast %cst_249 : f32 to vector<24x384xf32>
    %1566 = arith.select %1564, %1565, %1559 : vector<24x384xi1>, vector<24x384xf32>
    %1567 = arith.select %1564, %1563, %1560 : vector<24x384xi1>, vector<24x384xf32>
    %c4_250 = arith.constant 4 : index
    %1568 = memref.load %arg5[%c4_250] : memref<9xf32, #tpu.memory_space<smem>>
    %1569 = vector.broadcast %1568 : f32 to vector<24x384xf32>
    %1570 = math.tanh %1569 : vector<24x384xf32>
    %1571 = arith.cmpf olt, %1570, %1567 : vector<24x384xf32>
    %cst_251 = arith.constant 4.000000e+00 : f32
    %1572 = vector.broadcast %cst_251 : f32 to vector<24x384xf32>
    %1573 = arith.select %1571, %1572, %1566 : vector<24x384xi1>, vector<24x384xf32>
    %1574 = arith.select %1571, %1570, %1567 : vector<24x384xi1>, vector<24x384xf32>
    %c5_252 = arith.constant 5 : index
    %1575 = memref.load %arg5[%c5_252] : memref<9xf32, #tpu.memory_space<smem>>
    %1576 = vector.broadcast %1575 : f32 to vector<24x384xf32>
    %1577 = math.tanh %1576 : vector<24x384xf32>
    %1578 = arith.cmpf olt, %1577, %1574 : vector<24x384xf32>
    %cst_253 = arith.constant 5.000000e+00 : f32
    %1579 = vector.broadcast %cst_253 : f32 to vector<24x384xf32>
    %1580 = arith.select %1578, %1579, %1573 : vector<24x384xi1>, vector<24x384xf32>
    %1581 = arith.select %1578, %1577, %1574 : vector<24x384xi1>, vector<24x384xf32>
    %c6_254 = arith.constant 6 : index
    %1582 = memref.load %arg5[%c6_254] : memref<9xf32, #tpu.memory_space<smem>>
    %1583 = vector.broadcast %1582 : f32 to vector<24x384xf32>
    %1584 = math.tanh %1583 : vector<24x384xf32>
    %1585 = arith.cmpf olt, %1584, %1581 : vector<24x384xf32>
    %cst_255 = arith.constant 6.000000e+00 : f32
    %1586 = vector.broadcast %cst_255 : f32 to vector<24x384xf32>
    %1587 = arith.select %1585, %1586, %1580 : vector<24x384xi1>, vector<24x384xf32>
    %1588 = arith.select %1585, %1584, %1581 : vector<24x384xi1>, vector<24x384xf32>
    %c7_256 = arith.constant 7 : index
    %1589 = memref.load %arg5[%c7_256] : memref<9xf32, #tpu.memory_space<smem>>
    %1590 = vector.broadcast %1589 : f32 to vector<24x384xf32>
    %1591 = math.tanh %1590 : vector<24x384xf32>
    %1592 = arith.cmpf olt, %1591, %1588 : vector<24x384xf32>
    %cst_257 = arith.constant 7.000000e+00 : f32
    %1593 = vector.broadcast %cst_257 : f32 to vector<24x384xf32>
    %1594 = arith.select %1592, %1593, %1587 : vector<24x384xi1>, vector<24x384xf32>
    %1595 = arith.select %1592, %1591, %1588 : vector<24x384xi1>, vector<24x384xf32>
    %c8_258 = arith.constant 8 : index
    %1596 = memref.load %arg5[%c8_258] : memref<9xf32, #tpu.memory_space<smem>>
    %1597 = vector.broadcast %1596 : f32 to vector<24x384xf32>
    %1598 = math.tanh %1597 : vector<24x384xf32>
    %1599 = arith.cmpf olt, %1598, %1595 : vector<24x384xf32>
    %cst_259 = arith.constant 8.000000e+00 : f32
    %1600 = vector.broadcast %cst_259 : f32 to vector<24x384xf32>
    %1601 = arith.select %1599, %1600, %1594 : vector<24x384xi1>, vector<24x384xf32>
    %cst_260 = arith.constant 0.000000e+00 : f32
    %1602 = vector.broadcast %cst_260 : f32 to vector<24x384xf32>
    %1603 = arith.select %112, %1601, %1602 : vector<24x384xi1>, vector<24x384xf32>
    %c8_261 = arith.constant 8 : index
    %c0_262 = arith.constant 0 : index
    %1604 = vector.load %arg8[%c8_261, %c0_262] : memref<40x384xf32, #tpu.memory_space<vmem>>, vector<24x384xf32>
    tpu.vector_store %arg8[%c8_261, %c0_262], %1603 {strides = array<i32>} : memref<40x384xf32, #tpu.memory_space<vmem>>, vector<24x384xf32>,
    %c0_263 = arith.constant 0 : index
    %1605 = memref.load %arg3[%c0_263] : memref<9xf32, #tpu.memory_space<smem>>
    %1606 = vector.broadcast %1605 : f32 to vector<24x384xf32>
    %c1_264 = arith.constant 1 : index
    %1607 = memref.load %arg3[%c1_264] : memref<9xf32, #tpu.memory_space<smem>>
    %1608 = vector.broadcast %1607 : f32 to vector<24x384xf32>
    %c2_265 = arith.constant 2 : index
    %1609 = memref.load %arg3[%c2_265] : memref<9xf32, #tpu.memory_space<smem>>
    %1610 = vector.broadcast %1609 : f32 to vector<24x384xf32>
    %c7_266 = arith.constant 7 : index
    %c0_267 = arith.constant 0 : index
    %1611 = vector.load %arg8[%c7_266, %c0_267] : memref<40x384xf32, #tpu.memory_space<vmem>>, vector<24x384xf32>
    %c19_i32_268 = arith.constant 19 : i32
    %1612 = tpu.dynamic_rotate %1611 by %c19_i32_268 dim 1 : vector<24x384xf32>, i32 -> vector<24x384xf32>
    %c0_269 = arith.constant 0 : index
    %1613 = memref.load %arg2[%c0_269] : memref<243xf32, #tpu.memory_space<smem>>
    %1614 = vector.broadcast %1613 : f32 to vector<24x384xf32>
    %1615 = arith.mulf %1614, %1612 : vector<24x384xf32>
    %1616 = arith.addf %1606, %1615 : vector<24x384xf32>
    %c27_270 = arith.constant 27 : index
    %1617 = memref.load %arg2[%c27_270] : memref<243xf32, #tpu.memory_space<smem>>
    %1618 = vector.broadcast %1617 : f32 to vector<24x384xf32>
    %1619 = arith.mulf %1618, %1612 : vector<24x384xf32>
    %1620 = arith.addf %1608, %1619 : vector<24x384xf32>
    %c54_271 = arith.constant 54 : index
    %1621 = memref.load %arg2[%c54_271] : memref<243xf32, #tpu.memory_space<smem>>
    %1622 = vector.broadcast %1621 : f32 to vector<24x384xf32>
    %1623 = arith.mulf %1622, %1612 : vector<24x384xf32>
    %1624 = arith.addf %1610, %1623 : vector<24x384xf32>
    %c18_i32_272 = arith.constant 18 : i32
    %1625 = tpu.dynamic_rotate %1611 by %c18_i32_272 dim 1 : vector<24x384xf32>, i32 -> vector<24x384xf32>
    %c1_273 = arith.constant 1 : index
    %1626 = memref.load %arg2[%c1_273] : memref<243xf32, #tpu.memory_space<smem>>
    %1627 = vector.broadcast %1626 : f32 to vector<24x384xf32>
    %1628 = arith.mulf %1627, %1625 : vector<24x384xf32>
    %1629 = arith.addf %1616, %1628 : vector<24x384xf32>
    %c28_274 = arith.constant 28 : index
    %1630 = memref.load %arg2[%c28_274] : memref<243xf32, #tpu.memory_space<smem>>
    %1631 = vector.broadcast %1630 : f32 to vector<24x384xf32>
    %1632 = arith.mulf %1631, %1625 : vector<24x384xf32>
    %1633 = arith.addf %1620, %1632 : vector<24x384xf32>
    %c55_275 = arith.constant 55 : index
    %1634 = memref.load %arg2[%c55_275] : memref<243xf32, #tpu.memory_space<smem>>
    %1635 = vector.broadcast %1634 : f32 to vector<24x384xf32>
    %1636 = arith.mulf %1635, %1625 : vector<24x384xf32>
    %1637 = arith.addf %1624, %1636 : vector<24x384xf32>
    %c17_i32_276 = arith.constant 17 : i32
    %1638 = tpu.dynamic_rotate %1611 by %c17_i32_276 dim 1 : vector<24x384xf32>, i32 -> vector<24x384xf32>
    %c2_277 = arith.constant 2 : index
    %1639 = memref.load %arg2[%c2_277] : memref<243xf32, #tpu.memory_space<smem>>
    %1640 = vector.broadcast %1639 : f32 to vector<24x384xf32>
    %1641 = arith.mulf %1640, %1638 : vector<24x384xf32>
    %1642 = arith.addf %1629, %1641 : vector<24x384xf32>
    %c29_278 = arith.constant 29 : index
    %1643 = memref.load %arg2[%c29_278] : memref<243xf32, #tpu.memory_space<smem>>
    %1644 = vector.broadcast %1643 : f32 to vector<24x384xf32>
    %1645 = arith.mulf %1644, %1638 : vector<24x384xf32>
    %1646 = arith.addf %1633, %1645 : vector<24x384xf32>
    %c56_279 = arith.constant 56 : index
    %1647 = memref.load %arg2[%c56_279] : memref<243xf32, #tpu.memory_space<smem>>
    %1648 = vector.broadcast %1647 : f32 to vector<24x384xf32>
    %1649 = arith.mulf %1648, %1638 : vector<24x384xf32>
    %1650 = arith.addf %1637, %1649 : vector<24x384xf32>
    %c1_i32_280 = arith.constant 1 : i32
    %1651 = tpu.dynamic_rotate %1611 by %c1_i32_280 dim 1 : vector<24x384xf32>, i32 -> vector<24x384xf32>
    %c3_281 = arith.constant 3 : index
    %1652 = memref.load %arg2[%c3_281] : memref<243xf32, #tpu.memory_space<smem>>
    %1653 = vector.broadcast %1652 : f32 to vector<24x384xf32>
    %1654 = arith.mulf %1653, %1651 : vector<24x384xf32>
    %1655 = arith.addf %1642, %1654 : vector<24x384xf32>
    %c30_282 = arith.constant 30 : index
    %1656 = memref.load %arg2[%c30_282] : memref<243xf32, #tpu.memory_space<smem>>
    %1657 = vector.broadcast %1656 : f32 to vector<24x384xf32>
    %1658 = arith.mulf %1657, %1651 : vector<24x384xf32>
    %1659 = arith.addf %1646, %1658 : vector<24x384xf32>
    %c57_283 = arith.constant 57 : index
    %1660 = memref.load %arg2[%c57_283] : memref<243xf32, #tpu.memory_space<smem>>
    %1661 = vector.broadcast %1660 : f32 to vector<24x384xf32>
    %1662 = arith.mulf %1661, %1651 : vector<24x384xf32>
    %1663 = arith.addf %1650, %1662 : vector<24x384xf32>
    %c4_284 = arith.constant 4 : index
    %1664 = memref.load %arg2[%c4_284] : memref<243xf32, #tpu.memory_space<smem>>
    %1665 = vector.broadcast %1664 : f32 to vector<24x384xf32>
    %1666 = arith.mulf %1665, %1611 : vector<24x384xf32>
    %1667 = arith.addf %1655, %1666 : vector<24x384xf32>
    %c31_285 = arith.constant 31 : index
    %1668 = memref.load %arg2[%c31_285] : memref<243xf32, #tpu.memory_space<smem>>
    %1669 = vector.broadcast %1668 : f32 to vector<24x384xf32>
    %1670 = arith.mulf %1669, %1611 : vector<24x384xf32>
    %1671 = arith.addf %1659, %1670 : vector<24x384xf32>
    %c58_286 = arith.constant 58 : index
    %1672 = memref.load %arg2[%c58_286] : memref<243xf32, #tpu.memory_space<smem>>
    %1673 = vector.broadcast %1672 : f32 to vector<24x384xf32>
    %1674 = arith.mulf %1673, %1611 : vector<24x384xf32>
    %1675 = arith.addf %1663, %1674 : vector<24x384xf32>
    %c383_i32_287 = arith.constant 383 : i32
    %1676 = tpu.dynamic_rotate %1611 by %c383_i32_287 dim 1 : vector<24x384xf32>, i32 -> vector<24x384xf32>
    %c5_288 = arith.constant 5 : index
    %1677 = memref.load %arg2[%c5_288] : memref<243xf32, #tpu.memory_space<smem>>
    %1678 = vector.broadcast %1677 : f32 to vector<24x384xf32>
    %1679 = arith.mulf %1678, %1676 : vector<24x384xf32>
    %1680 = arith.addf %1667, %1679 : vector<24x384xf32>
    %c32_289 = arith.constant 32 : index
    %1681 = memref.load %arg2[%c32_289] : memref<243xf32, #tpu.memory_space<smem>>
    %1682 = vector.broadcast %1681 : f32 to vector<24x384xf32>
    %1683 = arith.mulf %1682, %1676 : vector<24x384xf32>
    %1684 = arith.addf %1671, %1683 : vector<24x384xf32>
    %c59_290 = arith.constant 59 : index
    %1685 = memref.load %arg2[%c59_290] : memref<243xf32, #tpu.memory_space<smem>>
    %1686 = vector.broadcast %1685 : f32 to vector<24x384xf32>
    %1687 = arith.mulf %1686, %1676 : vector<24x384xf32>
    %1688 = arith.addf %1675, %1687 : vector<24x384xf32>
    %c367_i32_291 = arith.constant 367 : i32
    %1689 = tpu.dynamic_rotate %1611 by %c367_i32_291 dim 1 : vector<24x384xf32>, i32 -> vector<24x384xf32>
    %c6_292 = arith.constant 6 : index
    %1690 = memref.load %arg2[%c6_292] : memref<243xf32, #tpu.memory_space<smem>>
    %1691 = vector.broadcast %1690 : f32 to vector<24x384xf32>
    %1692 = arith.mulf %1691, %1689 : vector<24x384xf32>
    %1693 = arith.addf %1680, %1692 : vector<24x384xf32>
    %c33_293 = arith.constant 33 : index
    %1694 = memref.load %arg2[%c33_293] : memref<243xf32, #tpu.memory_space<smem>>
    %1695 = vector.broadcast %1694 : f32 to vector<24x384xf32>
    %1696 = arith.mulf %1695, %1689 : vector<24x384xf32>
    %1697 = arith.addf %1684, %1696 : vector<24x384xf32>
    %c60_294 = arith.constant 60 : index
    %1698 = memref.load %arg2[%c60_294] : memref<243xf32, #tpu.memory_space<smem>>
    %1699 = vector.broadcast %1698 : f32 to vector<24x384xf32>
    %1700 = arith.mulf %1699, %1689 : vector<24x384xf32>
    %1701 = arith.addf %1688, %1700 : vector<24x384xf32>
    %c366_i32_295 = arith.constant 366 : i32
    %1702 = tpu.dynamic_rotate %1611 by %c366_i32_295 dim 1 : vector<24x384xf32>, i32 -> vector<24x384xf32>
    %c7_296 = arith.constant 7 : index
    %1703 = memref.load %arg2[%c7_296] : memref<243xf32, #tpu.memory_space<smem>>
    %1704 = vector.broadcast %1703 : f32 to vector<24x384xf32>
    %1705 = arith.mulf %1704, %1702 : vector<24x384xf32>
    %1706 = arith.addf %1693, %1705 : vector<24x384xf32>
    %c34_297 = arith.constant 34 : index
    %1707 = memref.load %arg2[%c34_297] : memref<243xf32, #tpu.memory_space<smem>>
    %1708 = vector.broadcast %1707 : f32 to vector<24x384xf32>
    %1709 = arith.mulf %1708, %1702 : vector<24x384xf32>
    %1710 = arith.addf %1697, %1709 : vector<24x384xf32>
    %c61_298 = arith.constant 61 : index
    %1711 = memref.load %arg2[%c61_298] : memref<243xf32, #tpu.memory_space<smem>>
    %1712 = vector.broadcast %1711 : f32 to vector<24x384xf32>
    %1713 = arith.mulf %1712, %1702 : vector<24x384xf32>
    %1714 = arith.addf %1701, %1713 : vector<24x384xf32>
    %c365_i32_299 = arith.constant 365 : i32
    %1715 = tpu.dynamic_rotate %1611 by %c365_i32_299 dim 1 : vector<24x384xf32>, i32 -> vector<24x384xf32>
    %c8_300 = arith.constant 8 : index
    %1716 = memref.load %arg2[%c8_300] : memref<243xf32, #tpu.memory_space<smem>>
    %1717 = vector.broadcast %1716 : f32 to vector<24x384xf32>
    %1718 = arith.mulf %1717, %1715 : vector<24x384xf32>
    %1719 = arith.addf %1706, %1718 : vector<24x384xf32>
    %c35_301 = arith.constant 35 : index
    %1720 = memref.load %arg2[%c35_301] : memref<243xf32, #tpu.memory_space<smem>>
    %1721 = vector.broadcast %1720 : f32 to vector<24x384xf32>
    %1722 = arith.mulf %1721, %1715 : vector<24x384xf32>
    %1723 = arith.addf %1710, %1722 : vector<24x384xf32>
    %c62_302 = arith.constant 62 : index
    %1724 = memref.load %arg2[%c62_302] : memref<243xf32, #tpu.memory_space<smem>>
    %1725 = vector.broadcast %1724 : f32 to vector<24x384xf32>
    %1726 = arith.mulf %1725, %1715 : vector<24x384xf32>
    %1727 = arith.addf %1714, %1726 : vector<24x384xf32>
    %c8_303 = arith.constant 8 : index
    %c0_304 = arith.constant 0 : index
    %1728 = vector.load %arg8[%c8_303, %c0_304] : memref<40x384xf32, #tpu.memory_space<vmem>>, vector<24x384xf32>
    %c19_i32_305 = arith.constant 19 : i32
    %1729 = tpu.dynamic_rotate %1728 by %c19_i32_305 dim 1 : vector<24x384xf32>, i32 -> vector<24x384xf32>
    %c9_306 = arith.constant 9 : index
    %1730 = memref.load %arg2[%c9_306] : memref<243xf32, #tpu.memory_space<smem>>
    %1731 = vector.broadcast %1730 : f32 to vector<24x384xf32>
    %1732 = arith.mulf %1731, %1729 : vector<24x384xf32>
    %1733 = arith.addf %1719, %1732 : vector<24x384xf32>
    %c36_307 = arith.constant 36 : index
    %1734 = memref.load %arg2[%c36_307] : memref<243xf32, #tpu.memory_space<smem>>
    %1735 = vector.broadcast %1734 : f32 to vector<24x384xf32>
    %1736 = arith.mulf %1735, %1729 : vector<24x384xf32>
    %1737 = arith.addf %1723, %1736 : vector<24x384xf32>
    %c63_308 = arith.constant 63 : index
    %1738 = memref.load %arg2[%c63_308] : memref<243xf32, #tpu.memory_space<smem>>
    %1739 = vector.broadcast %1738 : f32 to vector<24x384xf32>
    %1740 = arith.mulf %1739, %1729 : vector<24x384xf32>
    %1741 = arith.addf %1727, %1740 : vector<24x384xf32>
    %c18_i32_309 = arith.constant 18 : i32
    %1742 = tpu.dynamic_rotate %1728 by %c18_i32_309 dim 1 : vector<24x384xf32>, i32 -> vector<24x384xf32>
    %c10_310 = arith.constant 10 : index
    %1743 = memref.load %arg2[%c10_310] : memref<243xf32, #tpu.memory_space<smem>>
    %1744 = vector.broadcast %1743 : f32 to vector<24x384xf32>
    %1745 = arith.mulf %1744, %1742 : vector<24x384xf32>
    %1746 = arith.addf %1733, %1745 : vector<24x384xf32>
    %c37_311 = arith.constant 37 : index
    %1747 = memref.load %arg2[%c37_311] : memref<243xf32, #tpu.memory_space<smem>>
    %1748 = vector.broadcast %1747 : f32 to vector<24x384xf32>
    %1749 = arith.mulf %1748, %1742 : vector<24x384xf32>
    %1750 = arith.addf %1737, %1749 : vector<24x384xf32>
    %c64_312 = arith.constant 64 : index
    %1751 = memref.load %arg2[%c64_312] : memref<243xf32, #tpu.memory_space<smem>>
    %1752 = vector.broadcast %1751 : f32 to vector<24x384xf32>
    %1753 = arith.mulf %1752, %1742 : vector<24x384xf32>
    %1754 = arith.addf %1741, %1753 : vector<24x384xf32>
    %c17_i32_313 = arith.constant 17 : i32
    %1755 = tpu.dynamic_rotate %1728 by %c17_i32_313 dim 1 : vector<24x384xf32>, i32 -> vector<24x384xf32>
    %c11_314 = arith.constant 11 : index
    %1756 = memref.load %arg2[%c11_314] : memref<243xf32, #tpu.memory_space<smem>>
    %1757 = vector.broadcast %1756 : f32 to vector<24x384xf32>
    %1758 = arith.mulf %1757, %1755 : vector<24x384xf32>
    %1759 = arith.addf %1746, %1758 : vector<24x384xf32>
    %c38_315 = arith.constant 38 : index
    %1760 = memref.load %arg2[%c38_315] : memref<243xf32, #tpu.memory_space<smem>>
    %1761 = vector.broadcast %1760 : f32 to vector<24x384xf32>
    %1762 = arith.mulf %1761, %1755 : vector<24x384xf32>
    %1763 = arith.addf %1750, %1762 : vector<24x384xf32>
    %c65_316 = arith.constant 65 : index
    %1764 = memref.load %arg2[%c65_316] : memref<243xf32, #tpu.memory_space<smem>>
    %1765 = vector.broadcast %1764 : f32 to vector<24x384xf32>
    %1766 = arith.mulf %1765, %1755 : vector<24x384xf32>
    %1767 = arith.addf %1754, %1766 : vector<24x384xf32>
    %c1_i32_317 = arith.constant 1 : i32
    %1768 = tpu.dynamic_rotate %1728 by %c1_i32_317 dim 1 : vector<24x384xf32>, i32 -> vector<24x384xf32>
    %c12_318 = arith.constant 12 : index
    %1769 = memref.load %arg2[%c12_318] : memref<243xf32, #tpu.memory_space<smem>>
    %1770 = vector.broadcast %1769 : f32 to vector<24x384xf32>
    %1771 = arith.mulf %1770, %1768 : vector<24x384xf32>
    %1772 = arith.addf %1759, %1771 : vector<24x384xf32>
    %c39_319 = arith.constant 39 : index
    %1773 = memref.load %arg2[%c39_319] : memref<243xf32, #tpu.memory_space<smem>>
    %1774 = vector.broadcast %1773 : f32 to vector<24x384xf32>
    %1775 = arith.mulf %1774, %1768 : vector<24x384xf32>
    %1776 = arith.addf %1763, %1775 : vector<24x384xf32>
    %c66_320 = arith.constant 66 : index
    %1777 = memref.load %arg2[%c66_320] : memref<243xf32, #tpu.memory_space<smem>>
    %1778 = vector.broadcast %1777 : f32 to vector<24x384xf32>
    %1779 = arith.mulf %1778, %1768 : vector<24x384xf32>
    %1780 = arith.addf %1767, %1779 : vector<24x384xf32>
    %c13_321 = arith.constant 13 : index
    %1781 = memref.load %arg2[%c13_321] : memref<243xf32, #tpu.memory_space<smem>>
    %1782 = vector.broadcast %1781 : f32 to vector<24x384xf32>
    %1783 = arith.mulf %1782, %1728 : vector<24x384xf32>
    %1784 = arith.addf %1772, %1783 : vector<24x384xf32>
    %c40_322 = arith.constant 40 : index
    %1785 = memref.load %arg2[%c40_322] : memref<243xf32, #tpu.memory_space<smem>>
    %1786 = vector.broadcast %1785 : f32 to vector<24x384xf32>
    %1787 = arith.mulf %1786, %1728 : vector<24x384xf32>
    %1788 = arith.addf %1776, %1787 : vector<24x384xf32>
    %c67_323 = arith.constant 67 : index
    %1789 = memref.load %arg2[%c67_323] : memref<243xf32, #tpu.memory_space<smem>>
    %1790 = vector.broadcast %1789 : f32 to vector<24x384xf32>
    %1791 = arith.mulf %1790, %1728 : vector<24x384xf32>
    %1792 = arith.addf %1780, %1791 : vector<24x384xf32>
    %c383_i32_324 = arith.constant 383 : i32
    %1793 = tpu.dynamic_rotate %1728 by %c383_i32_324 dim 1 : vector<24x384xf32>, i32 -> vector<24x384xf32>
    %c14_325 = arith.constant 14 : index
    %1794 = memref.load %arg2[%c14_325] : memref<243xf32, #tpu.memory_space<smem>>
    %1795 = vector.broadcast %1794 : f32 to vector<24x384xf32>
    %1796 = arith.mulf %1795, %1793 : vector<24x384xf32>
    %1797 = arith.addf %1784, %1796 : vector<24x384xf32>
    %c41_326 = arith.constant 41 : index
    %1798 = memref.load %arg2[%c41_326] : memref<243xf32, #tpu.memory_space<smem>>
    %1799 = vector.broadcast %1798 : f32 to vector<24x384xf32>
    %1800 = arith.mulf %1799, %1793 : vector<24x384xf32>
    %1801 = arith.addf %1788, %1800 : vector<24x384xf32>
    %c68_327 = arith.constant 68 : index
    %1802 = memref.load %arg2[%c68_327] : memref<243xf32, #tpu.memory_space<smem>>
    %1803 = vector.broadcast %1802 : f32 to vector<24x384xf32>
    %1804 = arith.mulf %1803, %1793 : vector<24x384xf32>
    %1805 = arith.addf %1792, %1804 : vector<24x384xf32>
    %c367_i32_328 = arith.constant 367 : i32
    %1806 = tpu.dynamic_rotate %1728 by %c367_i32_328 dim 1 : vector<24x384xf32>, i32 -> vector<24x384xf32>
    %c15_329 = arith.constant 15 : index
    %1807 = memref.load %arg2[%c15_329] : memref<243xf32, #tpu.memory_space<smem>>
    %1808 = vector.broadcast %1807 : f32 to vector<24x384xf32>
    %1809 = arith.mulf %1808, %1806 : vector<24x384xf32>
    %1810 = arith.addf %1797, %1809 : vector<24x384xf32>
    %c42_330 = arith.constant 42 : index
    %1811 = memref.load %arg2[%c42_330] : memref<243xf32, #tpu.memory_space<smem>>
    %1812 = vector.broadcast %1811 : f32 to vector<24x384xf32>
    %1813 = arith.mulf %1812, %1806 : vector<24x384xf32>
    %1814 = arith.addf %1801, %1813 : vector<24x384xf32>
    %c69_331 = arith.constant 69 : index
    %1815 = memref.load %arg2[%c69_331] : memref<243xf32, #tpu.memory_space<smem>>
    %1816 = vector.broadcast %1815 : f32 to vector<24x384xf32>
    %1817 = arith.mulf %1816, %1806 : vector<24x384xf32>
    %1818 = arith.addf %1805, %1817 : vector<24x384xf32>
    %c366_i32_332 = arith.constant 366 : i32
    %1819 = tpu.dynamic_rotate %1728 by %c366_i32_332 dim 1 : vector<24x384xf32>, i32 -> vector<24x384xf32>
    %c16_333 = arith.constant 16 : index
    %1820 = memref.load %arg2[%c16_333] : memref<243xf32, #tpu.memory_space<smem>>
    %1821 = vector.broadcast %1820 : f32 to vector<24x384xf32>
    %1822 = arith.mulf %1821, %1819 : vector<24x384xf32>
    %1823 = arith.addf %1810, %1822 : vector<24x384xf32>
    %c43_334 = arith.constant 43 : index
    %1824 = memref.load %arg2[%c43_334] : memref<243xf32, #tpu.memory_space<smem>>
    %1825 = vector.broadcast %1824 : f32 to vector<24x384xf32>
    %1826 = arith.mulf %1825, %1819 : vector<24x384xf32>
    %1827 = arith.addf %1814, %1826 : vector<24x384xf32>
    %c70_335 = arith.constant 70 : index
    %1828 = memref.load %arg2[%c70_335] : memref<243xf32, #tpu.memory_space<smem>>
    %1829 = vector.broadcast %1828 : f32 to vector<24x384xf32>
    %1830 = arith.mulf %1829, %1819 : vector<24x384xf32>
    %1831 = arith.addf %1818, %1830 : vector<24x384xf32>
    %c365_i32_336 = arith.constant 365 : i32
    %1832 = tpu.dynamic_rotate %1728 by %c365_i32_336 dim 1 : vector<24x384xf32>, i32 -> vector<24x384xf32>
    %c17_337 = arith.constant 17 : index
    %1833 = memref.load %arg2[%c17_337] : memref<243xf32, #tpu.memory_space<smem>>
    %1834 = vector.broadcast %1833 : f32 to vector<24x384xf32>
    %1835 = arith.mulf %1834, %1832 : vector<24x384xf32>
    %1836 = arith.addf %1823, %1835 : vector<24x384xf32>
    %c44_338 = arith.constant 44 : index
    %1837 = memref.load %arg2[%c44_338] : memref<243xf32, #tpu.memory_space<smem>>
    %1838 = vector.broadcast %1837 : f32 to vector<24x384xf32>
    %1839 = arith.mulf %1838, %1832 : vector<24x384xf32>
    %1840 = arith.addf %1827, %1839 : vector<24x384xf32>
    %c71_339 = arith.constant 71 : index
    %1841 = memref.load %arg2[%c71_339] : memref<243xf32, #tpu.memory_space<smem>>
    %1842 = vector.broadcast %1841 : f32 to vector<24x384xf32>
    %1843 = arith.mulf %1842, %1832 : vector<24x384xf32>
    %1844 = arith.addf %1831, %1843 : vector<24x384xf32>
    %c9_340 = arith.constant 9 : index
    %c0_341 = arith.constant 0 : index
    %1845 = vector.load %arg8[%c9_340, %c0_341] : memref<40x384xf32, #tpu.memory_space<vmem>>, vector<24x384xf32>
    %c19_i32_342 = arith.constant 19 : i32
    %1846 = tpu.dynamic_rotate %1845 by %c19_i32_342 dim 1 : vector<24x384xf32>, i32 -> vector<24x384xf32>
    %c18_343 = arith.constant 18 : index
    %1847 = memref.load %arg2[%c18_343] : memref<243xf32, #tpu.memory_space<smem>>
    %1848 = vector.broadcast %1847 : f32 to vector<24x384xf32>
    %1849 = arith.mulf %1848, %1846 : vector<24x384xf32>
    %1850 = arith.addf %1836, %1849 : vector<24x384xf32>
    %c45_344 = arith.constant 45 : index
    %1851 = memref.load %arg2[%c45_344] : memref<243xf32, #tpu.memory_space<smem>>
    %1852 = vector.broadcast %1851 : f32 to vector<24x384xf32>
    %1853 = arith.mulf %1852, %1846 : vector<24x384xf32>
    %1854 = arith.addf %1840, %1853 : vector<24x384xf32>
    %c72_345 = arith.constant 72 : index
    %1855 = memref.load %arg2[%c72_345] : memref<243xf32, #tpu.memory_space<smem>>
    %1856 = vector.broadcast %1855 : f32 to vector<24x384xf32>
    %1857 = arith.mulf %1856, %1846 : vector<24x384xf32>
    %1858 = arith.addf %1844, %1857 : vector<24x384xf32>
    %c18_i32_346 = arith.constant 18 : i32
    %1859 = tpu.dynamic_rotate %1845 by %c18_i32_346 dim 1 : vector<24x384xf32>, i32 -> vector<24x384xf32>
    %c19_347 = arith.constant 19 : index
    %1860 = memref.load %arg2[%c19_347] : memref<243xf32, #tpu.memory_space<smem>>
    %1861 = vector.broadcast %1860 : f32 to vector<24x384xf32>
    %1862 = arith.mulf %1861, %1859 : vector<24x384xf32>
    %1863 = arith.addf %1850, %1862 : vector<24x384xf32>
    %c46_348 = arith.constant 46 : index
    %1864 = memref.load %arg2[%c46_348] : memref<243xf32, #tpu.memory_space<smem>>
    %1865 = vector.broadcast %1864 : f32 to vector<24x384xf32>
    %1866 = arith.mulf %1865, %1859 : vector<24x384xf32>
    %1867 = arith.addf %1854, %1866 : vector<24x384xf32>
    %c73_349 = arith.constant 73 : index
    %1868 = memref.load %arg2[%c73_349] : memref<243xf32, #tpu.memory_space<smem>>
    %1869 = vector.broadcast %1868 : f32 to vector<24x384xf32>
    %1870 = arith.mulf %1869, %1859 : vector<24x384xf32>
    %1871 = arith.addf %1858, %1870 : vector<24x384xf32>
    %c17_i32_350 = arith.constant 17 : i32
    %1872 = tpu.dynamic_rotate %1845 by %c17_i32_350 dim 1 : vector<24x384xf32>, i32 -> vector<24x384xf32>
    %c20_351 = arith.constant 20 : index
    %1873 = memref.load %arg2[%c20_351] : memref<243xf32, #tpu.memory_space<smem>>
    %1874 = vector.broadcast %1873 : f32 to vector<24x384xf32>
    %1875 = arith.mulf %1874, %1872 : vector<24x384xf32>
    %1876 = arith.addf %1863, %1875 : vector<24x384xf32>
    %c47_352 = arith.constant 47 : index
    %1877 = memref.load %arg2[%c47_352] : memref<243xf32, #tpu.memory_space<smem>>
    %1878 = vector.broadcast %1877 : f32 to vector<24x384xf32>
    %1879 = arith.mulf %1878, %1872 : vector<24x384xf32>
    %1880 = arith.addf %1867, %1879 : vector<24x384xf32>
    %c74_353 = arith.constant 74 : index
    %1881 = memref.load %arg2[%c74_353] : memref<243xf32, #tpu.memory_space<smem>>
    %1882 = vector.broadcast %1881 : f32 to vector<24x384xf32>
    %1883 = arith.mulf %1882, %1872 : vector<24x384xf32>
    %1884 = arith.addf %1871, %1883 : vector<24x384xf32>
    %c1_i32_354 = arith.constant 1 : i32
    %1885 = tpu.dynamic_rotate %1845 by %c1_i32_354 dim 1 : vector<24x384xf32>, i32 -> vector<24x384xf32>
    %c21_355 = arith.constant 21 : index
    %1886 = memref.load %arg2[%c21_355] : memref<243xf32, #tpu.memory_space<smem>>
    %1887 = vector.broadcast %1886 : f32 to vector<24x384xf32>
    %1888 = arith.mulf %1887, %1885 : vector<24x384xf32>
    %1889 = arith.addf %1876, %1888 : vector<24x384xf32>
    %c48_356 = arith.constant 48 : index
    %1890 = memref.load %arg2[%c48_356] : memref<243xf32, #tpu.memory_space<smem>>
    %1891 = vector.broadcast %1890 : f32 to vector<24x384xf32>
    %1892 = arith.mulf %1891, %1885 : vector<24x384xf32>
    %1893 = arith.addf %1880, %1892 : vector<24x384xf32>
    %c75_357 = arith.constant 75 : index
    %1894 = memref.load %arg2[%c75_357] : memref<243xf32, #tpu.memory_space<smem>>
    %1895 = vector.broadcast %1894 : f32 to vector<24x384xf32>
    %1896 = arith.mulf %1895, %1885 : vector<24x384xf32>
    %1897 = arith.addf %1884, %1896 : vector<24x384xf32>
    %c22_358 = arith.constant 22 : index
    %1898 = memref.load %arg2[%c22_358] : memref<243xf32, #tpu.memory_space<smem>>
    %1899 = vector.broadcast %1898 : f32 to vector<24x384xf32>
    %1900 = arith.mulf %1899, %1845 : vector<24x384xf32>
    %1901 = arith.addf %1889, %1900 : vector<24x384xf32>
    %c49_359 = arith.constant 49 : index
    %1902 = memref.load %arg2[%c49_359] : memref<243xf32, #tpu.memory_space<smem>>
    %1903 = vector.broadcast %1902 : f32 to vector<24x384xf32>
    %1904 = arith.mulf %1903, %1845 : vector<24x384xf32>
    %1905 = arith.addf %1893, %1904 : vector<24x384xf32>
    %c76_360 = arith.constant 76 : index
    %1906 = memref.load %arg2[%c76_360] : memref<243xf32, #tpu.memory_space<smem>>
    %1907 = vector.broadcast %1906 : f32 to vector<24x384xf32>
    %1908 = arith.mulf %1907, %1845 : vector<24x384xf32>
    %1909 = arith.addf %1897, %1908 : vector<24x384xf32>
    %c383_i32_361 = arith.constant 383 : i32
    %1910 = tpu.dynamic_rotate %1845 by %c383_i32_361 dim 1 : vector<24x384xf32>, i32 -> vector<24x384xf32>
    %c23_362 = arith.constant 23 : index
    %1911 = memref.load %arg2[%c23_362] : memref<243xf32, #tpu.memory_space<smem>>
    %1912 = vector.broadcast %1911 : f32 to vector<24x384xf32>
    %1913 = arith.mulf %1912, %1910 : vector<24x384xf32>
    %1914 = arith.addf %1901, %1913 : vector<24x384xf32>
    %c50_363 = arith.constant 50 : index
    %1915 = memref.load %arg2[%c50_363] : memref<243xf32, #tpu.memory_space<smem>>
    %1916 = vector.broadcast %1915 : f32 to vector<24x384xf32>
    %1917 = arith.mulf %1916, %1910 : vector<24x384xf32>
    %1918 = arith.addf %1905, %1917 : vector<24x384xf32>
    %c77_364 = arith.constant 77 : index
    %1919 = memref.load %arg2[%c77_364] : memref<243xf32, #tpu.memory_space<smem>>
    %1920 = vector.broadcast %1919 : f32 to vector<24x384xf32>
    %1921 = arith.mulf %1920, %1910 : vector<24x384xf32>
    %1922 = arith.addf %1909, %1921 : vector<24x384xf32>
    %c367_i32_365 = arith.constant 367 : i32
    %1923 = tpu.dynamic_rotate %1845 by %c367_i32_365 dim 1 : vector<24x384xf32>, i32 -> vector<24x384xf32>
    %c24_366 = arith.constant 24 : index
    %1924 = memref.load %arg2[%c24_366] : memref<243xf32, #tpu.memory_space<smem>>
    %1925 = vector.broadcast %1924 : f32 to vector<24x384xf32>
    %1926 = arith.mulf %1925, %1923 : vector<24x384xf32>
    %1927 = arith.addf %1914, %1926 : vector<24x384xf32>
    %c51_367 = arith.constant 51 : index
    %1928 = memref.load %arg2[%c51_367] : memref<243xf32, #tpu.memory_space<smem>>
    %1929 = vector.broadcast %1928 : f32 to vector<24x384xf32>
    %1930 = arith.mulf %1929, %1923 : vector<24x384xf32>
    %1931 = arith.addf %1918, %1930 : vector<24x384xf32>
    %c78_368 = arith.constant 78 : index
    %1932 = memref.load %arg2[%c78_368] : memref<243xf32, #tpu.memory_space<smem>>
    %1933 = vector.broadcast %1932 : f32 to vector<24x384xf32>
    %1934 = arith.mulf %1933, %1923 : vector<24x384xf32>
    %1935 = arith.addf %1922, %1934 : vector<24x384xf32>
    %c366_i32_369 = arith.constant 366 : i32
    %1936 = tpu.dynamic_rotate %1845 by %c366_i32_369 dim 1 : vector<24x384xf32>, i32 -> vector<24x384xf32>
    %c25_370 = arith.constant 25 : index
    %1937 = memref.load %arg2[%c25_370] : memref<243xf32, #tpu.memory_space<smem>>
    %1938 = vector.broadcast %1937 : f32 to vector<24x384xf32>
    %1939 = arith.mulf %1938, %1936 : vector<24x384xf32>
    %1940 = arith.addf %1927, %1939 : vector<24x384xf32>
    %c52_371 = arith.constant 52 : index
    %1941 = memref.load %arg2[%c52_371] : memref<243xf32, #tpu.memory_space<smem>>
    %1942 = vector.broadcast %1941 : f32 to vector<24x384xf32>
    %1943 = arith.mulf %1942, %1936 : vector<24x384xf32>
    %1944 = arith.addf %1931, %1943 : vector<24x384xf32>
    %c79_372 = arith.constant 79 : index
    %1945 = memref.load %arg2[%c79_372] : memref<243xf32, #tpu.memory_space<smem>>
    %1946 = vector.broadcast %1945 : f32 to vector<24x384xf32>
    %1947 = arith.mulf %1946, %1936 : vector<24x384xf32>
    %1948 = arith.addf %1935, %1947 : vector<24x384xf32>
    %c365_i32_373 = arith.constant 365 : i32
    %1949 = tpu.dynamic_rotate %1845 by %c365_i32_373 dim 1 : vector<24x384xf32>, i32 -> vector<24x384xf32>
    %c26_374 = arith.constant 26 : index
    %1950 = memref.load %arg2[%c26_374] : memref<243xf32, #tpu.memory_space<smem>>
    %1951 = vector.broadcast %1950 : f32 to vector<24x384xf32>
    %1952 = arith.mulf %1951, %1949 : vector<24x384xf32>
    %1953 = arith.addf %1940, %1952 : vector<24x384xf32>
    %c53_375 = arith.constant 53 : index
    %1954 = memref.load %arg2[%c53_375] : memref<243xf32, #tpu.memory_space<smem>>
    %1955 = vector.broadcast %1954 : f32 to vector<24x384xf32>
    %1956 = arith.mulf %1955, %1949 : vector<24x384xf32>
    %1957 = arith.addf %1944, %1956 : vector<24x384xf32>
    %c80_376 = arith.constant 80 : index
    %1958 = memref.load %arg2[%c80_376] : memref<243xf32, #tpu.memory_space<smem>>
    %1959 = vector.broadcast %1958 : f32 to vector<24x384xf32>
    %1960 = arith.mulf %1959, %1949 : vector<24x384xf32>
    %1961 = arith.addf %1948, %1960 : vector<24x384xf32>
    %cst_377 = arith.constant 0.000000e+00 : f32
    %1962 = vector.broadcast %cst_377 : f32 to vector<24x384xf32>
    %1963 = arith.select %112, %1953, %1962 : vector<24x384xi1>, vector<24x384xf32>
    %1964 = vector.shape_cast %1963 : vector<24x384xf32> to vector<1x24x384xf32>
    %cst_378 = arith.constant dense<0.000000e+00> : vector<1xf32>
    %1965 = vector.multi_reduction <add>, %1964, %cst_378 [1, 2] : vector<1x24x384xf32> to vector<1xf32>
    %1966 = vector.shape_cast %1965 : vector<1xf32> to vector<1x1x1xf32>
    %1967 = vector.extract %1966[0, 0, 0] : f32 from vector<1x1x1xf32>
    %1968 = arith.mulf %1963, %1963 : vector<24x384xf32>
    %1969 = vector.shape_cast %1968 : vector<24x384xf32> to vector<1x24x384xf32>
    %cst_379 = arith.constant dense<0.000000e+00> : vector<1xf32>
    %1970 = vector.multi_reduction <add>, %1969, %cst_379 [1, 2] : vector<1x24x384xf32> to vector<1xf32>
    %1971 = vector.shape_cast %1970 : vector<1xf32> to vector<1x1x1xf32>
    %1972 = vector.extract %1971[0, 0, 0] : f32 from vector<1x1x1xf32>
    %cst_380 = arith.constant 2.44140625E-4 : f32
    %1973 = arith.mulf %1967, %cst_380 : f32
    %cst_381 = arith.constant 2.44140625E-4 : f32
    %1974 = arith.mulf %1972, %cst_381 : f32
    %1975 = arith.mulf %1973, %1973 : f32
    %1976 = arith.subf %1974, %1975 : f32
    %1977 = vector.broadcast %1973 : f32 to vector<24x384xf32>
    %1978 = arith.subf %1953, %1977 : vector<24x384xf32>
    %cst_382 = arith.constant 9.99999974E-6 : f32
    %1979 = arith.addf %1976, %cst_382 : f32
    %1980 = math.rsqrt %1979 : f32
    %1981 = vector.broadcast %1980 : f32 to vector<24x384xf32>
    %1982 = arith.mulf %1978, %1981 : vector<24x384xf32>
    %c0_383 = arith.constant 0 : index
    %1983 = memref.load %arg4[%c0_383] : memref<9xf32, #tpu.memory_space<smem>>
    %1984 = vector.broadcast %1983 : f32 to vector<24x384xf32>
    %1985 = arith.mulf %1982, %1984 : vector<24x384xf32>
    %c0_384 = arith.constant 0 : index
    %1986 = memref.load %arg5[%c0_384] : memref<9xf32, #tpu.memory_space<smem>>
    %1987 = vector.broadcast %1986 : f32 to vector<24x384xf32>
    %1988 = arith.addf %1985, %1987 : vector<24x384xf32>
    %1989 = math.tanh %1988 : vector<24x384xf32>
    %cst_385 = arith.constant 0xFF800000 : f32
    %1990 = vector.broadcast %cst_385 : f32 to vector<24x384xf32>
    %1991 = arith.select %112, %1989, %1990 : vector<24x384xi1>, vector<24x384xf32>
    %c383_i32_386 = arith.constant 383 : i32
    %1992 = tpu.dynamic_rotate %1991 by %c383_i32_386 dim 1 : vector<24x384xf32>, i32 -> vector<24x384xf32>
    %c1_i32_387 = arith.constant 1 : i32
    %1993 = tpu.dynamic_rotate %1991 by %c1_i32_387 dim 1 : vector<24x384xf32>, i32 -> vector<24x384xf32>
    %1994 = arith.maximumf %1992, %1993 : vector<24x384xf32>
    %1995 = arith.maximumf %1991, %1994 : vector<24x384xf32>
    %c366_i32_388 = arith.constant 366 : i32
    %1996 = tpu.dynamic_rotate %1995 by %c366_i32_388 dim 1 : vector<24x384xf32>, i32 -> vector<24x384xf32>
    %c18_i32_389 = arith.constant 18 : i32
    %1997 = tpu.dynamic_rotate %1995 by %c18_i32_389 dim 1 : vector<24x384xf32>, i32 -> vector<24x384xf32>
    %1998 = arith.maximumf %1996, %1997 : vector<24x384xf32>
    %1999 = arith.maximumf %1995, %1998 : vector<24x384xf32>
    %c8_390 = arith.constant 8 : index
    %c0_391 = arith.constant 0 : index
    %2000 = vector.load %arg9[%c8_390, %c0_391] : memref<40x384xf32, #tpu.memory_space<vmem>>, vector<24x384xf32>
    tpu.vector_store %arg9[%c8_390, %c0_391], %1999 {strides = array<i32>} : memref<40x384xf32, #tpu.memory_space<vmem>>, vector<24x384xf32>,
    %cst_392 = arith.constant 0.000000e+00 : f32
    %2001 = vector.broadcast %cst_392 : f32 to vector<24x384xf32>
    %2002 = arith.select %112, %1957, %2001 : vector<24x384xi1>, vector<24x384xf32>
    %2003 = vector.shape_cast %2002 : vector<24x384xf32> to vector<1x24x384xf32>
    %cst_393 = arith.constant dense<0.000000e+00> : vector<1xf32>
    %2004 = vector.multi_reduction <add>, %2003, %cst_393 [1, 2] : vector<1x24x384xf32> to vector<1xf32>
    %2005 = vector.shape_cast %2004 : vector<1xf32> to vector<1x1x1xf32>
    %2006 = vector.extract %2005[0, 0, 0] : f32 from vector<1x1x1xf32>
    %2007 = arith.mulf %2002, %2002 : vector<24x384xf32>
    %2008 = vector.shape_cast %2007 : vector<24x384xf32> to vector<1x24x384xf32>
    %cst_394 = arith.constant dense<0.000000e+00> : vector<1xf32>
    %2009 = vector.multi_reduction <add>, %2008, %cst_394 [1, 2] : vector<1x24x384xf32> to vector<1xf32>
    %2010 = vector.shape_cast %2009 : vector<1xf32> to vector<1x1x1xf32>
    %2011 = vector.extract %2010[0, 0, 0] : f32 from vector<1x1x1xf32>
    %cst_395 = arith.constant 2.44140625E-4 : f32
    %2012 = arith.mulf %2006, %cst_395 : f32
    %cst_396 = arith.constant 2.44140625E-4 : f32
    %2013 = arith.mulf %2011, %cst_396 : f32
    %2014 = arith.mulf %2012, %2012 : f32
    %2015 = arith.subf %2013, %2014 : f32
    %2016 = vector.broadcast %2012 : f32 to vector<24x384xf32>
    %2017 = arith.subf %1957, %2016 : vector<24x384xf32>
    %cst_397 = arith.constant 9.99999974E-6 : f32
    %2018 = arith.addf %2015, %cst_397 : f32
    %2019 = math.rsqrt %2018 : f32
    %2020 = vector.broadcast %2019 : f32 to vector<24x384xf32>
    %2021 = arith.mulf %2017, %2020 : vector<24x384xf32>
    %c1_398 = arith.constant 1 : index
    %2022 = memref.load %arg4[%c1_398] : memref<9xf32, #tpu.memory_space<smem>>
    %2023 = vector.broadcast %2022 : f32 to vector<24x384xf32>
    %2024 = arith.mulf %2021, %2023 : vector<24x384xf32>
    %c1_399 = arith.constant 1 : index
    %2025 = memref.load %arg5[%c1_399] : memref<9xf32, #tpu.memory_space<smem>>
    %2026 = vector.broadcast %2025 : f32 to vector<24x384xf32>
    %2027 = arith.addf %2024, %2026 : vector<24x384xf32>
    %2028 = math.tanh %2027 : vector<24x384xf32>
    %cst_400 = arith.constant 0xFF800000 : f32
    %2029 = vector.broadcast %cst_400 : f32 to vector<24x384xf32>
    %2030 = arith.select %112, %2028, %2029 : vector<24x384xi1>, vector<24x384xf32>
    %c383_i32_401 = arith.constant 383 : i32
    %2031 = tpu.dynamic_rotate %2030 by %c383_i32_401 dim 1 : vector<24x384xf32>, i32 -> vector<24x384xf32>
    %c1_i32_402 = arith.constant 1 : i32
    %2032 = tpu.dynamic_rotate %2030 by %c1_i32_402 dim 1 : vector<24x384xf32>, i32 -> vector<24x384xf32>
    %2033 = arith.maximumf %2031, %2032 : vector<24x384xf32>
    %2034 = arith.maximumf %2030, %2033 : vector<24x384xf32>
    %c366_i32_403 = arith.constant 366 : i32
    %2035 = tpu.dynamic_rotate %2034 by %c366_i32_403 dim 1 : vector<24x384xf32>, i32 -> vector<24x384xf32>
    %c18_i32_404 = arith.constant 18 : i32
    %2036 = tpu.dynamic_rotate %2034 by %c18_i32_404 dim 1 : vector<24x384xf32>, i32 -> vector<24x384xf32>
    %2037 = arith.maximumf %2035, %2036 : vector<24x384xf32>
    %2038 = arith.maximumf %2034, %2037 : vector<24x384xf32>
    %c8_405 = arith.constant 8 : index
    %c0_406 = arith.constant 0 : index
    %2039 = vector.load %arg9[%c8_405, %c0_406] : memref<40x384xf32, #tpu.memory_space<vmem>>, vector<24x384xf32>
    tpu.vector_store %arg9[%c8_405, %c0_406], %2038 {strides = array<i32>} : memref<40x384xf32, #tpu.memory_space<vmem>>, vector<24x384xf32>,
    %cst_407 = arith.constant 0.000000e+00 : f32
    %2040 = vector.broadcast %cst_407 : f32 to vector<24x384xf32>
    %2041 = arith.select %112, %1961, %2040 : vector<24x384xi1>, vector<24x384xf32>
    %2042 = vector.shape_cast %2041 : vector<24x384xf32> to vector<1x24x384xf32>
    %cst_408 = arith.constant dense<0.000000e+00> : vector<1xf32>
    %2043 = vector.multi_reduction <add>, %2042, %cst_408 [1, 2] : vector<1x24x384xf32> to vector<1xf32>
    %2044 = vector.shape_cast %2043 : vector<1xf32> to vector<1x1x1xf32>
    %2045 = vector.extract %2044[0, 0, 0] : f32 from vector<1x1x1xf32>
    %2046 = arith.mulf %2041, %2041 : vector<24x384xf32>
    %2047 = vector.shape_cast %2046 : vector<24x384xf32> to vector<1x24x384xf32>
    %cst_409 = arith.constant dense<0.000000e+00> : vector<1xf32>
    %2048 = vector.multi_reduction <add>, %2047, %cst_409 [1, 2] : vector<1x24x384xf32> to vector<1xf32>
    %2049 = vector.shape_cast %2048 : vector<1xf32> to vector<1x1x1xf32>
    %2050 = vector.extract %2049[0, 0, 0] : f32 from vector<1x1x1xf32>
    %cst_410 = arith.constant 2.44140625E-4 : f32
    %2051 = arith.mulf %2045, %cst_410 : f32
    %cst_411 = arith.constant 2.44140625E-4 : f32
    %2052 = arith.mulf %2050, %cst_411 : f32
    %2053 = arith.mulf %2051, %2051 : f32
    %2054 = arith.subf %2052, %2053 : f32
    %2055 = vector.broadcast %2051 : f32 to vector<24x384xf32>
    %2056 = arith.subf %1961, %2055 : vector<24x384xf32>
    %cst_412 = arith.constant 9.99999974E-6 : f32
    %2057 = arith.addf %2054, %cst_412 : f32
    %2058 = math.rsqrt %2057 : f32
    %2059 = vector.broadcast %2058 : f32 to vector<24x384xf32>
    %2060 = arith.mulf %2056, %2059 : vector<24x384xf32>
    %c2_413 = arith.constant 2 : index
    %2061 = memref.load %arg4[%c2_413] : memref<9xf32, #tpu.memory_space<smem>>
    %2062 = vector.broadcast %2061 : f32 to vector<24x384xf32>
    %2063 = arith.mulf %2060, %2062 : vector<24x384xf32>
    %c2_414 = arith.constant 2 : index
    %2064 = memref.load %arg5[%c2_414] : memref<9xf32, #tpu.memory_space<smem>>
    %2065 = vector.broadcast %2064 : f32 to vector<24x384xf32>
    %2066 = arith.addf %2063, %2065 : vector<24x384xf32>
    %2067 = math.tanh %2066 : vector<24x384xf32>
    %cst_415 = arith.constant 0xFF800000 : f32
    %2068 = vector.broadcast %cst_415 : f32 to vector<24x384xf32>
    %2069 = arith.select %112, %2067, %2068 : vector<24x384xi1>, vector<24x384xf32>
    %c383_i32_416 = arith.constant 383 : i32
    %2070 = tpu.dynamic_rotate %2069 by %c383_i32_416 dim 1 : vector<24x384xf32>, i32 -> vector<24x384xf32>
    %c1_i32_417 = arith.constant 1 : i32
    %2071 = tpu.dynamic_rotate %2069 by %c1_i32_417 dim 1 : vector<24x384xf32>, i32 -> vector<24x384xf32>
    %2072 = arith.maximumf %2070, %2071 : vector<24x384xf32>
    %2073 = arith.maximumf %2069, %2072 : vector<24x384xf32>
    %c366_i32_418 = arith.constant 366 : i32
    %2074 = tpu.dynamic_rotate %2073 by %c366_i32_418 dim 1 : vector<24x384xf32>, i32 -> vector<24x384xf32>
    %c18_i32_419 = arith.constant 18 : i32
    %2075 = tpu.dynamic_rotate %2073 by %c18_i32_419 dim 1 : vector<24x384xf32>, i32 -> vector<24x384xf32>
    %2076 = arith.maximumf %2074, %2075 : vector<24x384xf32>
    %2077 = arith.maximumf %2073, %2076 : vector<24x384xf32>
    %c8_420 = arith.constant 8 : index
    %c0_421 = arith.constant 0 : index
    %2078 = vector.load %arg9[%c8_420, %c0_421] : memref<40x384xf32, #tpu.memory_space<vmem>>, vector<24x384xf32>
    tpu.vector_store %arg9[%c8_420, %c0_421], %2077 {strides = array<i32>} : memref<40x384xf32, #tpu.memory_space<vmem>>, vector<24x384xf32>,
    %c3_422 = arith.constant 3 : index
    %2079 = memref.load %arg3[%c3_422] : memref<9xf32, #tpu.memory_space<smem>>
    %2080 = vector.broadcast %2079 : f32 to vector<24x384xf32>
    %c4_423 = arith.constant 4 : index
    %2081 = memref.load %arg3[%c4_423] : memref<9xf32, #tpu.memory_space<smem>>
    %2082 = vector.broadcast %2081 : f32 to vector<24x384xf32>
    %c5_424 = arith.constant 5 : index
    %2083 = memref.load %arg3[%c5_424] : memref<9xf32, #tpu.memory_space<smem>>
    %2084 = vector.broadcast %2083 : f32 to vector<24x384xf32>
    %c7_425 = arith.constant 7 : index
    %c0_426 = arith.constant 0 : index
    %2085 = vector.load %arg8[%c7_425, %c0_426] : memref<40x384xf32, #tpu.memory_space<vmem>>, vector<24x384xf32>
    %c19_i32_427 = arith.constant 19 : i32
    %2086 = tpu.dynamic_rotate %2085 by %c19_i32_427 dim 1 : vector<24x384xf32>, i32 -> vector<24x384xf32>
    %c81_428 = arith.constant 81 : index
    %2087 = memref.load %arg2[%c81_428] : memref<243xf32, #tpu.memory_space<smem>>
    %2088 = vector.broadcast %2087 : f32 to vector<24x384xf32>
    %2089 = arith.mulf %2088, %2086 : vector<24x384xf32>
    %2090 = arith.addf %2080, %2089 : vector<24x384xf32>
    %c108_429 = arith.constant 108 : index
    %2091 = memref.load %arg2[%c108_429] : memref<243xf32, #tpu.memory_space<smem>>
    %2092 = vector.broadcast %2091 : f32 to vector<24x384xf32>
    %2093 = arith.mulf %2092, %2086 : vector<24x384xf32>
    %2094 = arith.addf %2082, %2093 : vector<24x384xf32>
    %c135_430 = arith.constant 135 : index
    %2095 = memref.load %arg2[%c135_430] : memref<243xf32, #tpu.memory_space<smem>>
    %2096 = vector.broadcast %2095 : f32 to vector<24x384xf32>
    %2097 = arith.mulf %2096, %2086 : vector<24x384xf32>
    %2098 = arith.addf %2084, %2097 : vector<24x384xf32>
    %c18_i32_431 = arith.constant 18 : i32
    %2099 = tpu.dynamic_rotate %2085 by %c18_i32_431 dim 1 : vector<24x384xf32>, i32 -> vector<24x384xf32>
    %c82_432 = arith.constant 82 : index
    %2100 = memref.load %arg2[%c82_432] : memref<243xf32, #tpu.memory_space<smem>>
    %2101 = vector.broadcast %2100 : f32 to vector<24x384xf32>
    %2102 = arith.mulf %2101, %2099 : vector<24x384xf32>
    %2103 = arith.addf %2090, %2102 : vector<24x384xf32>
    %c109_433 = arith.constant 109 : index
    %2104 = memref.load %arg2[%c109_433] : memref<243xf32, #tpu.memory_space<smem>>
    %2105 = vector.broadcast %2104 : f32 to vector<24x384xf32>
    %2106 = arith.mulf %2105, %2099 : vector<24x384xf32>
    %2107 = arith.addf %2094, %2106 : vector<24x384xf32>
    %c136_434 = arith.constant 136 : index
    %2108 = memref.load %arg2[%c136_434] : memref<243xf32, #tpu.memory_space<smem>>
    %2109 = vector.broadcast %2108 : f32 to vector<24x384xf32>
    %2110 = arith.mulf %2109, %2099 : vector<24x384xf32>
    %2111 = arith.addf %2098, %2110 : vector<24x384xf32>
    %c17_i32_435 = arith.constant 17 : i32
    %2112 = tpu.dynamic_rotate %2085 by %c17_i32_435 dim 1 : vector<24x384xf32>, i32 -> vector<24x384xf32>
    %c83_436 = arith.constant 83 : index
    %2113 = memref.load %arg2[%c83_436] : memref<243xf32, #tpu.memory_space<smem>>
    %2114 = vector.broadcast %2113 : f32 to vector<24x384xf32>
    %2115 = arith.mulf %2114, %2112 : vector<24x384xf32>
    %2116 = arith.addf %2103, %2115 : vector<24x384xf32>
    %c110_437 = arith.constant 110 : index
    %2117 = memref.load %arg2[%c110_437] : memref<243xf32, #tpu.memory_space<smem>>
    %2118 = vector.broadcast %2117 : f32 to vector<24x384xf32>
    %2119 = arith.mulf %2118, %2112 : vector<24x384xf32>
    %2120 = arith.addf %2107, %2119 : vector<24x384xf32>
    %c137_438 = arith.constant 137 : index
    %2121 = memref.load %arg2[%c137_438] : memref<243xf32, #tpu.memory_space<smem>>
    %2122 = vector.broadcast %2121 : f32 to vector<24x384xf32>
    %2123 = arith.mulf %2122, %2112 : vector<24x384xf32>
    %2124 = arith.addf %2111, %2123 : vector<24x384xf32>
    %c1_i32_439 = arith.constant 1 : i32
    %2125 = tpu.dynamic_rotate %2085 by %c1_i32_439 dim 1 : vector<24x384xf32>, i32 -> vector<24x384xf32>
    %c84_440 = arith.constant 84 : index
    %2126 = memref.load %arg2[%c84_440] : memref<243xf32, #tpu.memory_space<smem>>
    %2127 = vector.broadcast %2126 : f32 to vector<24x384xf32>
    %2128 = arith.mulf %2127, %2125 : vector<24x384xf32>
    %2129 = arith.addf %2116, %2128 : vector<24x384xf32>
    %c111_441 = arith.constant 111 : index
    %2130 = memref.load %arg2[%c111_441] : memref<243xf32, #tpu.memory_space<smem>>
    %2131 = vector.broadcast %2130 : f32 to vector<24x384xf32>
    %2132 = arith.mulf %2131, %2125 : vector<24x384xf32>
    %2133 = arith.addf %2120, %2132 : vector<24x384xf32>
    %c138_442 = arith.constant 138 : index
    %2134 = memref.load %arg2[%c138_442] : memref<243xf32, #tpu.memory_space<smem>>
    %2135 = vector.broadcast %2134 : f32 to vector<24x384xf32>
    %2136 = arith.mulf %2135, %2125 : vector<24x384xf32>
    %2137 = arith.addf %2124, %2136 : vector<24x384xf32>
    %c85_443 = arith.constant 85 : index
    %2138 = memref.load %arg2[%c85_443] : memref<243xf32, #tpu.memory_space<smem>>
    %2139 = vector.broadcast %2138 : f32 to vector<24x384xf32>
    %2140 = arith.mulf %2139, %2085 : vector<24x384xf32>
    %2141 = arith.addf %2129, %2140 : vector<24x384xf32>
    %c112_444 = arith.constant 112 : index
    %2142 = memref.load %arg2[%c112_444] : memref<243xf32, #tpu.memory_space<smem>>
    %2143 = vector.broadcast %2142 : f32 to vector<24x384xf32>
    %2144 = arith.mulf %2143, %2085 : vector<24x384xf32>
    %2145 = arith.addf %2133, %2144 : vector<24x384xf32>
    %c139_445 = arith.constant 139 : index
    %2146 = memref.load %arg2[%c139_445] : memref<243xf32, #tpu.memory_space<smem>>
    %2147 = vector.broadcast %2146 : f32 to vector<24x384xf32>
    %2148 = arith.mulf %2147, %2085 : vector<24x384xf32>
    %2149 = arith.addf %2137, %2148 : vector<24x384xf32>
    %c383_i32_446 = arith.constant 383 : i32
    %2150 = tpu.dynamic_rotate %2085 by %c383_i32_446 dim 1 : vector<24x384xf32>, i32 -> vector<24x384xf32>
    %c86_447 = arith.constant 86 : index
    %2151 = memref.load %arg2[%c86_447] : memref<243xf32, #tpu.memory_space<smem>>
    %2152 = vector.broadcast %2151 : f32 to vector<24x384xf32>
    %2153 = arith.mulf %2152, %2150 : vector<24x384xf32>
    %2154 = arith.addf %2141, %2153 : vector<24x384xf32>
    %c113_448 = arith.constant 113 : index
    %2155 = memref.load %arg2[%c113_448] : memref<243xf32, #tpu.memory_space<smem>>
    %2156 = vector.broadcast %2155 : f32 to vector<24x384xf32>
    %2157 = arith.mulf %2156, %2150 : vector<24x384xf32>
    %2158 = arith.addf %2145, %2157 : vector<24x384xf32>
    %c140_449 = arith.constant 140 : index
    %2159 = memref.load %arg2[%c140_449] : memref<243xf32, #tpu.memory_space<smem>>
    %2160 = vector.broadcast %2159 : f32 to vector<24x384xf32>
    %2161 = arith.mulf %2160, %2150 : vector<24x384xf32>
    %2162 = arith.addf %2149, %2161 : vector<24x384xf32>
    %c367_i32_450 = arith.constant 367 : i32
    %2163 = tpu.dynamic_rotate %2085 by %c367_i32_450 dim 1 : vector<24x384xf32>, i32 -> vector<24x384xf32>
    %c87_451 = arith.constant 87 : index
    %2164 = memref.load %arg2[%c87_451] : memref<243xf32, #tpu.memory_space<smem>>
    %2165 = vector.broadcast %2164 : f32 to vector<24x384xf32>
    %2166 = arith.mulf %2165, %2163 : vector<24x384xf32>
    %2167 = arith.addf %2154, %2166 : vector<24x384xf32>
    %c114_452 = arith.constant 114 : index
    %2168 = memref.load %arg2[%c114_452] : memref<243xf32, #tpu.memory_space<smem>>
    %2169 = vector.broadcast %2168 : f32 to vector<24x384xf32>
    %2170 = arith.mulf %2169, %2163 : vector<24x384xf32>
    %2171 = arith.addf %2158, %2170 : vector<24x384xf32>
    %c141_453 = arith.constant 141 : index
    %2172 = memref.load %arg2[%c141_453] : memref<243xf32, #tpu.memory_space<smem>>
    %2173 = vector.broadcast %2172 : f32 to vector<24x384xf32>
    %2174 = arith.mulf %2173, %2163 : vector<24x384xf32>
    %2175 = arith.addf %2162, %2174 : vector<24x384xf32>
    %c366_i32_454 = arith.constant 366 : i32
    %2176 = tpu.dynamic_rotate %2085 by %c366_i32_454 dim 1 : vector<24x384xf32>, i32 -> vector<24x384xf32>
    %c88_455 = arith.constant 88 : index
    %2177 = memref.load %arg2[%c88_455] : memref<243xf32, #tpu.memory_space<smem>>
    %2178 = vector.broadcast %2177 : f32 to vector<24x384xf32>
    %2179 = arith.mulf %2178, %2176 : vector<24x384xf32>
    %2180 = arith.addf %2167, %2179 : vector<24x384xf32>
    %c115_456 = arith.constant 115 : index
    %2181 = memref.load %arg2[%c115_456] : memref<243xf32, #tpu.memory_space<smem>>
    %2182 = vector.broadcast %2181 : f32 to vector<24x384xf32>
    %2183 = arith.mulf %2182, %2176 : vector<24x384xf32>
    %2184 = arith.addf %2171, %2183 : vector<24x384xf32>
    %c142_457 = arith.constant 142 : index
    %2185 = memref.load %arg2[%c142_457] : memref<243xf32, #tpu.memory_space<smem>>
    %2186 = vector.broadcast %2185 : f32 to vector<24x384xf32>
    %2187 = arith.mulf %2186, %2176 : vector<24x384xf32>
    %2188 = arith.addf %2175, %2187 : vector<24x384xf32>
    %c365_i32_458 = arith.constant 365 : i32
    %2189 = tpu.dynamic_rotate %2085 by %c365_i32_458 dim 1 : vector<24x384xf32>, i32 -> vector<24x384xf32>
    %c89_459 = arith.constant 89 : index
    %2190 = memref.load %arg2[%c89_459] : memref<243xf32, #tpu.memory_space<smem>>
    %2191 = vector.broadcast %2190 : f32 to vector<24x384xf32>
    %2192 = arith.mulf %2191, %2189 : vector<24x384xf32>
    %2193 = arith.addf %2180, %2192 : vector<24x384xf32>
    %c116_460 = arith.constant 116 : index
    %2194 = memref.load %arg2[%c116_460] : memref<243xf32, #tpu.memory_space<smem>>
    %2195 = vector.broadcast %2194 : f32 to vector<24x384xf32>
    %2196 = arith.mulf %2195, %2189 : vector<24x384xf32>
    %2197 = arith.addf %2184, %2196 : vector<24x384xf32>
    %c143_461 = arith.constant 143 : index
    %2198 = memref.load %arg2[%c143_461] : memref<243xf32, #tpu.memory_space<smem>>
    %2199 = vector.broadcast %2198 : f32 to vector<24x384xf32>
    %2200 = arith.mulf %2199, %2189 : vector<24x384xf32>
    %2201 = arith.addf %2188, %2200 : vector<24x384xf32>
    %c8_462 = arith.constant 8 : index
    %c0_463 = arith.constant 0 : index
    %2202 = vector.load %arg8[%c8_462, %c0_463] : memref<40x384xf32, #tpu.memory_space<vmem>>, vector<24x384xf32>
    %c19_i32_464 = arith.constant 19 : i32
    %2203 = tpu.dynamic_rotate %2202 by %c19_i32_464 dim 1 : vector<24x384xf32>, i32 -> vector<24x384xf32>
    %c90_465 = arith.constant 90 : index
    %2204 = memref.load %arg2[%c90_465] : memref<243xf32, #tpu.memory_space<smem>>
    %2205 = vector.broadcast %2204 : f32 to vector<24x384xf32>
    %2206 = arith.mulf %2205, %2203 : vector<24x384xf32>
    %2207 = arith.addf %2193, %2206 : vector<24x384xf32>
    %c117_466 = arith.constant 117 : index
    %2208 = memref.load %arg2[%c117_466] : memref<243xf32, #tpu.memory_space<smem>>
    %2209 = vector.broadcast %2208 : f32 to vector<24x384xf32>
    %2210 = arith.mulf %2209, %2203 : vector<24x384xf32>
    %2211 = arith.addf %2197, %2210 : vector<24x384xf32>
    %c144_467 = arith.constant 144 : index
    %2212 = memref.load %arg2[%c144_467] : memref<243xf32, #tpu.memory_space<smem>>
    %2213 = vector.broadcast %2212 : f32 to vector<24x384xf32>
    %2214 = arith.mulf %2213, %2203 : vector<24x384xf32>
    %2215 = arith.addf %2201, %2214 : vector<24x384xf32>
    %c18_i32_468 = arith.constant 18 : i32
    %2216 = tpu.dynamic_rotate %2202 by %c18_i32_468 dim 1 : vector<24x384xf32>, i32 -> vector<24x384xf32>
    %c91_469 = arith.constant 91 : index
    %2217 = memref.load %arg2[%c91_469] : memref<243xf32, #tpu.memory_space<smem>>
    %2218 = vector.broadcast %2217 : f32 to vector<24x384xf32>
    %2219 = arith.mulf %2218, %2216 : vector<24x384xf32>
    %2220 = arith.addf %2207, %2219 : vector<24x384xf32>
    %c118_470 = arith.constant 118 : index
    %2221 = memref.load %arg2[%c118_470] : memref<243xf32, #tpu.memory_space<smem>>
    %2222 = vector.broadcast %2221 : f32 to vector<24x384xf32>
    %2223 = arith.mulf %2222, %2216 : vector<24x384xf32>
    %2224 = arith.addf %2211, %2223 : vector<24x384xf32>
    %c145_471 = arith.constant 145 : index
    %2225 = memref.load %arg2[%c145_471] : memref<243xf32, #tpu.memory_space<smem>>
    %2226 = vector.broadcast %2225 : f32 to vector<24x384xf32>
    %2227 = arith.mulf %2226, %2216 : vector<24x384xf32>
    %2228 = arith.addf %2215, %2227 : vector<24x384xf32>
    %c17_i32_472 = arith.constant 17 : i32
    %2229 = tpu.dynamic_rotate %2202 by %c17_i32_472 dim 1 : vector<24x384xf32>, i32 -> vector<24x384xf32>
    %c92_473 = arith.constant 92 : index
    %2230 = memref.load %arg2[%c92_473] : memref<243xf32, #tpu.memory_space<smem>>
    %2231 = vector.broadcast %2230 : f32 to vector<24x384xf32>
    %2232 = arith.mulf %2231, %2229 : vector<24x384xf32>
    %2233 = arith.addf %2220, %2232 : vector<24x384xf32>
    %c119_474 = arith.constant 119 : index
    %2234 = memref.load %arg2[%c119_474] : memref<243xf32, #tpu.memory_space<smem>>
    %2235 = vector.broadcast %2234 : f32 to vector<24x384xf32>
    %2236 = arith.mulf %2235, %2229 : vector<24x384xf32>
    %2237 = arith.addf %2224, %2236 : vector<24x384xf32>
    %c146_475 = arith.constant 146 : index
    %2238 = memref.load %arg2[%c146_475] : memref<243xf32, #tpu.memory_space<smem>>
    %2239 = vector.broadcast %2238 : f32 to vector<24x384xf32>
    %2240 = arith.mulf %2239, %2229 : vector<24x384xf32>
    %2241 = arith.addf %2228, %2240 : vector<24x384xf32>
    %c1_i32_476 = arith.constant 1 : i32
    %2242 = tpu.dynamic_rotate %2202 by %c1_i32_476 dim 1 : vector<24x384xf32>, i32 -> vector<24x384xf32>
    %c93_477 = arith.constant 93 : index
    %2243 = memref.load %arg2[%c93_477] : memref<243xf32, #tpu.memory_space<smem>>
    %2244 = vector.broadcast %2243 : f32 to vector<24x384xf32>
    %2245 = arith.mulf %2244, %2242 : vector<24x384xf32>
    %2246 = arith.addf %2233, %2245 : vector<24x384xf32>
    %c120_478 = arith.constant 120 : index
    %2247 = memref.load %arg2[%c120_478] : memref<243xf32, #tpu.memory_space<smem>>
    %2248 = vector.broadcast %2247 : f32 to vector<24x384xf32>
    %2249 = arith.mulf %2248, %2242 : vector<24x384xf32>
    %2250 = arith.addf %2237, %2249 : vector<24x384xf32>
    %c147_479 = arith.constant 147 : index
    %2251 = memref.load %arg2[%c147_479] : memref<243xf32, #tpu.memory_space<smem>>
    %2252 = vector.broadcast %2251 : f32 to vector<24x384xf32>
    %2253 = arith.mulf %2252, %2242 : vector<24x384xf32>
    %2254 = arith.addf %2241, %2253 : vector<24x384xf32>
    %c94_480 = arith.constant 94 : index
    %2255 = memref.load %arg2[%c94_480] : memref<243xf32, #tpu.memory_space<smem>>
    %2256 = vector.broadcast %2255 : f32 to vector<24x384xf32>
    %2257 = arith.mulf %2256, %2202 : vector<24x384xf32>
    %2258 = arith.addf %2246, %2257 : vector<24x384xf32>
    %c121_481 = arith.constant 121 : index
    %2259 = memref.load %arg2[%c121_481] : memref<243xf32, #tpu.memory_space<smem>>
    %2260 = vector.broadcast %2259 : f32 to vector<24x384xf32>
    %2261 = arith.mulf %2260, %2202 : vector<24x384xf32>
    %2262 = arith.addf %2250, %2261 : vector<24x384xf32>
    %c148_482 = arith.constant 148 : index
    %2263 = memref.load %arg2[%c148_482] : memref<243xf32, #tpu.memory_space<smem>>
    %2264 = vector.broadcast %2263 : f32 to vector<24x384xf32>
    %2265 = arith.mulf %2264, %2202 : vector<24x384xf32>
    %2266 = arith.addf %2254, %2265 : vector<24x384xf32>
    %c383_i32_483 = arith.constant 383 : i32
    %2267 = tpu.dynamic_rotate %2202 by %c383_i32_483 dim 1 : vector<24x384xf32>, i32 -> vector<24x384xf32>
    %c95_484 = arith.constant 95 : index
    %2268 = memref.load %arg2[%c95_484] : memref<243xf32, #tpu.memory_space<smem>>
    %2269 = vector.broadcast %2268 : f32 to vector<24x384xf32>
    %2270 = arith.mulf %2269, %2267 : vector<24x384xf32>
    %2271 = arith.addf %2258, %2270 : vector<24x384xf32>
    %c122_485 = arith.constant 122 : index
    %2272 = memref.load %arg2[%c122_485] : memref<243xf32, #tpu.memory_space<smem>>
    %2273 = vector.broadcast %2272 : f32 to vector<24x384xf32>
    %2274 = arith.mulf %2273, %2267 : vector<24x384xf32>
    %2275 = arith.addf %2262, %2274 : vector<24x384xf32>
    %c149_486 = arith.constant 149 : index
    %2276 = memref.load %arg2[%c149_486] : memref<243xf32, #tpu.memory_space<smem>>
    %2277 = vector.broadcast %2276 : f32 to vector<24x384xf32>
    %2278 = arith.mulf %2277, %2267 : vector<24x384xf32>
    %2279 = arith.addf %2266, %2278 : vector<24x384xf32>
    %c367_i32_487 = arith.constant 367 : i32
    %2280 = tpu.dynamic_rotate %2202 by %c367_i32_487 dim 1 : vector<24x384xf32>, i32 -> vector<24x384xf32>
    %c96_488 = arith.constant 96 : index
    %2281 = memref.load %arg2[%c96_488] : memref<243xf32, #tpu.memory_space<smem>>
    %2282 = vector.broadcast %2281 : f32 to vector<24x384xf32>
    %2283 = arith.mulf %2282, %2280 : vector<24x384xf32>
    %2284 = arith.addf %2271, %2283 : vector<24x384xf32>
    %c123_489 = arith.constant 123 : index
    %2285 = memref.load %arg2[%c123_489] : memref<243xf32, #tpu.memory_space<smem>>
    %2286 = vector.broadcast %2285 : f32 to vector<24x384xf32>
    %2287 = arith.mulf %2286, %2280 : vector<24x384xf32>
    %2288 = arith.addf %2275, %2287 : vector<24x384xf32>
    %c150_490 = arith.constant 150 : index
    %2289 = memref.load %arg2[%c150_490] : memref<243xf32, #tpu.memory_space<smem>>
    %2290 = vector.broadcast %2289 : f32 to vector<24x384xf32>
    %2291 = arith.mulf %2290, %2280 : vector<24x384xf32>
    %2292 = arith.addf %2279, %2291 : vector<24x384xf32>
    %c366_i32_491 = arith.constant 366 : i32
    %2293 = tpu.dynamic_rotate %2202 by %c366_i32_491 dim 1 : vector<24x384xf32>, i32 -> vector<24x384xf32>
    %c97_492 = arith.constant 97 : index
    %2294 = memref.load %arg2[%c97_492] : memref<243xf32, #tpu.memory_space<smem>>
    %2295 = vector.broadcast %2294 : f32 to vector<24x384xf32>
    %2296 = arith.mulf %2295, %2293 : vector<24x384xf32>
    %2297 = arith.addf %2284, %2296 : vector<24x384xf32>
    %c124_493 = arith.constant 124 : index
    %2298 = memref.load %arg2[%c124_493] : memref<243xf32, #tpu.memory_space<smem>>
    %2299 = vector.broadcast %2298 : f32 to vector<24x384xf32>
    %2300 = arith.mulf %2299, %2293 : vector<24x384xf32>
    %2301 = arith.addf %2288, %2300 : vector<24x384xf32>
    %c151_494 = arith.constant 151 : index
    %2302 = memref.load %arg2[%c151_494] : memref<243xf32, #tpu.memory_space<smem>>
    %2303 = vector.broadcast %2302 : f32 to vector<24x384xf32>
    %2304 = arith.mulf %2303, %2293 : vector<24x384xf32>
    %2305 = arith.addf %2292, %2304 : vector<24x384xf32>
    %c365_i32_495 = arith.constant 365 : i32
    %2306 = tpu.dynamic_rotate %2202 by %c365_i32_495 dim 1 : vector<24x384xf32>, i32 -> vector<24x384xf32>
    %c98_496 = arith.constant 98 : index
    %2307 = memref.load %arg2[%c98_496] : memref<243xf32, #tpu.memory_space<smem>>
    %2308 = vector.broadcast %2307 : f32 to vector<24x384xf32>
    %2309 = arith.mulf %2308, %2306 : vector<24x384xf32>
    %2310 = arith.addf %2297, %2309 : vector<24x384xf32>
    %c125_497 = arith.constant 125 : index
    %2311 = memref.load %arg2[%c125_497] : memref<243xf32, #tpu.memory_space<smem>>
    %2312 = vector.broadcast %2311 : f32 to vector<24x384xf32>
    %2313 = arith.mulf %2312, %2306 : vector<24x384xf32>
    %2314 = arith.addf %2301, %2313 : vector<24x384xf32>
    %c152_498 = arith.constant 152 : index
    %2315 = memref.load %arg2[%c152_498] : memref<243xf32, #tpu.memory_space<smem>>
    %2316 = vector.broadcast %2315 : f32 to vector<24x384xf32>
    %2317 = arith.mulf %2316, %2306 : vector<24x384xf32>
    %2318 = arith.addf %2305, %2317 : vector<24x384xf32>
    %c9_499 = arith.constant 9 : index
    %c0_500 = arith.constant 0 : index
    %2319 = vector.load %arg8[%c9_499, %c0_500] : memref<40x384xf32, #tpu.memory_space<vmem>>, vector<24x384xf32>
    %c19_i32_501 = arith.constant 19 : i32
    %2320 = tpu.dynamic_rotate %2319 by %c19_i32_501 dim 1 : vector<24x384xf32>, i32 -> vector<24x384xf32>
    %c99_502 = arith.constant 99 : index
    %2321 = memref.load %arg2[%c99_502] : memref<243xf32, #tpu.memory_space<smem>>
    %2322 = vector.broadcast %2321 : f32 to vector<24x384xf32>
    %2323 = arith.mulf %2322, %2320 : vector<24x384xf32>
    %2324 = arith.addf %2310, %2323 : vector<24x384xf32>
    %c126_503 = arith.constant 126 : index
    %2325 = memref.load %arg2[%c126_503] : memref<243xf32, #tpu.memory_space<smem>>
    %2326 = vector.broadcast %2325 : f32 to vector<24x384xf32>
    %2327 = arith.mulf %2326, %2320 : vector<24x384xf32>
    %2328 = arith.addf %2314, %2327 : vector<24x384xf32>
    %c153_504 = arith.constant 153 : index
    %2329 = memref.load %arg2[%c153_504] : memref<243xf32, #tpu.memory_space<smem>>
    %2330 = vector.broadcast %2329 : f32 to vector<24x384xf32>
    %2331 = arith.mulf %2330, %2320 : vector<24x384xf32>
    %2332 = arith.addf %2318, %2331 : vector<24x384xf32>
    %c18_i32_505 = arith.constant 18 : i32
    %2333 = tpu.dynamic_rotate %2319 by %c18_i32_505 dim 1 : vector<24x384xf32>, i32 -> vector<24x384xf32>
    %c100_506 = arith.constant 100 : index
    %2334 = memref.load %arg2[%c100_506] : memref<243xf32, #tpu.memory_space<smem>>
    %2335 = vector.broadcast %2334 : f32 to vector<24x384xf32>
    %2336 = arith.mulf %2335, %2333 : vector<24x384xf32>
    %2337 = arith.addf %2324, %2336 : vector<24x384xf32>
    %c127_507 = arith.constant 127 : index
    %2338 = memref.load %arg2[%c127_507] : memref<243xf32, #tpu.memory_space<smem>>
    %2339 = vector.broadcast %2338 : f32 to vector<24x384xf32>
    %2340 = arith.mulf %2339, %2333 : vector<24x384xf32>
    %2341 = arith.addf %2328, %2340 : vector<24x384xf32>
    %c154_508 = arith.constant 154 : index
    %2342 = memref.load %arg2[%c154_508] : memref<243xf32, #tpu.memory_space<smem>>
    %2343 = vector.broadcast %2342 : f32 to vector<24x384xf32>
    %2344 = arith.mulf %2343, %2333 : vector<24x384xf32>
    %2345 = arith.addf %2332, %2344 : vector<24x384xf32>
    %c17_i32_509 = arith.constant 17 : i32
    %2346 = tpu.dynamic_rotate %2319 by %c17_i32_509 dim 1 : vector<24x384xf32>, i32 -> vector<24x384xf32>
    %c101_510 = arith.constant 101 : index
    %2347 = memref.load %arg2[%c101_510] : memref<243xf32, #tpu.memory_space<smem>>
    %2348 = vector.broadcast %2347 : f32 to vector<24x384xf32>
    %2349 = arith.mulf %2348, %2346 : vector<24x384xf32>
    %2350 = arith.addf %2337, %2349 : vector<24x384xf32>
    %c128_511 = arith.constant 128 : index
    %2351 = memref.load %arg2[%c128_511] : memref<243xf32, #tpu.memory_space<smem>>
    %2352 = vector.broadcast %2351 : f32 to vector<24x384xf32>
    %2353 = arith.mulf %2352, %2346 : vector<24x384xf32>
    %2354 = arith.addf %2341, %2353 : vector<24x384xf32>
    %c155_512 = arith.constant 155 : index
    %2355 = memref.load %arg2[%c155_512] : memref<243xf32, #tpu.memory_space<smem>>
    %2356 = vector.broadcast %2355 : f32 to vector<24x384xf32>
    %2357 = arith.mulf %2356, %2346 : vector<24x384xf32>
    %2358 = arith.addf %2345, %2357 : vector<24x384xf32>
    %c1_i32_513 = arith.constant 1 : i32
    %2359 = tpu.dynamic_rotate %2319 by %c1_i32_513 dim 1 : vector<24x384xf32>, i32 -> vector<24x384xf32>
    %c102_514 = arith.constant 102 : index
    %2360 = memref.load %arg2[%c102_514] : memref<243xf32, #tpu.memory_space<smem>>
    %2361 = vector.broadcast %2360 : f32 to vector<24x384xf32>
    %2362 = arith.mulf %2361, %2359 : vector<24x384xf32>
    %2363 = arith.addf %2350, %2362 : vector<24x384xf32>
    %c129_515 = arith.constant 129 : index
    %2364 = memref.load %arg2[%c129_515] : memref<243xf32, #tpu.memory_space<smem>>
    %2365 = vector.broadcast %2364 : f32 to vector<24x384xf32>
    %2366 = arith.mulf %2365, %2359 : vector<24x384xf32>
    %2367 = arith.addf %2354, %2366 : vector<24x384xf32>
    %c156_516 = arith.constant 156 : index
    %2368 = memref.load %arg2[%c156_516] : memref<243xf32, #tpu.memory_space<smem>>
    %2369 = vector.broadcast %2368 : f32 to vector<24x384xf32>
    %2370 = arith.mulf %2369, %2359 : vector<24x384xf32>
    %2371 = arith.addf %2358, %2370 : vector<24x384xf32>
    %c103_517 = arith.constant 103 : index
    %2372 = memref.load %arg2[%c103_517] : memref<243xf32, #tpu.memory_space<smem>>
    %2373 = vector.broadcast %2372 : f32 to vector<24x384xf32>
    %2374 = arith.mulf %2373, %2319 : vector<24x384xf32>
    %2375 = arith.addf %2363, %2374 : vector<24x384xf32>
    %c130_518 = arith.constant 130 : index
    %2376 = memref.load %arg2[%c130_518] : memref<243xf32, #tpu.memory_space<smem>>
    %2377 = vector.broadcast %2376 : f32 to vector<24x384xf32>
    %2378 = arith.mulf %2377, %2319 : vector<24x384xf32>
    %2379 = arith.addf %2367, %2378 : vector<24x384xf32>
    %c157_519 = arith.constant 157 : index
    %2380 = memref.load %arg2[%c157_519] : memref<243xf32, #tpu.memory_space<smem>>
    %2381 = vector.broadcast %2380 : f32 to vector<24x384xf32>
    %2382 = arith.mulf %2381, %2319 : vector<24x384xf32>
    %2383 = arith.addf %2371, %2382 : vector<24x384xf32>
    %c383_i32_520 = arith.constant 383 : i32
    %2384 = tpu.dynamic_rotate %2319 by %c383_i32_520 dim 1 : vector<24x384xf32>, i32 -> vector<24x384xf32>
    %c104_521 = arith.constant 104 : index
    %2385 = memref.load %arg2[%c104_521] : memref<243xf32, #tpu.memory_space<smem>>
    %2386 = vector.broadcast %2385 : f32 to vector<24x384xf32>
    %2387 = arith.mulf %2386, %2384 : vector<24x384xf32>
    %2388 = arith.addf %2375, %2387 : vector<24x384xf32>
    %c131_522 = arith.constant 131 : index
    %2389 = memref.load %arg2[%c131_522] : memref<243xf32, #tpu.memory_space<smem>>
    %2390 = vector.broadcast %2389 : f32 to vector<24x384xf32>
    %2391 = arith.mulf %2390, %2384 : vector<24x384xf32>
    %2392 = arith.addf %2379, %2391 : vector<24x384xf32>
    %c158_523 = arith.constant 158 : index
    %2393 = memref.load %arg2[%c158_523] : memref<243xf32, #tpu.memory_space<smem>>
    %2394 = vector.broadcast %2393 : f32 to vector<24x384xf32>
    %2395 = arith.mulf %2394, %2384 : vector<24x384xf32>
    %2396 = arith.addf %2383, %2395 : vector<24x384xf32>
    %c367_i32_524 = arith.constant 367 : i32
    %2397 = tpu.dynamic_rotate %2319 by %c367_i32_524 dim 1 : vector<24x384xf32>, i32 -> vector<24x384xf32>
    %c105_525 = arith.constant 105 : index
    %2398 = memref.load %arg2[%c105_525] : memref<243xf32, #tpu.memory_space<smem>>
    %2399 = vector.broadcast %2398 : f32 to vector<24x384xf32>
    %2400 = arith.mulf %2399, %2397 : vector<24x384xf32>
    %2401 = arith.addf %2388, %2400 : vector<24x384xf32>
    %c132_526 = arith.constant 132 : index
    %2402 = memref.load %arg2[%c132_526] : memref<243xf32, #tpu.memory_space<smem>>
    %2403 = vector.broadcast %2402 : f32 to vector<24x384xf32>
    %2404 = arith.mulf %2403, %2397 : vector<24x384xf32>
    %2405 = arith.addf %2392, %2404 : vector<24x384xf32>
    %c159_527 = arith.constant 159 : index
    %2406 = memref.load %arg2[%c159_527] : memref<243xf32, #tpu.memory_space<smem>>
    %2407 = vector.broadcast %2406 : f32 to vector<24x384xf32>
    %2408 = arith.mulf %2407, %2397 : vector<24x384xf32>
    %2409 = arith.addf %2396, %2408 : vector<24x384xf32>
    %c366_i32_528 = arith.constant 366 : i32
    %2410 = tpu.dynamic_rotate %2319 by %c366_i32_528 dim 1 : vector<24x384xf32>, i32 -> vector<24x384xf32>
    %c106_529 = arith.constant 106 : index
    %2411 = memref.load %arg2[%c106_529] : memref<243xf32, #tpu.memory_space<smem>>
    %2412 = vector.broadcast %2411 : f32 to vector<24x384xf32>
    %2413 = arith.mulf %2412, %2410 : vector<24x384xf32>
    %2414 = arith.addf %2401, %2413 : vector<24x384xf32>
    %c133_530 = arith.constant 133 : index
    %2415 = memref.load %arg2[%c133_530] : memref<243xf32, #tpu.memory_space<smem>>
    %2416 = vector.broadcast %2415 : f32 to vector<24x384xf32>
    %2417 = arith.mulf %2416, %2410 : vector<24x384xf32>
    %2418 = arith.addf %2405, %2417 : vector<24x384xf32>
    %c160_531 = arith.constant 160 : index
    %2419 = memref.load %arg2[%c160_531] : memref<243xf32, #tpu.memory_space<smem>>
    %2420 = vector.broadcast %2419 : f32 to vector<24x384xf32>
    %2421 = arith.mulf %2420, %2410 : vector<24x384xf32>
    %2422 = arith.addf %2409, %2421 : vector<24x384xf32>
    %c365_i32_532 = arith.constant 365 : i32
    %2423 = tpu.dynamic_rotate %2319 by %c365_i32_532 dim 1 : vector<24x384xf32>, i32 -> vector<24x384xf32>
    %c107_533 = arith.constant 107 : index
    %2424 = memref.load %arg2[%c107_533] : memref<243xf32, #tpu.memory_space<smem>>
    %2425 = vector.broadcast %2424 : f32 to vector<24x384xf32>
    %2426 = arith.mulf %2425, %2423 : vector<24x384xf32>
    %2427 = arith.addf %2414, %2426 : vector<24x384xf32>
    %c134_534 = arith.constant 134 : index
    %2428 = memref.load %arg2[%c134_534] : memref<243xf32, #tpu.memory_space<smem>>
    %2429 = vector.broadcast %2428 : f32 to vector<24x384xf32>
    %2430 = arith.mulf %2429, %2423 : vector<24x384xf32>
    %2431 = arith.addf %2418, %2430 : vector<24x384xf32>
    %c161_535 = arith.constant 161 : index
    %2432 = memref.load %arg2[%c161_535] : memref<243xf32, #tpu.memory_space<smem>>
    %2433 = vector.broadcast %2432 : f32 to vector<24x384xf32>
    %2434 = arith.mulf %2433, %2423 : vector<24x384xf32>
    %2435 = arith.addf %2422, %2434 : vector<24x384xf32>
    %cst_536 = arith.constant 0.000000e+00 : f32
    %2436 = vector.broadcast %cst_536 : f32 to vector<24x384xf32>
    %2437 = arith.select %112, %2427, %2436 : vector<24x384xi1>, vector<24x384xf32>
    %2438 = vector.shape_cast %2437 : vector<24x384xf32> to vector<1x24x384xf32>
    %cst_537 = arith.constant dense<0.000000e+00> : vector<1xf32>
    %2439 = vector.multi_reduction <add>, %2438, %cst_537 [1, 2] : vector<1x24x384xf32> to vector<1xf32>
    %2440 = vector.shape_cast %2439 : vector<1xf32> to vector<1x1x1xf32>
    %2441 = vector.extract %2440[0, 0, 0] : f32 from vector<1x1x1xf32>
    %2442 = arith.mulf %2437, %2437 : vector<24x384xf32>
    %2443 = vector.shape_cast %2442 : vector<24x384xf32> to vector<1x24x384xf32>
    %cst_538 = arith.constant dense<0.000000e+00> : vector<1xf32>
    %2444 = vector.multi_reduction <add>, %2443, %cst_538 [1, 2] : vector<1x24x384xf32> to vector<1xf32>
    %2445 = vector.shape_cast %2444 : vector<1xf32> to vector<1x1x1xf32>
    %2446 = vector.extract %2445[0, 0, 0] : f32 from vector<1x1x1xf32>
    %cst_539 = arith.constant 2.44140625E-4 : f32
    %2447 = arith.mulf %2441, %cst_539 : f32
    %cst_540 = arith.constant 2.44140625E-4 : f32
    %2448 = arith.mulf %2446, %cst_540 : f32
    %2449 = arith.mulf %2447, %2447 : f32
    %2450 = arith.subf %2448, %2449 : f32
    %2451 = vector.broadcast %2447 : f32 to vector<24x384xf32>
    %2452 = arith.subf %2427, %2451 : vector<24x384xf32>
    %cst_541 = arith.constant 9.99999974E-6 : f32
    %2453 = arith.addf %2450, %cst_541 : f32
    %2454 = math.rsqrt %2453 : f32
    %2455 = vector.broadcast %2454 : f32 to vector<24x384xf32>
    %2456 = arith.mulf %2452, %2455 : vector<24x384xf32>
    %c3_542 = arith.constant 3 : index
    %2457 = memref.load %arg4[%c3_542] : memref<9xf32, #tpu.memory_space<smem>>
    %2458 = vector.broadcast %2457 : f32 to vector<24x384xf32>
    %2459 = arith.mulf %2456, %2458 : vector<24x384xf32>
    %c3_543 = arith.constant 3 : index
    %2460 = memref.load %arg5[%c3_543] : memref<9xf32, #tpu.memory_space<smem>>
    %2461 = vector.broadcast %2460 : f32 to vector<24x384xf32>
    %2462 = arith.addf %2459, %2461 : vector<24x384xf32>
    %2463 = math.tanh %2462 : vector<24x384xf32>
    %cst_544 = arith.constant 0xFF800000 : f32
    %2464 = vector.broadcast %cst_544 : f32 to vector<24x384xf32>
    %2465 = arith.select %112, %2463, %2464 : vector<24x384xi1>, vector<24x384xf32>
    %c383_i32_545 = arith.constant 383 : i32
    %2466 = tpu.dynamic_rotate %2465 by %c383_i32_545 dim 1 : vector<24x384xf32>, i32 -> vector<24x384xf32>
    %c1_i32_546 = arith.constant 1 : i32
    %2467 = tpu.dynamic_rotate %2465 by %c1_i32_546 dim 1 : vector<24x384xf32>, i32 -> vector<24x384xf32>
    %2468 = arith.maximumf %2466, %2467 : vector<24x384xf32>
    %2469 = arith.maximumf %2465, %2468 : vector<24x384xf32>
    %c366_i32_547 = arith.constant 366 : i32
    %2470 = tpu.dynamic_rotate %2469 by %c366_i32_547 dim 1 : vector<24x384xf32>, i32 -> vector<24x384xf32>
    %c18_i32_548 = arith.constant 18 : i32
    %2471 = tpu.dynamic_rotate %2469 by %c18_i32_548 dim 1 : vector<24x384xf32>, i32 -> vector<24x384xf32>
    %2472 = arith.maximumf %2470, %2471 : vector<24x384xf32>
    %2473 = arith.maximumf %2469, %2472 : vector<24x384xf32>
    %c8_549 = arith.constant 8 : index
    %c0_550 = arith.constant 0 : index
    %2474 = vector.load %arg9[%c8_549, %c0_550] : memref<40x384xf32, #tpu.memory_space<vmem>>, vector<24x384xf32>
    tpu.vector_store %arg9[%c8_549, %c0_550], %2473 {strides = array<i32>} : memref<40x384xf32, #tpu.memory_space<vmem>>, vector<24x384xf32>,
    %cst_551 = arith.constant 0.000000e+00 : f32
    %2475 = vector.broadcast %cst_551 : f32 to vector<24x384xf32>
    %2476 = arith.select %112, %2431, %2475 : vector<24x384xi1>, vector<24x384xf32>
    %2477 = vector.shape_cast %2476 : vector<24x384xf32> to vector<1x24x384xf32>
    %cst_552 = arith.constant dense<0.000000e+00> : vector<1xf32>
    %2478 = vector.multi_reduction <add>, %2477, %cst_552 [1, 2] : vector<1x24x384xf32> to vector<1xf32>
    %2479 = vector.shape_cast %2478 : vector<1xf32> to vector<1x1x1xf32>
    %2480 = vector.extract %2479[0, 0, 0] : f32 from vector<1x1x1xf32>
    %2481 = arith.mulf %2476, %2476 : vector<24x384xf32>
    %2482 = vector.shape_cast %2481 : vector<24x384xf32> to vector<1x24x384xf32>
    %cst_553 = arith.constant dense<0.000000e+00> : vector<1xf32>
    %2483 = vector.multi_reduction <add>, %2482, %cst_553 [1, 2] : vector<1x24x384xf32> to vector<1xf32>
    %2484 = vector.shape_cast %2483 : vector<1xf32> to vector<1x1x1xf32>
    %2485 = vector.extract %2484[0, 0, 0] : f32 from vector<1x1x1xf32>
    %cst_554 = arith.constant 2.44140625E-4 : f32
    %2486 = arith.mulf %2480, %cst_554 : f32
    %cst_555 = arith.constant 2.44140625E-4 : f32
    %2487 = arith.mulf %2485, %cst_555 : f32
    %2488 = arith.mulf %2486, %2486 : f32
    %2489 = arith.subf %2487, %2488 : f32
    %2490 = vector.broadcast %2486 : f32 to vector<24x384xf32>
    %2491 = arith.subf %2431, %2490 : vector<24x384xf32>
    %cst_556 = arith.constant 9.99999974E-6 : f32
    %2492 = arith.addf %2489, %cst_556 : f32
    %2493 = math.rsqrt %2492 : f32
    %2494 = vector.broadcast %2493 : f32 to vector<24x384xf32>
    %2495 = arith.mulf %2491, %2494 : vector<24x384xf32>
    %c4_557 = arith.constant 4 : index
    %2496 = memref.load %arg4[%c4_557] : memref<9xf32, #tpu.memory_space<smem>>
    %2497 = vector.broadcast %2496 : f32 to vector<24x384xf32>
    %2498 = arith.mulf %2495, %2497 : vector<24x384xf32>
    %c4_558 = arith.constant 4 : index
    %2499 = memref.load %arg5[%c4_558] : memref<9xf32, #tpu.memory_space<smem>>
    %2500 = vector.broadcast %2499 : f32 to vector<24x384xf32>
    %2501 = arith.addf %2498, %2500 : vector<24x384xf32>
    %2502 = math.tanh %2501 : vector<24x384xf32>
    %cst_559 = arith.constant 0xFF800000 : f32
    %2503 = vector.broadcast %cst_559 : f32 to vector<24x384xf32>
    %2504 = arith.select %112, %2502, %2503 : vector<24x384xi1>, vector<24x384xf32>
    %c383_i32_560 = arith.constant 383 : i32
    %2505 = tpu.dynamic_rotate %2504 by %c383_i32_560 dim 1 : vector<24x384xf32>, i32 -> vector<24x384xf32>
    %c1_i32_561 = arith.constant 1 : i32
    %2506 = tpu.dynamic_rotate %2504 by %c1_i32_561 dim 1 : vector<24x384xf32>, i32 -> vector<24x384xf32>
    %2507 = arith.maximumf %2505, %2506 : vector<24x384xf32>
    %2508 = arith.maximumf %2504, %2507 : vector<24x384xf32>
    %c366_i32_562 = arith.constant 366 : i32
    %2509 = tpu.dynamic_rotate %2508 by %c366_i32_562 dim 1 : vector<24x384xf32>, i32 -> vector<24x384xf32>
    %c18_i32_563 = arith.constant 18 : i32
    %2510 = tpu.dynamic_rotate %2508 by %c18_i32_563 dim 1 : vector<24x384xf32>, i32 -> vector<24x384xf32>
    %2511 = arith.maximumf %2509, %2510 : vector<24x384xf32>
    %2512 = arith.maximumf %2508, %2511 : vector<24x384xf32>
    %c8_564 = arith.constant 8 : index
    %c0_565 = arith.constant 0 : index
    %2513 = vector.load %arg9[%c8_564, %c0_565] : memref<40x384xf32, #tpu.memory_space<vmem>>, vector<24x384xf32>
    tpu.vector_store %arg9[%c8_564, %c0_565], %2512 {strides = array<i32>} : memref<40x384xf32, #tpu.memory_space<vmem>>, vector<24x384xf32>,
    %cst_566 = arith.constant 0.000000e+00 : f32
    %2514 = vector.broadcast %cst_566 : f32 to vector<24x384xf32>
    %2515 = arith.select %112, %2435, %2514 : vector<24x384xi1>, vector<24x384xf32>
    %2516 = vector.shape_cast %2515 : vector<24x384xf32> to vector<1x24x384xf32>
    %cst_567 = arith.constant dense<0.000000e+00> : vector<1xf32>
    %2517 = vector.multi_reduction <add>, %2516, %cst_567 [1, 2] : vector<1x24x384xf32> to vector<1xf32>
    %2518 = vector.shape_cast %2517 : vector<1xf32> to vector<1x1x1xf32>
    %2519 = vector.extract %2518[0, 0, 0] : f32 from vector<1x1x1xf32>
    %2520 = arith.mulf %2515, %2515 : vector<24x384xf32>
    %2521 = vector.shape_cast %2520 : vector<24x384xf32> to vector<1x24x384xf32>
    %cst_568 = arith.constant dense<0.000000e+00> : vector<1xf32>
    %2522 = vector.multi_reduction <add>, %2521, %cst_568 [1, 2] : vector<1x24x384xf32> to vector<1xf32>
    %2523 = vector.shape_cast %2522 : vector<1xf32> to vector<1x1x1xf32>
    %2524 = vector.extract %2523[0, 0, 0] : f32 from vector<1x1x1xf32>
    %cst_569 = arith.constant 2.44140625E-4 : f32
    %2525 = arith.mulf %2519, %cst_569 : f32
    %cst_570 = arith.constant 2.44140625E-4 : f32
    %2526 = arith.mulf %2524, %cst_570 : f32
    %2527 = arith.mulf %2525, %2525 : f32
    %2528 = arith.subf %2526, %2527 : f32
    %2529 = vector.broadcast %2525 : f32 to vector<24x384xf32>
    %2530 = arith.subf %2435, %2529 : vector<24x384xf32>
    %cst_571 = arith.constant 9.99999974E-6 : f32
    %2531 = arith.addf %2528, %cst_571 : f32
    %2532 = math.rsqrt %2531 : f32
    %2533 = vector.broadcast %2532 : f32 to vector<24x384xf32>
    %2534 = arith.mulf %2530, %2533 : vector<24x384xf32>
    %c5_572 = arith.constant 5 : index
    %2535 = memref.load %arg4[%c5_572] : memref<9xf32, #tpu.memory_space<smem>>
    %2536 = vector.broadcast %2535 : f32 to vector<24x384xf32>
    %2537 = arith.mulf %2534, %2536 : vector<24x384xf32>
    %c5_573 = arith.constant 5 : index
    %2538 = memref.load %arg5[%c5_573] : memref<9xf32, #tpu.memory_space<smem>>
    %2539 = vector.broadcast %2538 : f32 to vector<24x384xf32>
    %2540 = arith.addf %2537, %2539 : vector<24x384xf32>
    %2541 = math.tanh %2540 : vector<24x384xf32>
    %cst_574 = arith.constant 0xFF800000 : f32
    %2542 = vector.broadcast %cst_574 : f32 to vector<24x384xf32>
    %2543 = arith.select %112, %2541, %2542 : vector<24x384xi1>, vector<24x384xf32>
    %c383_i32_575 = arith.constant 383 : i32
    %2544 = tpu.dynamic_rotate %2543 by %c383_i32_575 dim 1 : vector<24x384xf32>, i32 -> vector<24x384xf32>
    %c1_i32_576 = arith.constant 1 : i32
    %2545 = tpu.dynamic_rotate %2543 by %c1_i32_576 dim 1 : vector<24x384xf32>, i32 -> vector<24x384xf32>
    %2546 = arith.maximumf %2544, %2545 : vector<24x384xf32>
    %2547 = arith.maximumf %2543, %2546 : vector<24x384xf32>
    %c366_i32_577 = arith.constant 366 : i32
    %2548 = tpu.dynamic_rotate %2547 by %c366_i32_577 dim 1 : vector<24x384xf32>, i32 -> vector<24x384xf32>
    %c18_i32_578 = arith.constant 18 : i32
    %2549 = tpu.dynamic_rotate %2547 by %c18_i32_578 dim 1 : vector<24x384xf32>, i32 -> vector<24x384xf32>
    %2550 = arith.maximumf %2548, %2549 : vector<24x384xf32>
    %2551 = arith.maximumf %2547, %2550 : vector<24x384xf32>
    %c8_579 = arith.constant 8 : index
    %c0_580 = arith.constant 0 : index
    %2552 = vector.load %arg9[%c8_579, %c0_580] : memref<40x384xf32, #tpu.memory_space<vmem>>, vector<24x384xf32>
    tpu.vector_store %arg9[%c8_579, %c0_580], %2551 {strides = array<i32>} : memref<40x384xf32, #tpu.memory_space<vmem>>, vector<24x384xf32>,
    %c6_581 = arith.constant 6 : index
    %2553 = memref.load %arg3[%c6_581] : memref<9xf32, #tpu.memory_space<smem>>
    %2554 = vector.broadcast %2553 : f32 to vector<24x384xf32>
    %c7_582 = arith.constant 7 : index
    %2555 = memref.load %arg3[%c7_582] : memref<9xf32, #tpu.memory_space<smem>>
    %2556 = vector.broadcast %2555 : f32 to vector<24x384xf32>
    %c8_583 = arith.constant 8 : index
    %2557 = memref.load %arg3[%c8_583] : memref<9xf32, #tpu.memory_space<smem>>
    %2558 = vector.broadcast %2557 : f32 to vector<24x384xf32>
    %c7_584 = arith.constant 7 : index
    %c0_585 = arith.constant 0 : index
    %2559 = vector.load %arg8[%c7_584, %c0_585] : memref<40x384xf32, #tpu.memory_space<vmem>>, vector<24x384xf32>
    %c19_i32_586 = arith.constant 19 : i32
    %2560 = tpu.dynamic_rotate %2559 by %c19_i32_586 dim 1 : vector<24x384xf32>, i32 -> vector<24x384xf32>
    %c162_587 = arith.constant 162 : index
    %2561 = memref.load %arg2[%c162_587] : memref<243xf32, #tpu.memory_space<smem>>
    %2562 = vector.broadcast %2561 : f32 to vector<24x384xf32>
    %2563 = arith.mulf %2562, %2560 : vector<24x384xf32>
    %2564 = arith.addf %2554, %2563 : vector<24x384xf32>
    %c189_588 = arith.constant 189 : index
    %2565 = memref.load %arg2[%c189_588] : memref<243xf32, #tpu.memory_space<smem>>
    %2566 = vector.broadcast %2565 : f32 to vector<24x384xf32>
    %2567 = arith.mulf %2566, %2560 : vector<24x384xf32>
    %2568 = arith.addf %2556, %2567 : vector<24x384xf32>
    %c216_589 = arith.constant 216 : index
    %2569 = memref.load %arg2[%c216_589] : memref<243xf32, #tpu.memory_space<smem>>
    %2570 = vector.broadcast %2569 : f32 to vector<24x384xf32>
    %2571 = arith.mulf %2570, %2560 : vector<24x384xf32>
    %2572 = arith.addf %2558, %2571 : vector<24x384xf32>
    %c18_i32_590 = arith.constant 18 : i32
    %2573 = tpu.dynamic_rotate %2559 by %c18_i32_590 dim 1 : vector<24x384xf32>, i32 -> vector<24x384xf32>
    %c163_591 = arith.constant 163 : index
    %2574 = memref.load %arg2[%c163_591] : memref<243xf32, #tpu.memory_space<smem>>
    %2575 = vector.broadcast %2574 : f32 to vector<24x384xf32>
    %2576 = arith.mulf %2575, %2573 : vector<24x384xf32>
    %2577 = arith.addf %2564, %2576 : vector<24x384xf32>
    %c190_592 = arith.constant 190 : index
    %2578 = memref.load %arg2[%c190_592] : memref<243xf32, #tpu.memory_space<smem>>
    %2579 = vector.broadcast %2578 : f32 to vector<24x384xf32>
    %2580 = arith.mulf %2579, %2573 : vector<24x384xf32>
    %2581 = arith.addf %2568, %2580 : vector<24x384xf32>
    %c217_593 = arith.constant 217 : index
    %2582 = memref.load %arg2[%c217_593] : memref<243xf32, #tpu.memory_space<smem>>
    %2583 = vector.broadcast %2582 : f32 to vector<24x384xf32>
    %2584 = arith.mulf %2583, %2573 : vector<24x384xf32>
    %2585 = arith.addf %2572, %2584 : vector<24x384xf32>
    %c17_i32_594 = arith.constant 17 : i32
    %2586 = tpu.dynamic_rotate %2559 by %c17_i32_594 dim 1 : vector<24x384xf32>, i32 -> vector<24x384xf32>
    %c164_595 = arith.constant 164 : index
    %2587 = memref.load %arg2[%c164_595] : memref<243xf32, #tpu.memory_space<smem>>
    %2588 = vector.broadcast %2587 : f32 to vector<24x384xf32>
    %2589 = arith.mulf %2588, %2586 : vector<24x384xf32>
    %2590 = arith.addf %2577, %2589 : vector<24x384xf32>
    %c191_596 = arith.constant 191 : index
    %2591 = memref.load %arg2[%c191_596] : memref<243xf32, #tpu.memory_space<smem>>
    %2592 = vector.broadcast %2591 : f32 to vector<24x384xf32>
    %2593 = arith.mulf %2592, %2586 : vector<24x384xf32>
    %2594 = arith.addf %2581, %2593 : vector<24x384xf32>
    %c218_597 = arith.constant 218 : index
    %2595 = memref.load %arg2[%c218_597] : memref<243xf32, #tpu.memory_space<smem>>
    %2596 = vector.broadcast %2595 : f32 to vector<24x384xf32>
    %2597 = arith.mulf %2596, %2586 : vector<24x384xf32>
    %2598 = arith.addf %2585, %2597 : vector<24x384xf32>
    %c1_i32_598 = arith.constant 1 : i32
    %2599 = tpu.dynamic_rotate %2559 by %c1_i32_598 dim 1 : vector<24x384xf32>, i32 -> vector<24x384xf32>
    %c165_599 = arith.constant 165 : index
    %2600 = memref.load %arg2[%c165_599] : memref<243xf32, #tpu.memory_space<smem>>
    %2601 = vector.broadcast %2600 : f32 to vector<24x384xf32>
    %2602 = arith.mulf %2601, %2599 : vector<24x384xf32>
    %2603 = arith.addf %2590, %2602 : vector<24x384xf32>
    %c192_600 = arith.constant 192 : index
    %2604 = memref.load %arg2[%c192_600] : memref<243xf32, #tpu.memory_space<smem>>
    %2605 = vector.broadcast %2604 : f32 to vector<24x384xf32>
    %2606 = arith.mulf %2605, %2599 : vector<24x384xf32>
    %2607 = arith.addf %2594, %2606 : vector<24x384xf32>
    %c219_601 = arith.constant 219 : index
    %2608 = memref.load %arg2[%c219_601] : memref<243xf32, #tpu.memory_space<smem>>
    %2609 = vector.broadcast %2608 : f32 to vector<24x384xf32>
    %2610 = arith.mulf %2609, %2599 : vector<24x384xf32>
    %2611 = arith.addf %2598, %2610 : vector<24x384xf32>
    %c166_602 = arith.constant 166 : index
    %2612 = memref.load %arg2[%c166_602] : memref<243xf32, #tpu.memory_space<smem>>
    %2613 = vector.broadcast %2612 : f32 to vector<24x384xf32>
    %2614 = arith.mulf %2613, %2559 : vector<24x384xf32>
    %2615 = arith.addf %2603, %2614 : vector<24x384xf32>
    %c193_603 = arith.constant 193 : index
    %2616 = memref.load %arg2[%c193_603] : memref<243xf32, #tpu.memory_space<smem>>
    %2617 = vector.broadcast %2616 : f32 to vector<24x384xf32>
    %2618 = arith.mulf %2617, %2559 : vector<24x384xf32>
    %2619 = arith.addf %2607, %2618 : vector<24x384xf32>
    %c220_604 = arith.constant 220 : index
    %2620 = memref.load %arg2[%c220_604] : memref<243xf32, #tpu.memory_space<smem>>
    %2621 = vector.broadcast %2620 : f32 to vector<24x384xf32>
    %2622 = arith.mulf %2621, %2559 : vector<24x384xf32>
    %2623 = arith.addf %2611, %2622 : vector<24x384xf32>
    %c383_i32_605 = arith.constant 383 : i32
    %2624 = tpu.dynamic_rotate %2559 by %c383_i32_605 dim 1 : vector<24x384xf32>, i32 -> vector<24x384xf32>
    %c167_606 = arith.constant 167 : index
    %2625 = memref.load %arg2[%c167_606] : memref<243xf32, #tpu.memory_space<smem>>
    %2626 = vector.broadcast %2625 : f32 to vector<24x384xf32>
    %2627 = arith.mulf %2626, %2624 : vector<24x384xf32>
    %2628 = arith.addf %2615, %2627 : vector<24x384xf32>
    %c194_607 = arith.constant 194 : index
    %2629 = memref.load %arg2[%c194_607] : memref<243xf32, #tpu.memory_space<smem>>
    %2630 = vector.broadcast %2629 : f32 to vector<24x384xf32>
    %2631 = arith.mulf %2630, %2624 : vector<24x384xf32>
    %2632 = arith.addf %2619, %2631 : vector<24x384xf32>
    %c221_608 = arith.constant 221 : index
    %2633 = memref.load %arg2[%c221_608] : memref<243xf32, #tpu.memory_space<smem>>
    %2634 = vector.broadcast %2633 : f32 to vector<24x384xf32>
    %2635 = arith.mulf %2634, %2624 : vector<24x384xf32>
    %2636 = arith.addf %2623, %2635 : vector<24x384xf32>
    %c367_i32_609 = arith.constant 367 : i32
    %2637 = tpu.dynamic_rotate %2559 by %c367_i32_609 dim 1 : vector<24x384xf32>, i32 -> vector<24x384xf32>
    %c168_610 = arith.constant 168 : index
    %2638 = memref.load %arg2[%c168_610] : memref<243xf32, #tpu.memory_space<smem>>
    %2639 = vector.broadcast %2638 : f32 to vector<24x384xf32>
    %2640 = arith.mulf %2639, %2637 : vector<24x384xf32>
    %2641 = arith.addf %2628, %2640 : vector<24x384xf32>
    %c195_611 = arith.constant 195 : index
    %2642 = memref.load %arg2[%c195_611] : memref<243xf32, #tpu.memory_space<smem>>
    %2643 = vector.broadcast %2642 : f32 to vector<24x384xf32>
    %2644 = arith.mulf %2643, %2637 : vector<24x384xf32>
    %2645 = arith.addf %2632, %2644 : vector<24x384xf32>
    %c222_612 = arith.constant 222 : index
    %2646 = memref.load %arg2[%c222_612] : memref<243xf32, #tpu.memory_space<smem>>
    %2647 = vector.broadcast %2646 : f32 to vector<24x384xf32>
    %2648 = arith.mulf %2647, %2637 : vector<24x384xf32>
    %2649 = arith.addf %2636, %2648 : vector<24x384xf32>
    %c366_i32_613 = arith.constant 366 : i32
    %2650 = tpu.dynamic_rotate %2559 by %c366_i32_613 dim 1 : vector<24x384xf32>, i32 -> vector<24x384xf32>
    %c169_614 = arith.constant 169 : index
    %2651 = memref.load %arg2[%c169_614] : memref<243xf32, #tpu.memory_space<smem>>
    %2652 = vector.broadcast %2651 : f32 to vector<24x384xf32>
    %2653 = arith.mulf %2652, %2650 : vector<24x384xf32>
    %2654 = arith.addf %2641, %2653 : vector<24x384xf32>
    %c196_615 = arith.constant 196 : index
    %2655 = memref.load %arg2[%c196_615] : memref<243xf32, #tpu.memory_space<smem>>
    %2656 = vector.broadcast %2655 : f32 to vector<24x384xf32>
    %2657 = arith.mulf %2656, %2650 : vector<24x384xf32>
    %2658 = arith.addf %2645, %2657 : vector<24x384xf32>
    %c223_616 = arith.constant 223 : index
    %2659 = memref.load %arg2[%c223_616] : memref<243xf32, #tpu.memory_space<smem>>
    %2660 = vector.broadcast %2659 : f32 to vector<24x384xf32>
    %2661 = arith.mulf %2660, %2650 : vector<24x384xf32>
    %2662 = arith.addf %2649, %2661 : vector<24x384xf32>
    %c365_i32_617 = arith.constant 365 : i32
    %2663 = tpu.dynamic_rotate %2559 by %c365_i32_617 dim 1 : vector<24x384xf32>, i32 -> vector<24x384xf32>
    %c170_618 = arith.constant 170 : index
    %2664 = memref.load %arg2[%c170_618] : memref<243xf32, #tpu.memory_space<smem>>
    %2665 = vector.broadcast %2664 : f32 to vector<24x384xf32>
    %2666 = arith.mulf %2665, %2663 : vector<24x384xf32>
    %2667 = arith.addf %2654, %2666 : vector<24x384xf32>
    %c197_619 = arith.constant 197 : index
    %2668 = memref.load %arg2[%c197_619] : memref<243xf32, #tpu.memory_space<smem>>
    %2669 = vector.broadcast %2668 : f32 to vector<24x384xf32>
    %2670 = arith.mulf %2669, %2663 : vector<24x384xf32>
    %2671 = arith.addf %2658, %2670 : vector<24x384xf32>
    %c224_620 = arith.constant 224 : index
    %2672 = memref.load %arg2[%c224_620] : memref<243xf32, #tpu.memory_space<smem>>
    %2673 = vector.broadcast %2672 : f32 to vector<24x384xf32>
    %2674 = arith.mulf %2673, %2663 : vector<24x384xf32>
    %2675 = arith.addf %2662, %2674 : vector<24x384xf32>
    %c8_621 = arith.constant 8 : index
    %c0_622 = arith.constant 0 : index
    %2676 = vector.load %arg8[%c8_621, %c0_622] : memref<40x384xf32, #tpu.memory_space<vmem>>, vector<24x384xf32>
    %c19_i32_623 = arith.constant 19 : i32
    %2677 = tpu.dynamic_rotate %2676 by %c19_i32_623 dim 1 : vector<24x384xf32>, i32 -> vector<24x384xf32>
    %c171_624 = arith.constant 171 : index
    %2678 = memref.load %arg2[%c171_624] : memref<243xf32, #tpu.memory_space<smem>>
    %2679 = vector.broadcast %2678 : f32 to vector<24x384xf32>
    %2680 = arith.mulf %2679, %2677 : vector<24x384xf32>
    %2681 = arith.addf %2667, %2680 : vector<24x384xf32>
    %c198_625 = arith.constant 198 : index
    %2682 = memref.load %arg2[%c198_625] : memref<243xf32, #tpu.memory_space<smem>>
    %2683 = vector.broadcast %2682 : f32 to vector<24x384xf32>
    %2684 = arith.mulf %2683, %2677 : vector<24x384xf32>
    %2685 = arith.addf %2671, %2684 : vector<24x384xf32>
    %c225_626 = arith.constant 225 : index
    %2686 = memref.load %arg2[%c225_626] : memref<243xf32, #tpu.memory_space<smem>>
    %2687 = vector.broadcast %2686 : f32 to vector<24x384xf32>
    %2688 = arith.mulf %2687, %2677 : vector<24x384xf32>
    %2689 = arith.addf %2675, %2688 : vector<24x384xf32>
    %c18_i32_627 = arith.constant 18 : i32
    %2690 = tpu.dynamic_rotate %2676 by %c18_i32_627 dim 1 : vector<24x384xf32>, i32 -> vector<24x384xf32>
    %c172_628 = arith.constant 172 : index
    %2691 = memref.load %arg2[%c172_628] : memref<243xf32, #tpu.memory_space<smem>>
    %2692 = vector.broadcast %2691 : f32 to vector<24x384xf32>
    %2693 = arith.mulf %2692, %2690 : vector<24x384xf32>
    %2694 = arith.addf %2681, %2693 : vector<24x384xf32>
    %c199_629 = arith.constant 199 : index
    %2695 = memref.load %arg2[%c199_629] : memref<243xf32, #tpu.memory_space<smem>>
    %2696 = vector.broadcast %2695 : f32 to vector<24x384xf32>
    %2697 = arith.mulf %2696, %2690 : vector<24x384xf32>
    %2698 = arith.addf %2685, %2697 : vector<24x384xf32>
    %c226_630 = arith.constant 226 : index
    %2699 = memref.load %arg2[%c226_630] : memref<243xf32, #tpu.memory_space<smem>>
    %2700 = vector.broadcast %2699 : f32 to vector<24x384xf32>
    %2701 = arith.mulf %2700, %2690 : vector<24x384xf32>
    %2702 = arith.addf %2689, %2701 : vector<24x384xf32>
    %c17_i32_631 = arith.constant 17 : i32
    %2703 = tpu.dynamic_rotate %2676 by %c17_i32_631 dim 1 : vector<24x384xf32>, i32 -> vector<24x384xf32>
    %c173_632 = arith.constant 173 : index
    %2704 = memref.load %arg2[%c173_632] : memref<243xf32, #tpu.memory_space<smem>>
    %2705 = vector.broadcast %2704 : f32 to vector<24x384xf32>
    %2706 = arith.mulf %2705, %2703 : vector<24x384xf32>
    %2707 = arith.addf %2694, %2706 : vector<24x384xf32>
    %c200_633 = arith.constant 200 : index
    %2708 = memref.load %arg2[%c200_633] : memref<243xf32, #tpu.memory_space<smem>>
    %2709 = vector.broadcast %2708 : f32 to vector<24x384xf32>
    %2710 = arith.mulf %2709, %2703 : vector<24x384xf32>
    %2711 = arith.addf %2698, %2710 : vector<24x384xf32>
    %c227_634 = arith.constant 227 : index
    %2712 = memref.load %arg2[%c227_634] : memref<243xf32, #tpu.memory_space<smem>>
    %2713 = vector.broadcast %2712 : f32 to vector<24x384xf32>
    %2714 = arith.mulf %2713, %2703 : vector<24x384xf32>
    %2715 = arith.addf %2702, %2714 : vector<24x384xf32>
    %c1_i32_635 = arith.constant 1 : i32
    %2716 = tpu.dynamic_rotate %2676 by %c1_i32_635 dim 1 : vector<24x384xf32>, i32 -> vector<24x384xf32>
    %c174_636 = arith.constant 174 : index
    %2717 = memref.load %arg2[%c174_636] : memref<243xf32, #tpu.memory_space<smem>>
    %2718 = vector.broadcast %2717 : f32 to vector<24x384xf32>
    %2719 = arith.mulf %2718, %2716 : vector<24x384xf32>
    %2720 = arith.addf %2707, %2719 : vector<24x384xf32>
    %c201_637 = arith.constant 201 : index
    %2721 = memref.load %arg2[%c201_637] : memref<243xf32, #tpu.memory_space<smem>>
    %2722 = vector.broadcast %2721 : f32 to vector<24x384xf32>
    %2723 = arith.mulf %2722, %2716 : vector<24x384xf32>
    %2724 = arith.addf %2711, %2723 : vector<24x384xf32>
    %c228_638 = arith.constant 228 : index
    %2725 = memref.load %arg2[%c228_638] : memref<243xf32, #tpu.memory_space<smem>>
    %2726 = vector.broadcast %2725 : f32 to vector<24x384xf32>
    %2727 = arith.mulf %2726, %2716 : vector<24x384xf32>
    %2728 = arith.addf %2715, %2727 : vector<24x384xf32>
    %c175_639 = arith.constant 175 : index
    %2729 = memref.load %arg2[%c175_639] : memref<243xf32, #tpu.memory_space<smem>>
    %2730 = vector.broadcast %2729 : f32 to vector<24x384xf32>
    %2731 = arith.mulf %2730, %2676 : vector<24x384xf32>
    %2732 = arith.addf %2720, %2731 : vector<24x384xf32>
    %c202_640 = arith.constant 202 : index
    %2733 = memref.load %arg2[%c202_640] : memref<243xf32, #tpu.memory_space<smem>>
    %2734 = vector.broadcast %2733 : f32 to vector<24x384xf32>
    %2735 = arith.mulf %2734, %2676 : vector<24x384xf32>
    %2736 = arith.addf %2724, %2735 : vector<24x384xf32>
    %c229_641 = arith.constant 229 : index
    %2737 = memref.load %arg2[%c229_641] : memref<243xf32, #tpu.memory_space<smem>>
    %2738 = vector.broadcast %2737 : f32 to vector<24x384xf32>
    %2739 = arith.mulf %2738, %2676 : vector<24x384xf32>
    %2740 = arith.addf %2728, %2739 : vector<24x384xf32>
    %c383_i32_642 = arith.constant 383 : i32
    %2741 = tpu.dynamic_rotate %2676 by %c383_i32_642 dim 1 : vector<24x384xf32>, i32 -> vector<24x384xf32>
    %c176_643 = arith.constant 176 : index
    %2742 = memref.load %arg2[%c176_643] : memref<243xf32, #tpu.memory_space<smem>>
    %2743 = vector.broadcast %2742 : f32 to vector<24x384xf32>
    %2744 = arith.mulf %2743, %2741 : vector<24x384xf32>
    %2745 = arith.addf %2732, %2744 : vector<24x384xf32>
    %c203_644 = arith.constant 203 : index
    %2746 = memref.load %arg2[%c203_644] : memref<243xf32, #tpu.memory_space<smem>>
    %2747 = vector.broadcast %2746 : f32 to vector<24x384xf32>
    %2748 = arith.mulf %2747, %2741 : vector<24x384xf32>
    %2749 = arith.addf %2736, %2748 : vector<24x384xf32>
    %c230_645 = arith.constant 230 : index
    %2750 = memref.load %arg2[%c230_645] : memref<243xf32, #tpu.memory_space<smem>>
    %2751 = vector.broadcast %2750 : f32 to vector<24x384xf32>
    %2752 = arith.mulf %2751, %2741 : vector<24x384xf32>
    %2753 = arith.addf %2740, %2752 : vector<24x384xf32>
    %c367_i32_646 = arith.constant 367 : i32
    %2754 = tpu.dynamic_rotate %2676 by %c367_i32_646 dim 1 : vector<24x384xf32>, i32 -> vector<24x384xf32>
    %c177_647 = arith.constant 177 : index
    %2755 = memref.load %arg2[%c177_647] : memref<243xf32, #tpu.memory_space<smem>>
    %2756 = vector.broadcast %2755 : f32 to vector<24x384xf32>
    %2757 = arith.mulf %2756, %2754 : vector<24x384xf32>
    %2758 = arith.addf %2745, %2757 : vector<24x384xf32>
    %c204_648 = arith.constant 204 : index
    %2759 = memref.load %arg2[%c204_648] : memref<243xf32, #tpu.memory_space<smem>>
    %2760 = vector.broadcast %2759 : f32 to vector<24x384xf32>
    %2761 = arith.mulf %2760, %2754 : vector<24x384xf32>
    %2762 = arith.addf %2749, %2761 : vector<24x384xf32>
    %c231_649 = arith.constant 231 : index
    %2763 = memref.load %arg2[%c231_649] : memref<243xf32, #tpu.memory_space<smem>>
    %2764 = vector.broadcast %2763 : f32 to vector<24x384xf32>
    %2765 = arith.mulf %2764, %2754 : vector<24x384xf32>
    %2766 = arith.addf %2753, %2765 : vector<24x384xf32>
    %c366_i32_650 = arith.constant 366 : i32
    %2767 = tpu.dynamic_rotate %2676 by %c366_i32_650 dim 1 : vector<24x384xf32>, i32 -> vector<24x384xf32>
    %c178_651 = arith.constant 178 : index
    %2768 = memref.load %arg2[%c178_651] : memref<243xf32, #tpu.memory_space<smem>>
    %2769 = vector.broadcast %2768 : f32 to vector<24x384xf32>
    %2770 = arith.mulf %2769, %2767 : vector<24x384xf32>
    %2771 = arith.addf %2758, %2770 : vector<24x384xf32>
    %c205_652 = arith.constant 205 : index
    %2772 = memref.load %arg2[%c205_652] : memref<243xf32, #tpu.memory_space<smem>>
    %2773 = vector.broadcast %2772 : f32 to vector<24x384xf32>
    %2774 = arith.mulf %2773, %2767 : vector<24x384xf32>
    %2775 = arith.addf %2762, %2774 : vector<24x384xf32>
    %c232_653 = arith.constant 232 : index
    %2776 = memref.load %arg2[%c232_653] : memref<243xf32, #tpu.memory_space<smem>>
    %2777 = vector.broadcast %2776 : f32 to vector<24x384xf32>
    %2778 = arith.mulf %2777, %2767 : vector<24x384xf32>
    %2779 = arith.addf %2766, %2778 : vector<24x384xf32>
    %c365_i32_654 = arith.constant 365 : i32
    %2780 = tpu.dynamic_rotate %2676 by %c365_i32_654 dim 1 : vector<24x384xf32>, i32 -> vector<24x384xf32>
    %c179_655 = arith.constant 179 : index
    %2781 = memref.load %arg2[%c179_655] : memref<243xf32, #tpu.memory_space<smem>>
    %2782 = vector.broadcast %2781 : f32 to vector<24x384xf32>
    %2783 = arith.mulf %2782, %2780 : vector<24x384xf32>
    %2784 = arith.addf %2771, %2783 : vector<24x384xf32>
    %c206_656 = arith.constant 206 : index
    %2785 = memref.load %arg2[%c206_656] : memref<243xf32, #tpu.memory_space<smem>>
    %2786 = vector.broadcast %2785 : f32 to vector<24x384xf32>
    %2787 = arith.mulf %2786, %2780 : vector<24x384xf32>
    %2788 = arith.addf %2775, %2787 : vector<24x384xf32>
    %c233_657 = arith.constant 233 : index
    %2789 = memref.load %arg2[%c233_657] : memref<243xf32, #tpu.memory_space<smem>>
    %2790 = vector.broadcast %2789 : f32 to vector<24x384xf32>
    %2791 = arith.mulf %2790, %2780 : vector<24x384xf32>
    %2792 = arith.addf %2779, %2791 : vector<24x384xf32>
    %c9_658 = arith.constant 9 : index
    %c0_659 = arith.constant 0 : index
    %2793 = vector.load %arg8[%c9_658, %c0_659] : memref<40x384xf32, #tpu.memory_space<vmem>>, vector<24x384xf32>
    %c19_i32_660 = arith.constant 19 : i32
    %2794 = tpu.dynamic_rotate %2793 by %c19_i32_660 dim 1 : vector<24x384xf32>, i32 -> vector<24x384xf32>
    %c180_661 = arith.constant 180 : index
    %2795 = memref.load %arg2[%c180_661] : memref<243xf32, #tpu.memory_space<smem>>
    %2796 = vector.broadcast %2795 : f32 to vector<24x384xf32>
    %2797 = arith.mulf %2796, %2794 : vector<24x384xf32>
    %2798 = arith.addf %2784, %2797 : vector<24x384xf32>
    %c207_662 = arith.constant 207 : index
    %2799 = memref.load %arg2[%c207_662] : memref<243xf32, #tpu.memory_space<smem>>
    %2800 = vector.broadcast %2799 : f32 to vector<24x384xf32>
    %2801 = arith.mulf %2800, %2794 : vector<24x384xf32>
    %2802 = arith.addf %2788, %2801 : vector<24x384xf32>
    %c234_663 = arith.constant 234 : index
    %2803 = memref.load %arg2[%c234_663] : memref<243xf32, #tpu.memory_space<smem>>
    %2804 = vector.broadcast %2803 : f32 to vector<24x384xf32>
    %2805 = arith.mulf %2804, %2794 : vector<24x384xf32>
    %2806 = arith.addf %2792, %2805 : vector<24x384xf32>
    %c18_i32_664 = arith.constant 18 : i32
    %2807 = tpu.dynamic_rotate %2793 by %c18_i32_664 dim 1 : vector<24x384xf32>, i32 -> vector<24x384xf32>
    %c181_665 = arith.constant 181 : index
    %2808 = memref.load %arg2[%c181_665] : memref<243xf32, #tpu.memory_space<smem>>
    %2809 = vector.broadcast %2808 : f32 to vector<24x384xf32>
    %2810 = arith.mulf %2809, %2807 : vector<24x384xf32>
    %2811 = arith.addf %2798, %2810 : vector<24x384xf32>
    %c208_666 = arith.constant 208 : index
    %2812 = memref.load %arg2[%c208_666] : memref<243xf32, #tpu.memory_space<smem>>
    %2813 = vector.broadcast %2812 : f32 to vector<24x384xf32>
    %2814 = arith.mulf %2813, %2807 : vector<24x384xf32>
    %2815 = arith.addf %2802, %2814 : vector<24x384xf32>
    %c235_667 = arith.constant 235 : index
    %2816 = memref.load %arg2[%c235_667] : memref<243xf32, #tpu.memory_space<smem>>
    %2817 = vector.broadcast %2816 : f32 to vector<24x384xf32>
    %2818 = arith.mulf %2817, %2807 : vector<24x384xf32>
    %2819 = arith.addf %2806, %2818 : vector<24x384xf32>
    %c17_i32_668 = arith.constant 17 : i32
    %2820 = tpu.dynamic_rotate %2793 by %c17_i32_668 dim 1 : vector<24x384xf32>, i32 -> vector<24x384xf32>
    %c182_669 = arith.constant 182 : index
    %2821 = memref.load %arg2[%c182_669] : memref<243xf32, #tpu.memory_space<smem>>
    %2822 = vector.broadcast %2821 : f32 to vector<24x384xf32>
    %2823 = arith.mulf %2822, %2820 : vector<24x384xf32>
    %2824 = arith.addf %2811, %2823 : vector<24x384xf32>
    %c209_670 = arith.constant 209 : index
    %2825 = memref.load %arg2[%c209_670] : memref<243xf32, #tpu.memory_space<smem>>
    %2826 = vector.broadcast %2825 : f32 to vector<24x384xf32>
    %2827 = arith.mulf %2826, %2820 : vector<24x384xf32>
    %2828 = arith.addf %2815, %2827 : vector<24x384xf32>
    %c236_671 = arith.constant 236 : index
    %2829 = memref.load %arg2[%c236_671] : memref<243xf32, #tpu.memory_space<smem>>
    %2830 = vector.broadcast %2829 : f32 to vector<24x384xf32>
    %2831 = arith.mulf %2830, %2820 : vector<24x384xf32>
    %2832 = arith.addf %2819, %2831 : vector<24x384xf32>
    %c1_i32_672 = arith.constant 1 : i32
    %2833 = tpu.dynamic_rotate %2793 by %c1_i32_672 dim 1 : vector<24x384xf32>, i32 -> vector<24x384xf32>
    %c183_673 = arith.constant 183 : index
    %2834 = memref.load %arg2[%c183_673] : memref<243xf32, #tpu.memory_space<smem>>
    %2835 = vector.broadcast %2834 : f32 to vector<24x384xf32>
    %2836 = arith.mulf %2835, %2833 : vector<24x384xf32>
    %2837 = arith.addf %2824, %2836 : vector<24x384xf32>
    %c210_674 = arith.constant 210 : index
    %2838 = memref.load %arg2[%c210_674] : memref<243xf32, #tpu.memory_space<smem>>
    %2839 = vector.broadcast %2838 : f32 to vector<24x384xf32>
    %2840 = arith.mulf %2839, %2833 : vector<24x384xf32>
    %2841 = arith.addf %2828, %2840 : vector<24x384xf32>
    %c237_675 = arith.constant 237 : index
    %2842 = memref.load %arg2[%c237_675] : memref<243xf32, #tpu.memory_space<smem>>
    %2843 = vector.broadcast %2842 : f32 to vector<24x384xf32>
    %2844 = arith.mulf %2843, %2833 : vector<24x384xf32>
    %2845 = arith.addf %2832, %2844 : vector<24x384xf32>
    %c184_676 = arith.constant 184 : index
    %2846 = memref.load %arg2[%c184_676] : memref<243xf32, #tpu.memory_space<smem>>
    %2847 = vector.broadcast %2846 : f32 to vector<24x384xf32>
    %2848 = arith.mulf %2847, %2793 : vector<24x384xf32>
    %2849 = arith.addf %2837, %2848 : vector<24x384xf32>
    %c211_677 = arith.constant 211 : index
    %2850 = memref.load %arg2[%c211_677] : memref<243xf32, #tpu.memory_space<smem>>
    %2851 = vector.broadcast %2850 : f32 to vector<24x384xf32>
    %2852 = arith.mulf %2851, %2793 : vector<24x384xf32>
    %2853 = arith.addf %2841, %2852 : vector<24x384xf32>
    %c238_678 = arith.constant 238 : index
    %2854 = memref.load %arg2[%c238_678] : memref<243xf32, #tpu.memory_space<smem>>
    %2855 = vector.broadcast %2854 : f32 to vector<24x384xf32>
    %2856 = arith.mulf %2855, %2793 : vector<24x384xf32>
    %2857 = arith.addf %2845, %2856 : vector<24x384xf32>
    %c383_i32_679 = arith.constant 383 : i32
    %2858 = tpu.dynamic_rotate %2793 by %c383_i32_679 dim 1 : vector<24x384xf32>, i32 -> vector<24x384xf32>
    %c185_680 = arith.constant 185 : index
    %2859 = memref.load %arg2[%c185_680] : memref<243xf32, #tpu.memory_space<smem>>
    %2860 = vector.broadcast %2859 : f32 to vector<24x384xf32>
    %2861 = arith.mulf %2860, %2858 : vector<24x384xf32>
    %2862 = arith.addf %2849, %2861 : vector<24x384xf32>
    %c212_681 = arith.constant 212 : index
    %2863 = memref.load %arg2[%c212_681] : memref<243xf32, #tpu.memory_space<smem>>
    %2864 = vector.broadcast %2863 : f32 to vector<24x384xf32>
    %2865 = arith.mulf %2864, %2858 : vector<24x384xf32>
    %2866 = arith.addf %2853, %2865 : vector<24x384xf32>
    %c239_682 = arith.constant 239 : index
    %2867 = memref.load %arg2[%c239_682] : memref<243xf32, #tpu.memory_space<smem>>
    %2868 = vector.broadcast %2867 : f32 to vector<24x384xf32>
    %2869 = arith.mulf %2868, %2858 : vector<24x384xf32>
    %2870 = arith.addf %2857, %2869 : vector<24x384xf32>
    %c367_i32_683 = arith.constant 367 : i32
    %2871 = tpu.dynamic_rotate %2793 by %c367_i32_683 dim 1 : vector<24x384xf32>, i32 -> vector<24x384xf32>
    %c186_684 = arith.constant 186 : index
    %2872 = memref.load %arg2[%c186_684] : memref<243xf32, #tpu.memory_space<smem>>
    %2873 = vector.broadcast %2872 : f32 to vector<24x384xf32>
    %2874 = arith.mulf %2873, %2871 : vector<24x384xf32>
    %2875 = arith.addf %2862, %2874 : vector<24x384xf32>
    %c213_685 = arith.constant 213 : index
    %2876 = memref.load %arg2[%c213_685] : memref<243xf32, #tpu.memory_space<smem>>
    %2877 = vector.broadcast %2876 : f32 to vector<24x384xf32>
    %2878 = arith.mulf %2877, %2871 : vector<24x384xf32>
    %2879 = arith.addf %2866, %2878 : vector<24x384xf32>
    %c240_686 = arith.constant 240 : index
    %2880 = memref.load %arg2[%c240_686] : memref<243xf32, #tpu.memory_space<smem>>
    %2881 = vector.broadcast %2880 : f32 to vector<24x384xf32>
    %2882 = arith.mulf %2881, %2871 : vector<24x384xf32>
    %2883 = arith.addf %2870, %2882 : vector<24x384xf32>
    %c366_i32_687 = arith.constant 366 : i32
    %2884 = tpu.dynamic_rotate %2793 by %c366_i32_687 dim 1 : vector<24x384xf32>, i32 -> vector<24x384xf32>
    %c187_688 = arith.constant 187 : index
    %2885 = memref.load %arg2[%c187_688] : memref<243xf32, #tpu.memory_space<smem>>
    %2886 = vector.broadcast %2885 : f32 to vector<24x384xf32>
    %2887 = arith.mulf %2886, %2884 : vector<24x384xf32>
    %2888 = arith.addf %2875, %2887 : vector<24x384xf32>
    %c214_689 = arith.constant 214 : index
    %2889 = memref.load %arg2[%c214_689] : memref<243xf32, #tpu.memory_space<smem>>
    %2890 = vector.broadcast %2889 : f32 to vector<24x384xf32>
    %2891 = arith.mulf %2890, %2884 : vector<24x384xf32>
    %2892 = arith.addf %2879, %2891 : vector<24x384xf32>
    %c241_690 = arith.constant 241 : index
    %2893 = memref.load %arg2[%c241_690] : memref<243xf32, #tpu.memory_space<smem>>
    %2894 = vector.broadcast %2893 : f32 to vector<24x384xf32>
    %2895 = arith.mulf %2894, %2884 : vector<24x384xf32>
    %2896 = arith.addf %2883, %2895 : vector<24x384xf32>
    %c365_i32_691 = arith.constant 365 : i32
    %2897 = tpu.dynamic_rotate %2793 by %c365_i32_691 dim 1 : vector<24x384xf32>, i32 -> vector<24x384xf32>
    %c188_692 = arith.constant 188 : index
    %2898 = memref.load %arg2[%c188_692] : memref<243xf32, #tpu.memory_space<smem>>
    %2899 = vector.broadcast %2898 : f32 to vector<24x384xf32>
    %2900 = arith.mulf %2899, %2897 : vector<24x384xf32>
    %2901 = arith.addf %2888, %2900 : vector<24x384xf32>
    %c215_693 = arith.constant 215 : index
    %2902 = memref.load %arg2[%c215_693] : memref<243xf32, #tpu.memory_space<smem>>
    %2903 = vector.broadcast %2902 : f32 to vector<24x384xf32>
    %2904 = arith.mulf %2903, %2897 : vector<24x384xf32>
    %2905 = arith.addf %2892, %2904 : vector<24x384xf32>
    %c242_694 = arith.constant 242 : index
    %2906 = memref.load %arg2[%c242_694] : memref<243xf32, #tpu.memory_space<smem>>
    %2907 = vector.broadcast %2906 : f32 to vector<24x384xf32>
    %2908 = arith.mulf %2907, %2897 : vector<24x384xf32>
    %2909 = arith.addf %2896, %2908 : vector<24x384xf32>
    %cst_695 = arith.constant 0.000000e+00 : f32
    %2910 = vector.broadcast %cst_695 : f32 to vector<24x384xf32>
    %2911 = arith.select %112, %2901, %2910 : vector<24x384xi1>, vector<24x384xf32>
    %2912 = vector.shape_cast %2911 : vector<24x384xf32> to vector<1x24x384xf32>
    %cst_696 = arith.constant dense<0.000000e+00> : vector<1xf32>
    %2913 = vector.multi_reduction <add>, %2912, %cst_696 [1, 2] : vector<1x24x384xf32> to vector<1xf32>
    %2914 = vector.shape_cast %2913 : vector<1xf32> to vector<1x1x1xf32>
    %2915 = vector.extract %2914[0, 0, 0] : f32 from vector<1x1x1xf32>
    %2916 = arith.mulf %2911, %2911 : vector<24x384xf32>
    %2917 = vector.shape_cast %2916 : vector<24x384xf32> to vector<1x24x384xf32>
    %cst_697 = arith.constant dense<0.000000e+00> : vector<1xf32>
    %2918 = vector.multi_reduction <add>, %2917, %cst_697 [1, 2] : vector<1x24x384xf32> to vector<1xf32>
    %2919 = vector.shape_cast %2918 : vector<1xf32> to vector<1x1x1xf32>
    %2920 = vector.extract %2919[0, 0, 0] : f32 from vector<1x1x1xf32>
    %cst_698 = arith.constant 2.44140625E-4 : f32
    %2921 = arith.mulf %2915, %cst_698 : f32
    %cst_699 = arith.constant 2.44140625E-4 : f32
    %2922 = arith.mulf %2920, %cst_699 : f32
    %2923 = arith.mulf %2921, %2921 : f32
    %2924 = arith.subf %2922, %2923 : f32
    %2925 = vector.broadcast %2921 : f32 to vector<24x384xf32>
    %2926 = arith.subf %2901, %2925 : vector<24x384xf32>
    %cst_700 = arith.constant 9.99999974E-6 : f32
    %2927 = arith.addf %2924, %cst_700 : f32
    %2928 = math.rsqrt %2927 : f32
    %2929 = vector.broadcast %2928 : f32 to vector<24x384xf32>
    %2930 = arith.mulf %2926, %2929 : vector<24x384xf32>
    %c6_701 = arith.constant 6 : index
    %2931 = memref.load %arg4[%c6_701] : memref<9xf32, #tpu.memory_space<smem>>
    %2932 = vector.broadcast %2931 : f32 to vector<24x384xf32>
    %2933 = arith.mulf %2930, %2932 : vector<24x384xf32>
    %c6_702 = arith.constant 6 : index
    %2934 = memref.load %arg5[%c6_702] : memref<9xf32, #tpu.memory_space<smem>>
    %2935 = vector.broadcast %2934 : f32 to vector<24x384xf32>
    %2936 = arith.addf %2933, %2935 : vector<24x384xf32>
    %2937 = math.tanh %2936 : vector<24x384xf32>
    %cst_703 = arith.constant 0xFF800000 : f32
    %2938 = vector.broadcast %cst_703 : f32 to vector<24x384xf32>
    %2939 = arith.select %112, %2937, %2938 : vector<24x384xi1>, vector<24x384xf32>
    %c383_i32_704 = arith.constant 383 : i32
    %2940 = tpu.dynamic_rotate %2939 by %c383_i32_704 dim 1 : vector<24x384xf32>, i32 -> vector<24x384xf32>
    %c1_i32_705 = arith.constant 1 : i32
    %2941 = tpu.dynamic_rotate %2939 by %c1_i32_705 dim 1 : vector<24x384xf32>, i32 -> vector<24x384xf32>
    %2942 = arith.maximumf %2940, %2941 : vector<24x384xf32>
    %2943 = arith.maximumf %2939, %2942 : vector<24x384xf32>
    %c366_i32_706 = arith.constant 366 : i32
    %2944 = tpu.dynamic_rotate %2943 by %c366_i32_706 dim 1 : vector<24x384xf32>, i32 -> vector<24x384xf32>
    %c18_i32_707 = arith.constant 18 : i32
    %2945 = tpu.dynamic_rotate %2943 by %c18_i32_707 dim 1 : vector<24x384xf32>, i32 -> vector<24x384xf32>
    %2946 = arith.maximumf %2944, %2945 : vector<24x384xf32>
    %2947 = arith.maximumf %2943, %2946 : vector<24x384xf32>
    %c8_708 = arith.constant 8 : index
    %c0_709 = arith.constant 0 : index
    %2948 = vector.load %arg9[%c8_708, %c0_709] : memref<40x384xf32, #tpu.memory_space<vmem>>, vector<24x384xf32>
    tpu.vector_store %arg9[%c8_708, %c0_709], %2947 {strides = array<i32>} : memref<40x384xf32, #tpu.memory_space<vmem>>, vector<24x384xf32>,
    %cst_710 = arith.constant 0.000000e+00 : f32
    %2949 = vector.broadcast %cst_710 : f32 to vector<24x384xf32>
    %2950 = arith.select %112, %2905, %2949 : vector<24x384xi1>, vector<24x384xf32>
    %2951 = vector.shape_cast %2950 : vector<24x384xf32> to vector<1x24x384xf32>
    %cst_711 = arith.constant dense<0.000000e+00> : vector<1xf32>
    %2952 = vector.multi_reduction <add>, %2951, %cst_711 [1, 2] : vector<1x24x384xf32> to vector<1xf32>
    %2953 = vector.shape_cast %2952 : vector<1xf32> to vector<1x1x1xf32>
    %2954 = vector.extract %2953[0, 0, 0] : f32 from vector<1x1x1xf32>
    %2955 = arith.mulf %2950, %2950 : vector<24x384xf32>
    %2956 = vector.shape_cast %2955 : vector<24x384xf32> to vector<1x24x384xf32>
    %cst_712 = arith.constant dense<0.000000e+00> : vector<1xf32>
    %2957 = vector.multi_reduction <add>, %2956, %cst_712 [1, 2] : vector<1x24x384xf32> to vector<1xf32>
    %2958 = vector.shape_cast %2957 : vector<1xf32> to vector<1x1x1xf32>
    %2959 = vector.extract %2958[0, 0, 0] : f32 from vector<1x1x1xf32>
    %cst_713 = arith.constant 2.44140625E-4 : f32
    %2960 = arith.mulf %2954, %cst_713 : f32
    %cst_714 = arith.constant 2.44140625E-4 : f32
    %2961 = arith.mulf %2959, %cst_714 : f32
    %2962 = arith.mulf %2960, %2960 : f32
    %2963 = arith.subf %2961, %2962 : f32
    %2964 = vector.broadcast %2960 : f32 to vector<24x384xf32>
    %2965 = arith.subf %2905, %2964 : vector<24x384xf32>
    %cst_715 = arith.constant 9.99999974E-6 : f32
    %2966 = arith.addf %2963, %cst_715 : f32
    %2967 = math.rsqrt %2966 : f32
    %2968 = vector.broadcast %2967 : f32 to vector<24x384xf32>
    %2969 = arith.mulf %2965, %2968 : vector<24x384xf32>
    %c7_716 = arith.constant 7 : index
    %2970 = memref.load %arg4[%c7_716] : memref<9xf32, #tpu.memory_space<smem>>
    %2971 = vector.broadcast %2970 : f32 to vector<24x384xf32>
    %2972 = arith.mulf %2969, %2971 : vector<24x384xf32>
    %c7_717 = arith.constant 7 : index
    %2973 = memref.load %arg5[%c7_717] : memref<9xf32, #tpu.memory_space<smem>>
    %2974 = vector.broadcast %2973 : f32 to vector<24x384xf32>
    %2975 = arith.addf %2972, %2974 : vector<24x384xf32>
    %2976 = math.tanh %2975 : vector<24x384xf32>
    %cst_718 = arith.constant 0xFF800000 : f32
    %2977 = vector.broadcast %cst_718 : f32 to vector<24x384xf32>
    %2978 = arith.select %112, %2976, %2977 : vector<24x384xi1>, vector<24x384xf32>
    %c383_i32_719 = arith.constant 383 : i32
    %2979 = tpu.dynamic_rotate %2978 by %c383_i32_719 dim 1 : vector<24x384xf32>, i32 -> vector<24x384xf32>
    %c1_i32_720 = arith.constant 1 : i32
    %2980 = tpu.dynamic_rotate %2978 by %c1_i32_720 dim 1 : vector<24x384xf32>, i32 -> vector<24x384xf32>
    %2981 = arith.maximumf %2979, %2980 : vector<24x384xf32>
    %2982 = arith.maximumf %2978, %2981 : vector<24x384xf32>
    %c366_i32_721 = arith.constant 366 : i32
    %2983 = tpu.dynamic_rotate %2982 by %c366_i32_721 dim 1 : vector<24x384xf32>, i32 -> vector<24x384xf32>
    %c18_i32_722 = arith.constant 18 : i32
    %2984 = tpu.dynamic_rotate %2982 by %c18_i32_722 dim 1 : vector<24x384xf32>, i32 -> vector<24x384xf32>
    %2985 = arith.maximumf %2983, %2984 : vector<24x384xf32>
    %2986 = arith.maximumf %2982, %2985 : vector<24x384xf32>
    %c8_723 = arith.constant 8 : index
    %c0_724 = arith.constant 0 : index
    %2987 = vector.load %arg9[%c8_723, %c0_724] : memref<40x384xf32, #tpu.memory_space<vmem>>, vector<24x384xf32>
    tpu.vector_store %arg9[%c8_723, %c0_724], %2986 {strides = array<i32>} : memref<40x384xf32, #tpu.memory_space<vmem>>, vector<24x384xf32>,
    %cst_725 = arith.constant 0.000000e+00 : f32
    %2988 = vector.broadcast %cst_725 : f32 to vector<24x384xf32>
    %2989 = arith.select %112, %2909, %2988 : vector<24x384xi1>, vector<24x384xf32>
    %2990 = vector.shape_cast %2989 : vector<24x384xf32> to vector<1x24x384xf32>
    %cst_726 = arith.constant dense<0.000000e+00> : vector<1xf32>
    %2991 = vector.multi_reduction <add>, %2990, %cst_726 [1, 2] : vector<1x24x384xf32> to vector<1xf32>
    %2992 = vector.shape_cast %2991 : vector<1xf32> to vector<1x1x1xf32>
    %2993 = vector.extract %2992[0, 0, 0] : f32 from vector<1x1x1xf32>
    %2994 = arith.mulf %2989, %2989 : vector<24x384xf32>
    %2995 = vector.shape_cast %2994 : vector<24x384xf32> to vector<1x24x384xf32>
    %cst_727 = arith.constant dense<0.000000e+00> : vector<1xf32>
    %2996 = vector.multi_reduction <add>, %2995, %cst_727 [1, 2] : vector<1x24x384xf32> to vector<1xf32>
    %2997 = vector.shape_cast %2996 : vector<1xf32> to vector<1x1x1xf32>
    %2998 = vector.extract %2997[0, 0, 0] : f32 from vector<1x1x1xf32>
    %cst_728 = arith.constant 2.44140625E-4 : f32
    %2999 = arith.mulf %2993, %cst_728 : f32
    %cst_729 = arith.constant 2.44140625E-4 : f32
    %3000 = arith.mulf %2998, %cst_729 : f32
    %3001 = arith.mulf %2999, %2999 : f32
    %3002 = arith.subf %3000, %3001 : f32
    %3003 = vector.broadcast %2999 : f32 to vector<24x384xf32>
    %3004 = arith.subf %2909, %3003 : vector<24x384xf32>
    %cst_730 = arith.constant 9.99999974E-6 : f32
    %3005 = arith.addf %3002, %cst_730 : f32
    %3006 = math.rsqrt %3005 : f32
    %3007 = vector.broadcast %3006 : f32 to vector<24x384xf32>
    %3008 = arith.mulf %3004, %3007 : vector<24x384xf32>
    %c8_731 = arith.constant 8 : index
    %3009 = memref.load %arg4[%c8_731] : memref<9xf32, #tpu.memory_space<smem>>
    %3010 = vector.broadcast %3009 : f32 to vector<24x384xf32>
    %3011 = arith.mulf %3008, %3010 : vector<24x384xf32>
    %c8_732 = arith.constant 8 : index
    %3012 = memref.load %arg5[%c8_732] : memref<9xf32, #tpu.memory_space<smem>>
    %3013 = vector.broadcast %3012 : f32 to vector<24x384xf32>
    %3014 = arith.addf %3011, %3013 : vector<24x384xf32>
    %3015 = math.tanh %3014 : vector<24x384xf32>
    %cst_733 = arith.constant 0xFF800000 : f32
    %3016 = vector.broadcast %cst_733 : f32 to vector<24x384xf32>
    %3017 = arith.select %112, %3015, %3016 : vector<24x384xi1>, vector<24x384xf32>
    %c383_i32_734 = arith.constant 383 : i32
    %3018 = tpu.dynamic_rotate %3017 by %c383_i32_734 dim 1 : vector<24x384xf32>, i32 -> vector<24x384xf32>
    %c1_i32_735 = arith.constant 1 : i32
    %3019 = tpu.dynamic_rotate %3017 by %c1_i32_735 dim 1 : vector<24x384xf32>, i32 -> vector<24x384xf32>
    %3020 = arith.maximumf %3018, %3019 : vector<24x384xf32>
    %3021 = arith.maximumf %3017, %3020 : vector<24x384xf32>
    %c366_i32_736 = arith.constant 366 : i32
    %3022 = tpu.dynamic_rotate %3021 by %c366_i32_736 dim 1 : vector<24x384xf32>, i32 -> vector<24x384xf32>
    %c18_i32_737 = arith.constant 18 : i32
    %3023 = tpu.dynamic_rotate %3021 by %c18_i32_737 dim 1 : vector<24x384xf32>, i32 -> vector<24x384xf32>
    %3024 = arith.maximumf %3022, %3023 : vector<24x384xf32>
    %3025 = arith.maximumf %3021, %3024 : vector<24x384xf32>
    %c8_738 = arith.constant 8 : index
    %c0_739 = arith.constant 0 : index
    %3026 = vector.load %arg9[%c8_738, %c0_739] : memref<40x384xf32, #tpu.memory_space<vmem>>, vector<24x384xf32>
    tpu.vector_store %arg9[%c8_738, %c0_739], %3025 {strides = array<i32>} : memref<40x384xf32, #tpu.memory_space<vmem>>, vector<24x384xf32>,
    %cst_740 = arith.constant 0.000000e+00 : f32
    %3027 = vector.broadcast %cst_740 : f32 to vector<24x384xf32>
    %c0_741 = arith.constant 0 : index
    %c0_742 = arith.constant 0 : index
    %3028 = vector.load %arg1[%c0_741, %c0_742] : memref<24x384xf32, #tpu.memory_space<vmem>>, vector<24x384xf32>
    %cst_743 = arith.constant 0.000000e+00 : f32
    %3029 = vector.broadcast %cst_743 : f32 to vector<24x384xf32>
    %3030 = arith.maximumf %3027, %3029 : vector<24x384xf32>
    %cst_744 = arith.constant 0.000000e+00 : f32
    %3031 = vector.broadcast %cst_744 : f32 to vector<24x384xf32>
    %3032 = arith.cmpf ogt, %3030, %3031 : vector<24x384xf32>
    %3033 = arith.andi %3032, %112 : vector<24x384xi1>
    %cst_745 = arith.constant 1.000000e+00 : f32
    %cst_746 = arith.constant 0.000000e+00 : f32
    %3034 = vector.broadcast %cst_745 : f32 to vector<24x384xf32>
    %3035 = vector.broadcast %cst_746 : f32 to vector<24x384xf32>
    %3036 = arith.select %3033, %3034, %3035 : vector<24x384xi1>, vector<24x384xf32>
    %cst_747 = arith.constant 1.000000e+00 : f32
    %3037 = vector.broadcast %cst_747 : f32 to vector<24x384xf32>
    %3038 = arith.subf %3037, %3036 : vector<24x384xf32>
    %cst_748 = arith.constant 0.000000e+00 : f32
    %3039 = vector.broadcast %cst_748 : f32 to vector<24x384xf32>
    %3040 = arith.select %112, %3038, %3039 : vector<24x384xi1>, vector<24x384xf32>
    %3041 = arith.mulf %3028, %3036 : vector<24x384xf32>
    %3042 = vector.shape_cast %3041 : vector<24x384xf32> to vector<1x24x384xf32>
    %cst_749 = arith.constant dense<0.000000e+00> : vector<1xf32>
    %3043 = vector.multi_reduction <add>, %3042, %cst_749 [1, 2] : vector<1x24x384xf32> to vector<1xf32>
    %3044 = vector.shape_cast %3043 : vector<1xf32> to vector<1x1x1xf32>
    %3045 = vector.extract %3044[0, 0, 0] : f32 from vector<1x1x1xf32>
    %3046 = vector.shape_cast %3036 : vector<24x384xf32> to vector<1x24x384xf32>
    %cst_750 = arith.constant dense<0.000000e+00> : vector<1xf32>
    %3047 = vector.multi_reduction <add>, %3046, %cst_750 [1, 2] : vector<1x24x384xf32> to vector<1xf32>
    %3048 = vector.shape_cast %3047 : vector<1xf32> to vector<1x1x1xf32>
    %3049 = vector.extract %3048[0, 0, 0] : f32 from vector<1x1x1xf32>
    %cst_751 = arith.constant 9.99999993E-9 : f32
    %3050 = arith.addf %3049, %cst_751 : f32
    %3051 = arith.divf %3045, %3050 : f32
    %3052 = arith.mulf %3028, %3040 : vector<24x384xf32>
    %3053 = vector.shape_cast %3052 : vector<24x384xf32> to vector<1x24x384xf32>
    %cst_752 = arith.constant dense<0.000000e+00> : vector<1xf32>
    %3054 = vector.multi_reduction <add>, %3053, %cst_752 [1, 2] : vector<1x24x384xf32> to vector<1xf32>
    %3055 = vector.shape_cast %3054 : vector<1xf32> to vector<1x1x1xf32>
    %3056 = vector.extract %3055[0, 0, 0] : f32 from vector<1x1x1xf32>
    %3057 = vector.shape_cast %3040 : vector<24x384xf32> to vector<1x24x384xf32>
    %cst_753 = arith.constant dense<0.000000e+00> : vector<1xf32>
    %3058 = vector.multi_reduction <add>, %3057, %cst_753 [1, 2] : vector<1x24x384xf32> to vector<1xf32>
    %3059 = vector.shape_cast %3058 : vector<1xf32> to vector<1x1x1xf32>
    %3060 = vector.extract %3059[0, 0, 0] : f32 from vector<1x1x1xf32>
    %cst_754 = arith.constant 9.99999993E-9 : f32
    %3061 = arith.addf %3060, %cst_754 : f32
    %3062 = arith.divf %3056, %3061 : f32
    %3063 = vector.broadcast %3062 : f32 to vector<24x384xf32>
    %3064 = arith.subf %3028, %3063 : vector<24x384xf32>
    %3065 = arith.mulf %3064, %3064 : vector<24x384xf32>
    %3066 = vector.broadcast %3051 : f32 to vector<24x384xf32>
    %3067 = arith.subf %3028, %3066 : vector<24x384xf32>
    %3068 = arith.mulf %3067, %3067 : vector<24x384xf32>
    %3069 = arith.subf %3065, %3068 : vector<24x384xf32>
    %cst_755 = arith.constant 0.000000e+00 : f32
    %3070 = vector.broadcast %cst_755 : f32 to vector<24x384xf32>
    %3071 = arith.select %112, %3069, %3070 : vector<24x384xi1>, vector<24x384xf32>
    %c8_756 = arith.constant 8 : index
    %c0_757 = arith.constant 0 : index
    %3072 = vector.load %arg8[%c8_756, %c0_757] : memref<40x384xf32, #tpu.memory_space<vmem>>, vector<24x384xf32>
    tpu.vector_store %arg8[%c8_756, %c0_757], %3071 {strides = array<i32>} : memref<40x384xf32, #tpu.memory_space<vmem>>, vector<24x384xf32>,
    %cst_758 = arith.constant 0.000000e+00 : f32
    %3073 = vector.broadcast %cst_758 : f32 to vector<24x384xf32>
    %c7_759 = arith.constant 7 : index
    %c0_760 = arith.constant 0 : index
    %3074 = vector.load %arg8[%c7_759, %c0_760] : memref<40x384xf32, #tpu.memory_space<vmem>>, vector<24x384xf32>
    %c0_761 = arith.constant 0 : index
    %3075 = memref.load %arg6[%c0_761] : memref<27xf32, #tpu.memory_space<smem>>
    %c19_i32_762 = arith.constant 19 : i32
    %3076 = tpu.dynamic_rotate %3074 by %c19_i32_762 dim 1 : vector<24x384xf32>, i32 -> vector<24x384xf32>
    %3077 = vector.broadcast %3075 : f32 to vector<24x384xf32>
    %3078 = arith.mulf %3077, %3076 : vector<24x384xf32>
    %3079 = arith.addf %3073, %3078 : vector<24x384xf32>
    %c1_763 = arith.constant 1 : index
    %3080 = memref.load %arg6[%c1_763] : memref<27xf32, #tpu.memory_space<smem>>
    %c18_i32_764 = arith.constant 18 : i32
    %3081 = tpu.dynamic_rotate %3074 by %c18_i32_764 dim 1 : vector<24x384xf32>, i32 -> vector<24x384xf32>
    %3082 = vector.broadcast %3080 : f32 to vector<24x384xf32>
    %3083 = arith.mulf %3082, %3081 : vector<24x384xf32>
    %3084 = arith.addf %3079, %3083 : vector<24x384xf32>
    %c2_765 = arith.constant 2 : index
    %3085 = memref.load %arg6[%c2_765] : memref<27xf32, #tpu.memory_space<smem>>
    %c17_i32_766 = arith.constant 17 : i32
    %3086 = tpu.dynamic_rotate %3074 by %c17_i32_766 dim 1 : vector<24x384xf32>, i32 -> vector<24x384xf32>
    %3087 = vector.broadcast %3085 : f32 to vector<24x384xf32>
    %3088 = arith.mulf %3087, %3086 : vector<24x384xf32>
    %3089 = arith.addf %3084, %3088 : vector<24x384xf32>
    %c3_767 = arith.constant 3 : index
    %3090 = memref.load %arg6[%c3_767] : memref<27xf32, #tpu.memory_space<smem>>
    %c1_i32_768 = arith.constant 1 : i32
    %3091 = tpu.dynamic_rotate %3074 by %c1_i32_768 dim 1 : vector<24x384xf32>, i32 -> vector<24x384xf32>
    %3092 = vector.broadcast %3090 : f32 to vector<24x384xf32>
    %3093 = arith.mulf %3092, %3091 : vector<24x384xf32>
    %3094 = arith.addf %3089, %3093 : vector<24x384xf32>
    %c4_769 = arith.constant 4 : index
    %3095 = memref.load %arg6[%c4_769] : memref<27xf32, #tpu.memory_space<smem>>
    %3096 = vector.broadcast %3095 : f32 to vector<24x384xf32>
    %3097 = arith.mulf %3096, %3074 : vector<24x384xf32>
    %3098 = arith.addf %3094, %3097 : vector<24x384xf32>
    %c5_770 = arith.constant 5 : index
    %3099 = memref.load %arg6[%c5_770] : memref<27xf32, #tpu.memory_space<smem>>
    %c383_i32_771 = arith.constant 383 : i32
    %3100 = tpu.dynamic_rotate %3074 by %c383_i32_771 dim 1 : vector<24x384xf32>, i32 -> vector<24x384xf32>
    %3101 = vector.broadcast %3099 : f32 to vector<24x384xf32>
    %3102 = arith.mulf %3101, %3100 : vector<24x384xf32>
    %3103 = arith.addf %3098, %3102 : vector<24x384xf32>
    %c6_772 = arith.constant 6 : index
    %3104 = memref.load %arg6[%c6_772] : memref<27xf32, #tpu.memory_space<smem>>
    %c367_i32_773 = arith.constant 367 : i32
    %3105 = tpu.dynamic_rotate %3074 by %c367_i32_773 dim 1 : vector<24x384xf32>, i32 -> vector<24x384xf32>
    %3106 = vector.broadcast %3104 : f32 to vector<24x384xf32>
    %3107 = arith.mulf %3106, %3105 : vector<24x384xf32>
    %3108 = arith.addf %3103, %3107 : vector<24x384xf32>
    %c7_774 = arith.constant 7 : index
    %3109 = memref.load %arg6[%c7_774] : memref<27xf32, #tpu.memory_space<smem>>
    %c366_i32_775 = arith.constant 366 : i32
    %3110 = tpu.dynamic_rotate %3074 by %c366_i32_775 dim 1 : vector<24x384xf32>, i32 -> vector<24x384xf32>
    %3111 = vector.broadcast %3109 : f32 to vector<24x384xf32>
    %3112 = arith.mulf %3111, %3110 : vector<24x384xf32>
    %3113 = arith.addf %3108, %3112 : vector<24x384xf32>
    %c8_776 = arith.constant 8 : index
    %3114 = memref.load %arg6[%c8_776] : memref<27xf32, #tpu.memory_space<smem>>
    %c365_i32_777 = arith.constant 365 : i32
    %3115 = tpu.dynamic_rotate %3074 by %c365_i32_777 dim 1 : vector<24x384xf32>, i32 -> vector<24x384xf32>
    %3116 = vector.broadcast %3114 : f32 to vector<24x384xf32>
    %3117 = arith.mulf %3116, %3115 : vector<24x384xf32>
    %3118 = arith.addf %3113, %3117 : vector<24x384xf32>
    %c8_778 = arith.constant 8 : index
    %c0_779 = arith.constant 0 : index
    %3119 = vector.load %arg8[%c8_778, %c0_779] : memref<40x384xf32, #tpu.memory_space<vmem>>, vector<24x384xf32>
    %c9_780 = arith.constant 9 : index
    %3120 = memref.load %arg6[%c9_780] : memref<27xf32, #tpu.memory_space<smem>>
    %c19_i32_781 = arith.constant 19 : i32
    %3121 = tpu.dynamic_rotate %3119 by %c19_i32_781 dim 1 : vector<24x384xf32>, i32 -> vector<24x384xf32>
    %3122 = vector.broadcast %3120 : f32 to vector<24x384xf32>
    %3123 = arith.mulf %3122, %3121 : vector<24x384xf32>
    %3124 = arith.addf %3118, %3123 : vector<24x384xf32>
    %c10_782 = arith.constant 10 : index
    %3125 = memref.load %arg6[%c10_782] : memref<27xf32, #tpu.memory_space<smem>>
    %c18_i32_783 = arith.constant 18 : i32
    %3126 = tpu.dynamic_rotate %3119 by %c18_i32_783 dim 1 : vector<24x384xf32>, i32 -> vector<24x384xf32>
    %3127 = vector.broadcast %3125 : f32 to vector<24x384xf32>
    %3128 = arith.mulf %3127, %3126 : vector<24x384xf32>
    %3129 = arith.addf %3124, %3128 : vector<24x384xf32>
    %c11_784 = arith.constant 11 : index
    %3130 = memref.load %arg6[%c11_784] : memref<27xf32, #tpu.memory_space<smem>>
    %c17_i32_785 = arith.constant 17 : i32
    %3131 = tpu.dynamic_rotate %3119 by %c17_i32_785 dim 1 : vector<24x384xf32>, i32 -> vector<24x384xf32>
    %3132 = vector.broadcast %3130 : f32 to vector<24x384xf32>
    %3133 = arith.mulf %3132, %3131 : vector<24x384xf32>
    %3134 = arith.addf %3129, %3133 : vector<24x384xf32>
    %c12_786 = arith.constant 12 : index
    %3135 = memref.load %arg6[%c12_786] : memref<27xf32, #tpu.memory_space<smem>>
    %c1_i32_787 = arith.constant 1 : i32
    %3136 = tpu.dynamic_rotate %3119 by %c1_i32_787 dim 1 : vector<24x384xf32>, i32 -> vector<24x384xf32>
    %3137 = vector.broadcast %3135 : f32 to vector<24x384xf32>
    %3138 = arith.mulf %3137, %3136 : vector<24x384xf32>
    %3139 = arith.addf %3134, %3138 : vector<24x384xf32>
    %c13_788 = arith.constant 13 : index
    %3140 = memref.load %arg6[%c13_788] : memref<27xf32, #tpu.memory_space<smem>>
    %3141 = vector.broadcast %3140 : f32 to vector<24x384xf32>
    %3142 = arith.mulf %3141, %3119 : vector<24x384xf32>
    %3143 = arith.addf %3139, %3142 : vector<24x384xf32>
    %c14_789 = arith.constant 14 : index
    %3144 = memref.load %arg6[%c14_789] : memref<27xf32, #tpu.memory_space<smem>>
    %c383_i32_790 = arith.constant 383 : i32
    %3145 = tpu.dynamic_rotate %3119 by %c383_i32_790 dim 1 : vector<24x384xf32>, i32 -> vector<24x384xf32>
    %3146 = vector.broadcast %3144 : f32 to vector<24x384xf32>
    %3147 = arith.mulf %3146, %3145 : vector<24x384xf32>
    %3148 = arith.addf %3143, %3147 : vector<24x384xf32>
    %c15_791 = arith.constant 15 : index
    %3149 = memref.load %arg6[%c15_791] : memref<27xf32, #tpu.memory_space<smem>>
    %c367_i32_792 = arith.constant 367 : i32
    %3150 = tpu.dynamic_rotate %3119 by %c367_i32_792 dim 1 : vector<24x384xf32>, i32 -> vector<24x384xf32>
    %3151 = vector.broadcast %3149 : f32 to vector<24x384xf32>
    %3152 = arith.mulf %3151, %3150 : vector<24x384xf32>
    %3153 = arith.addf %3148, %3152 : vector<24x384xf32>
    %c16_793 = arith.constant 16 : index
    %3154 = memref.load %arg6[%c16_793] : memref<27xf32, #tpu.memory_space<smem>>
    %c366_i32_794 = arith.constant 366 : i32
    %3155 = tpu.dynamic_rotate %3119 by %c366_i32_794 dim 1 : vector<24x384xf32>, i32 -> vector<24x384xf32>
    %3156 = vector.broadcast %3154 : f32 to vector<24x384xf32>
    %3157 = arith.mulf %3156, %3155 : vector<24x384xf32>
    %3158 = arith.addf %3153, %3157 : vector<24x384xf32>
    %c17_795 = arith.constant 17 : index
    %3159 = memref.load %arg6[%c17_795] : memref<27xf32, #tpu.memory_space<smem>>
    %c365_i32_796 = arith.constant 365 : i32
    %3160 = tpu.dynamic_rotate %3119 by %c365_i32_796 dim 1 : vector<24x384xf32>, i32 -> vector<24x384xf32>
    %3161 = vector.broadcast %3159 : f32 to vector<24x384xf32>
    %3162 = arith.mulf %3161, %3160 : vector<24x384xf32>
    %3163 = arith.addf %3158, %3162 : vector<24x384xf32>
    %c9_797 = arith.constant 9 : index
    %c0_798 = arith.constant 0 : index
    %3164 = vector.load %arg8[%c9_797, %c0_798] : memref<40x384xf32, #tpu.memory_space<vmem>>, vector<24x384xf32>
    %c18_799 = arith.constant 18 : index
    %3165 = memref.load %arg6[%c18_799] : memref<27xf32, #tpu.memory_space<smem>>
    %c19_i32_800 = arith.constant 19 : i32
    %3166 = tpu.dynamic_rotate %3164 by %c19_i32_800 dim 1 : vector<24x384xf32>, i32 -> vector<24x384xf32>
    %3167 = vector.broadcast %3165 : f32 to vector<24x384xf32>
    %3168 = arith.mulf %3167, %3166 : vector<24x384xf32>
    %3169 = arith.addf %3163, %3168 : vector<24x384xf32>
    %c19_801 = arith.constant 19 : index
    %3170 = memref.load %arg6[%c19_801] : memref<27xf32, #tpu.memory_space<smem>>
    %c18_i32_802 = arith.constant 18 : i32
    %3171 = tpu.dynamic_rotate %3164 by %c18_i32_802 dim 1 : vector<24x384xf32>, i32 -> vector<24x384xf32>
    %3172 = vector.broadcast %3170 : f32 to vector<24x384xf32>
    %3173 = arith.mulf %3172, %3171 : vector<24x384xf32>
    %3174 = arith.addf %3169, %3173 : vector<24x384xf32>
    %c20_803 = arith.constant 20 : index
    %3175 = memref.load %arg6[%c20_803] : memref<27xf32, #tpu.memory_space<smem>>
    %c17_i32_804 = arith.constant 17 : i32
    %3176 = tpu.dynamic_rotate %3164 by %c17_i32_804 dim 1 : vector<24x384xf32>, i32 -> vector<24x384xf32>
    %3177 = vector.broadcast %3175 : f32 to vector<24x384xf32>
    %3178 = arith.mulf %3177, %3176 : vector<24x384xf32>
    %3179 = arith.addf %3174, %3178 : vector<24x384xf32>
    %c21_805 = arith.constant 21 : index
    %3180 = memref.load %arg6[%c21_805] : memref<27xf32, #tpu.memory_space<smem>>
    %c1_i32_806 = arith.constant 1 : i32
    %3181 = tpu.dynamic_rotate %3164 by %c1_i32_806 dim 1 : vector<24x384xf32>, i32 -> vector<24x384xf32>
    %3182 = vector.broadcast %3180 : f32 to vector<24x384xf32>
    %3183 = arith.mulf %3182, %3181 : vector<24x384xf32>
    %3184 = arith.addf %3179, %3183 : vector<24x384xf32>
    %c22_807 = arith.constant 22 : index
    %3185 = memref.load %arg6[%c22_807] : memref<27xf32, #tpu.memory_space<smem>>
    %3186 = vector.broadcast %3185 : f32 to vector<24x384xf32>
    %3187 = arith.mulf %3186, %3164 : vector<24x384xf32>
    %3188 = arith.addf %3184, %3187 : vector<24x384xf32>
    %c23_808 = arith.constant 23 : index
    %3189 = memref.load %arg6[%c23_808] : memref<27xf32, #tpu.memory_space<smem>>
    %c383_i32_809 = arith.constant 383 : i32
    %3190 = tpu.dynamic_rotate %3164 by %c383_i32_809 dim 1 : vector<24x384xf32>, i32 -> vector<24x384xf32>
    %3191 = vector.broadcast %3189 : f32 to vector<24x384xf32>
    %3192 = arith.mulf %3191, %3190 : vector<24x384xf32>
    %3193 = arith.addf %3188, %3192 : vector<24x384xf32>
    %c24_810 = arith.constant 24 : index
    %3194 = memref.load %arg6[%c24_810] : memref<27xf32, #tpu.memory_space<smem>>
    %c367_i32_811 = arith.constant 367 : i32
    %3195 = tpu.dynamic_rotate %3164 by %c367_i32_811 dim 1 : vector<24x384xf32>, i32 -> vector<24x384xf32>
    %3196 = vector.broadcast %3194 : f32 to vector<24x384xf32>
    %3197 = arith.mulf %3196, %3195 : vector<24x384xf32>
    %3198 = arith.addf %3193, %3197 : vector<24x384xf32>
    %c25_812 = arith.constant 25 : index
    %3199 = memref.load %arg6[%c25_812] : memref<27xf32, #tpu.memory_space<smem>>
    %c366_i32_813 = arith.constant 366 : i32
    %3200 = tpu.dynamic_rotate %3164 by %c366_i32_813 dim 1 : vector<24x384xf32>, i32 -> vector<24x384xf32>
    %3201 = vector.broadcast %3199 : f32 to vector<24x384xf32>
    %3202 = arith.mulf %3201, %3200 : vector<24x384xf32>
    %3203 = arith.addf %3198, %3202 : vector<24x384xf32>
    %c26_814 = arith.constant 26 : index
    %3204 = memref.load %arg6[%c26_814] : memref<27xf32, #tpu.memory_space<smem>>
    %c365_i32_815 = arith.constant 365 : i32
    %3205 = tpu.dynamic_rotate %3164 by %c365_i32_815 dim 1 : vector<24x384xf32>, i32 -> vector<24x384xf32>
    %3206 = vector.broadcast %3204 : f32 to vector<24x384xf32>
    %3207 = arith.mulf %3206, %3205 : vector<24x384xf32>
    %3208 = arith.addf %3203, %3207 : vector<24x384xf32>
    %3209 = math.tanh %3208 : vector<24x384xf32>
    %cst_816 = arith.constant 0.000000e+00 : f32
    %3210 = vector.broadcast %cst_816 : f32 to vector<24x384xf32>
    %3211 = arith.select %112, %3209, %3210 : vector<24x384xi1>, vector<24x384xf32>
    %c0_817 = arith.constant 0 : index
    %c0_818 = arith.constant 0 : index
    %3212 = vector.load %arg7[%c0_817, %c0_818] : memref<24x384xf32, #tpu.memory_space<vmem>>, vector<24x384xf32>
    tpu.vector_store %arg7[%c0_817, %c0_818], %3211 {strides = array<i32>} : memref<24x384xf32, #tpu.memory_space<vmem>>, vector<24x384xf32>,
    return
  }
}

</mosaic_0001>

<bundles_post_ra>
// kernel: lsnet_forward.1
= control target key start
LH: loop header
LB: loop body
LE: loop exit
PB: predicated region body
PF: predicated region fallthrough
CT: control target
= control target key end

     0   :  { %12 = vsyncpa [#allocation5], 0  ;;  %s26329_s0 = inlined_call_operand.vmem [shape: f32[24,384], index: 0, kind: input, shape index: {}]   ;;  %s26330_s1 = inlined_call_operand.vmem [shape: f32[24,384], index: 1, kind: input, shape index: {}]   ;;  %s26331_s2 = inlined_call_operand.vmem [shape: f32[243], index: 2, kind: input, shape index: {}]   ;;  %s26332_s3 = inlined_call_operand.vmem [shape: f32[9], index: 3, kind: input, shape index: {}]   ;;  %s26333_s4 = inlined_call_operand.vmem [shape: f32[9], index: 4, kind: input, shape index: {}]   ;;  %s26334_s5 = inlined_call_operand.vmem [shape: f32[9], index: 5, kind: input, shape index: {}]   ;;  %s26335_s6 = inlined_call_operand.vmem [shape: f32[27], index: 6, kind: input, shape index: {}]   ;;  %s26336_s7 = inlined_call_operand.vmem [shape: f32[24,384], index: 7, kind: output, shape index: {}]  }
   0x1   :  { %13 = vsyncpa [#allocation7], 0  ;;  %s35_s25 = sshll.u32 %s26332_s3, 4  ;;  %s36_s25 = int_to_ptr.vmem [resolvable:$true] %s35_s25 }
   0x2   :  { %14 = vsyncpa [#allocation10], 0  ;;  %s55_s28 = sshll.u32 %s26334_s5, 4  ;;  %s23517_s29 = scalar_lea.vmem %s36_s25, 16  ;;  %s56_s28 = int_to_ptr.vmem [resolvable:$true] %s55_s28 }
   0x3   :  { %p23518_p0 = scmp.ne.s32.totalorder %s36_s25, %s23517_s29  ;;  %p23522_p1 = scmp.lt.s32.totalorder %s36_s25, %s36_s25 }
   0x4   :  { %p23523_p2 = scmp.lt.s32.totalorder %s23517_s29, %s23517_s29 }
   0x6   :  { %p23524_p3 = por %p23523_p2, %p23522_p1 }
   0x8   :  { %p23525_p4 = pnand %p23524_p3, %p23518_p0 }
   0xa   :  { %23528 = shalt.err (!%p23525_p4)
}
   0xb   :  { %s23583_s30 = smov [#allocation6]   ;;  %s23529_s8 = scalar_lea.vmem %s56_s28, 16 }
   0xc   :  { %38 = dma.vmem_to_smem %s36_s25, 16, %s23583_s30, [#allocation7]  }
   0xd   :  { %p23530_p5 = scmp.ne.s32.totalorder %s56_s28, %s23529_s8  ;;  %p23534_p6 = scmp.lt.s32.totalorder %s56_s28, %s56_s28 }
   0xe   :  { %p23535_p7 = scmp.lt.s32.totalorder %s23529_s8, %s23529_s8 }
  0x10   :  { %p23536_p8 = por %p23535_p7, %p23534_p6 }
  0x12   :  { %p23537_p9 = pnand %p23536_p8, %p23530_p5 }
  0x14   :  { %23540 = shalt.err (!%p23537_p9)
}
  0x15   :  { %s23584_s3 = smov [#allocation9]   ;;  %s25_s10 = sshll.u32 %s26331_s2, 4  ;;  %s26_s10 = int_to_ptr.vmem [resolvable:$true] %s25_s10 }
  0x16   :  { %58 = dma.vmem_to_smem %s56_s28, 16, %s23584_s3, [#allocation10]  }
  0x17   :  { %s45_s13 = sshll.u32 %s26333_s4, 4  ;;  %s23541_s14 = scalar_lea.vmem %s26_s10, 32  ;;  %s46_s13 = int_to_ptr.vmem [resolvable:$true] %s45_s13 }
  0x18   :  { %p23542_p10 = scmp.ne.s32.totalorder %s26_s10, %s23541_s14  ;;  %p23546_p11 = scmp.lt.s32.totalorder %s26_s10, %s26_s10 }
  0x19   :  { %p23547_p12 = scmp.lt.s32.totalorder %s23541_s14, %s23541_s14 }
  0x1b   :  { %p23548_p13 = por %p23547_p12, %p23546_p11 }
  0x1d   :  { %p23549_p0 = pnand %p23548_p13, %p23542_p10 }
  0x1f   :  { %23552 = shalt.err (!%p23549_p0)
}
  0x20   :  { %s23585_s15 = smov [#allocation4]   ;;  %s23553_s16 = scalar_lea.vmem %s46_s13, 16 }
  0x21   :  { %28 = dma.vmem_to_smem %s26_s10, 32, %s23585_s15, [#allocation5]  }
  0x22   :  { %p23554_p1 = scmp.ne.s32.totalorder %s46_s13, %s23553_s16  ;;  %p23558_p2 = scmp.lt.s32.totalorder %s46_s13, %s46_s13 }
  0x23   :  { %p23559_p3 = scmp.lt.s32.totalorder %s23553_s16, %s23553_s16 }
  0x25   :  { %p23560_p4 = por %p23559_p3, %p23558_p2 }
  0x27   :  { %p23561_p5 = pnand %p23560_p4, %p23554_p1 }
  0x29   :  { %23564 = shalt.err (!%p23561_p5)
}
  0x2a   :  { %s23586_s2 = smov [#allocation8]   ;;  %s65_s18 = sshll.u32 %s26335_s6, 4  ;;  %s66_s18 = int_to_ptr.vmem [resolvable:$true] %s65_s18 }
  0x2b   :  { %48 = dma.vmem_to_smem %s46_s13, 16, %s23586_s2, [#allocation7]  }
  0x2c   :  { %s23565_s19 = scalar_lea.vmem %s66_s18, 16  ;;  %p23570_p7 = scmp.lt.s32.totalorder %s66_s18, %s66_s18 }
  0x2d   :  { %p23566_p6 = scmp.ne.s32.totalorder %s66_s18, %s23565_s19  ;;  %p23571_p8 = scmp.lt.s32.totalorder %s23565_s19, %s23565_s19 }
  0x2f   :  { %p23572_p9 = por %p23571_p8, %p23570_p7 }
  0x31   :  { %p23573_p10 = pnand %p23572_p9, %p23566_p6 }
  0x33   :  { %23576 = shalt.err (!%p23573_p10)
}
  0x34   :  { %s23587_s20 = smov [#allocation11]  }
  0x35   :  { %68 = dma.vmem_to_smem %s66_s18, 16, %s23587_s20, [#allocation10]  }
  0x36   :  { %23577 = dma.done.wait [#allocation5], 32  }
  0x37   :  { %23578 = vsyncadd [#allocation5], 4294967264 }
  0x38   :  { %23579 = dma.done.wait [#allocation7], 32  }
  0x39   :  { %23580 = vsyncadd [#allocation7], 4294967264 }
  0x3a   :  { %23581 = dma.done.wait [#allocation10], 32  }
  0x3b   :  { %23582 = vsyncadd [#allocation10], 4294967264 }
  0x3c   :  { %84 = sfence }
  0x3d   :  { %v23655_v0 = vld [vmem:[%s26330_s1] sm:$0xff]  ;;  %v23660_v1 = vld [vmem:[%s26330_s1 + $0x8] sm:$0xff]  ;;  %v23665_v2 = vld [vmem:[%s26330_s1 + $0x10] sm:$0xff]  ;;  %v23588_v3 = vmov 0.0   ;;  %v85_v8 = vlaneseq  ;;  %v26448_v31 = vmov 0  ;;  %v26450_v32 = vmov 0 }
  0x3e   :  { %21353 = vadd.xlane.f32.xlu0 %v23588_v3  ;;  %312 = vst [vmem:[#allocation2 + $0x18] sm:$0xff] %v23588_v3  ;;  %313 = vst [vmem:[#allocation2] sm:$0xff] %v23588_v3  ;;  %v23677_v4 = vld [vmem:[%s26330_s1 + $0x18] sm:$0xff]  ;;  %v21319_v5 = vmul.f32 0.0, %v23655_v0  ;;  %v21320_v6 = vmul.f32 0.0, %v23660_v1  ;;  %v21321_v7 = vmul.f32 0.0, %v23665_v2 }
  0x3f   :  { %314 = vst [vmem:[#allocation2 + $0x40] sm:$0xff] %v23588_v3  ;;  %315 = vst [vmem:[#allocation2 + $0x60] sm:$0xff] %v23588_v3  ;;  %v23685_v9 = vld [vmem:[%s26330_s1 + $0x20] sm:$0xff]  ;;  %v21322_v10 = vmul.f32 0.0, %v23677_v4  ;;  %v23691_v12 = vld [vmem:[%s26330_s1 + $0x28] sm:$0xff]  ;;  %v23699_v16 = vand.u32 127, %v85_v8 }
  0x40   :  { %316 = vst [vmem:[#allocation2 + $0x38] sm:$0xff] %v23588_v3  ;;  %317 = vst [vmem:[#allocation2 + $0x50] sm:$0xff] %v23588_v3  ;;  %v21328_v11 = vadd.f32 %v21320_v6, %v21319_v5  ;;  %v23696_v13 = vld [vmem:[%s26330_s1 + $0x30] sm:$0xff]  ;;  %v21323_v14 = vmul.f32 0.0, %v23685_v9  ;;  %v21324_v17 = vmul.f32 0.0, %v23691_v12  ;;  %v23707_v19 = vld [vmem:[%s26330_s1 + $0x38] sm:$0xff] }
  0x41   :  { %vm114_vm0 = vcmp.ge.s32.totalorder %v23699_v16, 19  ;;  %vm117_vm1 = vcmp.le.s32.totalorder %v23699_v16, 34  ;;  %v21325_v20 = vmul.f32 0.0, %v23696_v13  ;;  %vm123_vm3 = vcmp.ge.s32.totalorder %v23699_v16, 37  ;;  %v23721_v23 = vld [vmem:[%s26330_s1 + $0x40] sm:$0xff]  ;;  %s23889_s19 = sld [smem:[#allocation11 + $0x4]] }
  0x42   :  { %v21329_v15 = vadd.f32 %v21328_v11, %v21321_v7  ;;  %vm23710_vm2 = vmand %vm114_vm0, %vm117_vm1  ;;  %vm126_vm4 = vcmp.le.s32.totalorder %v23699_v16, 52  ;;  %vm135_vm5 = vcmp.ge.s32.totalorder %v23699_v16, 55  ;;  %vm138_vm6 = vcmp.le.s32.totalorder %v23699_v16, 70  ;;  %s23589_s20 = smov 19   ;;  %s23464_s21 = sld [smem:[#allocation11 + $0x16]] }
  0x43   :  { %vm129_vm7 = vmand %vm123_vm3, %vm126_vm4  ;;  %v21326_v24 = vmul.f32 0.0, %v23707_v19  ;;  %vm147_vm9 = vcmp.ge.s32.totalorder %v23699_v16, 73  ;;  %vm150_vm10 = vcmp.le.s32.totalorder %v23699_v16, 88  ;;  %v21327_v26 = vmul.f32 0.0, %v23721_v23  ;;  %s23590_s22 = smov 18   ;;  %s23591_s6 = smov 17  }
  0x44   :  { %v21330_v18 = vadd.f32 %v21329_v15, %v21322_v10  ;;  %vm132_vm8 = vmor %vm23710_vm2, %vm129_vm7  ;;  %vm159_vm13 = vcmp.ge.s32.totalorder %v23699_v16, 91  ;;  %vm162_vm14 = vcmp.le.s32.totalorder %v23699_v16, 106  ;;  %v91_v28 = vadd.s32 128, %v23699_v16  ;;  %s23592_s0 = smov 1   ;;  %s23593_s23 = smov 127  }
  0x45   :  { %vm141_vm11 = vmand %vm135_vm5, %vm138_vm6  ;;  %vm171_vm1 = vcmp.ge.s32.totalorder %v23699_v16, 109  ;;  %vm174_vm2 = vcmp.le.s32.totalorder %v23699_v16, 124  ;;  %v86_v33 = vshrl.u32 %v85_v8, 7  ;;  %v92_v35 = vadd.s32 256, %v23699_v16  ;;  %s23594_s24 = smov 111   ;;  %s23595_s25 = smov 110  }
  0x46   :  { %v21331_v22 = vadd.f32 %v21330_v18, %v21323_v14  ;;  %vm144_vm12 = vmor %vm132_vm8, %vm141_vm11  ;;  %vm196_vm6 = vcmp.ge.s32.totalorder %v91_v28, 145  ;;  %vm199_vm7 = vcmp.le.s32.totalorder %v91_v28, 160  ;;  %vm187_vm8 = vcmp.le.s32.totalorder %v91_v28, 142  ;;  %s23596_s26 = smov 109   ;;  %s23455_s27 = sld [smem:[#allocation11 + $0xd]] }
  0x47   :  { %vm153_vm15 = vmand %vm147_vm9, %vm150_vm10  ;;  %vm208_vm10 = vcmp.ge.s32.totalorder %v91_v28, 163  ;;  %vm211_vm11 = vcmp.le.s32.totalorder %v91_v28, 178  ;;  %v87_v34 = vadd.s32 8, %v86_v33  ;;  %v26455_v36 = vmov 0  ;;  %s23451_s28 = sld [smem:[#allocation11 + $0x9]] }
  0x48   :  { %v21332_v25 = vadd.f32 %v21331_v22, %v21324_v17  ;;  %vm156_vm0 = vmor %vm144_vm12, %vm153_vm15  ;;  %vm223_vm15 = vcmp.le.s32.totalorder %v91_v28, 196  ;;  %v26457_v37 = vmov 0  ;;  %v88_v40 = vadd.s32 16, %v86_v33  ;;  %s23452_s29 = sld [smem:[#allocation11 + $0xa]] }
  0x49   :  { %vm165_vm3 = vmand %vm159_vm13, %vm162_vm14  ;;  %vm220_vm14 = vcmp.ge.s32.totalorder %v91_v28, 181  ;;  %v26464_v41 = vmov 0  ;;  %v26467_v42 = vmov 0  ;;  %v26470_v44 = vmov 0  ;;  %s24645_s30 = sld [smem:[#allocation11 + $0xb]] }
  0x4a   :  { %v21333_v27 = vadd.f32 %v21332_v25, %v21325_v20  ;;  %vm23734_vm4 = vmor %vm156_vm0, %vm165_vm3  ;;  %vm232_vm3 = vcmp.ge.s32.totalorder %v91_v28, 199  ;;  %v26474_v47 = vmov 0  ;;  %v26477_v51 = vmov 0  ;;  %s24652_s8 = sld [smem:[#allocation11 + $0xc]] }
  0x4b   :  { %v26449_v31 = vsel %vm23734_vm4, 4294967295, %v26448_v31  ;;  %vm23738_vm5 = vmand %vm171_vm1, %vm174_vm2  ;;  %vm183_vm1 = vcmp.ge.s32.totalorder %v23699_v16, 127  ;;  %vm235_vm4 = vcmp.le.s32.totalorder %v91_v28, 214  ;;  %v26480_v54 = vmov 0  ;;  %s24659_s3 = sld [smem:[#allocation11 + $0xe]] }
  0x4c   :  { %v21334_v29 = vadd.f32 %v21333_v27, %v21326_v24  ;;  %v26451_v32 = vsel %vm23738_vm5, 4294967295, %v26450_v32  ;;  %vm202_vm12 = vmand %vm196_vm6, %vm199_vm7  ;;  %vm244_vm6 = vcmp.ge.s32.totalorder %v91_v28, 217  ;;  %vm247_vm7 = vcmp.le.s32.totalorder %v91_v28, 232  ;;  %s24663_s5 = sld [smem:[#allocation11 + $0xf]] }
  0x4d   :  { %vm205_vm13 = vmor %vm187_vm8, %vm202_vm12  ;;  %vm97_vm8 = vcmp.le.s32.totalorder %v87_v34, 8  ;;  %vm103_vm12 = vcmp.ge.s32.totalorder %v87_v34, 11  ;;  %v26483_v59 = vmov 0  ;;  %v26486_v5 = vmov 0  ;;  %s24667_s9 = sld [smem:[#allocation11 + $0x10]] }
  0x4e   :  { %v21335_v30 = vadd.f32 %v21334_v29, %v21327_v26  ;;  %vm214_vm0 = vmand %vm208_vm10, %vm211_vm11  ;;  %vm26452_vm10 = vnez %v26449_v31  ;;  %vm26453_vm11 = vnez %v26451_v32  ;;  %v26489_v11 = vmov 0  ;;  %s24672_s10 = sld [smem:[#allocation11 + $0x11]] }
  0x4f   :  { %vm217_vm2 = vmor %vm205_vm13, %vm214_vm0  ;;  %s24757_s11 = sld [smem:[#allocation11]] }
  0x50   :  { %21336 = vadd.xlane.f32.xlu0 %v21335_v30  ;;  %vm226_vm5 = vmand %vm220_vm14, %vm223_vm15 }
  0x51   :  { %vm229_vm9 = vmor %vm217_vm2, %vm226_vm5  ;;  %vm256_vm2 = vcmp.ge.s32.totalorder %v91_v28, 235  ;;  %vm259_vm5 = vcmp.le.s32.totalorder %v91_v28, 250 }
  0x52   :  { %vm26454_vm0 = vmor %vm26452_vm10, %vm26453_vm11 }
  0x53   :  { %vm23753_vm13 = vmor %vm26454_vm0, %vm183_vm1  ;;  %vm268_vm1 = vcmp.ge.s32.totalorder %v91_v28, 253 }
  0x54   :  { %v26456_v36 = vsel %vm23753_vm13, 4294967295, %v26455_v36  ;;  %vm238_vm14 = vmand %vm232_vm3, %vm235_vm4  ;;  %vm281_vm3 = vcmp.ge.s32.totalorder %v92_v35, 271  ;;  %vm284_vm4 = vcmp.le.s32.totalorder %v92_v35, 286 }
  0x55   :  { %vm241_vm15 = vmor %vm229_vm9, %vm238_vm14  ;;  %vm272_vm14 = vcmp.le.s32.totalorder %v92_v35, 268 }
  0x56   :  { %vm250_vm10 = vmand %vm244_vm6, %vm247_vm7  ;;  %vm293_vm7 = vcmp.ge.s32.totalorder %v92_v35, 289 }
  0x57   :  { %vm23757_vm11 = vmor %vm97_vm8, %vm103_vm12  ;;  %vm296_vm8 = vcmp.le.s32.totalorder %v92_v35, 304 }
  0x58   :  { %v26458_v37 = vsel %vm23757_vm11, 4294967295, %v26457_v37  ;;  %vm253_vm0 = vmor %vm241_vm15, %vm250_vm10  ;;  %vm93_vm11 = vcmp.ge.s32.totalorder %v86_v33, 1 }
  0x59   :  { %vm262_vm13 = vmand %vm256_vm2, %vm259_vm5  ;;  %vm26463_vm5 = vnez %v26456_v36 }
  0x5a   :  { %vm265_vm9 = vmor %vm253_vm0, %vm262_vm13 }
  0x5b   :  { %vm23761_vm6 = vmor %vm265_vm9, %vm268_vm1 }
  0x5c   :  { %vm287_vm12 = vmand %vm281_vm3, %vm284_vm4  ;;  %vm26473_vm3 = vnez %v26458_v37 }
  0x5d   :  { %vm290_vm10 = vmor %vm272_vm14, %vm287_vm12 }
  0x5e   :  { %vm299_vm15 = vmand %vm293_vm7, %vm296_vm8 }
  0x5f   :  { %vm23765_vm2 = vmor %vm290_vm10, %vm299_vm15  ;;  %vm26442_vm10 = vcmask 1046528   ;;  %vm430_vm15 = vcmp.lt.s32.totalorder %v23699_v16, 19 }
  0x60   :  { %vm23771_vm0 = vmand %vm93_vm11, %vm26463_vm5 }
  0x61   :  { %v26465_v41 = vsel %vm23771_vm0, 4294967295, %v26464_v41  ;;  %vm23777_vm13 = vmand %vm93_vm11, %vm23761_vm6  ;;  %v21310_v43 = vsel %vm23771_vm0, 1.0, %v23588_v3 }
  0x62   :  { %26466 = vst [vmem:[#allocation15_spill] sm:$0xff] %v26465_v41  ;;  %v26468_v42 = vsel %vm23777_vm13, 4294967295, %v26467_v42  ;;  %vm23786_vm1 = vmand %vm93_vm11, %vm23765_vm2  ;;  %v21311_v45 = vsel %vm23777_vm13, 1.0, %v23588_v3  ;;  %v21367_v46 = vmul.f32 %v21310_v43, %v23655_v0  ;;  %vm107_vm11 = vcmp.le.s32.totalorder %v88_v40, 18 }
  0x63   :  { %26469 = vst [vmem:[#allocation16_spill] sm:$0xff] %v26468_v42  ;;  %v26471_v44 = vsel %vm23786_vm1, 4294967295, %v26470_v44  ;;  %vm23798_vm4 = vmand %vm26473_vm3, %vm26463_vm5  ;;  %v21312_v48 = vsel %vm23786_vm1, 1.0, %v23588_v3  ;;  %v21368_v49 = vmul.f32 %v21311_v45, %v23660_v1  ;;  %v21393_v50 = vadd.f32 %v21311_v45, %v21310_v43 }
  0x64   :  { %26472 = vst [vmem:[#allocation17_spill] sm:$0xff] %v26471_v44  ;;  %v26475_v47 = vsel %vm23798_vm4, 4294967295, %v26474_v47  ;;  %vm23810_vm9 = vmand %vm26473_vm3, %vm23761_vm6  ;;  %v21313_v52 = vsel %vm23798_vm4, 1.0, %v23588_v3  ;;  %v21369_v53 = vmul.f32 %v21312_v48, %v23665_v2 }
  0x65   :  { %26476 = vst [vmem:[#allocation18_spill] sm:$0xff] %v26475_v47  ;;  %v26478_v51 = vsel %vm23810_vm9, 4294967295, %v26477_v51  ;;  %vm23822_vm14 = vmand %vm26473_vm3, %vm23765_vm2  ;;  %v21394_v55 = vadd.f32 %v21393_v50, %v21312_v48  ;;  %v21370_v56 = vmul.f32 %v21313_v52, %v23677_v4  ;;  %v21376_v57 = vadd.f32 %v21368_v49, %v21367_v46 }
  0x66   :  { %26479 = vst [vmem:[#allocation19_spill] sm:$0xff] %v26478_v51  ;;  %v26481_v54 = vsel %vm23822_vm14, 4294967295, %v26480_v54  ;;  %v21314_v58 = vsel %vm23810_vm9, 1.0, %v23588_v3  ;;  %vm23833_vm7 = vmand %vm107_vm11, %vm26463_vm5  ;;  %v21315_v63 = vsel %vm23822_vm14, 1.0, %v23588_v3  ;;  %vm606_vm5 = vcmp.lt.s32.totalorder %v23699_v16, 17 }
  0x67   :  { %26482 = vst [vmem:[#allocation20_spill] sm:$0xff] %v26481_v54  ;;  %v26484_v59 = vsel %vm23833_vm7, 4294967295, %v26483_v59  ;;  %v21371_v60 = vmul.f32 %v21314_v58, %v23685_v9  ;;  %v21395_v61 = vadd.f32 %v21394_v55, %v21313_v52  ;;  %v21377_v62 = vadd.f32 %v21376_v57, %v21369_v53  ;;  %vm23844_vm8 = vmand %vm107_vm11, %vm23761_vm6 }
  0x68   :  { %26485 = vst [vmem:[#allocation21_spill] sm:$0xff] %v26484_v59  ;;  %v26487_v5 = vsel %vm23844_vm8, 4294967295, %v26486_v5  ;;  %v21372_v6 = vmul.f32 %v21315_v63, %v23691_v12  ;;  %v21316_v10 = vsel %vm23833_vm7, 1.0, %v23588_v3  ;;  %vm23855_vm12 = vmand %vm107_vm11, %vm23765_vm2  ;;  %v21317_v18 = vsel %vm23844_vm8, 1.0, %v23588_v3 }
  0x69   :  { %26488 = vst [vmem:[#allocation22_spill] sm:$0xff] %v26487_v5  ;;  %v21396_v7 = vadd.f32 %v21395_v61, %v21314_v58  ;;  %v21378_v8 = vadd.f32 %v21377_v62, %v21370_v56  ;;  %v26490_v11 = vsel %vm23855_vm12, 4294967295, %v26489_v11  ;;  %v21373_v14 = vmul.f32 %v21316_v10, %v23696_v13 }
  0x6a   :  { %26491 = vst [vmem:[#allocation23_spill] sm:$0xff] %v26490_v11  ;;  %v21374_v20 = vmul.f32 %v21317_v18, %v23707_v19  ;;  %v21318_v24 = vsel %vm23855_vm12, 1.0, %v23588_v3  ;;  %vm381_vm6 = vcmask 1040384   ;;  %vm518_vm2 = vcmp.lt.s32.totalorder %v23699_v16, 18 }
  0x6b   :  { %v21397_v15 = vadd.f32 %v21396_v7, %v21315_v63  ;;  %v21379_v17 = vadd.f32 %v21378_v8, %v21371_v60  ;;  %v21375_v25 = vmul.f32 %v21318_v24, %v23721_v23  ;;  %vm694_vm3 = vcmp.lt.s32.totalorder %v23699_v16, 1 }
  0x6c   :  { %vm26443_vm11 = vcmp.lt.s32.totalorder %v23699_v16, 127 }
  0x6d   :  { %v21398_v21 = vadd.f32 %v21397_v15, %v21316_v10  ;;  %v21380_v22 = vadd.f32 %v21379_v17, %v21372_v6 }
  0x6f   :  { %v21399_v26 = vadd.f32 %v21398_v21, %v21317_v18  ;;  %v21381_v27 = vadd.f32 %v21380_v22, %v21373_v14 }
  0x71   :  { %v21400_v28 = vadd.f32 %v21399_v26, %v21318_v24  ;;  %v21382_v29 = vadd.f32 %v21381_v27, %v21374_v20 }
  0x73   :  { %21401 = vadd.xlane.f32.xlu1 %v21400_v28  ;;  %v21383_v30 = vadd.f32 %v21382_v29, %v21375_v25 }
  0x77   :  { %21384 = vadd.xlane.f32.xlu1 %v21383_v30 }
  0xc7   :  { %v21354_v31 = vpop.xlane.xlu0 %21353 }
  0xc8   :  { %v21355_v32 = vrot.slane %v21354_v31, 4 }
  0xca   :  { %v21356_v33 = vadd.f32 %v21355_v32, %v21354_v31 }
  0xcc   :  { %v21357_v35 = vrot.slane %v21356_v33, 2 }
  0xce   :  { %v21358_v38 = vadd.f32 %v21357_v35, %v21356_v33 }
  0xd0   :  { %v21359_v3 = vrot.slane %v21358_v38, 1 }
  0xd2   :  { %v21360_v46 = vadd.f32 %v21359_v3, %v21358_v38 }
  0xd9   :  { %v21337_v34 = vpop.xlane.xlu0 %21336 }
  0xda   :  { %v21338_v36 = vrot.slane %v21337_v34, 4 }
  0xdc   :  { %v21339_v37 = vadd.f32 %v21338_v36, %v21337_v34 }
  0xde   :  { %v21340_v39 = vrot.slane %v21339_v37, 2 }
  0xe0   :  { %v21341_v40 = vadd.f32 %v21340_v39, %v21339_v37 }
  0xe2   :  { %v21342_v43 = vrot.slane %v21341_v40, 1 }
  0xe4   :  { %v21343_v45 = vadd.f32 %v21342_v43, %v21341_v40 }
  0xe6   :  { %23469 = vpush %v21343_v45 }
  0xe7   :  { %23471 = vpush %v21360_v46 }
  0xfc   :  { %v21402_v48 = vpop.xlane.xlu1 %21401 }
  0xfd   :  { %v21403_v52 = vrot.slane %v21402_v48, 4 }
  0xff   :  { %v21404_v55 = vadd.f32 %v21403_v52, %v21402_v48 }
 0x100   :  { %v21385_v49 = vpop.xlane.xlu1 %21384 }
 0x101   :  { %v21386_v50 = vrot.slane %v21385_v49, 4  ;;  %v21405_v58 = vrot.slane %v21404_v55, 2 }
 0x103   :  { %v21387_v53 = vadd.f32 %v21386_v50, %v21385_v49  ;;  %v21406_v61 = vadd.f32 %v21405_v58, %v21404_v55 }
 0x105   :  { %v21388_v57 = vrot.slane %v21387_v53, 2  ;;  %v21407_v63 = vrot.slane %v21406_v61, 1 }
 0x107   :  { %v21389_v60 = vadd.f32 %v21388_v57, %v21387_v53  ;;  %v21408_v8 = vadd.f32 %v21407_v63, %v21406_v61 }
 0x109   :  { %v21390_v62 = vrot.slane %v21389_v60, 1 }
 0x10b   :  { %v21391_v7 = vadd.f32 %v21390_v62, %v21389_v60 }
 0x117   :  { %s23470_s1 = spop %23469 }
 0x118   :  { %s23472_s12 = spop %23471 }
 0x119   :  { %s21362_s13 = sadd.f32 1e-08, %s23472_s12 }
 0x11a   :  { %s24881_s12 = sld [smem:[#allocation11 + $0x2]] }
 0x11b   :  { %v21363_v56 = vstv %s21362_s13  ;;  %s24912_s13 = sld [smem:[#allocation11 + $0x3]] }
 0x11c   :  { %23495 = vrcp.f32 %v21363_v56 }
 0x129   :  { %v23496_v6 = vpop.eup %23495 }
 0x12a   :  { %23473 = vpush %v23496_v6 }
 0x12b   :  { %23475 = vpush %v21391_v7 }
 0x12c   :  { %23477 = vpush %v21408_v8 }
 0x15b   :  { %s23474_s14 = spop %23473 }
 0x15c   :  { %s23868_s15 = spop %23475  ;;  %s21366_s4 = smul.f32 %s23474_s14, %s23470_s1 }
 0x15d   :  { %s23478_s16 = spop %23477  ;;  %s24804_s1 = sld [smem:[#allocation11 + $0x1]] }
 0x15e   :  { %s21410_s2 = sadd.f32 1e-08, %s23478_s16  ;;  %v21434_v15 = vstv %s21366_s4 }
 0x15f   :  { %v21435_v17 = vsub.f32 %v23655_v0, %v21434_v15  ;;  %v21436_v18 = vsub.f32 %v23660_v1, %v21434_v15  ;;  %v21437_v20 = vsub.f32 %v23665_v2, %v21434_v15  ;;  %v21438_v21 = vsub.f32 %v23677_v4, %v21434_v15  ;;  %s24932_s14 = sld [smem:[#allocation11 + $0x5]] }
 0x160   :  { %v21411_v10 = vstv %s21410_s2  ;;  %v21439_v22 = vsub.f32 %v23685_v9, %v21434_v15  ;;  %v21440_v24 = vsub.f32 %v23691_v12, %v21434_v15  ;;  %v21441_v25 = vsub.f32 %v23696_v13, %v21434_v15  ;;  %s25389_s16 = sld [smem:[#allocation11 + $0x7]] }
 0x161   :  { %23497 = vrcp.f32 %v21411_v10  ;;  %v21442_v26 = vsub.f32 %v23707_v19, %v21434_v15  ;;  %v21443_v27 = vsub.f32 %v23721_v23, %v21434_v15  ;;  %v21444_v28 = vmul.f32 %v21435_v17, %v21435_v17  ;;  %s25569_s2 = sld [smem:[#allocation11 + $0x8]] }
 0x162   :  { %v21445_v29 = vmul.f32 %v21436_v18, %v21436_v18  ;;  %v21446_v30 = vmul.f32 %v21437_v20, %v21437_v20  ;;  %v21447_v31 = vmul.f32 %v21438_v21, %v21438_v21  ;;  %v21448_v32 = vmul.f32 %v21439_v22, %v21439_v22  ;;  %v23938_v18 = vld [vmem:[#allocation2 + $0x40] sm:$0x80]  ;;  %v23943_v21 = vld [vmem:[#allocation2 + $0x18] sm:$0x80]  ;;  %s25793_s4 = sld [smem:[#allocation11 + $0x12]] }
 0x163   :  { %v21449_v33 = vmul.f32 %v21440_v24, %v21440_v24  ;;  %v21450_v34 = vmul.f32 %v21441_v25, %v21441_v25  ;;  %v21451_v35 = vmul.f32 %v21442_v26, %v21442_v26  ;;  %v21452_v36 = vmul.f32 %v21443_v27, %v21443_v27  ;;  %v23947_v22 = vld [vmem:[#allocation2] sm:$0x80] }
 0x164   :  { %v21723_v20 = vstv %s23889_s19  ;;  %v21505_v54 = vrot.slane %v23943_v21, 7  ;;  %s23463_s19 = sld [smem:[#allocation11 + $0x15]] }
 0x165   :  { %v21726_v24 = vmul.f32 %v21723_v20, %v23938_v18  ;;  %v21724_v26 = vmul.f32 %v21723_v20, %v23943_v21 }
 0x16e   :  { %v23498_v14 = vpop.eup %23497 }
 0x16f   :  { %23479 = vpush %v23498_v14 }
 0x1a0   :  { %s23480_s17 = spop %23479 }
 0x1a1   :  { %s21414_s18 = smul.f32 %s23480_s17, %s23868_s15  ;;  %s24952_s15 = sld [smem:[#allocation11 + $0x6]] }
 0x1a2   :  { %s25807_s17 = sld [smem:[#allocation11 + $0x13]] }
 0x1a3   :  { %v21415_v37 = vstv %s21414_s18  ;;  %s23462_s18 = sld [smem:[#allocation11 + $0x14]] }
 0x1a4   :  { %v21416_v38 = vsub.f32 %v23655_v0, %v21415_v37  ;;  %v21417_v39 = vsub.f32 %v23660_v1, %v21415_v37  ;;  %v21418_v40 = vsub.f32 %v23665_v2, %v21415_v37  ;;  %v21419_v3 = vsub.f32 %v23677_v4, %v21415_v37 }
 0x1a5   :  { %v21420_v43 = vsub.f32 %v23685_v9, %v21415_v37  ;;  %v21421_v45 = vsub.f32 %v23691_v12, %v21415_v37  ;;  %v21422_v46 = vsub.f32 %v23696_v13, %v21415_v37  ;;  %v21423_v48 = vsub.f32 %v23707_v19, %v21415_v37 }
 0x1a6   :  { %v21424_v49 = vsub.f32 %v23721_v23, %v21415_v37  ;;  %v21425_v50 = vmul.f32 %v21416_v38, %v21416_v38  ;;  %v21426_v52 = vmul.f32 %v21417_v39, %v21417_v39  ;;  %v21427_v53 = vmul.f32 %v21418_v40, %v21418_v40  ;;  %v23976_v37 = vld [vmem:[#allocation2 + $0x50] sm:$0x1] }
 0x1a7   :  { %v21428_v0 = vmul.f32 %v21419_v3, %v21419_v3  ;;  %v21429_v1 = vmul.f32 %v21420_v43, %v21420_v43  ;;  %v21430_v2 = vmul.f32 %v21421_v45, %v21421_v45  ;;  %v21431_v55 = vmul.f32 %v21422_v46, %v21422_v46 }
 0x1a8   :  { %v21432_v4 = vmul.f32 %v21423_v48, %v21423_v48  ;;  %v21433_v56 = vmul.f32 %v21424_v49, %v21424_v49  ;;  %v21453_v9 = vsub.f32 %v21425_v50, %v21444_v28  ;;  %v21454_v57 = vsub.f32 %v21426_v52, %v21445_v29 }
 0x1a9   :  { %v21455_v12 = vsub.f32 %v21427_v53, %v21446_v30  ;;  %v21456_v58 = vsub.f32 %v21428_v0, %v21447_v31  ;;  %v21457_v13 = vsub.f32 %v21429_v1, %v21448_v32  ;;  %v21458_v60 = vsub.f32 %v21430_v2, %v21449_v33  ;;  %v23962_v30 = vld [vmem:[#allocation2 + $0x60] sm:$0x1]  ;;  %v23964_v31 = vld [vmem:[#allocation2 + $0x38] sm:$0x1] }
 0x1aa   :  { %v21459_v19 = vsub.f32 %v21431_v55, %v21450_v34  ;;  %v21460_v61 = vsub.f32 %v21432_v4, %v21451_v35  ;;  %v21461_v23 = vsub.f32 %v21433_v56, %v21452_v36  ;;  %v23893_v62 = vsel %vm23771_vm0, %v21453_v9, 0.0 }
 0x1ab   :  { %v23897_v63 = vsel %vm23777_vm13, %v21454_v57, 0.0  ;;  %v23901_v6 = vsel %vm23786_vm1, %v21455_v12, 0.0  ;;  %v23905_v7 = vsel %vm23798_vm4, %v21456_v58, 0.0  ;;  %v23909_v8 = vsel %vm23810_vm9, %v21457_v13, 0.0  ;;  %21471 = vst [vmem:[#allocation2 + $0x8] sm:$0xff] %v23893_v62  ;;  %21979 = vrot.lane.b32.xlu0 %v23893_v62, %s23589_s20 }
 0x1ac   :  { %v23916_v10 = vsel %vm23822_vm14, %v21458_v60, 0.0  ;;  %v23920_v14 = vsel %vm23833_vm7, %v21459_v19, 0.0  ;;  %v23924_v15 = vsel %vm23844_vm8, %v21460_v61, 0.0  ;;  %v23928_v17 = vsel %vm23855_vm12, %v21461_v23, 0.0  ;;  %21472 = vst [vmem:[#allocation2 + $0x30] sm:$0xff] %v23897_v63  ;;  %21473 = vst [vmem:[#allocation2 + $0x28] sm:$0xff] %v23901_v6  ;;  %21981 = vrot.lane.b32.xlu1 %v23905_v7, %s23589_s20 }
 0x1ad   :  { %21476 = vst [vmem:[#allocation2 + $0x20] sm:$0xff] %v23916_v10  ;;  %21477 = vst [vmem:[#allocation2 + $0x48] sm:$0xff] %v23920_v14  ;;  %v23951_v25 = vmul.f32 %v21723_v20, %v23893_v62  ;;  %v23957_v27 = vmul.f32 %v21723_v20, %v23901_v6  ;;  %v21725_v28 = vmul.f32 %v21723_v20, %v23947_v22  ;;  %v21754_v29 = vrot.slane %v21726_v24, 7 }
 0x1ae   :  { %21478 = vst [vmem:[#allocation2 + $0x58] sm:$0xff] %v23924_v15  ;;  %21479 = vst [vmem:[#allocation2 + $0x70] sm:$0xff] %v23928_v17  ;;  %v23968_v33 = vmul.f32 %v21723_v20, %v23897_v63  ;;  %v21748_v34 = vrot.slane %v21724_v26, 7  ;;  %v23970_v35 = vstv %s23464_s21  ;;  %v23986_v43 = vmul.f32 %v21723_v20, %v23916_v10  ;;  %s23466_s21 = sld [smem:[#allocation11 + $0x18]] }
 0x1af   :  { %21983 = vrot.lane.b32.xlu0 %v23920_v14, %s23589_s20  ;;  %v26345_v32 = vrot.slane %v23951_v25, 7  ;;  %v26343_v38 = vrot.slane %v23957_v27, 7  ;;  %v21751_v3 = vrot.slane %v21725_v28, 7  ;;  %v23989_v45 = vmul.f32 %v21723_v20, %v23905_v7 }
 0x1b0   :  { %21985 = vrot.lane.b32.xlu1 %v23897_v63, %s23589_s20  ;;  %v23997_v48 = vmul.f32 %v21723_v20, %v23909_v8  ;;  %v22627_v49 = vmul.f32 %v23970_v35, %v23962_v30  ;;  %v26341_v52 = vrot.slane %v23968_v33, 7  ;;  %v22628_v0 = vmul.f32 %v23970_v35, %v23964_v31 }
 0x1b1   :  { %v23994_v46 = vsel %vm381_vm6, %v21754_v29, %v26343_v38  ;;  %v24004_v50 = vsel %vm381_vm6, %v21748_v34, %v26345_v32  ;;  %v22629_v55 = vmul.f32 %v23970_v35, %v23976_v37  ;;  %v26344_v57 = vrot.slane %v23986_v43, 7 }
 0x1b2   :  { %26492 = vst [vmem:[#allocation24_spill] sm:$0xff] %v23994_v46  ;;  %26493 = vst [vmem:[#allocation25_spill] sm:$0xff] %v24004_v50  ;;  %v24018_v4 = vld [vmem:[#allocation2 + $0x8] sm:$0xfe]  ;;  %v24025_v9 = vsel %vm381_vm6, %v21751_v3, %v26341_v52  ;;  %v26346_v13 = vrot.slane %v23989_v45, 7  ;;  %v26342_v60 = vrot.slane %v23997_v48, 7  ;;  %v24055_v3 = vmul.f32 %v23970_v35, %v23905_v7 }
 0x1b3   :  { %21987 = vrot.lane.b32.xlu0 %v23909_v8, %s23589_s20  ;;  %v24020_v56 = vld [vmem:[#allocation2 + $0x28] sm:$0xfe]  ;;  %26494 = vst [vmem:[#allocation26_spill] sm:$0xff] %v24025_v9  ;;  %v24032_v23 = vld [vmem:[#allocation2 + $0x30] sm:$0xfe]  ;;  %v22657_v26 = vrot.slane %v22627_v49, 1  ;;  %v24061_v49 = vmul.f32 %v23970_v35, %v23920_v14  ;;  %v24084_v11 = vmul.f32 %v23970_v35, %v23924_v15 }
 0x1b4   :  { %21989 = vrot.lane.b32.xlu1 %v23924_v15, %s23589_s20  ;;  %v23981_v39 = vld [vmem:[#allocation2 + $0x48] sm:$0x7f]  ;;  %v24028_v58 = vld [vmem:[#allocation2 + $0x20] sm:$0xff]  ;;  %v22659_v28 = vrot.slane %v22628_v0, 1  ;;  %26498 = vst [vmem:[#allocation30_spill] sm:$0xff] %v24055_v3  ;;  %v22620_v0 = vmul.f32 %v23970_v35, %v24020_v56  ;;  %v21506_v59 = vrot.slane %v23893_v62, 7 }
 0x1b5   :  { %v23974_v36 = vld [vmem:[#allocation2 + $0x70] sm:$0x7f]  ;;  %v23983_v40 = vld [vmem:[#allocation2 + $0x58] sm:$0x7f]  ;;  %v21733_v1 = vmul.f32 %v21723_v20, %v23981_v39  ;;  %26499 = vst [vmem:[#allocation31_spill] sm:$0xff] %v24061_v49  ;;  %v26351_v52 = vrot.slane %v24061_v49, 1 }
 0x1b6   :  { %v21735_v53 = vmul.f32 %v21723_v20, %v23974_v36  ;;  %v21734_v2 = vmul.f32 %v21723_v20, %v23983_v40  ;;  %v24034_v20 = vld [vmem:[#allocation2 + $0x70] sm:$0xff]  ;;  %26501 = vst [vmem:[#allocation33_spill] sm:$0xff] %v24084_v11  ;;  %v21514_v41 = vrot.slane %v23905_v7, 7  ;;  %v21516_v21 = vrot.slane %v23909_v8, 7 }
 0x1b7   :  { %21991 = vrot.lane.b32.xlu0 %v23901_v6, %s23589_s20  ;;  %v21763_v19 = vrot.slane %v21733_v1, 7  ;;  %v22623_v1 = vmul.f32 %v23970_v35, %v24028_v58  ;;  %v21511_v49 = vrot.slane %v23938_v18, 7  ;;  %v21524_v18 = vrot.slane %v23974_v36, 7 }
 0x1b8   :  { %21993 = vrot.lane.b32.xlu1 %v23916_v10, %s23589_s20  ;;  %v21767_v12 = vrot.slane %v21735_v53, 7  ;;  %v21765_v61 = vrot.slane %v21734_v2, 7  ;;  %v22661_v53 = vrot.slane %v22629_v55, 1  ;;  %v22618_v2 = vmul.f32 %v23970_v35, %v24018_v4 }
 0x1b9   :  { %v24046_v29 = vsel %vm381_vm6, %v26346_v13, %v21763_v19  ;;  %v22619_v55 = vmul.f32 %v23970_v35, %v24032_v23  ;;  %v24074_v19 = vmul.f32 %v23970_v35, %v23909_v8  ;;  %v22649_v38 = vrot.slane %v22623_v1, 1 }
 0x1ba   :  { %v24039_v24 = vsel %vm381_vm6, %v26344_v57, %v21767_v12  ;;  %26496 = vst [vmem:[#allocation28_spill] sm:$0xff] %v24046_v29  ;;  %v24051_v34 = vsel %vm381_vm6, %v26342_v60, %v21765_v61  ;;  %v22626_v61 = vmul.f32 %v23970_v35, %v24034_v20  ;;  %v22648_v60 = vrot.slane %v22620_v0, 1 }
 0x1bb   :  { %21995 = vrot.lane.b32.xlu0 %v23928_v17, %s23589_s20  ;;  %26495 = vst [vmem:[#allocation27_spill] sm:$0xff] %v24039_v24  ;;  %26497 = vst [vmem:[#allocation29_spill] sm:$0xff] %v24051_v34  ;;  %v22642_v57 = vrot.slane %v22618_v2, 1  ;;  %v22645_v32 = vrot.slane %v22619_v55, 1  ;;  %v26349_v13 = vrot.slane %v24074_v19, 1  ;;  %v26503_v0 = vrot.slane %v24055_v3, 1 }
 0x1bc   :  { %22026 = vrot.lane.b32.xlu1 %v23893_v62, %s23590_s22  ;;  %26500 = vst [vmem:[#allocation32_spill] sm:$0xff] %v24074_v19  ;;  %v22655_v12 = vrot.slane %v22626_v61, 1  ;;  %v24089_v5 = vsel %vm26442_vm10, %v22648_v60, %v22649_v38  ;;  %v24099_v2 = vsel %vm26442_vm10, %v26351_v52, %v22657_v26  ;;  %v26350_v60 = vrot.slane %v24084_v11, 1 }
 0x1bd   :  { %26502 = vst [vmem:[#allocation34_spill] sm:$0xff] %v24089_v5  ;;  %v24094_v1 = vsel %vm26442_vm10, %v22642_v57, %v26503_v0  ;;  %26505 = vst [vmem:[#allocation36_spill] sm:$0xff] %v24099_v2  ;;  %v24104_v35 = vsel %vm26442_vm10, %v22645_v32, %v26349_v13  ;;  %v21509_v5 = vrot.slane %v23897_v63, 7  ;;  %v21520_v19 = vrot.slane %v23981_v39, 7 }
 0x1be   :  { %26504 = vst [vmem:[#allocation35_spill] sm:$0xff] %v24094_v1  ;;  %26506 = vst [vmem:[#allocation37_spill] sm:$0xff] %v24104_v35  ;;  %v24107_v55 = vsel %vm26442_vm10, %v22655_v12, %v22661_v53  ;;  %v24111_v61 = vsel %vm26442_vm10, %v22649_v38, %v22655_v12  ;;  %v24118_v57 = vsel %vm26442_vm10, %v26350_v60, %v22659_v28  ;;  %v21508_v39 = vrot.slane %v23947_v22, 7 }
 0x1bf   :  { %22028 = vrot.lane.b32.xlu0 %v23905_v7, %s23590_s22  ;;  %26507 = vst [vmem:[#allocation38_spill] sm:$0xff] %v24107_v55  ;;  %26508 = vst [vmem:[#allocation39_spill] sm:$0xff] %v24111_v61  ;;  %v24270_v1 = vsel %vm381_vm6, %v21505_v54, %v21506_v59  ;;  %v24277_v61 = vsel %vm381_vm6, %v21506_v59, %v21514_v41  ;;  %v24287_v54 = vsel %vm381_vm6, %v21509_v5, %v21516_v21 }
 0x1c0   :  { %22030 = vrot.lane.b32.xlu1 %v23920_v14, %s23590_s22  ;;  %26509 = vst [vmem:[#allocation40_spill] sm:$0xff] %v24118_v57  ;;  %v21512_v57 = vrot.slane %v23901_v6, 7  ;;  %v24294_v59 = vsel %vm381_vm6, %v21514_v41, %v21520_v19  ;;  %v24310_v41 = vsel %vm381_vm6, %v21508_v39, %v21509_v5  ;;  %v21522_v22 = vrot.slane %v23983_v40, 7 }
 0x1c1   :  { %v21518_v19 = vrot.slane %v23916_v10, 7 }
 0x1c2   :  { %v24304_v24 = vsel %vm381_vm6, %v21511_v49, %v21512_v57  ;;  %v24326_v5 = vsel %vm381_vm6, %v21516_v21, %v21522_v22 }
 0x1c3   :  { %22032 = vrot.lane.b32.xlu0 %v23897_v63, %s23590_s22  ;;  %v24321_v49 = vsel %vm381_vm6, %v21518_v19, %v21524_v18  ;;  %v24337_v39 = vsel %vm381_vm6, %v21512_v57, %v21518_v19 }
 0x1c4   :  { %22034 = vrot.lane.b32.xlu1 %v23909_v8, %s23590_s22 }
 0x1c7   :  { %22036 = vrot.lane.b32.xlu0 %v23924_v15, %s23590_s22 }
 0x1c8   :  { %22038 = vrot.lane.b32.xlu1 %v23901_v6, %s23590_s22 }
 0x1cb   :  { %22040 = vrot.lane.b32.xlu0 %v23916_v10, %s23590_s22 }
 0x1cc   :  { %22042 = vrot.lane.b32.xlu1 %v23928_v17, %s23590_s22 }
 0x1cf   :  { %22073 = vrot.lane.b32.xlu0 %v23893_v62, %s23591_s6 }
 0x1d0   :  { %22075 = vrot.lane.b32.xlu1 %v23905_v7, %s23591_s6 }
 0x1d3   :  { %22077 = vrot.lane.b32.xlu0 %v23920_v14, %s23591_s6 }
 0x1d4   :  { %22079 = vrot.lane.b32.xlu1 %v23897_v63, %s23591_s6 }
 0x1d7   :  { %22081 = vrot.lane.b32.xlu0 %v23909_v8, %s23591_s6 }
 0x1d8   :  { %22083 = vrot.lane.b32.xlu1 %v23924_v15, %s23591_s6 }
 0x1db   :  { %22085 = vrot.lane.b32.xlu0 %v23901_v6, %s23591_s6 }
 0x1dc   :  { %22087 = vrot.lane.b32.xlu1 %v23916_v10, %s23591_s6 }
 0x1df   :  { %22089 = vrot.lane.b32.xlu0 %v23928_v17, %s23591_s6 }
 0x1e0   :  { %22120 = vrot.lane.b32.xlu1 %v23893_v62, %s23592_s0 }
 0x1e3   :  { %22122 = vrot.lane.b32.xlu0 %v23905_v7, %s23592_s0 }
 0x1e4   :  { %22124 = vrot.lane.b32.xlu1 %v23920_v14, %s23592_s0 }
 0x1e7   :  { %22126 = vrot.lane.b32.xlu0 %v23897_v63, %s23592_s0 }
 0x1e8   :  { %22128 = vrot.lane.b32.xlu1 %v23909_v8, %s23592_s0 }
 0x1eb   :  { %22130 = vrot.lane.b32.xlu0 %v23924_v15, %s23592_s0 }
 0x1ec   :  { %22132 = vrot.lane.b32.xlu1 %v23901_v6, %s23592_s0 }
 0x1ef   :  { %22134 = vrot.lane.b32.xlu0 %v23916_v10, %s23592_s0 }
 0x1f0   :  { %22136 = vrot.lane.b32.xlu1 %v23928_v17, %s23592_s0 }
 0x1f3   :  { %22187 = vrot.lane.b32.xlu0 %v23893_v62, %s23593_s23 }
 0x1f4   :  { %22189 = vrot.lane.b32.xlu1 %v23905_v7, %s23593_s23 }
 0x1f7   :  { %22191 = vrot.lane.b32.xlu0 %v23920_v14, %s23593_s23 }
 0x1f8   :  { %22193 = vrot.lane.b32.xlu1 %v23897_v63, %s23593_s23 }
 0x1fb   :  { %22195 = vrot.lane.b32.xlu0 %v23909_v8, %s23593_s23 }
 0x1fc   :  { %22197 = vrot.lane.b32.xlu1 %v23924_v15, %s23593_s23 }
 0x1ff   :  { %22199 = vrot.lane.b32.xlu0 %v23901_v6, %s23593_s23 }
 0x200   :  { %22201 = vrot.lane.b32.xlu1 %v23916_v10, %s23593_s23 }
 0x203   :  { %22203 = vrot.lane.b32.xlu0 %v23928_v17, %s23593_s23 }
 0x204   :  { %22234 = vrot.lane.b32.xlu1 %v23893_v62, %s23594_s24 }
 0x207   :  { %22236 = vrot.lane.b32.xlu0 %v23905_v7, %s23594_s24 }
 0x208   :  { %22238 = vrot.lane.b32.xlu1 %v23920_v14, %s23594_s24 }
 0x20b   :  { %22240 = vrot.lane.b32.xlu0 %v23897_v63, %s23594_s24 }
 0x20c   :  { %22242 = vrot.lane.b32.xlu1 %v23909_v8, %s23594_s24 }
 0x20f   :  { %22244 = vrot.lane.b32.xlu0 %v23924_v15, %s23594_s24 }
 0x210   :  { %22246 = vrot.lane.b32.xlu1 %v23901_v6, %s23594_s24 }
 0x213   :  { %22248 = vrot.lane.b32.xlu0 %v23916_v10, %s23594_s24 }
 0x214   :  { %22250 = vrot.lane.b32.xlu1 %v23928_v17, %s23594_s24 }
 0x217   :  { %22281 = vrot.lane.b32.xlu0 %v23893_v62, %s23595_s25 }
 0x218   :  { %22283 = vrot.lane.b32.xlu1 %v23905_v7, %s23595_s25 }
 0x21b   :  { %22285 = vrot.lane.b32.xlu0 %v23920_v14, %s23595_s25 }
 0x21c   :  { %22287 = vrot.lane.b32.xlu1 %v23897_v63, %s23595_s25 }
 0x21d   :  { %v24206_v32 = vpop.permute.xlu0 %21979 }
 0x21e   :  { %v24208_v38 = vpop.permute.xlu1 %21981 }
 0x21f   :  { %22289 = vrot.lane.b32.xlu0 %v23909_v8, %s23595_s25 }
 0x220   :  { %22291 = vrot.lane.b32.xlu1 %v23924_v15, %s23595_s25 }
 0x221   :  { %v24214_v26 = vpop.permute.xlu0 %21983 }
 0x222   :  { %v24216_v28 = vpop.permute.xlu1 %21985 }
 0x223   :  { %22293 = vrot.lane.b32.xlu0 %v23901_v6, %s23595_s25 }
 0x224   :  { %22295 = vrot.lane.b32.xlu1 %v23916_v10, %s23595_s25 }
 0x225   :  { %v24222_v53 = vpop.permute.xlu0 %21987 }
 0x226   :  { %v24224_v12 = vpop.permute.xlu1 %21989 }
 0x227   :  { %22297 = vrot.lane.b32.xlu0 %v23928_v17, %s23595_s25 }
 0x228   :  { %22328 = vrot.lane.b32.xlu1 %v23893_v62, %s23596_s26 }
 0x229   :  { %v24230_v0 = vpop.permute.xlu0 %21991 }
 0x22a   :  { %v24232_v13 = vpop.permute.xlu1 %21993 }
 0x22b   :  { %22330 = vrot.lane.b32.xlu0 %v23905_v7, %s23596_s26 }
 0x22c   :  { %22332 = vrot.lane.b32.xlu1 %v23920_v14, %s23596_s26 }
 0x22d   :  { %v24238_v60 = vpop.permute.xlu0 %21995 }
 0x22e   :  { %v24240_v52 = vpop.permute.xlu1 %22026 }
 0x22f   :  { %22334 = vrot.lane.b32.xlu0 %v23897_v63, %s23596_s26 }
 0x230   :  { %22336 = vrot.lane.b32.xlu1 %v23909_v8, %s23596_s26 }
 0x231   :  { %v24246_v44 = vpop.permute.xlu0 %22028 }
 0x232   :  { %v24248_v42 = vpop.permute.xlu1 %22030 }
 0x233   :  { %22338 = vrot.lane.b32.xlu0 %v23924_v15, %s23596_s26 }
 0x234   :  { %22340 = vrot.lane.b32.xlu1 %v23901_v6, %s23596_s26 }
 0x235   :  { %v24254_v51 = vpop.permute.xlu0 %22032 }
 0x236   :  { %v24256_v47 = vpop.permute.xlu1 %22034 }
 0x237   :  { %22342 = vrot.lane.b32.xlu0 %v23916_v10, %s23596_s26 }
 0x238   :  { %22344 = vrot.lane.b32.xlu1 %v23928_v17, %s23596_s26 }
 0x239   :  { %v24265_v2 = vpop.permute.xlu0 %22036 }
 0x23a   :  { %v24267_v55 = vpop.permute.xlu1 %22038 }
 0x23b   :  { %21535 = vrot.lane.b32.xlu0 %v24270_v1, %s23589_s20 }
 0x23c   :  { %21537 = vrot.lane.b32.xlu1 %v24277_v61, %s23589_s20 }
 0x23d   :  { %v24282_v11 = vpop.permute.xlu0 %22040 }
 0x23e   :  { %v24284_v3 = vpop.permute.xlu1 %22042 }
 0x23f   :  { %21543 = vrot.lane.b32.xlu0 %v24287_v54, %s23589_s20 }
 0x240   :  { %21539 = vrot.lane.b32.xlu1 %v24294_v59, %s23589_s20 }
 0x241   :  { %v24299_v35 = vpop.permute.xlu0 %22073 }
 0x242   :  { %v24301_v34 = vpop.permute.xlu1 %22075 }
 0x243   :  { %21547 = vrot.lane.b32.xlu0 %v24304_v24, %s23589_s20 }
 0x244   :  { %21541 = vrot.lane.b32.xlu1 %v24310_v41, %s23589_s20 }
 0x245   :  { %v24316_v46 = vpop.permute.xlu0 %22077 }
 0x246   :  { %v24318_v29 = vpop.permute.xlu1 %22079 }
 0x247   :  { %21551 = vrot.lane.b32.xlu0 %v24321_v49, %s23589_s20 }
 0x248   :  { %21545 = vrot.lane.b32.xlu1 %v24326_v5, %s23589_s20 }
 0x249   :  { %v24330_v36 = vpop.permute.xlu0 %22081 }
 0x24a   :  { %v24332_v40 = vpop.permute.xlu1 %22083 }
 0x24b   :  { %21584 = vrot.lane.b32.xlu0 %v24277_v61, %s23590_s22 }
 0x24c   :  { %21549 = vrot.lane.b32.xlu1 %v24337_v39, %s23589_s20 }
 0x24d   :  { %v24341_v18 = vpop.permute.xlu0 %22085 }
 0x24e   :  { %v24343_v21 = vpop.permute.xlu1 %22087 }
 0x24f   :  { %21588 = vrot.lane.b32.xlu0 %v24310_v41, %s23590_s22 }
 0x250   :  { %21582 = vrot.lane.b32.xlu1 %v24270_v1, %s23590_s22 }
 0x251   :  { %v24349_v22 = vpop.permute.xlu0 %22089 }
 0x252   :  { %26510 = vst [vmem:[#allocation41_spill] sm:$0xff] %v24349_v22  ;;  %v24351_v9 = vpop.permute.xlu1 %22120 }
 0x253   :  { %26511 = vst [vmem:[#allocation42_spill] sm:$0xff] %v24351_v9  ;;  %21592 = vrot.lane.b32.xlu0 %v24326_v5, %s23590_s22 }
 0x254   :  { %21586 = vrot.lane.b32.xlu1 %v24294_v59, %s23590_s22 }
 0x255   :  { %v24357_v57 = vpop.permute.xlu0 %22122 }
 0x256   :  { %26512 = vst [vmem:[#allocation43_spill] sm:$0xff] %v24357_v57  ;;  %v24359_v19 = vpop.permute.xlu1 %22124 }
 0x257   :  { %26513 = vst [vmem:[#allocation44_spill] sm:$0xff] %v24359_v19  ;;  %21596 = vrot.lane.b32.xlu0 %v24337_v39, %s23590_s22 }
 0x258   :  { %21590 = vrot.lane.b32.xlu1 %v24287_v54, %s23590_s22 }
 0x259   :  { %v24365_v50 = vpop.permute.xlu0 %22126 }
 0x25a   :  { %26514 = vst [vmem:[#allocation45_spill] sm:$0xff] %v24365_v50  ;;  %v24367_v22 = vpop.permute.xlu1 %22128 }
 0x25b   :  { %26515 = vst [vmem:[#allocation46_spill] sm:$0xff] %v24367_v22  ;;  %21629 = vrot.lane.b32.xlu0 %v24270_v1, %s23591_s6 }
 0x25c   :  { %21594 = vrot.lane.b32.xlu1 %v24304_v24, %s23590_s22 }
 0x25d   :  { %v24373_v9 = vpop.permute.xlu0 %22130 }
 0x25e   :  { %26516 = vst [vmem:[#allocation47_spill] sm:$0xff] %v24373_v9  ;;  %v24375_v57 = vpop.permute.xlu1 %22132 }
 0x25f   :  { %26517 = vst [vmem:[#allocation48_spill] sm:$0xff] %v24375_v57  ;;  %21633 = vrot.lane.b32.xlu0 %v24294_v59, %s23591_s6 }
 0x260   :  { %21598 = vrot.lane.b32.xlu1 %v24321_v49, %s23590_s22 }
 0x261   :  { %v24381_v19 = vpop.permute.xlu0 %22134 }
 0x262   :  { %26518 = vst [vmem:[#allocation49_spill] sm:$0xff] %v24381_v19  ;;  %v24383_v50 = vpop.permute.xlu1 %22136 }
 0x263   :  { %26519 = vst [vmem:[#allocation50_spill] sm:$0xff] %v24383_v50  ;;  %21637 = vrot.lane.b32.xlu0 %v24287_v54, %s23591_s6 }
 0x264   :  { %21631 = vrot.lane.b32.xlu1 %v24277_v61, %s23591_s6 }
 0x265   :  { %v24389_v22 = vpop.permute.xlu0 %22187 }
 0x266   :  { %26520 = vst [vmem:[#allocation51_spill] sm:$0xff] %v24389_v22  ;;  %v24391_v9 = vpop.permute.xlu1 %22189 }
 0x267   :  { %26521 = vst [vmem:[#allocation52_spill] sm:$0xff] %v24391_v9  ;;  %21641 = vrot.lane.b32.xlu0 %v24304_v24, %s23591_s6 }
 0x268   :  { %21635 = vrot.lane.b32.xlu1 %v24310_v41, %s23591_s6 }
 0x269   :  { %v24397_v57 = vpop.permute.xlu0 %22191 }
 0x26a   :  { %26522 = vst [vmem:[#allocation53_spill] sm:$0xff] %v24397_v57  ;;  %v24399_v19 = vpop.permute.xlu1 %22193 }
 0x26b   :  { %26523 = vst [vmem:[#allocation54_spill] sm:$0xff] %v24399_v19  ;;  %21645 = vrot.lane.b32.xlu0 %v24321_v49, %s23591_s6 }
 0x26c   :  { %21639 = vrot.lane.b32.xlu1 %v24326_v5, %s23591_s6 }
 0x26d   :  { %v24405_v50 = vpop.permute.xlu0 %22195 }
 0x26e   :  { %26524 = vst [vmem:[#allocation55_spill] sm:$0xff] %v24405_v50  ;;  %v24407_v22 = vpop.permute.xlu1 %22197 }
 0x26f   :  { %26525 = vst [vmem:[#allocation56_spill] sm:$0xff] %v24407_v22  ;;  %21678 = vrot.lane.b32.xlu0 %v24277_v61, %s23592_s0 }
 0x270   :  { %21643 = vrot.lane.b32.xlu1 %v24337_v39, %s23591_s6 }
 0x271   :  { %v24413_v9 = vpop.permute.xlu0 %22199 }
 0x272   :  { %26526 = vst [vmem:[#allocation57_spill] sm:$0xff] %v24413_v9  ;;  %v24415_v57 = vpop.permute.xlu1 %22201 }
 0x273   :  { %26527 = vst [vmem:[#allocation58_spill] sm:$0xff] %v24415_v57  ;;  %21682 = vrot.lane.b32.xlu0 %v24310_v41, %s23592_s0 }
 0x274   :  { %21676 = vrot.lane.b32.xlu1 %v24270_v1, %s23592_s0 }
 0x275   :  { %v24421_v19 = vpop.permute.xlu0 %22203 }
 0x276   :  { %26528 = vst [vmem:[#allocation59_spill] sm:$0xff] %v24421_v19  ;;  %v24423_v50 = vpop.permute.xlu1 %22234 }
 0x277   :  { %26529 = vst [vmem:[#allocation60_spill] sm:$0xff] %v24423_v50  ;;  %21686 = vrot.lane.b32.xlu0 %v24326_v5, %s23592_s0 }
 0x278   :  { %21680 = vrot.lane.b32.xlu1 %v24294_v59, %s23592_s0 }
 0x279   :  { %v24429_v22 = vpop.permute.xlu0 %22236 }
 0x27a   :  { %26530 = vst [vmem:[#allocation61_spill] sm:$0xff] %v24429_v22  ;;  %v24431_v9 = vpop.permute.xlu1 %22238 }
 0x27b   :  { %26531 = vst [vmem:[#allocation62_spill] sm:$0xff] %v24431_v9  ;;  %21690 = vrot.lane.b32.xlu0 %v24337_v39, %s23592_s0 }
 0x27c   :  { %21684 = vrot.lane.b32.xlu1 %v24287_v54, %s23592_s0 }
 0x27d   :  { %v24437_v57 = vpop.permute.xlu0 %22240 }
 0x27e   :  { %26532 = vst [vmem:[#allocation63_spill] sm:$0xff] %v24437_v57  ;;  %v24439_v19 = vpop.permute.xlu1 %22242 }
 0x27f   :  { %26533 = vst [vmem:[#allocation64_spill] sm:$0xff] %v24439_v19  ;;  %21788 = vrot.lane.b32.xlu0 %v24270_v1, %s23593_s23 }
 0x280   :  { %21688 = vrot.lane.b32.xlu1 %v24304_v24, %s23592_s0 }
 0x281   :  { %v24445_v50 = vpop.permute.xlu0 %22244 }
 0x282   :  { %26534 = vst [vmem:[#allocation65_spill] sm:$0xff] %v24445_v50  ;;  %v24447_v22 = vpop.permute.xlu1 %22246 }
 0x283   :  { %26535 = vst [vmem:[#allocation66_spill] sm:$0xff] %v24447_v22  ;;  %21792 = vrot.lane.b32.xlu0 %v24294_v59, %s23593_s23 }
 0x284   :  { %21692 = vrot.lane.b32.xlu1 %v24321_v49, %s23592_s0 }
 0x285   :  { %v24453_v9 = vpop.permute.xlu0 %22248 }
 0x286   :  { %26536 = vst [vmem:[#allocation67_spill] sm:$0xff] %v24453_v9  ;;  %v24455_v57 = vpop.permute.xlu1 %22250 }
 0x287   :  { %26537 = vst [vmem:[#allocation68_spill] sm:$0xff] %v24455_v57  ;;  %21796 = vrot.lane.b32.xlu0 %v24287_v54, %s23593_s23 }
 0x288   :  { %21790 = vrot.lane.b32.xlu1 %v24277_v61, %s23593_s23 }
 0x289   :  { %v24461_v19 = vpop.permute.xlu0 %22281 }
 0x28a   :  { %26538 = vst [vmem:[#allocation69_spill] sm:$0xff] %v24461_v19  ;;  %v24463_v50 = vpop.permute.xlu1 %22283 }
 0x28b   :  { %26539 = vst [vmem:[#allocation70_spill] sm:$0xff] %v24463_v50  ;;  %21800 = vrot.lane.b32.xlu0 %v24304_v24, %s23593_s23 }
 0x28c   :  { %21794 = vrot.lane.b32.xlu1 %v24310_v41, %s23593_s23 }
 0x28d   :  { %v24469_v22 = vpop.permute.xlu0 %22285 }
 0x28e   :  { %26540 = vst [vmem:[#allocation71_spill] sm:$0xff] %v24469_v22  ;;  %v24471_v9 = vpop.permute.xlu1 %22287 }
 0x28f   :  { %26541 = vst [vmem:[#allocation72_spill] sm:$0xff] %v24471_v9  ;;  %21804 = vrot.lane.b32.xlu0 %v24321_v49, %s23593_s23 }
 0x290   :  { %21798 = vrot.lane.b32.xlu1 %v24326_v5, %s23593_s23 }
 0x291   :  { %v24477_v57 = vpop.permute.xlu0 %22289 }
 0x292   :  { %26542 = vst [vmem:[#allocation73_spill] sm:$0xff] %v24477_v57  ;;  %v24479_v19 = vpop.permute.xlu1 %22291 }
 0x293   :  { %26543 = vst [vmem:[#allocation74_spill] sm:$0xff] %v24479_v19  ;;  %21837 = vrot.lane.b32.xlu0 %v24277_v61, %s23594_s24 }
 0x294   :  { %21802 = vrot.lane.b32.xlu1 %v24337_v39, %s23593_s23 }
 0x295   :  { %v24485_v50 = vpop.permute.xlu0 %22293 }
 0x296   :  { %26544 = vst [vmem:[#allocation75_spill] sm:$0xff] %v24485_v50  ;;  %v24487_v22 = vpop.permute.xlu1 %22295 }
 0x297   :  { %26545 = vst [vmem:[#allocation76_spill] sm:$0xff] %v24487_v22  ;;  %21841 = vrot.lane.b32.xlu0 %v24310_v41, %s23594_s24 }
 0x298   :  { %21835 = vrot.lane.b32.xlu1 %v24270_v1, %s23594_s24 }
 0x299   :  { %v24493_v9 = vpop.permute.xlu0 %22297 }
 0x29a   :  { %26546 = vst [vmem:[#allocation77_spill] sm:$0xff] %v24493_v9  ;;  %v24495_v57 = vpop.permute.xlu1 %22328 }
 0x29b   :  { %26547 = vst [vmem:[#allocation78_spill] sm:$0xff] %v24495_v57  ;;  %21845 = vrot.lane.b32.xlu0 %v24326_v5, %s23594_s24 }
 0x29c   :  { %21839 = vrot.lane.b32.xlu1 %v24294_v59, %s23594_s24 }
 0x29d   :  { %v24501_v19 = vpop.permute.xlu0 %22330 }
 0x29e   :  { %26548 = vst [vmem:[#allocation79_spill] sm:$0xff] %v24501_v19  ;;  %v24503_v50 = vpop.permute.xlu1 %22332 }
 0x29f   :  { %26549 = vst [vmem:[#allocation80_spill] sm:$0xff] %v24503_v50  ;;  %21849 = vrot.lane.b32.xlu0 %v24337_v39, %s23594_s24 }
 0x2a0   :  { %21843 = vrot.lane.b32.xlu1 %v24287_v54, %s23594_s24 }
 0x2a1   :  { %v24509_v22 = vpop.permute.xlu0 %22334 }
 0x2a2   :  { %26550 = vst [vmem:[#allocation81_spill] sm:$0xff] %v24509_v22  ;;  %v24511_v9 = vpop.permute.xlu1 %22336 }
 0x2a3   :  { %26551 = vst [vmem:[#allocation82_spill] sm:$0xff] %v24511_v9  ;;  %21882 = vrot.lane.b32.xlu0 %v24270_v1, %s23595_s25 }
 0x2a4   :  { %21847 = vrot.lane.b32.xlu1 %v24304_v24, %s23594_s24 }
 0x2a5   :  { %v24517_v57 = vpop.permute.xlu0 %22338 }
 0x2a6   :  { %26552 = vst [vmem:[#allocation83_spill] sm:$0xff] %v24517_v57  ;;  %v24519_v19 = vpop.permute.xlu1 %22340 }
 0x2a7   :  { %26553 = vst [vmem:[#allocation84_spill] sm:$0xff] %v24519_v19  ;;  %21886 = vrot.lane.b32.xlu0 %v24294_v59, %s23595_s25 }
 0x2a8   :  { %21851 = vrot.lane.b32.xlu1 %v24321_v49, %s23594_s24 }
 0x2a9   :  { %v24525_v50 = vpop.permute.xlu0 %22342 }
 0x2aa   :  { %26554 = vst [vmem:[#allocation85_spill] sm:$0xff] %v24525_v50  ;;  %v24527_v22 = vpop.permute.xlu1 %22344 }
 0x2ab   :  { %26555 = vst [vmem:[#allocation86_spill] sm:$0xff] %v24527_v22  ;;  %21890 = vrot.lane.b32.xlu0 %v24287_v54, %s23595_s25 }
 0x2ac   :  { %21884 = vrot.lane.b32.xlu1 %v24277_v61, %s23595_s25 }
 0x2ad   :  { %v24533_v9 = vpop.permute.xlu0 %21535 }
 0x2ae   :  { %26556 = vst [vmem:[#allocation87_spill] sm:$0xff] %v24533_v9  ;;  %v24535_v57 = vpop.permute.xlu1 %21537 }
 0x2af   :  { %26557 = vst [vmem:[#allocation88_spill] sm:$0xff] %v24535_v57  ;;  %21894 = vrot.lane.b32.xlu0 %v24304_v24, %s23595_s25 }
 0x2b0   :  { %21888 = vrot.lane.b32.xlu1 %v24310_v41, %s23595_s25 }
 0x2b1   :  { %v24541_v19 = vpop.permute.xlu0 %21543 }
 0x2b2   :  { %26558 = vst [vmem:[#allocation89_spill] sm:$0xff] %v24541_v19  ;;  %v24543_v50 = vpop.permute.xlu1 %21539 }
 0x2b3   :  { %26559 = vst [vmem:[#allocation90_spill] sm:$0xff] %v24543_v50  ;;  %21898 = vrot.lane.b32.xlu0 %v24321_v49, %s23595_s25 }
 0x2b4   :  { %21892 = vrot.lane.b32.xlu1 %v24326_v5, %s23595_s25 }
 0x2b5   :  { %v24549_v22 = vpop.permute.xlu0 %21547 }
 0x2b6   :  { %26560 = vst [vmem:[#allocation91_spill] sm:$0xff] %v24549_v22  ;;  %v24551_v9 = vpop.permute.xlu1 %21541 }
 0x2b7   :  { %21931 = vrot.lane.b32.xlu0 %v24277_v61, %s23596_s26 }
 0x2b8   :  { %21896 = vrot.lane.b32.xlu1 %v24337_v39, %s23595_s25 }
 0x2b9   :  { %v24557_v57 = vpop.permute.xlu0 %21551 }
 0x2ba   :  { %26561 = vst [vmem:[#allocation92_spill] sm:$0xff] %v24557_v57  ;;  %v24559_v19 = vpop.permute.xlu1 %21545 }
 0x2bb   :  { %26562 = vst [vmem:[#allocation93_spill] sm:$0xff] %v24559_v19  ;;  %21935 = vrot.lane.b32.xlu0 %v24310_v41, %s23596_s26  ;;  %v22399_v19 = vrot.slane %v24018_v4, 1 }
 0x2bc   :  { %21929 = vrot.lane.b32.xlu1 %v24270_v1, %s23596_s26  ;;  %v22400_v1 = vrot.slane %v23905_v7, 1 }
 0x2bd   :  { %v24565_v50 = vpop.permute.xlu0 %21584 }
 0x2be   :  { %26563 = vst [vmem:[#allocation94_spill] sm:$0xff] %v24565_v50  ;;  %v24567_v22 = vpop.permute.xlu1 %21549  ;;  %v22414_v50 = vrot.slane %v23962_v30, 1 }
 0x2bf   :  { %26564 = vst [vmem:[#allocation95_spill] sm:$0xff] %v24567_v22  ;;  %21939 = vrot.lane.b32.xlu0 %v24326_v5, %s23596_s26  ;;  %v22408_v22 = vrot.slane %v23920_v14, 1 }
 0x2c0   :  { %21933 = vrot.lane.b32.xlu1 %v24294_v59, %s23596_s26  ;;  %v24588_v59 = vsel %vm26442_vm10, %v22399_v19, %v22400_v1  ;;  %v22403_v19 = vrot.slane %v23909_v8, 1 }
 0x2c1   :  { %v24573_v61 = vpop.permute.xlu0 %21588 }
 0x2c2   :  { %26565 = vst [vmem:[#allocation96_spill] sm:$0xff] %v24573_v61  ;;  %v24575_v57 = vpop.permute.xlu1 %21582 }
 0x2c3   :  { %26566 = vst [vmem:[#allocation97_spill] sm:$0xff] %v24575_v57  ;;  %21943 = vrot.lane.b32.xlu0 %v24337_v39, %s23596_s26  ;;  %v24601_v39 = vsel %vm26442_vm10, %v22408_v22, %v22414_v50  ;;  %v22405_v50 = vrot.slane %v24020_v56, 1  ;;  %v22402_v57 = vrot.slane %v24032_v23, 1 }
 0x2c4   :  { %21937 = vrot.lane.b32.xlu1 %v24287_v54, %s23596_s26  ;;  %26571 = vst [vmem:[#allocation102_spill] sm:$0xff] %v24601_v39 }
 0x2c5   :  { %v24583_v41 = vpop.permute.xlu0 %21592  ;;  %v24638_v23 = vsel %vm26442_vm10, %v22402_v57, %v22403_v19 }
 0x2c6   :  { %26567 = vst [vmem:[#allocation98_spill] sm:$0xff] %v24583_v41  ;;  %v24585_v5 = vpop.permute.xlu1 %21586  ;;  %v24621_v41 = vsel %vm26442_vm10, %v22400_v1, %v22408_v22  ;;  %v22416_v22 = vrot.slane %v23964_v31, 1 }
 0x2c7   :  { %26568 = vst [vmem:[#allocation99_spill] sm:$0xff] %v24585_v5  ;;  %22429 = vrot.lane.b32.xlu0 %v24588_v59, %s23589_s20  ;;  %v22410_v5 = vrot.slane %v23924_v15, 1 }
 0x2c8   :  { %21941 = vrot.lane.b32.xlu1 %v24304_v24, %s23596_s26 }
 0x2c9   :  { %v24596_v4 = vpop.permute.xlu0 %21596  ;;  %v24657_v31 = vsel %vm26442_vm10, %v22410_v5, %v22416_v22  ;;  %v24680_v22 = vstv %s23452_s29 }
 0x2ca   :  { %26569 = vst [vmem:[#allocation100_spill] sm:$0xff] %v24596_v4  ;;  %v24598_v54 = vpop.permute.xlu1 %21590  ;;  %v24614_v4 = vsel %vm26442_vm10, %v22403_v19, %v22410_v5  ;;  %v22167_v19 = vstv %s23455_s27 }
 0x2cb   :  { %26570 = vst [vmem:[#allocation101_spill] sm:$0xff] %v24598_v54  ;;  %22433 = vrot.lane.b32.xlu0 %v24601_v39, %s23589_s20  ;;  %v22406_v54 = vrot.slane %v24028_v58, 1  ;;  %v22412_v58 = vrot.slane %v24034_v20, 1 }
 0x2cc   :  { %21945 = vrot.lane.b32.xlu1 %v24321_v49, %s23596_s26 }
 0x2cd   :  { %v24609_v30 = vpop.permute.xlu0 %21629  ;;  %v24631_v56 = vsel %vm26442_vm10, %v22405_v50, %v22406_v54  ;;  %v22006_v50 = vstv %s23451_s28  ;;  %v24677_v5 = vsel %vm26442_vm10, %v22406_v54, %v22412_v58  ;;  %v26585_v54 = vrot.slane %v23951_v25, 7 }
 0x2ce   :  { %26572 = vst [vmem:[#allocation103_spill] sm:$0xff] %v24609_v30  ;;  %v24611_v24 = vpop.permute.xlu1 %21594  ;;  %26576 = vst [vmem:[#allocation107_spill] sm:$0xff] %v24631_v56  ;;  %v26591_v25 = vrot.slane %v23997_v48, 7  ;;  %v24755_v48 = vstv %s24652_s8 }
 0x2cf   :  { %26573 = vst [vmem:[#allocation104_spill] sm:$0xff] %v24611_v24  ;;  %22437 = vrot.lane.b32.xlu0 %v24614_v4, %s23589_s20  ;;  %v22418_v24 = vrot.slane %v23976_v37, 1  ;;  %26599 = vst [vmem:[#allocation124_spill] sm:$0xff] %v24755_v48 }
 0x2d0   :  { %22431 = vrot.lane.b32.xlu1 %v24621_v41, %s23589_s20 }
 0x2d1   :  { %v24626_v49 = vpop.permute.xlu0 %21633  ;;  %v24650_v37 = vsel %vm26442_vm10, %v22412_v58, %v22418_v24  ;;  %vm1153_vm10 = vcmp.lt.s32.totalorder %v23699_v16, 110 }
 0x2d2   :  { %26574 = vst [vmem:[#allocation105_spill] sm:$0xff] %v24626_v49  ;;  %v24628_v30 = vpop.permute.xlu1 %21598  ;;  %26579 = vst [vmem:[#allocation110_spill] sm:$0xff] %v24650_v37  ;;  %v24685_v49 = vmul.f32 %v22167_v19, %v23909_v8  ;;  %v24710_v8 = vmul.f32 %v22167_v19, %v23901_v6  ;;  %v24732_v6 = vstv %s24645_s30 }
 0x2d3   :  { %26575 = vst [vmem:[#allocation106_spill] sm:$0xff] %v24628_v30  ;;  %22441 = vrot.lane.b32.xlu0 %v24631_v56, %s23589_s20  ;;  %v26587_v30 = vrot.slane %v23957_v27, 7  ;;  %v24722_v27 = vmul.f32 %v22167_v19, %v23920_v14  ;;  %v24740_v14 = vmul.f32 %v22167_v19, %v23916_v10  ;;  %v21997_v10 = vsel %vm430_vm15, %v24216_v28, %v24230_v0 }
 0x2d4   :  { %22435 = vrot.lane.b32.xlu1 %v24638_v23, %s23589_s20  ;;  %26582 = vst [vmem:[#allocation113_spill] sm:$0xff] %v24685_v49  ;;  %26590 = vst [vmem:[#allocation117_spill] sm:$0xff] %v24710_v8 }
 0x2d5   :  { %v24643_v1 = vpop.permute.xlu0 %21637  ;;  %26594 = vst [vmem:[#allocation119_spill] sm:$0xff] %v24722_v27  ;;  %26598 = vst [vmem:[#allocation123_spill] sm:$0xff] %v24740_v14  ;;  %v22045_v27 = vsel %vm518_vm2, %v24256_v47, %v24282_v11 }
 0x2d6   :  { %26577 = vst [vmem:[#allocation108_spill] sm:$0xff] %v24643_v1  ;;  %v24647_v20 = vpop.permute.xlu1 %21631  ;;  %v26586_v1 = vrot.slane %v23986_v43, 7 }
 0x2d7   :  { %26578 = vst [vmem:[#allocation109_spill] sm:$0xff] %v24647_v20  ;;  %22445 = vrot.lane.b32.xlu0 %v24650_v37, %s23589_s20  ;;  %v26584_v20 = vrot.slane %v23989_v45, 7 }
 0x2d8   :  { %22439 = vrot.lane.b32.xlu1 %v24657_v31, %s23589_s20  ;;  %v24704_v61 = vsel %vm381_vm6, %v26587_v30, %v26586_v1  ;;  %v24725_v30 = vmul.f32 %v22167_v19, %v23924_v15  ;;  %v22000_v15 = vsel %vm430_vm15, %v24206_v32, %v24216_v28  ;;  %v22003_v1 = vsel %vm430_vm15, %v24230_v0, %v24206_v32 }
 0x2d9   :  { %v24665_v57 = vpop.permute.xlu0 %21641  ;;  %v24697_v58 = vsel %vm381_vm6, %v26585_v54, %v26584_v20  ;;  %26588 = vst [vmem:[#allocation115_spill] sm:$0xff] %v24704_v61  ;;  %v26592_v20 = vrot.slane %v23968_v33, 7  ;;  %v24737_v33 = vmul.f32 %v22167_v19, %v23905_v7  ;;  %v22002_v7 = vsel %vm430_vm15, %v24214_v26, %v24224_v12 }
 0x2da   :  { %26580 = vst [vmem:[#allocation111_spill] sm:$0xff] %v24665_v57  ;;  %v24669_v24 = vpop.permute.xlu1 %21635  ;;  %26595 = vst [vmem:[#allocation120_spill] sm:$0xff] %v24725_v30  ;;  %v24774_v54 = vstv %s24659_s3  ;;  %v22005_v28 = vsel %vm430_vm15, %v24238_v60, %v24214_v26  ;;  %v24788_v32 = vstv %s24663_s5  ;;  %v24791_v0 = vstv %s24667_s9 }
 0x2db   :  { %26581 = vst [vmem:[#allocation112_spill] sm:$0xff] %v24669_v24  ;;  %22478 = vrot.lane.b32.xlu0 %v24621_v41, %s23590_s22  ;;  %v24688_v24 = vmul.f32 %v22167_v19, %v23893_v62  ;;  %v24707_v62 = vmul.f32 %v22167_v19, %v23897_v63  ;;  %v24719_v43 = vsel %vm381_vm6, %v26592_v20, %v26591_v25  ;;  %26597 = vst [vmem:[#allocation122_spill] sm:$0xff] %v24737_v33 }
 0x2dc   :  { %22443 = vrot.lane.b32.xlu1 %v24677_v5, %s23589_s20  ;;  %26593 = vst [vmem:[#allocation118_spill] sm:$0xff] %v24719_v43  ;;  %v24728_v63 = vmul.f32 %v22167_v19, %v23928_v17  ;;  %v22001_v17 = vsel %vm430_vm15, %v24208_v38, %v24222_v53  ;;  %v22004_v19 = vsel %vm430_vm15, %v24232_v13, %v24208_v38  ;;  %26600 = vst [vmem:[#allocation125_spill] sm:$0xff] %v24774_v54  ;;  %s23465_s20 = sld [smem:[#allocation11 + $0x17]] }
 0x2dd   :  { %26583 = vst [vmem:[#allocation114_spill] sm:$0xff] %v24688_v24  ;;  %v24690_v57 = vpop.permute.xlu0 %21645  ;;  %26589 = vst [vmem:[#allocation116_spill] sm:$0xff] %v24707_v62  ;;  %v21998_v20 = vsel %vm430_vm15, %v24222_v53, %v24232_v13  ;;  %v24795_v14 = vmul.f32 %v22006_v50, %v22000_v15  ;;  %v24797_v33 = vmul.f32 %v22006_v50, %v22001_v17  ;;  %v24802_v13 = vstv %s24672_s10 }
 0x2de   :  { %v24712_v45 = vpop.permute.xlu1 %21639  ;;  %26596 = vst [vmem:[#allocation121_spill] sm:$0xff] %v24728_v63  ;;  %26601 = vst [vmem:[#allocation126_spill] sm:$0xff] %v24788_v32  ;;  %v24799_v63 = vmul.f32 %v22006_v50, %v22002_v7  ;;  %v24808_v26 = vmul.f32 %v22006_v50, %v22003_v1  ;;  %v24810_v53 = vmul.f32 %v22006_v50, %v21997_v10  ;;  %v25087_v24 = vstv %s24952_s15  ;;  %v26664_v32 = vld [vmem:[#allocation104_spill] sm:$0xff] }
 0x2df   :  { %22482 = vrot.lane.b32.xlu0 %v24638_v23, %s23590_s22  ;;  %26602 = vst [vmem:[#allocation127_spill] sm:$0xff] %v24791_v0  ;;  %26603 = vst [vmem:[#allocation128_spill] sm:$0xff] %v24795_v14  ;;  %v24812_v30 = vmul.f32 %v22006_v50, %v22004_v19  ;;  %v21999_v15 = vsel %vm430_vm15, %v24224_v12, %v24238_v60  ;;  %v24820_v17 = vmul.f32 %v22006_v50, %v21998_v20 }
 0x2e0   :  { %22476 = vrot.lane.b32.xlu1 %v24588_v59, %s23590_s22  ;;  %26604 = vst [vmem:[#allocation129_spill] sm:$0xff] %v24797_v33  ;;  %26605 = vst [vmem:[#allocation130_spill] sm:$0xff] %v24799_v63  ;;  %v24822_v7 = vmul.f32 %v22006_v50, %v22005_v28  ;;  %v22047_v10 = vsel %vm518_vm2, %v24240_v52, %v24254_v51  ;;  %v22048_v1 = vsel %vm518_vm2, %v24246_v44, %v24256_v47  ;;  %v26657_v33 = vld [vmem:[#allocation97_spill] sm:$0xff] }
 0x2e1   :  { %v24776_v25 = vpop.permute.xlu0 %21678  ;;  %26606 = vst [vmem:[#allocation131_spill] sm:$0xff] %v24802_v13  ;;  %26607 = vst [vmem:[#allocation132_spill] sm:$0xff] %v24808_v26  ;;  %v22049_v60 = vsel %vm518_vm2, %v24248_v42, %v24265_v2  ;;  %v22044_v12 = vsel %vm518_vm2, %v24254_v51, %v24267_v55  ;;  %v22050_v20 = vsel %vm518_vm2, %v24267_v55, %v24240_v52  ;;  %v26663_v13 = vld [vmem:[#allocation101_spill] sm:$0xff]  ;;  %v26670_v61 = vld [vmem:[#allocation111_spill] sm:$0xff]  ;;  %vm1065_vm6 = vcmp.lt.s32.totalorder %v23699_v16, 111 }
 0x2e2   :  { %v24793_v38 = vpop.permute.xlu1 %21643  ;;  %26608 = vst [vmem:[#allocation133_spill] sm:$0xff] %v24810_v53  ;;  %26609 = vst [vmem:[#allocation134_spill] sm:$0xff] %v24812_v30  ;;  %v22051_v28 = vsel %vm518_vm2, %v24282_v11, %v24246_v44  ;;  %v24852_v62 = vmul.f32 %v22006_v50, %v21999_v15  ;;  %v22046_v51 = vsel %vm518_vm2, %v24265_v2, %v24284_v3  ;;  %v24879_v11 = vstv %s24757_s11 }
 0x2e3   :  { %22486 = vrot.lane.b32.xlu0 %v24657_v31, %s23590_s22  ;;  %26610 = vst [vmem:[#allocation135_spill] sm:$0xff] %v24820_v17  ;;  %26611 = vst [vmem:[#allocation136_spill] sm:$0xff] %v24822_v7  ;;  %v22052_v52 = vsel %vm518_vm2, %v24284_v3, %v24248_v42  ;;  %v24869_v44 = vmul.f32 %v24680_v22, %v22047_v10  ;;  %v24872_v55 = vmul.f32 %v24680_v22, %v22048_v1  ;;  %v26659_v7 = vld [vmem:[#allocation98_spill] sm:$0xff] }
 0x2e4   :  { %22480 = vrot.lane.b32.xlu1 %v24601_v39, %s23590_s22  ;;  %26612 = vst [vmem:[#allocation137_spill] sm:$0xff] %v24852_v62  ;;  %v22094_v47 = vsel %vm606_vm5, %v24299_v35, %v24318_v29  ;;  %v24886_v42 = vmul.f32 %v24680_v22, %v22049_v60  ;;  %v24889_v3 = vmul.f32 %v24680_v22, %v22050_v20  ;;  %v26627_v62 = vld [vmem:[#allocation46_spill] sm:$0xff] }
 0x2e5   :  { %v24832_v19 = vpop.permute.xlu0 %21682  ;;  %26613 = vst [vmem:[#allocation138_spill] sm:$0xff] %v24869_v44  ;;  %26614 = vst [vmem:[#allocation139_spill] sm:$0xff] %v24872_v55  ;;  %v24892_v2 = vmul.f32 %v24680_v22, %v22044_v12  ;;  %v24895_v50 = vmul.f32 %v24680_v22, %v22051_v28  ;;  %v24900_v10 = vmul.f32 %v24680_v22, %v22045_v27  ;;  %v26633_v44 = vld [vmem:[#allocation48_spill] sm:$0xff] }
 0x2e6   :  { %v24850_v8 = vpop.permute.xlu1 %21676  ;;  %26615 = vst [vmem:[#allocation140_spill] sm:$0xff] %v24886_v42  ;;  %26616 = vst [vmem:[#allocation141_spill] sm:$0xff] %v24889_v3  ;;  %v24903_v1 = vmul.f32 %v24680_v22, %v22052_v52  ;;  %v24906_v60 = vmul.f32 %v24680_v22, %v22046_v51  ;;  %v22095_v12 = vsel %vm606_vm5, %v24301_v34, %v24330_v36  ;;  %v24928_v51 = vstv %s24804_s1 }
 0x2e7   :  { %22490 = vrot.lane.b32.xlu0 %v24677_v5, %s23590_s22  ;;  %26617 = vst [vmem:[#allocation142_spill] sm:$0xff] %v24892_v2  ;;  %26618 = vst [vmem:[#allocation143_spill] sm:$0xff] %v24895_v50  ;;  %v24917_v28 = vmul.f32 %v24732_v6, %v22094_v47  ;;  %v22096_v27 = vsel %vm606_vm5, %v24316_v46, %v24332_v40  ;;  %v22097_v22 = vsel %vm606_vm5, %v24341_v18, %v24299_v35 }
 0x2e8   :  { %22484 = vrot.lane.b32.xlu1 %v24614_v4, %s23590_s22  ;;  %26619 = vst [vmem:[#allocation144_spill] sm:$0xff] %v24900_v10  ;;  %26620 = vst [vmem:[#allocation145_spill] sm:$0xff] %v24903_v1  ;;  %v22091_v52 = vsel %vm606_vm5, %v24318_v29, %v24341_v18  ;;  %v22092_v47 = vsel %vm606_vm5, %v24330_v36, %v24343_v21  ;;  %v22098_v35 = vsel %vm606_vm5, %v24343_v21, %v24301_v34  ;;  %v26625_v18 = vld [vmem:[#allocation45_spill] sm:$0xff]  ;;  %v26626_v34 = vld [vmem:[#allocation42_spill] sm:$0xff] }
 0x2e9   :  { %v24897_v15 = vpop.permute.xlu0 %21686  ;;  %26621 = vst [vmem:[#allocation146_spill] sm:$0xff] %v24906_v60  ;;  %26622 = vst [vmem:[#allocation147_spill] sm:$0xff] %v24917_v28  ;;  %v26623_v60 = vld [vmem:[#allocation41_spill] sm:$0xff]  ;;  %v24955_v29 = vmul.f32 %v24732_v6, %v22095_v12  ;;  %v22141_v21 = vsel %vm694_vm3, %v26626_v34, %v26625_v18  ;;  %v24972_v12 = vmul.f32 %v24732_v6, %v22096_v27 }
 0x2ea   :  { %v24914_v20 = vpop.permute.xlu1 %21680  ;;  %v22099_v42 = vsel %vm606_vm5, %v26623_v60, %v24316_v46  ;;  %v22093_v36 = vsel %vm606_vm5, %v24332_v40, %v26623_v60  ;;  %v26628_v46 = vld [vmem:[#allocation43_spill] sm:$0xff]  ;;  %v24975_v28 = vmul.f32 %v24732_v6, %v22097_v22  ;;  %v26632_v60 = vld [vmem:[#allocation44_spill] sm:$0xff]  ;;  %v22144_v53 = vsel %vm694_vm3, %v26633_v44, %v26626_v34  ;;  %v26658_v1 = vld [vmem:[#allocation93_spill] sm:$0xff] }
 0x2eb   :  { %22523 = vrot.lane.b32.xlu0 %v24588_v59, %s23591_s6  ;;  %26624 = vst [vmem:[#allocation41_spill] sm:$0xff] %v24955_v29  ;;  %v22142_v49 = vsel %vm694_vm3, %v26628_v46, %v26627_v62  ;;  %26629 = vst [vmem:[#allocation45_spill] sm:$0xff] %v24972_v12  ;;  %v26631_v40 = vld [vmem:[#allocation47_spill] sm:$0xff]  ;;  %v24988_v29 = vmul.f32 %v24732_v6, %v22091_v52  ;;  %v24991_v27 = vmul.f32 %v24732_v6, %v22098_v35 }
 0x2ec   :  { %22488 = vrot.lane.b32.xlu1 %v24631_v56, %s23590_s22  ;;  %26630 = vst [vmem:[#allocation42_spill] sm:$0xff] %v24975_v28  ;;  %v22143_v2 = vsel %vm694_vm3, %v26632_v60, %v26631_v40  ;;  %v24994_v22 = vmul.f32 %v24732_v6, %v22092_v47  ;;  %v24997_v12 = vmul.f32 %v24732_v6, %v22099_v42  ;;  %v25011_v35 = vstv %s24881_s12  ;;  %v26662_v28 = vld [vmem:[#allocation100_spill] sm:$0xff] }
 0x2ed   :  { %v24969_v63 = vpop.permute.xlu0 %21690  ;;  %26634 = vst [vmem:[#allocation46_spill] sm:$0xff] %v24988_v29  ;;  %26635 = vst [vmem:[#allocation43_spill] sm:$0xff] %v24991_v27  ;;  %v25002_v55 = vmul.f32 %v24732_v6, %v22093_v36  ;;  %v25005_v34 = vmul.f32 %v24755_v48, %v22141_v21  ;;  %v25008_v52 = vmul.f32 %v24755_v48, %v22142_v49  ;;  %v26644_v49 = vld [vmem:[#allocation89_spill] sm:$0xff]  ;;  %v26645_v36 = vld [vmem:[#allocation88_spill] sm:$0xff] }
 0x2ee   :  { %v24985_v14 = vpop.permute.xlu1 %21684  ;;  %26636 = vst [vmem:[#allocation47_spill] sm:$0xff] %v24994_v22  ;;  %26637 = vst [vmem:[#allocation44_spill] sm:$0xff] %v24997_v12  ;;  %v25016_v42 = vmul.f32 %v24755_v48, %v22143_v2  ;;  %v25022_v6 = vsel %vm694_vm3, %v26625_v18, %v26633_v44  ;;  %v25025_v47 = vmul.f32 %v24755_v48, %v22144_v53  ;;  %v26646_v2 = vld [vmem:[#allocation49_spill] sm:$0xff]  ;;  %v26648_v44 = vld [vmem:[#allocation87_spill] sm:$0xff] }
 0x2ef   :  { %22527 = vrot.lane.b32.xlu0 %v24601_v39, %s23591_s6  ;;  %26638 = vst [vmem:[#allocation48_spill] sm:$0xff] %v25002_v55  ;;  %26639 = vst [vmem:[#allocation148_spill] sm:$0xff] %v25005_v34  ;;  %v21557_v21 = vsel %vm430_vm15, %v26645_v36, %v26644_v49  ;;  %v26649_v18 = vld [vmem:[#allocation91_spill] sm:$0xff]  ;;  %v21556_v29 = vsel %vm430_vm15, %v26648_v44, %v24551_v9  ;;  %v26651_v27 = vld [vmem:[#allocation50_spill] sm:$0xff]  ;;  %v21606_v54 = vsel %vm518_vm2, %v26664_v32, %v26657_v33 }
 0x2f0   :  { %26640 = vst [vmem:[#allocation149_spill] sm:$0xff] %v25008_v52  ;;  %22492 = vrot.lane.b32.xlu1 %v24650_v37, %s23590_s22  ;;  %26641 = vst [vmem:[#allocation150_spill] sm:$0xff] %v25016_v42  ;;  %v25037_v42 = vsel %vm694_vm3, %v26627_v62, %v26646_v2  ;;  %v21559_v53 = vsel %vm430_vm15, %v26649_v18, %v26648_v44  ;;  %v21553_v34 = vsel %vm430_vm15, %v24551_v9, %v26649_v18  ;;  %v26654_v9 = vld [vmem:[#allocation90_spill] sm:$0xff]  ;;  %v26655_v44 = vld [vmem:[#allocation92_spill] sm:$0xff]  ;;  %s23467_s22 = sld [smem:[#allocation11 + $0x19]] }
 0x2f1   :  { %26642 = vst [vmem:[#allocation151_spill] sm:$0xff] %v25022_v6  ;;  %26643 = vst [vmem:[#allocation152_spill] sm:$0xff] %v25025_v47  ;;  %v25031_v55 = vpop.permute.xlu0 %21788  ;;  %v25057_v62 = vsel %vm694_vm3, %v26646_v2, %v26628_v46  ;;  %v25063_v22 = vsel %vm694_vm3, %v26631_v40, %v26651_v27  ;;  %v25069_v18 = vsel %vm694_vm3, %v26651_v27, %v26632_v60  ;;  %v25079_v2 = vstv %s24912_s13  ;;  %v26656_v12 = vld [vmem:[#allocation96_spill] sm:$0xff]  ;;  %v26668_v48 = vld [vmem:[#allocation109_spill] sm:$0xff] }
 0x2f2   :  { %26647 = vst [vmem:[#allocation89_spill] sm:$0xff] %v25037_v42  ;;  %v25051_v52 = vpop.permute.xlu1 %21688  ;;  %26650 = vst [vmem:[#allocation88_spill] sm:$0xff] %v25057_v62  ;;  %v21561_v50 = vsel %vm430_vm15, %v26655_v44, %v26654_v9  ;;  %v21567_v46 = vmul.f32 %v24879_v11, %v21557_v21  ;;  %v25084_v40 = vstv %s24932_s14  ;;  %v21563_v60 = vmul.f32 %v24879_v11, %v21559_v53  ;;  %v26660_v53 = vld [vmem:[#allocation99_spill] sm:$0xff]  ;;  %v26667_v62 = vld [vmem:[#allocation108_spill] sm:$0xff] }
 0x2f3   :  { %26652 = vst [vmem:[#allocation49_spill] sm:$0xff] %v25063_v22  ;;  %26653 = vst [vmem:[#allocation87_spill] sm:$0xff] %v25069_v18  ;;  %22531 = vrot.lane.b32.xlu0 %v24614_v4, %s23591_s6  ;;  %v21564_v27 = vmul.f32 %v24879_v11, %v21556_v29  ;;  %v21565_v10 = vmul.f32 %v24879_v11, %v21553_v34  ;;  %v21603_v21 = vsel %vm518_vm2, %v26657_v33, %v26656_v12  ;;  %v26661_v34 = vld [vmem:[#allocation94_spill] sm:$0xff] }
 0x2f4   :  { %22525 = vrot.lane.b32.xlu1 %v24621_v41, %s23591_s6  ;;  %v21569_v17 = vmul.f32 %v24879_v11, %v21561_v50  ;;  %v21555_v47 = vsel %vm430_vm15, %v26658_v1, %v26655_v44  ;;  %v21605_v29 = vsel %vm518_vm2, %v26660_v53, %v26659_v7  ;;  %v21607_v3 = vsel %vm518_vm2, %v26662_v28, %v26661_v34 }
 0x2f5   :  { %v25096_v30 = vpop.permute.xlu0 %21792  ;;  %v21558_v50 = vsel %vm430_vm15, %v26654_v9, %v26658_v1  ;;  %v21601_v44 = vsel %vm518_vm2, %v26663_v13, %v26662_v28  ;;  %v21604_v0 = vsel %vm518_vm2, %v26661_v34, %v26663_v13  ;;  %v26665_v1 = vld [vmem:[#allocation95_spill] sm:$0xff]  ;;  %v21611_v28 = vmul.f32 %v24928_v51, %v21603_v21  ;;  %v26666_v34 = vld [vmem:[#allocation106_spill] sm:$0xff] }
 0x2f6   :  { %v25111_v26 = vpop.permute.xlu1 %21692  ;;  %v21560_v9 = vsel %vm430_vm15, %v26665_v1, %v26645_v36  ;;  %v21600_v13 = vsel %vm518_vm2, %v26656_v12, %v26664_v32  ;;  %v21608_v33 = vsel %vm518_vm2, %v26666_v34, %v26660_v53  ;;  %v21554_v36 = vsel %vm430_vm15, %v26644_v49, %v26665_v1 }
 0x2f7   :  { %22535 = vrot.lane.b32.xlu0 %v24631_v56, %s23591_s6  ;;  %v21617_v21 = vmul.f32 %v24928_v51, %v21605_v29  ;;  %v21613_v22 = vmul.f32 %v24928_v51, %v21607_v3  ;;  %v21602_v32 = vsel %vm518_vm2, %v26659_v7, %v26666_v34  ;;  %v21614_v53 = vmul.f32 %v24928_v51, %v21604_v0 }
 0x2f8   :  { %22529 = vrot.lane.b32.xlu1 %v24638_v23, %s23591_s6  ;;  %v21615_v18 = vmul.f32 %v24928_v51, %v21601_v44  ;;  %v21610_v42 = vmul.f32 %v24928_v51, %v21606_v54  ;;  %v21651_v49 = vsel %vm606_vm5, %v26668_v48, %v26667_v62  ;;  %v21570_v3 = vmul.f32 %v24879_v11, %v21558_v50 }
 0x2f9   :  { %v25156_v12 = vpop.permute.xlu0 %21796  ;;  %v21566_v1 = vmul.f32 %v24879_v11, %v21560_v9  ;;  %v21612_v7 = vmul.f32 %v24928_v51, %v21600_v13  ;;  %v21616_v34 = vmul.f32 %v24928_v51, %v21608_v33  ;;  %v21571_v54 = vmul.f32 %v24879_v11, %v21555_v47  ;;  %v26669_v33 = vld [vmem:[#allocation103_spill] sm:$0xff] }
 0x2fa   :  { %v25165_v29 = vpop.permute.xlu1 %21790  ;;  %v21568_v0 = vmul.f32 %v24879_v11, %v21554_v36  ;;  %v21620_v44 = vadd.f32 %v21611_v28, %v21564_v27  ;;  %v21618_v6 = vmul.f32 %v24928_v51, %v21602_v32  ;;  %v21626_v50 = vadd.f32 %v21617_v21, %v21570_v3  ;;  %v26671_v27 = vld [vmem:[#allocation112_spill] sm:$0xff] }
 0x2fb   :  { %22539 = vrot.lane.b32.xlu0 %v24650_v37, %s23591_s6  ;;  %v21622_v9 = vadd.f32 %v21613_v22, %v21566_v1  ;;  %v21661_v13 = vmul.f32 %v25011_v35, %v21651_v49  ;;  %v21653_v37 = vsel %vm606_vm5, %v26670_v61, %v26669_v33  ;;  %v21623_v47 = vadd.f32 %v21614_v53, %v21567_v46 }
 0x2fc   :  { %22533 = vrot.lane.b32.xlu1 %v24657_v31, %s23591_s6  ;;  %v21624_v56 = vadd.f32 %v21615_v18, %v21568_v0  ;;  %v21619_v11 = vadd.f32 %v21610_v42, %v21563_v60  ;;  %v21650_v51 = vsel %vm606_vm5, %v26669_v33, %v26671_v27  ;;  %v21621_v22 = vadd.f32 %v21612_v7, %v21565_v10  ;;  %v26672_v60 = vld [vmem:[#allocation105_spill] sm:$0xff] }
 0x2fd   :  { %v25184_v43 = vpop.permute.xlu0 %21800  ;;  %v21625_v36 = vadd.f32 %v21616_v34, %v21569_v17  ;;  %v21647_v21 = vsel %vm606_vm5, %v26671_v27, %v26670_v61  ;;  %v21700_v18 = vsel %vm694_vm3, %v25051_v52, %v24850_v8  ;;  %v21627_v42 = vadd.f32 %v21618_v6, %v21571_v54 }
 0x2fe   :  { %v25190_v28 = vpop.permute.xlu1 %21794  ;;  %v21657_v46 = vmul.f32 %v25011_v35, %v21653_v37  ;;  %v21655_v17 = vsel %vm606_vm5, %v24690_v57, %v26672_v60  ;;  %v21697_v61 = vsel %vm694_vm3, %v24850_v8, %v24832_v19  ;;  %v21670_v10 = vadd.f32 %v21661_v13, %v21623_v47 }
 0x2ff   :  { %22572 = vrot.lane.b32.xlu0 %v24621_v41, %s23592_s0  ;;  %v21658_v32 = vmul.f32 %v25011_v35, %v21650_v51  ;;  %v21652_v37 = vsel %vm606_vm5, %v26672_v60, %v24712_v45  ;;  %v21654_v6 = vsel %vm606_vm5, %v24793_v38, %v26668_v48  ;;  %v21659_v8 = vmul.f32 %v25011_v35, %v21647_v21 }
 0x300   :  { %22537 = vrot.lane.b32.xlu1 %v24677_v5, %s23591_s6  ;;  %v21649_v49 = vsel %vm606_vm5, %v24712_v45, %v24690_v57  ;;  %v21648_v3 = vsel %vm606_vm5, %v26667_v62, %v24793_v38  ;;  %v21704_v1 = vmul.f32 %v25079_v2, %v21700_v18  ;;  %v21663_v48 = vmul.f32 %v25011_v35, %v21655_v17  ;;  %s23468_s6 = sld [smem:[#allocation11 + $0x1a]] }
 0x301   :  { %v25222_v53 = vpop.permute.xlu0 %21804  ;;  %v21705_v34 = vmul.f32 %v25079_v2, %v21697_v61  ;;  %v21701_v54 = vsel %vm694_vm3, %v24969_v63, %v24776_v25  ;;  %v21702_v57 = vsel %vm694_vm3, %v25111_v26, %v24914_v20  ;;  %v21666_v45 = vadd.f32 %v21657_v46, %v21619_v11 }
 0x302   :  { %v25235_v7 = vpop.permute.xlu1 %21798  ;;  %v21664_v38 = vmul.f32 %v25011_v35, %v21652_v37  ;;  %v21660_v62 = vmul.f32 %v25011_v35, %v21654_v6  ;;  %v21698_v0 = vsel %vm694_vm3, %v24776_v25, %v24985_v14  ;;  %v21667_v13 = vadd.f32 %v21658_v32, %v21620_v44 }
 0x303   :  { %22576 = vrot.lane.b32.xlu0 %v24638_v23, %s23592_s0  ;;  %v21665_v33 = vmul.f32 %v25011_v35, %v21649_v49  ;;  %v21662_v47 = vmul.f32 %v25011_v35, %v21648_v3  ;;  %v21809_v11 = vsel %vm26443_vm11, %v25031_v55, %v25190_v28  ;;  %v21707_v51 = vmul.f32 %v25079_v2, %v21701_v54  ;;  %v26673_v49 = vld [vmem:[#allocation25_spill] sm:$0xff] }
 0x304   :  { %22570 = vrot.lane.b32.xlu1 %v24588_v59, %s23592_s0  ;;  %v21695_v25 = vsel %vm694_vm3, %v24985_v14, %v24969_v63  ;;  %v21713_v21 = vadd.f32 %v21704_v1, %v21666_v45  ;;  %v21710_v44 = vmul.f32 %v25079_v2, %v21702_v57  ;;  %v21668_v46 = vadd.f32 %v21659_v8, %v21621_v22 }
 0x305   :  { %v25263_v27 = vpop.permute.xlu0 %21837  ;;  %v21672_v35 = vadd.f32 %v21663_v48, %v21625_v36  ;;  %v21714_v60 = vadd.f32 %v21705_v34, %v21667_v13  ;;  %v21708_v17 = vmul.f32 %v25079_v2, %v21698_v0  ;;  %v25274_v61 = vadd.f32 %v21664_v38, %v21626_v50  ;;  %v26674_v48 = vld [vmem:[#allocation26_spill] sm:$0xff] }
 0x306   :  { %v21803_v18 = vpop.permute.xlu1 %21802  ;;  %v21669_v32 = vadd.f32 %v21660_v62, %v21622_v9  ;;  %v21699_v63 = vsel %vm694_vm3, %v24914_v20, %v24897_v15  ;;  %v21816_v14 = vmul.f32 %v25084_v40, %v21809_v11  ;;  %v25283_v22 = vadd.f32 %v21665_v33, %v21627_v42  ;;  %v26675_v11 = vld [vmem:[#allocation28_spill] sm:$0xff] }
 0x307   :  { %22580 = vrot.lane.b32.xlu0 %v24657_v31, %s23592_s0  ;;  %v21671_v36 = vadd.f32 %v21662_v47, %v21624_v56  ;;  %v21709_v37 = vmul.f32 %v25079_v2, %v21695_v25  ;;  %v21811_v50 = vsel %vm26443_vm11, %v25096_v30, %v25235_v7  ;;  %v21694_v20 = vsel %vm694_vm3, %v24832_v19, %v25051_v52 }
 0x308   :  { %22574 = vrot.lane.b32.xlu1 %v24601_v39, %s23592_s0  ;;  %v21716_v6 = vadd.f32 %v21707_v51, %v21669_v32  ;;  %v21719_v8 = vadd.f32 %v21710_v44, %v21672_v35  ;;  %v21778_v42 = vadd.f32 %v26673_v49, %v21713_v21  ;;  %v21711_v56 = vmul.f32 %v25079_v2, %v21699_v63  ;;  %v26676_v35 = vld [vmem:[#allocation107_spill] sm:$0xff] }
 0x309   :  { %v25290_v9 = vpop.permute.xlu0 %21841  ;;  %v21717_v1 = vadd.f32 %v21708_v17, %v21670_v10  ;;  %v21779_v34 = vadd.f32 %v26674_v48, %v21714_v60  ;;  %v21822_v19 = vmul.f32 %v25084_v40, %v21811_v50  ;;  %v21813_v52 = vsel %vm26443_vm11, %v21803_v18, %v25165_v29  ;;  %v26677_v60 = vld [vmem:[#allocation118_spill] sm:$0xff]  ;;  %v26678_v32 = vld [vmem:[#allocation115_spill] sm:$0xff] }
 0x30a   :  { %v25297_v3 = vpop.permute.xlu1 %21835  ;;  %v21825_v57 = vadd.f32 %v21816_v14, %v21778_v42  ;;  %v21718_v10 = vadd.f32 %v21709_v37, %v21671_v36  ;;  %v21706_v38 = vmul.f32 %v25079_v2, %v21694_v20  ;;  %v21810_v62 = vsel %vm26443_vm11, %v25165_v29, %v25156_v12 }
 0x30b   :  { %v21856_v54 = vsel %vm1065_vm6, %v25297_v3, %v25290_v9  ;;  %22584 = vrot.lane.b32.xlu0 %v24677_v5, %s23592_s0  ;;  %v21807_v0 = vsel %vm26443_vm11, %v25156_v12, %v21803_v18  ;;  %v21696_v33 = vsel %vm694_vm3, %v24897_v15, %v25111_v26  ;;  %v21781_v47 = vadd.f32 %v24697_v58, %v21716_v6 }
 0x30c   :  { %v21863_v45 = vmul.f32 %v25087_v24, %v21856_v54  ;;  %22578 = vrot.lane.b32.xlu1 %v24614_v4, %s23592_s0  ;;  %v21784_v51 = vadd.f32 %v26675_v11, %v21719_v8  ;;  %v21812_v12 = vsel %vm26443_vm11, %v25184_v43, %v25031_v55  ;;  %v21806_v29 = vsel %vm26443_vm11, %v25190_v28, %v25184_v43 }
 0x30d   :  { %v25322_v13 = vpop.permute.xlu0 %21845  ;;  %v21821_v26 = vmul.f32 %v25084_v40, %v21813_v52  ;;  %v21819_v15 = vmul.f32 %v25084_v40, %v21810_v62  ;;  %v21820_v55 = vmul.f32 %v25084_v40, %v21807_v0  ;;  %v21715_v43 = vadd.f32 %v21706_v38, %v21668_v46 }
 0x30e   :  { %v25330_v25 = vadd.f32 %v21863_v45, %v21825_v57  ;;  %v25332_v21 = vpop.permute.xlu1 %21839  ;;  %v21831_v44 = vadd.f32 %v21822_v19, %v21784_v51  ;;  %v21712_v28 = vmul.f32 %v25079_v2, %v21696_v33  ;;  %v21782_v17 = vadd.f32 %v26677_v60, %v21717_v1  ;;  %v26679_v57 = vld [vmem:[#allocation110_spill] sm:$0xff]  ;;  %v26680_v19 = vld [vmem:[#allocation24_spill] sm:$0xff] }
 0x30f   :  { %v21858_v58 = vsel %vm1065_vm6, %v25332_v21, %v25322_v13  ;;  %22682 = vrot.lane.b32.xlu0 %v24588_v59, %s23593_s23  ;;  %v21783_v63 = vadd.f32 %v26678_v32, %v21718_v10  ;;  %v21818_v36 = vmul.f32 %v25084_v40, %v21812_v12  ;;  %v21817_v37 = vmul.f32 %v25084_v40, %v21806_v29 }
 0x310   :  { %v21869_v18 = vmul.f32 %v25087_v24, %v21858_v58  ;;  %22582 = vrot.lane.b32.xlu1 %v26676_v35, %s23592_s0  ;;  %v21828_v42 = vadd.f32 %v21819_v15, %v21781_v47  ;;  %v21829_v1 = vadd.f32 %v21820_v55, %v21782_v17  ;;  %v21780_v52 = vadd.f32 %v26680_v19, %v21715_v43  ;;  %v26684_v58 = vld [vmem:[#allocation89_spill] sm:$0xff]  ;;  %v26693_v19 = vld [vmem:[#allocation56_spill] sm:$0xff] }
 0x311   :  { %v21850_v14 = vpop.permute.xlu0 %21849  ;;  %v21830_v8 = vadd.f32 %v21821_v26, %v21783_v63  ;;  %v21814_v45 = vsel %vm26443_vm11, %v25222_v53, %v25096_v30  ;;  %v21720_v62 = vadd.f32 %v21711_v56, %v25274_v61  ;;  %v21721_v0 = vadd.f32 %v21712_v28, %v25283_v22  ;;  %v26683_v26 = vld [vmem:[#allocation88_spill] sm:$0xff]  ;;  %v26687_v28 = vld [vmem:[#allocation29_spill] sm:$0xff] }
 0x312   :  { %v25359_v50 = vadd.f32 %v21869_v18, %v21831_v44  ;;  %v21860_v6 = vsel %vm1065_vm6, %v21850_v14, %v25263_v27  ;;  %v21844_v20 = vpop.permute.xlu1 %21843  ;;  %v21827_v11 = vadd.f32 %v21818_v36, %v21780_v52  ;;  %v21826_v51 = vadd.f32 %v21817_v37, %v21779_v34  ;;  %v26681_v34 = vld [vmem:[#allocation151_spill] sm:$0xff]  ;;  %v26689_v37 = vld [vmem:[#allocation54_spill] sm:$0xff]  ;;  %v26694_v52 = vld [vmem:[#allocation53_spill] sm:$0xff] }
 0x313   :  { %v21868_v46 = vmul.f32 %v25087_v24, %v21860_v6  ;;  %v21854_v2 = vsel %vm1065_vm6, %v21844_v20, %v21850_v14  ;;  %v21857_v49 = vsel %vm1065_vm6, %v25263_v27, %v21844_v20  ;;  %22686 = vrot.lane.b32.xlu0 %v24601_v39, %s23593_s23  ;;  %v21808_v27 = vsel %vm26443_vm11, %v25235_v7, %v25222_v53  ;;  %v26686_v18 = vld [vmem:[#allocation27_spill] sm:$0xff]  ;;  %v26688_v14 = vld [vmem:[#allocation49_spill] sm:$0xff] }
 0x314   :  { %v21866_v48 = vmul.f32 %v25087_v24, %v21857_v49  ;;  %v21867_v54 = vmul.f32 %v25087_v24, %v21854_v2  ;;  %22586 = vrot.lane.b32.xlu1 %v26679_v57, %s23592_s0  ;;  %v21824_v61 = vmul.f32 %v25084_v40, %v21814_v45  ;;  %v21823_v22 = vmul.f32 %v25084_v40, %v21808_v27  ;;  %v26685_v40 = vld [vmem:[#allocation87_spill] sm:$0xff]  ;;  %v26695_v45 = vld [vmem:[#allocation57_spill] sm:$0xff] }
 0x315   :  { %v25385_v10 = vadd.f32 %v21868_v46, %v21830_v8  ;;  %v25387_v38 = vpop.permute.xlu0 %21882  ;;  %v21786_v43 = vadd.f32 %v26686_v18, %v21721_v0  ;;  %v21785_v60 = vadd.f32 %v26687_v28, %v21720_v62  ;;  %v26690_v6 = vld [vmem:[#allocation51_spill] sm:$0xff]  ;;  %v22205_v27 = vsel %vm26443_vm11, %v26689_v37, %v26695_v45 }
 0x316   :  { %v21875_v33 = vadd.f32 %v21866_v48, %v21828_v42  ;;  %v25394_v47 = vadd.f32 %v21867_v54, %v21829_v1  ;;  %v21848_v30 = vpop.permute.xlu1 %21847  ;;  %v22208_v20 = vsel %vm26443_vm11, %v26690_v6, %v26689_v37  ;;  %v26691_v48 = vld [vmem:[#allocation55_spill] sm:$0xff]  ;;  %v26692_v54 = vld [vmem:[#allocation52_spill] sm:$0xff]  ;;  %v22211_v0 = vsel %vm26443_vm11, %v26695_v45, %v26690_v6 }
 0x317   :  { %v21853_v53 = vsel %vm1065_vm6, %v25290_v9, %v21848_v30  ;;  %v21859_v7 = vsel %vm1065_vm6, %v21848_v30, %v25297_v3  ;;  %22690 = vrot.lane.b32.xlu0 %v24614_v4, %s23593_s23  ;;  %v26682_v9 = vld [vmem:[#allocation124_spill] sm:$0xff]  ;;  %v21833_v2 = vadd.f32 %v21824_v61, %v21786_v43  ;;  %v21832_v49 = vadd.f32 %v21823_v22, %v21785_v60  ;;  %v26696_v30 = vld [vmem:[#allocation58_spill] sm:$0xff]  ;;  %v26697_v61 = vld [vmem:[#allocation125_spill] sm:$0xff] }
 0x318   :  { %v21864_v56 = vmul.f32 %v25087_v24, %v21853_v53  ;;  %v21865_v12 = vmul.f32 %v25087_v24, %v21859_v7  ;;  %22684 = vrot.lane.b32.xlu1 %v24621_v41, %s23593_s23  ;;  %v25412_v29 = vmul.f32 %v26682_v9, %v26681_v34  ;;  %v25416_v3 = vmul.f32 %v26682_v9, %v26683_v26 }
 0x319   :  { %v25420_v15 = vmul.f32 %v26682_v9, %v26684_v58  ;;  %v25424_v44 = vmul.f32 %v26682_v9, %v26685_v40  ;;  %v25426_v55 = vpop.permute.xlu0 %21886  ;;  %v25432_v36 = vmul.f32 %v26682_v9, %v26688_v14  ;;  %v25480_v22 = vmul.f32 %v26697_v61, %v22208_v20  ;;  %v26701_v14 = vld [vmem:[#allocation60_spill] sm:$0xff] }
 0x31a   :  { %v21873_v17 = vadd.f32 %v21864_v56, %v21826_v51  ;;  %v21874_v32 = vadd.f32 %v21865_v12, %v21827_v11  ;;  %v21852_v63 = vpop.permute.xlu1 %21851  ;;  %v22206_v11 = vsel %vm26443_vm11, %v26691_v48, %v26696_v30  ;;  %v22212_v56 = vsel %vm26443_vm11, %v26696_v30, %v26692_v54  ;;  %v26698_v12 = vld [vmem:[#allocation59_spill] sm:$0xff] }
 0x31b   :  { %v21855_v8 = vsel %vm1065_vm6, %v25322_v13, %v21852_v63  ;;  %v21861_v46 = vsel %vm1065_vm6, %v21852_v63, %v25332_v21  ;;  %22694 = vrot.lane.b32.xlu0 %v26676_v35, %s23593_s23  ;;  %v22209_v13 = vsel %vm26443_vm11, %v26692_v54, %v26691_v48  ;;  %v22210_v21 = vsel %vm26443_vm11, %v26694_v52, %v26693_v19  ;;  %v26700_v63 = vld [vmem:[#allocation63_spill] sm:$0xff] }
 0x31c   :  { %v21870_v42 = vmul.f32 %v25087_v24, %v21855_v8  ;;  %v21871_v1 = vmul.f32 %v25087_v24, %v21861_v46  ;;  %22688 = vrot.lane.b32.xlu1 %v24638_v23, %s23593_s23  ;;  %v25465_v24 = vstv %s25389_s16  ;;  %v22207_v34 = vsel %vm26443_vm11, %v26693_v19, %v26698_v12  ;;  %v26706_v19 = vld [vmem:[#allocation64_spill] sm:$0xff] }
 0x31d   :  { %v25462_v62 = vpop.permute.xlu0 %21890  ;;  %v25497_v26 = vmul.f32 %v26697_v61, %v22209_v13  ;;  %v25500_v58 = vmul.f32 %v26697_v61, %v22210_v21  ;;  %v22213_v40 = vsel %vm26443_vm11, %v26698_v12, %v26694_v52  ;;  %v25510_v43 = vmul.f32 %v26697_v61, %v22205_v27  ;;  %v26707_v52 = vld [vmem:[#allocation61_spill] sm:$0xff] }
 0x31e   :  { %v25475_v51 = vadd.f32 %v21870_v42, %v21832_v49  ;;  %v21880_v53 = vadd.f32 %v21871_v1, %v21833_v2  ;;  %v25477_v7 = vpop.permute.xlu1 %21884  ;;  %v25513_v28 = vmul.f32 %v26697_v61, %v22211_v0  ;;  %v25516_v60 = vmul.f32 %v26697_v61, %v22206_v11  ;;  %v26708_v0 = vld [vmem:[#allocation65_spill] sm:$0xff]  ;;  %v26710_v11 = vld [vmem:[#allocation66_spill] sm:$0xff] }
 0x31f   :  { %v21904_v9 = vsel %vm1153_vm10, %v25477_v7, %v25462_v62  ;;  %22698 = vrot.lane.b32.xlu0 %v26679_v57, %s23593_s23  ;;  %26699 = vst [vmem:[#allocation91_spill] sm:$0xff] %v25497_v26  ;;  %v22255_v37 = vsel %vm1065_vm6, %v26701_v14, %v26700_v63  ;;  %v25523_v20 = vmul.f32 %v26697_v61, %v22212_v56  ;;  %vm26445_vm11 = vcmp.lt.s32.totalorder %v23699_v16, 109 }
 0x320   :  { %v21913_v18 = vmul.f32 %v25465_v24, %v21904_v9  ;;  %22692 = vrot.lane.b32.xlu1 %v24657_v31, %s23593_s23  ;;  %v25526_v8 = vmul.f32 %v26697_v61, %v22207_v34  ;;  %v25534_v42 = vmul.f32 %v26697_v61, %v22213_v40  ;;  %v22256_v21 = vsel %vm1065_vm6, %v26707_v52, %v26706_v19  ;;  %v26711_v9 = vld [vmem:[#allocation67_spill] sm:$0xff] }
 0x321   :  { %v21895_v6 = vpop.permute.xlu0 %21894  ;;  %26702 = vst [vmem:[#allocation50_spill] sm:$0xff] %v25523_v20  ;;  %v22252_v61 = vsel %vm1065_vm6, %v26700_v63, %v26710_v11  ;;  %v22258_v56 = vsel %vm1065_vm6, %v26710_v11, %v26701_v14  ;;  %v22253_v40 = vsel %vm1065_vm6, %v26706_v19, %v26711_v9  ;;  %v26734_v20 = vld [vmem:[#allocation83_spill] sm:$0xff] }
 0x322   :  { %26703 = vst [vmem:[#allocation90_spill] sm:$0xff] %v25526_v8  ;;  %v25528_v46 = vadd.f32 %v21913_v18, %v21875_v33  ;;  %v21906_v2 = vsel %vm1153_vm10, %v21895_v6, %v25387_v38  ;;  %v21889_v49 = vpop.permute.xlu1 %21888  ;;  %26704 = vst [vmem:[#allocation92_spill] sm:$0xff] %v25534_v42  ;;  %v26705_v33 = vld [vmem:[#allocation126_spill] sm:$0xff] }
 0x323   :  { %v21912_v1 = vmul.f32 %v25465_v24, %v21906_v2  ;;  %v21900_v48 = vsel %vm1153_vm10, %v21889_v49, %v21895_v6  ;;  %v21903_v54 = vsel %vm1153_vm10, %v25387_v38, %v21889_v49  ;;  %22731 = vrot.lane.b32.xlu0 %v24621_v41, %s23594_s24  ;;  %v25545_v13 = vmul.f32 %v26705_v33, %v22255_v37  ;;  %v26709_v38 = vld [vmem:[#allocation62_spill] sm:$0xff] }
 0x324   :  { %v21910_v45 = vmul.f32 %v25465_v24, %v21903_v54  ;;  %v21911_v27 = vmul.f32 %v25465_v24, %v21900_v48  ;;  %22696 = vrot.lane.b32.xlu1 %v24677_v5, %s23593_s23  ;;  %v22257_v30 = vsel %vm1065_vm6, %v26709_v38, %v26708_v0  ;;  %v25585_v37 = vmul.f32 %v26705_v33, %v22256_v21 }
 0x325   :  { %v25567_v12 = vadd.f32 %v21912_v1, %v21874_v32  ;;  %v21899_v34 = vpop.permute.xlu0 %21898  ;;  %v25599_v49 = vmul.f32 %v26705_v33, %v22252_v61  ;;  %v25606_v54 = vmul.f32 %v26705_v33, %v22258_v56  ;;  %v25613_v19 = vmul.f32 %v26705_v33, %v22253_v40  ;;  %v26714_v56 = vld [vmem:[#allocation72_spill] sm:$0xff]  ;;  %v26716_v40 = vld [vmem:[#allocation73_spill] sm:$0xff] }
 0x326   :  { %v25577_v18 = vadd.f32 %v21910_v45, %v25330_v25  ;;  %v25579_v63 = vadd.f32 %v21911_v27, %v21873_v17  ;;  %v21908_v32 = vsel %vm1153_vm10, %v21899_v34, %v25426_v55  ;;  %v21893_v14 = vpop.permute.xlu1 %21892  ;;  %26712 = vst [vmem:[#allocation96_spill] sm:$0xff] %v25585_v37  ;;  %v25596_v17 = vmul.f32 %v26705_v33, %v22257_v30  ;;  %v26713_v27 = vld [vmem:[#allocation68_spill] sm:$0xff] }
 0x327   :  { %v21918_v6 = vmul.f32 %v25465_v24, %v21908_v32  ;;  %v21902_v2 = vsel %vm1153_vm10, %v21893_v14, %v21899_v34  ;;  %v21905_v25 = vsel %vm1153_vm10, %v25426_v55, %v21893_v14  ;;  %22735 = vrot.lane.b32.xlu0 %v24638_v23, %s23594_s24  ;;  %v22259_v55 = vsel %vm1065_vm6, %v26711_v9, %v26707_v52  ;;  %v26715_v34 = vld [vmem:[#allocation69_spill] sm:$0xff]  ;;  %v26717_v32 = vld [vmem:[#allocation70_spill] sm:$0xff]  ;;  %v26719_v14 = vld [vmem:[#allocation71_spill] sm:$0xff] }
 0x328   :  { %v21916_v1 = vmul.f32 %v25465_v24, %v21905_v25  ;;  %v21917_v48 = vmul.f32 %v25465_v24, %v21902_v2  ;;  %22729 = vrot.lane.b32.xlu1 %v24588_v59, %s23594_s24  ;;  %v22254_v30 = vsel %vm1065_vm6, %v26708_v0, %v26713_v27  ;;  %v22260_v11 = vsel %vm1065_vm6, %v26713_v27, %v26709_v38  ;;  %v26720_v2 = vld [vmem:[#allocation75_spill] sm:$0xff] }
 0x329   :  { %v25615_v21 = vadd.f32 %v21918_v6, %v21880_v53  ;;  %v25617_v45 = vpop.permute.xlu0 %21931  ;;  %v22302_v9 = vsel %vm1153_vm10, %v26715_v34, %v26714_v56  ;;  %v22303_v0 = vsel %vm1153_vm10, %v26717_v32, %v26716_v40  ;;  %v22299_v25 = vsel %vm1153_vm10, %v26714_v56, %v26720_v2  ;;  %v26724_v56 = vld [vmem:[#allocation127_spill] sm:$0xff] }
 0x32a   :  { %v21925_v61 = vadd.f32 %v21916_v1, %v25359_v50  ;;  %v25629_v52 = vadd.f32 %v21917_v48, %v25475_v51  ;;  %v21897_v53 = vpop.permute.xlu1 %21896  ;;  %v26718_v51 = vld [vmem:[#allocation74_spill] sm:$0xff]  ;;  %v25663_v48 = vmul.f32 %v26705_v33, %v22254_v30  ;;  %v25666_v27 = vmul.f32 %v26705_v33, %v22260_v11 }
 0x32b   :  { %v21901_v38 = vsel %vm1153_vm10, %v25462_v62, %v21897_v53  ;;  %v21907_v50 = vsel %vm1153_vm10, %v21897_v53, %v25477_v7  ;;  %22739 = vrot.lane.b32.xlu0 %v24657_v31, %s23594_s24  ;;  %v22304_v6 = vsel %vm1153_vm10, %v26719_v14, %v26718_v51  ;;  %v25660_v7 = vmul.f32 %v26705_v33, %v22259_v55 }
 0x32c   :  { %v21914_v1 = vmul.f32 %v25465_v24, %v21901_v38  ;;  %v21915_v62 = vmul.f32 %v25465_v24, %v21907_v50  ;;  %22733 = vrot.lane.b32.xlu1 %v24601_v39, %s23594_s24  ;;  %26722 = vst [vmem:[#allocation93_spill] sm:$0xff] %v25663_v48  ;;  %26723 = vst [vmem:[#allocation98_spill] sm:$0xff] %v25666_v27  ;;  %v25671_v37 = vstv %s25569_s2  ;;  %v26736_v27 = vld [vmem:[#allocation84_spill] sm:$0xff] }
 0x32d   :  { %26721 = vst [vmem:[#allocation97_spill] sm:$0xff] %v25660_v7  ;;  %v25668_v53 = vpop.permute.xlu0 %21935  ;;  %v25674_v38 = vmul.f32 %v26724_v56, %v22302_v9  ;;  %v22305_v24 = vsel %vm1153_vm10, %v26720_v2, %v26715_v34  ;;  %v25687_v33 = vmul.f32 %v26724_v56, %v22303_v0  ;;  %v25690_v11 = vmul.f32 %v26724_v56, %v22304_v6  ;;  %v26728_v6 = vld [vmem:[#allocation77_spill] sm:$0xff] }
 0x32e   :  { %v25681_v55 = vadd.f32 %v21914_v1, %v25394_v47  ;;  %v21924_v30 = vadd.f32 %v21915_v62, %v25385_v10  ;;  %v25684_v50 = vpop.permute.xlu1 %21929  ;;  %v25693_v9 = vmul.f32 %v26724_v56, %v22299_v25  ;;  %v26727_v10 = vld [vmem:[#allocation76_spill] sm:$0xff]  ;;  %v22301_v2 = vsel %vm1153_vm10, %v26718_v51, %v26728_v6  ;;  %v26730_v62 = vld [vmem:[#allocation81_spill] sm:$0xff]  ;;  %v26733_v51 = vld [vmem:[#allocation79_spill] sm:$0xff] }
 0x32f   :  { %26725 = vst [vmem:[#allocation99_spill] sm:$0xff] %v25687_v33  ;;  %26726 = vst [vmem:[#allocation94_spill] sm:$0xff] %v25690_v11  ;;  %v21950_v34 = vsel %vm26445_vm11, %v25684_v50, %v25668_v53  ;;  %22743 = vrot.lane.b32.xlu0 %v24677_v5, %s23594_s24  ;;  %v22300_v47 = vsel %vm1153_vm10, %v26716_v40, %v26727_v10  ;;  %v22306_v0 = vsel %vm1153_vm10, %v26727_v10, %v26717_v32  ;;  %v26731_v32 = vld [vmem:[#allocation78_spill] sm:$0xff] }
 0x330   :  { %v21957_v25 = vmul.f32 %v25671_v37, %v21950_v34  ;;  %22737 = vrot.lane.b32.xlu1 %v24614_v4, %s23594_s24  ;;  %v25717_v1 = vmul.f32 %v26724_v56, %v22305_v24  ;;  %v22307_v40 = vsel %vm1153_vm10, %v26728_v6, %v26719_v14  ;;  %v22349_v10 = vsel %vm26445_vm11, %v26731_v32, %v26730_v62  ;;  %v26732_v33 = vld [vmem:[#allocation82_spill] sm:$0xff]  ;;  %v26735_v24 = vld [vmem:[#allocation80_spill] sm:$0xff] }
 0x331   :  { %v22350_v34 = vsel %vm26445_vm11, %v26733_v51, %v26732_v33  ;;  %v25731_v7 = vpop.permute.xlu0 %21939  ;;  %v22351_v26 = vsel %vm26445_vm11, %v26735_v24, %v26734_v20  ;;  %v22346_v14 = vsel %vm26445_vm11, %v26730_v62, %v26736_v27  ;;  %v22352_v6 = vsel %vm26445_vm11, %v26736_v27, %v26731_v32  ;;  %v26740_v27 = vld [vmem:[#allocation131_spill] sm:$0xff] }
 0x332   :  { %26729 = vst [vmem:[#allocation100_spill] sm:$0xff] %v25717_v1  ;;  %v21966_v48 = vadd.f32 %v21957_v25, %v25577_v18  ;;  %v25746_v42 = vpop.permute.xlu1 %21933  ;;  %v25749_v11 = vmul.f32 %v26724_v56, %v22300_v47  ;;  %v25752_v1 = vmul.f32 %v26724_v56, %v22306_v0  ;;  %v25755_v8 = vmul.f32 %v26724_v56, %v22301_v2  ;;  %v26741_v25 = vld [vmem:[#allocation132_spill] sm:$0xff] }
 0x333   :  { %v21952_v62 = vsel %vm26445_vm11, %v25746_v42, %v25731_v7  ;;  %22776 = vrot.lane.b32.xlu0 %v24588_v59, %s23595_s25  ;;  %v25764_v18 = vmul.f32 %v26724_v56, %v22307_v40  ;;  %v25767_v47 = vmul.f32 %v26740_v27, %v22349_v10  ;;  %v25774_v2 = vmul.f32 %v26740_v27, %v22350_v34  ;;  %v26745_v10 = vld [vmem:[#allocation85_spill] sm:$0xff] }
 0x334   :  { %26737 = vst [vmem:[#allocation101_spill] sm:$0xff] %v25752_v1  ;;  %26738 = vst [vmem:[#allocation104_spill] sm:$0xff] %v25755_v8  ;;  %v22016_v0 = vadd.f32 %v26741_v25, %v21966_v48  ;;  %v21963_v32 = vmul.f32 %v25671_v37, %v21952_v62  ;;  %22741 = vrot.lane.b32.xlu1 %v26676_v35, %s23594_s24  ;;  %v25777_v1 = vmul.f32 %v26740_v27, %v22351_v26  ;;  %v26746_v62 = vld [vmem:[#allocation141_spill] sm:$0xff] }
 0x335   :  { %26739 = vst [vmem:[#allocation95_spill] sm:$0xff] %v25764_v18  ;;  %26742 = vst [vmem:[#allocation106_spill] sm:$0xff] %v25774_v2  ;;  %v25780_v8 = vmul.f32 %v26740_v27, %v22346_v14  ;;  %v25783_v56 = vmul.f32 %v26740_v27, %v22352_v6  ;;  %v21944_v40 = vpop.permute.xlu0 %21943  ;;  %v22347_v48 = vsel %vm26445_vm11, %v26732_v33, %v26745_v10  ;;  %v26747_v14 = vld [vmem:[#allocation86_spill] sm:$0xff] }
 0x336   :  { %26743 = vst [vmem:[#allocation108_spill] sm:$0xff] %v25777_v1  ;;  %v22063_v25 = vadd.f32 %v26746_v62, %v22016_v0  ;;  %v21972_v18 = vadd.f32 %v21963_v32, %v21925_v61  ;;  %v21954_v26 = vsel %vm26445_vm11, %v21944_v40, %v25617_v45  ;;  %v21938_v34 = vpop.permute.xlu1 %21937  ;;  %v22348_v6 = vsel %vm26445_vm11, %v26734_v20, %v26747_v14  ;;  %v26748_v0 = vld [vmem:[#allocation42_spill] sm:$0xff]  ;;  %v26749_v62 = vld [vmem:[#allocation136_spill] sm:$0xff] }
 0x337   :  { %26744 = vst [vmem:[#allocation109_spill] sm:$0xff] %v25783_v56  ;;  %v21962_v2 = vmul.f32 %v25671_v37, %v21954_v26  ;;  %v21948_v33 = vsel %vm26445_vm11, %v21938_v34, %v21944_v40  ;;  %v21951_v61 = vsel %vm26445_vm11, %v25617_v45, %v21938_v34  ;;  %22780 = vrot.lane.b32.xlu0 %v24601_v39, %s23595_s25 }
 0x338   :  { %v22110_v32 = vadd.f32 %v26748_v0, %v22063_v25  ;;  %v22022_v1 = vadd.f32 %v26749_v62, %v21972_v18  ;;  %v21960_v20 = vmul.f32 %v25671_v37, %v21951_v61  ;;  %v21961_v26 = vmul.f32 %v25671_v37, %v21948_v33  ;;  %22745 = vrot.lane.b32.xlu1 %v26679_v57, %s23594_s24  ;;  %v26751_v33 = vld [vmem:[#allocation152_spill] sm:$0xff]  ;;  %v26752_v0 = vld [vmem:[#allocation145_spill] sm:$0xff] }
 0x339   :  { %v25819_v45 = vsel %vm26445_vm11, %v26745_v10, %v26733_v51  ;;  %v25822_v40 = vmul.f32 %v26740_v27, %v22347_v48  ;;  %v22354_v18 = vsel %vm26445_vm11, %v26747_v14, %v26735_v24  ;;  %v21971_v25 = vadd.f32 %v21962_v2, %v21924_v30  ;;  %v25828_v34 = vpop.permute.xlu0 %22429  ;;  %v26755_v2 = vld [vmem:[#allocation129_spill] sm:$0xff] }
 0x33a   :  { %26750 = vst [vmem:[#allocation103_spill] sm:$0xff] %v25819_v45  ;;  %v22157_v61 = vadd.f32 %v26751_v33, %v22110_v32  ;;  %v22069_v62 = vadd.f32 %v26752_v0, %v22022_v1  ;;  %v21969_v56 = vadd.f32 %v21960_v20, %v25528_v46  ;;  %v21970_v51 = vadd.f32 %v21961_v26, %v25681_v55  ;;  %v21942_v10 = vpop.permute.xlu1 %21941  ;;  %v26753_v45 = vld [vmem:[#allocation135_spill] sm:$0xff]  ;;  %v26754_v55 = vld [vmem:[#allocation134_spill] sm:$0xff] }
 0x33b   :  { %v25835_v48 = vmul.f32 %v26740_v27, %v22348_v6  ;;  %v22021_v39 = vadd.f32 %v26753_v45, %v21971_v25  ;;  %v21947_v30 = vsel %vm26445_vm11, %v25668_v53, %v21942_v10  ;;  %v21953_v24 = vsel %vm26445_vm11, %v21942_v10, %v25684_v50  ;;  %22784 = vrot.lane.b32.xlu0 %v24614_v4, %s23595_s25  ;;  %v26756_v53 = vld [vmem:[#allocation44_spill] sm:$0xff]  ;;  %v26759_v33 = vld [vmem:[#allocation143_spill] sm:$0xff] }
 0x33c   :  { %v25847_v46 = vmul.f32 %v26740_v27, %v22354_v18  ;;  %v22019_v1 = vadd.f32 %v26754_v55, %v21969_v56  ;;  %v22020_v14 = vadd.f32 %v26755_v2, %v21970_v51  ;;  %v21958_v6 = vmul.f32 %v25671_v37, %v21947_v30  ;;  %22778 = vrot.lane.b32.xlu1 %v24621_v41, %s23595_s25  ;;  %v26757_v50 = vld [vmem:[#allocation144_spill] sm:$0xff]  ;;  %v26758_v18 = vld [vmem:[#allocation114_spill] sm:$0xff]  ;;  %v26760_v0 = vld [vmem:[#allocation139_spill] sm:$0xff] }
 0x33d   :  { %v22116_v32 = vadd.f32 %v26756_v53, %v22069_v62  ;;  %v22068_v20 = vadd.f32 %v26757_v50, %v22021_v39  ;;  %v21959_v26 = vmul.f32 %v25671_v37, %v21953_v24  ;;  %v25857_v45 = vpop.permute.xlu0 %22433  ;;  %v22177_v25 = vadd.f32 %v26758_v18, %v22157_v61  ;;  %v26761_v24 = vld [vmem:[#allocation47_spill] sm:$0xff]  ;;  %v26764_v50 = vld [vmem:[#allocation133_spill] sm:$0xff] }
 0x33e   :  { %v22066_v56 = vadd.f32 %v26759_v33, %v22019_v1  ;;  %v22067_v51 = vadd.f32 %v26760_v0, %v22020_v14  ;;  %v21967_v10 = vadd.f32 %v21958_v6, %v25579_v63  ;;  %v21946_v30 = vpop.permute.xlu1 %21945  ;;  %v25864_v55 = vstv %s25793_s4  ;;  %v26762_v1 = vld [vmem:[#allocation41_spill] sm:$0xff]  ;;  %v26763_v6 = vld [vmem:[#allocation128_spill] sm:$0xff] }
 0x33f   :  { %v21968_v2 = vadd.f32 %v21959_v26, %v25567_v12  ;;  %v21949_v39 = vsel %vm26445_vm11, %v25731_v7, %v21946_v30  ;;  %v21955_v62 = vsel %vm26445_vm11, %v21946_v30, %v25746_v42  ;;  %22788 = vrot.lane.b32.xlu0 %v26676_v35, %s23595_s25  ;;  %v25876_v61 = vstv %s25807_s17 }
 0x340   :  { %v22115_v63 = vadd.f32 %v26761_v24, %v22068_v20  ;;  %v22114_v14 = vadd.f32 %v26762_v1, %v22067_v51  ;;  %v22017_v53 = vadd.f32 %v26763_v6, %v21967_v10  ;;  %v21964_v12 = vmul.f32 %v25671_v37, %v21949_v39  ;;  %22782 = vrot.lane.b32.xlu1 %v24638_v23, %s23595_s25  ;;  %v26765_v20 = vld [vmem:[#allocation43_spill] sm:$0xff]  ;;  %v26766_v51 = vld [vmem:[#allocation149_spill] sm:$0xff]  ;;  %v26767_v10 = vld [vmem:[#allocation138_spill] sm:$0xff] }
 0x341   :  { %v22163_v7 = vadd.f32 %v25424_v44, %v22116_v32  ;;  %v22018_v42 = vadd.f32 %v26764_v50, %v21968_v2  ;;  %v21965_v26 = vmul.f32 %v25671_v37, %v21955_v62  ;;  %v25887_v18 = vpop.permute.xlu0 %22437  ;;  %v22224_v33 = vadd.f32 %v25480_v22, %v22177_v25  ;;  %v26768_v6 = vld [vmem:[#allocation142_spill] sm:$0xff]  ;;  %v26773_v50 = vld [vmem:[#allocation137_spill] sm:$0xff] }
 0x342   :  { %v22113_v0 = vadd.f32 %v26765_v20, %v22066_v56  ;;  %v22161_v30 = vadd.f32 %v26766_v51, %v22114_v14  ;;  %v22064_v24 = vadd.f32 %v26767_v10, %v22017_v53  ;;  %v21973_v39 = vadd.f32 %v21964_v12, %v25629_v52  ;;  %v25894_v1 = vpop.permute.xlu1 %22431  ;;  %v26769_v52 = vld [vmem:[#allocation147_spill] sm:$0xff]  ;;  %v26770_v2 = vld [vmem:[#allocation130_spill] sm:$0xff]  ;;  %v26771_v14 = vld [vmem:[#allocation113_spill] sm:$0xff] }
 0x343   :  { %v22065_v44 = vadd.f32 %v26768_v6, %v22018_v42  ;;  %v21974_v32 = vadd.f32 %v21965_v26, %v25615_v21  ;;  %v22451_v37 = vsel %vm430_vm15, %v25894_v1, %v25887_v18  ;;  %22792 = vrot.lane.b32.xlu0 %v26679_v57, %s23595_s25  ;;  %v22271_v22 = vadd.f32 %v25545_v13, %v22224_v33  ;;  %v26772_v21 = vld [vmem:[#allocation46_spill] sm:$0xff]  ;;  %v26774_v13 = vld [vmem:[#allocation119_spill] sm:$0xff]  ;;  %v26776_v51 = vld [vmem:[#allocation140_spill] sm:$0xff] }
 0x344   :  { %v25906_v25 = vadd.f32 %v25420_v15, %v22115_v63  ;;  %v22111_v56 = vadd.f32 %v26769_v52, %v22064_v24  ;;  %v22023_v62 = vadd.f32 %v26770_v2, %v21973_v39  ;;  %v22181_v53 = vadd.f32 %v26771_v14, %v22161_v30  ;;  %22786 = vrot.lane.b32.xlu1 %v24657_v31, %s23595_s25  ;;  %v26775_v15 = vld [vmem:[#allocation148_spill] sm:$0xff] }
 0x345   :  { %v22112_v12 = vadd.f32 %v26772_v21, %v22065_v44  ;;  %v22024_v42 = vadd.f32 %v26773_v50, %v21974_v32  ;;  %v22442_v26 = vpop.permute.xlu0 %22441  ;;  %v22318_v20 = vadd.f32 %v25674_v38, %v22271_v22  ;;  %v22183_v33 = vadd.f32 %v26774_v13, %v22163_v7  ;;  %v26777_v44 = vld [vmem:[#allocation146_spill] sm:$0xff]  ;;  %v26778_v7 = vld [vmem:[#allocation45_spill] sm:$0xff] }
 0x346   :  { %v22158_v63 = vadd.f32 %v26775_v15, %v22111_v56  ;;  %v22070_v10 = vadd.f32 %v26776_v51, %v22023_v62  ;;  %v22228_v24 = vadd.f32 %v25516_v60, %v22181_v53  ;;  %v22453_v30 = vsel %vm430_vm15, %v22442_v26, %v25828_v34  ;;  %v22436_v39 = vpop.permute.xlu1 %22435  ;;  %v26779_v56 = vld [vmem:[#allocation116_spill] sm:$0xff]  ;;  %v26781_v53 = vld [vmem:[#allocation117_spill] sm:$0xff]  ;;  %v26782_v50 = vld [vmem:[#allocation150_spill] sm:$0xff] }
 0x347   :  { %v22159_v6 = vadd.f32 %v25412_v29, %v22112_v12  ;;  %v22071_v32 = vadd.f32 %v26777_v44, %v22024_v42  ;;  %v22365_v52 = vadd.f32 %v25767_v47, %v22318_v20  ;;  %v22457_v38 = vmul.f32 %v25864_v55, %v22453_v30  ;;  %22825 = vrot.lane.b32.xlu0 %v24621_v41, %s23596_s26  ;;  %v26780_v29 = vld [vmem:[#allocation48_spill] sm:$0xff]  ;;  %v26787_v44 = vld [vmem:[#allocation94_spill] sm:$0xff] }
 0x348   :  { %v22117_v22 = vadd.f32 %v26778_v7, %v22070_v10  ;;  %v22275_v60 = vadd.f32 %v25613_v19, %v22228_v24  ;;  %v22178_v2 = vadd.f32 %v26779_v56, %v22158_v63  ;;  %v22447_v62 = vsel %vm430_vm15, %v22436_v39, %v22442_v26  ;;  %22790 = vrot.lane.b32.xlu1 %v24677_v5, %s23595_s25  ;;  %v26785_v24 = vld [vmem:[#allocation90_spill] sm:$0xff] }
 0x349   :  { %v22118_v14 = vadd.f32 %v26780_v29, %v22071_v32  ;;  %v25937_v47 = vadd.f32 %v22457_v38, %v22365_v52  ;;  %v22179_v21 = vadd.f32 %v26781_v53, %v22159_v6  ;;  %v22450_v41 = vsel %vm430_vm15, %v25828_v34, %v22436_v39  ;;  %v22446_v12 = vpop.permute.xlu0 %22445  ;;  %v26786_v6 = vld [vmem:[#allocation100_spill] sm:$0xff]  ;;  %v26791_v29 = vld [vmem:[#allocation109_spill] sm:$0xff] }
 0x34a   :  { %v22160_v19 = vadd.f32 %v25416_v3, %v22113_v0  ;;  %v22164_v42 = vadd.f32 %v26782_v50, %v22117_v22  ;;  %v22322_v26 = vadd.f32 %v25749_v11, %v22275_v60  ;;  %v22225_v20 = vadd.f32 %v25510_v43, %v22178_v2  ;;  %v22440_v13 = vpop.permute.xlu1 %22439  ;;  %v26783_v11 = vld [vmem:[#allocation120_spill] sm:$0xff]  ;;  %v26789_v60 = vld [vmem:[#allocation93_spill] sm:$0xff]  ;;  %v26790_v2 = vld [vmem:[#allocation102_spill] sm:$0xff] }
 0x34b   :  { %v22165_v15 = vadd.f32 %v25432_v36, %v22118_v14  ;;  %v22461_v63 = vmul.f32 %v25864_v55, %v22451_v37  ;;  %v22226_v51 = vadd.f32 %v25513_v28, %v22179_v21  ;;  %v22230_v10 = vadd.f32 %v25500_v58, %v22183_v33  ;;  %22829 = vrot.lane.b32.xlu0 %v24638_v23, %s23596_s26  ;;  %v26784_v23 = vld [vmem:[#allocation121_spill] sm:$0xff]  ;;  %v26788_v32 = vld [vmem:[#allocation92_spill] sm:$0xff]  ;;  %v26794_v50 = vld [vmem:[#allocation122_spill] sm:$0xff] }
 0x34c   :  { %v22369_v3 = vadd.f32 %v25822_v40, %v22322_v26  ;;  %v22272_v34 = vadd.f32 %v25599_v49, %v22225_v20  ;;  %v22455_v43 = vsel %vm430_vm15, %v22446_v12, %v25857_v45  ;;  %v22184_v0 = vadd.f32 %v26783_v11, %v22164_v42  ;;  %22823 = vrot.lane.b32.xlu1 %v24588_v59, %s23596_s26  ;;  %v26792_v53 = vld [vmem:[#allocation108_spill] sm:$0xff] }
 0x34d   :  { %v22273_v36 = vadd.f32 %v25606_v54, %v22226_v51  ;;  %v22277_v58 = vadd.f32 %v25596_v17, %v22230_v10  ;;  %v22463_v28 = vmul.f32 %v25864_v55, %v22455_v43  ;;  %v22185_v37 = vadd.f32 %v26784_v23, %v22165_v15  ;;  %v25965_v40 = vpop.permute.xlu0 %22478  ;;  %v26797_v10 = vld [vmem:[#allocation95_spill] sm:$0xff] }
 0x34e   :  { %v25967_v49 = vadd.f32 %v22461_v63, %v22369_v3  ;;  %v22319_v33 = vadd.f32 %v25693_v9, %v22272_v34  ;;  %v22231_v30 = vadd.f32 %v26785_v24, %v22184_v0  ;;  %v22449_v39 = vsel %vm430_vm15, %v22440_v13, %v22446_v12  ;;  %v22444_v59 = vpop.permute.xlu1 %22443  ;;  %v26793_v12 = vld [vmem:[#allocation98_spill] sm:$0xff]  ;;  %v26798_v34 = vld [vmem:[#allocation91_spill] sm:$0xff] }
 0x34f   :  { %v22320_v54 = vadd.f32 %v26786_v6, %v22273_v36  ;;  %v22324_v17 = vadd.f32 %v26787_v44, %v22277_v58  ;;  %v22232_v52 = vadd.f32 %v26788_v32, %v22185_v37  ;;  %v22452_v38 = vsel %vm430_vm15, %v25857_v45, %v22440_v13  ;;  %22833 = vrot.lane.b32.xlu0 %v24657_v31, %s23596_s26  ;;  %v26799_v0 = vld [vmem:[#allocation50_spill] sm:$0xff]  ;;  %v26801_v37 = vld [vmem:[#allocation103_spill] sm:$0xff] }
 0x350   :  { %v22366_v9 = vadd.f32 %v25780_v8, %v22319_v33  ;;  %v22458_v7 = vmul.f32 %v25864_v55, %v22450_v41  ;;  %v22459_v22 = vmul.f32 %v25864_v55, %v22447_v62  ;;  %v22278_v56 = vadd.f32 %v26789_v60, %v22231_v30  ;;  %22827 = vrot.lane.b32.xlu1 %v26790_v2, %s23596_s26  ;;  %v26795_v8 = vld [vmem:[#allocation104_spill] sm:$0xff]  ;;  %v26796_v41 = vld [vmem:[#allocation123_spill] sm:$0xff]  ;;  %v26802_v30 = vld [vmem:[#allocation97_spill] sm:$0xff] }
 0x351   :  { %v22367_v14 = vadd.f32 %v26791_v29, %v22320_v54  ;;  %v22371_v21 = vadd.f32 %v26792_v53, %v22324_v17  ;;  %v22279_v45 = vadd.f32 %v26793_v12, %v22232_v52  ;;  %v22180_v42 = vadd.f32 %v26794_v50, %v22160_v19  ;;  %v22483_v31 = vpop.permute.xlu0 %22482  ;;  %v26803_v54 = vld [vmem:[#allocation99_spill] sm:$0xff]  ;;  %v26804_v17 = vld [vmem:[#allocation101_spill] sm:$0xff] }
 0x352   :  { %v22467_v26 = vadd.f32 %v22458_v7, %v22366_v9  ;;  %v22325_v20 = vadd.f32 %v26795_v8, %v22278_v56  ;;  %v22182_v62 = vadd.f32 %v26796_v41, %v25906_v25  ;;  %v22448_v13 = vsel %vm430_vm15, %v25887_v18, %v22444_v59  ;;  %v22477_v15 = vpop.permute.xlu1 %22476  ;;  %v26805_v9 = vld [vmem:[#allocation106_spill] sm:$0xff] }
 0x353   :  { %v22468_v63 = vadd.f32 %v22459_v22, %v22367_v14  ;;  %v22472_v51 = vadd.f32 %v22463_v28, %v22371_v21  ;;  %v22326_v3 = vadd.f32 %v26797_v10, %v22279_v45  ;;  %v22227_v43 = vadd.f32 %v26798_v34, %v22180_v42  ;;  %22837 = vrot.lane.b32.xlu0 %v24677_v5, %s23596_s26  ;;  %v26800_v28 = vld [vmem:[#allocation96_spill] sm:$0xff] }
 0x354   :  { %v22372_v19 = vadd.f32 %v25835_v48, %v22325_v20  ;;  %v22464_v11 = vmul.f32 %v25864_v55, %v22452_v38  ;;  %v22229_v25 = vadd.f32 %v26799_v0, %v22182_v62  ;;  %v22454_v18 = vsel %vm430_vm15, %v22444_v59, %v25894_v1  ;;  %22831 = vrot.lane.b32.xlu1 %v24614_v4, %s23596_s26 }
 0x355   :  { %v22373_v36 = vadd.f32 %v25847_v46, %v22326_v3  ;;  %v22465_v58 = vmul.f32 %v25864_v55, %v22449_v39  ;;  %v22274_v23 = vadd.f32 %v26800_v28, %v22227_v43  ;;  %v22497_v5 = vsel %vm518_vm2, %v22477_v15, %v22483_v31  ;;  %v22487_v48 = vpop.permute.xlu0 %22486 }
 0x356   :  { %v22361_v33 = vmul.f32 %v26740_v27, %v26801_v37  ;;  %v22473_v24 = vadd.f32 %v22464_v11, %v22372_v19  ;;  %v22276_v6 = vadd.f32 %v26802_v30, %v22229_v25  ;;  %v22505_v1 = vmul.f32 %v25876_v61, %v22497_v5  ;;  %v22481_v59 = vpop.permute.xlu1 %22480 }
 0x357   :  { %v22474_v4 = vadd.f32 %v22465_v58, %v22373_v36  ;;  %v22321_v46 = vadd.f32 %v26803_v54, %v22274_v23  ;;  %v22460_v39 = vmul.f32 %v25864_v55, %v22454_v18  ;;  %v22499_v44 = vsel %vm518_vm2, %v22481_v59, %v22487_v48 }
 0x358   :  { %v22323_v32 = vadd.f32 %v26804_v17, %v22276_v6  ;;  %v22462_v52 = vmul.f32 %v25864_v55, %v22448_v13  ;;  %v22514_v38 = vadd.f32 %v22505_v1, %v22467_v26  ;;  %v22511_v27 = vmul.f32 %v25876_v61, %v22499_v44  ;;  %22835 = vrot.lane.b32.xlu1 %v26676_v35, %s23596_s26 }
 0x359   :  { %v22368_v7 = vadd.f32 %v26805_v9, %v22321_v46  ;;  %v22491_v22 = vpop.permute.xlu0 %22490  ;;  %v22550_v11 = vstv %s23462_s18  ;;  %vm26812_vm15 = vcmask 1046528  }
 0x35a   :  { %v22370_v60 = vadd.f32 %v22361_v33, %v22323_v32  ;;  %v22520_v56 = vadd.f32 %v22511_v27, %v22473_v24  ;;  %v22501_v2 = vsel %vm518_vm2, %v22491_v22, %v25965_v40  ;;  %v22485_v29 = vpop.permute.xlu1 %22484 }
 0x35b   :  { %v22469_v14 = vadd.f32 %v22460_v39, %v22368_v7  ;;  %v22507_v53 = vmul.f32 %v25876_v61, %v22501_v2  ;;  %v22495_v55 = vsel %vm518_vm2, %v22485_v29, %v22491_v22  ;;  %v22498_v35 = vsel %vm518_vm2, %v25965_v40, %v22485_v29 }
 0x35c   :  { %v22471_v21 = vadd.f32 %v22462_v52, %v22370_v60  ;;  %v22508_v12 = vmul.f32 %v25876_v61, %v22498_v35  ;;  %v22509_v45 = vmul.f32 %v25876_v61, %v22495_v55  ;;  %22839 = vrot.lane.b32.xlu1 %v26679_v57, %s23596_s26  ;;  %v22597_v29 = vstv %s23463_s19 }
 0x35d   :  { %v22516_v50 = vadd.f32 %v22507_v53, %v22469_v14  ;;  %v22524_v42 = vpop.permute.xlu0 %22523 }
 0x35e   :  { %v22517_v26 = vadd.f32 %v22508_v12, %v25967_v49  ;;  %v22518_v8 = vadd.f32 %v22509_v45, %v22471_v21  ;;  %v22489_v20 = vpop.permute.xlu1 %22488 }
 0x35f   :  { %v22494_v41 = vsel %vm518_vm2, %v22483_v31, %v22489_v20  ;;  %v22500_v40 = vsel %vm518_vm2, %v22489_v20, %v22477_v15  ;;  %v26806_v20 = vld [vmem:[#allocation37_spill] sm:$0xff] }
 0x360   :  { %v22504_v62 = vmul.f32 %v25876_v61, %v22500_v40  ;;  %v22506_v13 = vmul.f32 %v25876_v61, %v22494_v41 }
 0x361   :  { %v22528_v10 = vpop.permute.xlu0 %22527 }
 0x362   :  { %v22513_v57 = vadd.f32 %v22504_v62, %v25937_v47  ;;  %v22515_v3 = vadd.f32 %v22506_v13, %v22468_v63  ;;  %v22493_v34 = vpop.permute.xlu1 %22492 }
 0x363   :  { %v22496_v49 = vsel %vm518_vm2, %v22487_v48, %v22493_v34  ;;  %v22502_v43 = vsel %vm518_vm2, %v22493_v34, %v22481_v59  ;;  %vm26817_vm2 = vmmov %vm26812_vm15 }
 0x364   :  { %v22510_v31 = vmul.f32 %v25876_v61, %v22502_v43  ;;  %v22512_v19 = vmul.f32 %v25876_v61, %v22496_v49  ;;  %v26807_v49 = vld [vmem:[#allocation40_spill] sm:$0xff] }
 0x365   :  { %v22532_v15 = vpop.permute.xlu0 %22531 }
 0x366   :  { %v22519_v0 = vadd.f32 %v22510_v31, %v22472_v51  ;;  %v22521_v25 = vadd.f32 %v22512_v19, %v22474_v4  ;;  %v22526_v18 = vpop.permute.xlu1 %22525 }
 0x367   :  { %v22545_v47 = vsel %vm606_vm5, %v22526_v18, %v22532_v15 }
 0x368   :  { %v22555_v63 = vmul.f32 %v22550_v11, %v22545_v47  ;;  %v26810_v47 = vld [vmem:[#allocation30_spill] sm:$0xff] }
 0x369   :  { %v22536_v36 = vpop.permute.xlu0 %22535 }
 0x36a   :  { %v22564_v58 = vadd.f32 %v22555_v63, %v22517_v26  ;;  %v22547_v28 = vsel %vm606_vm5, %v22536_v36, %v22524_v42  ;;  %v22530_v23 = vpop.permute.xlu1 %22529  ;;  %v26811_v63 = vrot.slane %v26810_v47, 1 }
 0x36b   :  { %v22551_v5 = vmul.f32 %v22550_v11, %v22547_v28  ;;  %v22541_v48 = vsel %vm606_vm5, %v22530_v23, %v22536_v36  ;;  %v22544_v61 = vsel %vm606_vm5, %v22524_v42, %v22530_v23 }
 0x36c   :  { %v22552_v51 = vmul.f32 %v22550_v11, %v22544_v61  ;;  %v22553_v37 = vmul.f32 %v22550_v11, %v22541_v48  ;;  %v26813_v48 = vld [vmem:[#allocation33_spill] sm:$0xff] }
 0x36d   :  { %v22560_v33 = vadd.f32 %v22551_v5, %v22513_v57  ;;  %v22540_v24 = vpop.permute.xlu0 %22539  ;;  %v26814_v61 = vrot.slane %v26813_v48, 1 }
 0x36e   :  { %v22561_v30 = vadd.f32 %v22552_v51, %v22514_v38  ;;  %v22562_v6 = vadd.f32 %v22553_v37, %v22515_v3  ;;  %v22549_v1 = vsel %vm606_vm5, %v22540_v24, %v22528_v10  ;;  %v22534_v59 = vpop.permute.xlu1 %22533  ;;  %v26815_v51 = vld [vmem:[#allocation32_spill] sm:$0xff] }
 0x36f   :  { %v22557_v4 = vmul.f32 %v22550_v11, %v22549_v1  ;;  %v22543_v54 = vsel %vm606_vm5, %v22534_v59, %v22540_v24  ;;  %v22546_v46 = vsel %vm606_vm5, %v22528_v10, %v22534_v59  ;;  %v26818_v59 = vld [vmem:[#allocation39_spill] sm:$0xff] }
 0x370   :  { %v22558_v39 = vmul.f32 %v22550_v11, %v22546_v46  ;;  %v22559_v44 = vmul.f32 %v22550_v11, %v22543_v54 }
 0x371   :  { %v22566_v17 = vadd.f32 %v22557_v4, %v22519_v0  ;;  %v22573_v32 = vpop.permute.xlu0 %22572 }
 0x372   :  { %v22567_v52 = vadd.f32 %v22558_v39, %v22520_v56  ;;  %v22568_v27 = vadd.f32 %v22559_v44, %v22521_v25  ;;  %v22538_v9 = vpop.permute.xlu1 %22537  ;;  %v26808_v25 = vld [vmem:[#allocation31_spill] sm:$0xff] }
 0x373   :  { %v22542_v38 = vsel %vm606_vm5, %v22532_v15, %v22538_v9  ;;  %v22548_v7 = vsel %vm606_vm5, %v22538_v9, %v22526_v18  ;;  %v26809_v18 = vrot.slane %v26808_v25, 1  ;;  %vm26823_vm5 = vcmp.lt.s32.totalorder %v23699_v16, 127 }
 0x374   :  { %v22554_v22 = vmul.f32 %v22550_v11, %v22548_v7  ;;  %v22556_v60 = vmul.f32 %v22550_v11, %v22542_v38  ;;  %v26819_v7 = vld [vmem:[#allocation34_spill] sm:$0xff] }
 0x375   :  { %v22577_v2 = vpop.permute.xlu0 %22576  ;;  %v22652_v36 = vsel %vm26812_vm15, %v26811_v63, %v26809_v18 }
 0x376   :  { %v22563_v14 = vadd.f32 %v22554_v22, %v22516_v50  ;;  %v22565_v53 = vadd.f32 %v22556_v60, %v22518_v8  ;;  %v22571_v55 = vpop.permute.xlu1 %22570  ;;  %v26820_v60 = vld [vmem:[#allocation35_spill] sm:$0xff] }
 0x377   :  { %v22591_v35 = vsel %vm694_vm3, %v22571_v55, %v22577_v2 }
 0x378   :  { %v22599_v21 = vmul.f32 %v22597_v29, %v22591_v35 }
 0x379   :  { %v22581_v56 = vpop.permute.xlu0 %22580 }
 0x37a   :  { %v22608_v12 = vadd.f32 %v22599_v21, %v22561_v30  ;;  %v22575_v45 = vpop.permute.xlu1 %22574  ;;  %v26822_v21 = vld [vmem:[#allocation36_spill] sm:$0xff] }
 0x37b   :  { %v22593_v42 = vsel %vm694_vm3, %v22575_v45, %v22581_v56 }
 0x37c   :  { %v22605_v26 = vmul.f32 %v22597_v29, %v22593_v42  ;;  %v26078_v41 = vadd.f32 %v26806_v20, %v22608_v12 }
 0x37d   :  { %v22585_v40 = vpop.permute.xlu0 %22584 }
 0x37e   :  { %v22614_v62 = vadd.f32 %v22605_v26, %v22567_v52  ;;  %v22595_v50 = vsel %vm694_vm3, %v22585_v40, %v22573_v32  ;;  %v22579_v8 = vpop.permute.xlu1 %22578 }
 0x37f   :  { %v22601_v13 = vmul.f32 %v22597_v29, %v22595_v50  ;;  %v22589_v10 = vsel %vm694_vm3, %v22579_v8, %v22585_v40  ;;  %v22592_v57 = vsel %vm694_vm3, %v22573_v32, %v22579_v8 }
 0x380   :  { %v22602_v3 = vmul.f32 %v22597_v29, %v22592_v57  ;;  %v22603_v34 = vmul.f32 %v22597_v29, %v22589_v10  ;;  %v26087_v43 = vadd.f32 %v26807_v49, %v22614_v62 }
 0x381   :  { %v22610_v31 = vadd.f32 %v22601_v13, %v22563_v14  ;;  %v22683_v19 = vpop.permute.xlu0 %22682 }
 0x382   :  { %v22611_v15 = vadd.f32 %v22602_v3, %v22564_v58  ;;  %v22612_v11 = vadd.f32 %v22603_v34, %v22565_v53  ;;  %v22583_v0 = vpop.permute.xlu1 %22582  ;;  %v26816_v58 = vrot.slane %v26815_v51, 1 }
 0x383   :  { %v22588_v28 = vsel %vm694_vm3, %v22577_v2, %v22583_v0  ;;  %v22594_v23 = vsel %vm694_vm3, %v22583_v0, %v22571_v55  ;;  %v26098_v5 = vadd.f32 %v22652_v36, %v22610_v31 }
 0x384   :  { %v22654_v37 = vsel %vm26817_vm2, %v26816_v58, %v26814_v61  ;;  %v22598_v24 = vmul.f32 %v22597_v29, %v22594_v23  ;;  %v22600_v30 = vmul.f32 %v22597_v29, %v22588_v28  ;;  %v26108_v4 = vadd.f32 %v26818_v59, %v22612_v11 }
 0x385   :  { %v26105_v1 = vadd.f32 %v22654_v37, %v22611_v15  ;;  %v22687_v54 = vpop.permute.xlu0 %22686 }
 0x386   :  { %v22607_v46 = vadd.f32 %v22598_v24, %v22560_v33  ;;  %v22609_v39 = vadd.f32 %v22600_v30, %v22562_v6  ;;  %v22587_v44 = vpop.permute.xlu1 %22586  ;;  %v26821_v33 = vld [vmem:[#allocation38_spill] sm:$0xff] }
 0x387   :  { %v22590_v32 = vsel %vm694_vm3, %v22581_v56, %v22587_v44  ;;  %v22596_v52 = vsel %vm694_vm3, %v22587_v44, %v22575_v45  ;;  %v22709_v56 = vstv %s23465_s20  ;;  %vm26824_vm3 = vmmov %vm26823_vm5  ;;  %v26164_v44 = vstv %s23467_s22 }
 0x388   :  { %v22604_v9 = vmul.f32 %v22597_v29, %v22596_v52  ;;  %v22606_v38 = vmul.f32 %v22597_v29, %v22590_v32  ;;  %v22674_v22 = vadd.f32 %v26819_v7, %v22609_v39  ;;  %v22672_v2 = vadd.f32 %v26820_v60, %v22607_v46  ;;  %vm26825_vm15 = vmmov %vm26824_vm3 }
 0x389   :  { %v22691_v14 = vpop.permute.xlu0 %22690  ;;  %vm26826_vm2 = vmmov %vm26824_vm3  ;;  %v26160_v46 = vstv %s23466_s21  ;;  %v26166_v32 = vstv %s23468_s6 }
 0x38a   :  { %v22613_v53 = vadd.f32 %v22604_v9, %v22566_v17  ;;  %v22615_v55 = vadd.f32 %v22606_v38, %v22568_v27  ;;  %v22685_v35 = vpop.permute.xlu1 %22684  ;;  %vm26829_vm11 = vmmov %vm26826_vm2 }
 0x38b   :  { %v22704_v36 = vsel %vm26825_vm15, %v22685_v35, %v22691_v14  ;;  %vm26830_vm15 = vmmov %vm26826_vm2 }
 0x38c   :  { %v22680_v6 = vadd.f32 %v26821_v33, %v22615_v55  ;;  %v26118_v12 = vadd.f32 %v26822_v21, %v22613_v53  ;;  %v22713_v61 = vmul.f32 %v22709_v56, %v22704_v36 }
 0x38d   :  { %v22695_v42 = vpop.permute.xlu0 %22694 }
 0x38e   :  { %v22706_v45 = vsel %vm26823_vm5, %v22695_v42, %v22683_v19  ;;  %v22689_v26 = vpop.permute.xlu1 %22688  ;;  %vm26827_vm5 = vmmov %vm26826_vm2  ;;  %v22722_v7 = vadd.f32 %v22713_v61, %v26098_v5 }
 0x38f   :  { %v22712_v29 = vmul.f32 %v22709_v56, %v22706_v45  ;;  %v22703_v28 = vsel %vm26826_vm2, %v22683_v19, %v22689_v26  ;;  %v22700_v48 = vsel %vm26827_vm5, %v22689_v26, %v22695_v42 }
 0x390   :  { %v22710_v51 = vmul.f32 %v22709_v56, %v22703_v28  ;;  %v22711_v30 = vmul.f32 %v22709_v56, %v22700_v48 }
 0x391   :  { %v26122_v20 = vadd.f32 %v22712_v29, %v22674_v22  ;;  %v22699_v40 = vpop.permute.xlu0 %22698 }
 0x392   :  { %v22708_v17 = vsel %vm26824_vm3, %v22699_v40, %v22687_v54  ;;  %v22693_v27 = vpop.permute.xlu1 %22692  ;;  %vm26828_vm3 = vmmov %vm26826_vm2  ;;  %v22719_v22 = vadd.f32 %v22710_v51, %v22672_v2  ;;  %v22720_v55 = vadd.f32 %v22711_v30, %v26078_v41 }
 0x393   :  { %v22718_v62 = vmul.f32 %v22709_v56, %v22708_v17  ;;  %v22702_v58 = vsel %vm26828_vm3, %v22693_v27, %v22699_v40  ;;  %v22705_v37 = vsel %vm26829_vm11, %v22687_v54, %v22693_v27  ;;  %vm26831_vm11 = vmmov %vm26826_vm2  ;;  %vm26832_vm2 = vcmp.lt.s32.totalorder %v23699_v16, 109 }
 0x394   :  { %v22716_v52 = vmul.f32 %v22709_v56, %v22705_v37  ;;  %v22717_v9 = vmul.f32 %v22709_v56, %v22702_v58  ;;  %vm26833_vm5 = vmmov %vm26832_vm2 }
 0x395   :  { %v26126_v50 = vadd.f32 %v22718_v62, %v22680_v6  ;;  %v22732_v8 = vpop.permute.xlu0 %22731  ;;  %vm26834_vm3 = vmmov %vm26832_vm2 }
 0x396   :  { %v22697_v13 = vpop.permute.xlu1 %22696  ;;  %v22725_v41 = vadd.f32 %v22716_v52, %v26118_v12  ;;  %v26194_v26 = vadd.f32 %v22717_v9, %v26087_v43 }
 0x397   :  { %v22701_v59 = vsel %vm26830_vm15, %v22691_v14, %v22697_v13  ;;  %v22707_v54 = vsel %vm26831_vm11, %v22697_v13, %v22685_v35  ;;  %vm26836_vm15 = vmmov %vm26832_vm2 }
 0x398   :  { %v22714_v60 = vmul.f32 %v22709_v56, %v22701_v59  ;;  %v22715_v2 = vmul.f32 %v22709_v56, %v22707_v54  ;;  %vm26837_vm11 = vmmov %vm26832_vm2 }
 0x399   :  { %v22736_v10 = vpop.permute.xlu0 %22735 }
 0x39a   :  { %v22730_v57 = vpop.permute.xlu1 %22729  ;;  %v22723_v56 = vadd.f32 %v22714_v60, %v26105_v1 }
 0x39b   :  { %v22750_v39 = vsel %vm1065_vm6, %v22730_v57, %v22736_v10 }
 0x39c   :  { %v22757_v35 = vmul.f32 %v26160_v46, %v22750_v39 }
 0x39d   :  { %v26128_v3 = vpop.permute.xlu0 %22739 }
 0x39e   :  { %v26130_v34 = vpop.permute.xlu1 %22733 }
 0x39f   :  { %v22752_v38 = vsel %vm1065_vm6, %v26130_v34, %v26128_v3 }
 0x3a0   :  { %v22763_v21 = vmul.f32 %v26160_v46, %v22752_v38 }
 0x3a1   :  { %v22744_v49 = vpop.permute.xlu0 %22743 }
 0x3a2   :  { %v22738_v31 = vpop.permute.xlu1 %22737  ;;  %v22754_v33 = vsel %vm1065_vm6, %v22744_v49, %v22732_v8 }
 0x3a3   :  { %v22751_v6 = vsel %vm1065_vm6, %v22732_v8, %v22738_v31  ;;  %v22748_v42 = vsel %vm1065_vm6, %v22738_v31, %v22744_v49  ;;  %v22762_v17 = vmul.f32 %v26160_v46, %v22754_v33  ;;  %v22766_v8 = vadd.f32 %v22757_v35, %v22719_v22 }
 0x3a4   :  { %v22760_v27 = vmul.f32 %v26160_v46, %v22751_v6  ;;  %v22761_v43 = vmul.f32 %v26160_v46, %v22748_v42  ;;  %v22772_v49 = vadd.f32 %v22763_v21, %v22725_v41 }
 0x3a5   :  { %v26132_v15 = vpop.permute.xlu0 %22776 }
 0x3a6   :  { %v22742_v11 = vpop.permute.xlu1 %22741  ;;  %v22769_v58 = vadd.f32 %v22760_v27, %v22722_v7  ;;  %v22770_v59 = vadd.f32 %v22761_v43, %v22723_v56 }
 0x3a7   :  { %v22747_v45 = vsel %vm1065_vm6, %v22736_v10, %v22742_v11  ;;  %v22753_v29 = vsel %vm1065_vm6, %v22742_v11, %v22730_v57  ;;  %v22724_v57 = vadd.f32 %v22715_v2, %v26108_v4 }
 0x3a8   :  { %v22758_v13 = vmul.f32 %v26160_v46, %v22747_v45  ;;  %v22759_v31 = vmul.f32 %v26160_v46, %v22753_v29 }
 0x3a9   :  { %v26134_v0 = vpop.permute.xlu0 %22780  ;;  %v22771_v51 = vadd.f32 %v22762_v17, %v22724_v57 }
 0x3aa   :  { %v26136_v25 = vpop.permute.xlu1 %22745  ;;  %v22767_v39 = vadd.f32 %v22758_v13, %v22720_v55  ;;  %v22768_v54 = vadd.f32 %v22759_v31, %v26122_v20 }
 0x3ab   :  { %v22749_v20 = vsel %vm1065_vm6, %v26128_v3, %v26136_v25 }
 0x3ac   :  { %v22764_v41 = vmul.f32 %v26160_v46, %v22749_v20 }
 0x3ad   :  { %v26138_v18 = vpop.permute.xlu0 %22784 }
 0x3ae   :  { %v22779_v47 = vpop.permute.xlu1 %22778 }
 0x3af   :  { %v22798_v10 = vsel %vm1153_vm10, %v22779_v47, %v26138_v18 }
 0x3b0   :  { %v22807_v37 = vmul.f32 %v26164_v44, %v22798_v10 }
 0x3b1   :  { %v26140_v63 = vpop.permute.xlu0 %22788 }
 0x3b2   :  { %v26146_v23 = vpop.permute.xlu1 %22782  ;;  %v22800_v52 = vsel %vm1153_vm10, %v26140_v63, %v26132_v15 }
 0x3b3   :  { %v22797_v14 = vsel %vm1153_vm10, %v26132_v15, %v26146_v23  ;;  %v22794_v38 = vsel %vm1153_vm10, %v26146_v23, %v26140_v63  ;;  %v22755_v63 = vsel %vm1065_vm6, %v26136_v25, %v26130_v34  ;;  %v22816_v23 = vadd.f32 %v22807_v37, %v22769_v58  ;;  %vm26835_vm6 = vmmov %vm26832_vm2 }
 0x3b4   :  { %v22804_v40 = vmul.f32 %v26164_v44, %v22797_v14  ;;  %v22806_v14 = vmul.f32 %v26164_v44, %v22800_v52  ;;  %v22805_v35 = vmul.f32 %v26164_v44, %v22794_v38  ;;  %v22765_v29 = vmul.f32 %v26160_v46, %v22755_v63 }
 0x3b5   :  { %v26154_v24 = vpop.permute.xlu0 %22792 }
 0x3b6   :  { %v26158_v19 = vpop.permute.xlu1 %22786  ;;  %v22813_v36 = vadd.f32 %v22804_v40, %v22766_v8  ;;  %v22802_v33 = vsel %vm1153_vm10, %v26154_v24, %v26134_v0  ;;  %v22815_v17 = vadd.f32 %v22806_v14, %v22768_v54  ;;  %v22814_v27 = vadd.f32 %v22805_v35, %v22767_v39 }
 0x3b7   :  { %v22799_v62 = vsel %vm1153_vm10, %v26134_v0, %v26158_v19  ;;  %v22796_v40 = vsel %vm1153_vm10, %v26158_v19, %v26154_v24  ;;  %v22812_v43 = vmul.f32 %v26164_v44, %v22802_v33  ;;  %v22774_v57 = vadd.f32 %v22765_v29, %v26126_v50 }
 0x3b8   :  { %v22810_v28 = vmul.f32 %v26164_v44, %v22799_v62  ;;  %v22811_v10 = vmul.f32 %v26164_v44, %v22796_v40 }
 0x3b9   :  { %v26179_v53 = vpop.permute.xlu0 %22825 }
 0x3ba   :  { %v22791_v5 = vpop.permute.xlu1 %22790  ;;  %v22819_v22 = vadd.f32 %v22810_v28, %v22772_v49  ;;  %v22773_v49 = vadd.f32 %v22764_v41, %v26194_v26  ;;  %v22821_v28 = vadd.f32 %v22812_v43, %v22774_v57 }
 0x3bb   :  { %v22801_v48 = vsel %vm1153_vm10, %v22791_v5, %v22779_v47  ;;  %v22795_v4 = vsel %vm1153_vm10, %v26138_v18, %v22791_v5  ;;  %vm26838_vm10 = vmmov %vm26832_vm2 }
 0x3bc   :  { %v22809_v7 = vmul.f32 %v26164_v44, %v22801_v48  ;;  %v22808_v60 = vmul.f32 %v26164_v44, %v22795_v4 }
 0x3bd   :  { %v22830_v12 = vpop.permute.xlu0 %22829 }
 0x3be   :  { %v22824_v1 = vpop.permute.xlu1 %22823  ;;  %v22818_v2 = vadd.f32 %v22809_v7, %v22771_v51  ;;  %v22817_v42 = vadd.f32 %v22808_v60, %v22770_v59 }
 0x3bf   :  { %v22844_v11 = vsel %vm26832_vm2, %v22824_v1, %v22830_v12 }
 0x3c0   :  { %v22851_v61 = vmul.f32 %v26166_v32, %v22844_v11 }
 0x3c1   :  { %v22834_v30 = vpop.permute.xlu0 %22833 }
 0x3c2   :  { %v22860_v9 = vadd.f32 %v22851_v61, %v22813_v36  ;;  %v22828_v47 = vpop.permute.xlu1 %22827 }
 0x3c3   :  { %v22846_v18 = vsel %vm26833_vm5, %v22828_v47, %v22834_v30  ;;  %vm26839_vm5 = vmmov %vm26832_vm2 }
 0x3c4   :  { %23499 = vtanh.f32 %v22860_v9  ;;  %v22857_v15 = vmul.f32 %v26166_v32, %v22846_v18 }
 0x3c5   :  { %v22838_v55 = vpop.permute.xlu0 %22837 }
 0x3c6   :  { %v22866_v6 = vadd.f32 %v22857_v15, %v22819_v22  ;;  %v22848_v3 = vsel %vm26834_vm3, %v22838_v55, %v26179_v53  ;;  %v22832_v5 = vpop.permute.xlu1 %22831 }
 0x3c7   :  { %v22856_v34 = vmul.f32 %v26166_v32, %v22848_v3  ;;  %v22842_v25 = vsel %vm26835_vm6, %v22832_v5, %v22838_v55  ;;  %v22845_v21 = vsel %vm26836_vm15, %v26179_v53, %v22832_v5 }
 0x3c8   :  { %23501 = vtanh.f32 %v22866_v6  ;;  %v22854_v0 = vmul.f32 %v26166_v32, %v22845_v21  ;;  %v22855_v45 = vmul.f32 %v26166_v32, %v22842_v25 }
 0x3c9   :  { %v22865_v56 = vadd.f32 %v22856_v34, %v22818_v2 }
 0x3ca   :  { %v22863_v62 = vadd.f32 %v22854_v0, %v22816_v23  ;;  %v22864_v53 = vadd.f32 %v22855_v45, %v22817_v42  ;;  %v22836_v8 = vpop.permute.xlu1 %22835 }
 0x3cb   :  { %23503 = vtanh.f32 %v22865_v56  ;;  %v22841_v13 = vsel %vm26837_vm11, %v22830_v12, %v22836_v8  ;;  %v22847_v46 = vsel %vm26832_vm2, %v22836_v8, %v22824_v1  ;;  %v22820_v1 = vadd.f32 %v22811_v10, %v22773_v49 }
 0x3cc   :  { %23505 = vtanh.f32 %v22863_v62  ;;  %v22852_v24 = vmul.f32 %v26166_v32, %v22841_v13  ;;  %v22853_v19 = vmul.f32 %v26166_v32, %v22847_v46 }
 0x3cd   :  { %23507 = vtanh.f32 %v22864_v53 }
 0x3ce   :  { %v22861_v31 = vadd.f32 %v22852_v24, %v22814_v27  ;;  %v22862_v11 = vadd.f32 %v22853_v19, %v22815_v17  ;;  %v22840_v36 = vpop.permute.xlu1 %22839 }
 0x3cf   :  { %v22843_v12 = vsel %vm26838_vm10, %v22834_v30, %v22840_v36  ;;  %v22849_v44 = vsel %vm26839_vm5, %v22840_v36, %v22828_v47 }
 0x3d0   :  { %23509 = vtanh.f32 %v22861_v31  ;;  %v22858_v48 = vmul.f32 %v26166_v32, %v22843_v12  ;;  %v22859_v61 = vmul.f32 %v26166_v32, %v22849_v44 }
 0x3d1   :  { %v23500_v50 = vpop.eup %23499  ;;  %23511 = vtanh.f32 %v22862_v11 }
 0x3d2   :  { %v22878_v26 = vsel %vm23771_vm0, %v23500_v50, 0.0  ;;  %v22867_v58 = vadd.f32 %v22858_v48, %v22820_v1  ;;  %v22868_v37 = vadd.f32 %v22859_v61, %v22821_v28 }
 0x3d3   :  { %22887 = vst [vmem:[%s26336_s7] sm:$0xff] %v22878_v26 }
 0x3d4   :  { %23513 = vtanh.f32 %v22867_v58 }
 0x3d5   :  { %v23502_v16 = vpop.eup %23501  ;;  %23515 = vtanh.f32 %v22868_v37 }
 0x3d6   :  { %v22884_v30 = vsel %vm23833_vm7, %v23502_v16, 0.0 }
 0x3d7   :  { %22893 = vst [vmem:[%s26336_s7 + $0x30] sm:$0xff] %v22884_v30 }
 0x3d8   :  { %v23504_v32 = vpop.eup %23503 }
 0x3d9   :  { %v23506_v59 = vpop.eup %23505  ;;  %v22883_v52 = vsel %vm23822_vm14, %v23504_v32, 0.0 }
 0x3da   :  { %v23508_v9 = vpop.eup %23507  ;;  %22892 = vst [vmem:[%s26336_s7 + $0x28] sm:$0xff] %v22883_v52  ;;  %v22881_v54 = vsel %vm23798_vm4, %v23506_v59, 0.0 }
 0x3db   :  { %v22882_v7 = vsel %vm23810_vm9, %v23508_v9, 0.0  ;;  %22890 = vst [vmem:[%s26336_s7 + $0x18] sm:$0xff] %v22881_v54 }
 0x3dc   :  { %22891 = vst [vmem:[%s26336_s7 + $0x20] sm:$0xff] %v22882_v7 }
 0x3dd   :  { %v23510_v18 = vpop.eup %23509 }
 0x3de   :  { %v23512_v22 = vpop.eup %23511  ;;  %v22879_v15 = vsel %vm23777_vm13, %v23510_v18, 0.0 }
 0x3df   :  { %v22880_v63 = vsel %vm23786_vm1, %v23512_v22, 0.0  ;;  %22888 = vst [vmem:[%s26336_s7 + $0x8] sm:$0xff] %v22879_v15 }
 0x3e0   :  { %22889 = vst [vmem:[%s26336_s7 + $0x10] sm:$0xff] %v22880_v63 }
 0x3e1   :  { %v23514_v23 = vpop.eup %23513 }
 0x3e2   :  { %v23516_v14 = vpop.eup %23515  ;;  %v22885_v35 = vsel %vm23844_vm8, %v23514_v23, 0.0 }
 0x3e3   :  { %v22886_v6 = vsel %vm23855_vm12, %v23516_v14, 0.0  ;;  %22894 = vst [vmem:[%s26336_s7 + $0x38] sm:$0xff] %v22885_v35 }
 0x3e4   :  { %22895 = vst [vmem:[%s26336_s7 + $0x40] sm:$0xff] %v22886_v6 }
 0x3e5   :  { %22900 = vsyncpa [#allocation5], 1 }
 0x3e6   :  { %22901 = vsyncpa [#allocation7], 1 }
 0x3e7   :  { %22902 = vsyncpa [#allocation10], 1 }

</bundles_post_ra>
